<compile_context>
chip_gen: v7x
topology: tpu7x:2x2x1
jax: 0.10.0
libtpu: 0.0.40
codegen_flags: <defaults>
</compile_context>

<pallas_src>
import functools

import jax
import jax.numpy as jnp
from jax.experimental import pallas as pl
from jax.experimental.pallas import tpu as pltpu

EPS = 1e-5
F32 = jnp.float32
BF16 = jnp.bfloat16


# ---------------------------------------------------------------------------
# In-kernel helpers.
# ---------------------------------------------------------------------------
def _bn_train(y, gb):
    """Training-mode BatchNorm1d folded into a single per-channel scale/shift
    FMA, using one-pass moments (stats stay f32, variance clamped at 0).
    y: (M, C) f32;  gb: (2, C) f32 with gb[0] = gamma, gb[1] = beta."""
    mean = jnp.mean(y, axis=0, keepdims=True)
    mean_sq = jnp.mean(y * y, axis=0, keepdims=True)
    var = jnp.maximum(mean_sq - mean * mean, 0.0)
    scale = gb[0:1, :] * jax.lax.rsqrt(var + EPS)
    shift = gb[1:2, :] - mean * scale
    return y * scale + shift


def _bn_relu(y, gb):
    return jnp.maximum(_bn_train(y, gb), 0.0)


def _bn_relu_bf16(y, gb):
    # Cast once after ReLU: next consumer is a bf16 MXU matmul anyway.
    return _bn_relu(y, gb).astype(BF16)


def _mxu(x_bf16, w_bf16):
    """bf16 MXU matmul with f32 accumulation (weights pre-cast in wrapper)."""
    return jnp.dot(x_bf16, w_bf16, preferred_element_type=F32)


def _small_cin_matmul(x, w):
    """Cin == point_dim (3): VPU FMAs instead of a padded K=3 MXU pass.
    x: (M, pd) f32, w: (pd, Cout) f32 -> (M, Cout) f32."""
    acc = x[:, 0:1] * w[0:1, :]
    for k in range(1, x.shape[1]):
        acc = acc + x[:, k:k + 1] * w[k:k + 1, :]
    return acc


# ---------------------------------------------------------------------------
# Single fused kernel: encoder + max-pool + concat + decoder.
# ---------------------------------------------------------------------------
def _denoiser_kernel(x_ref,
                     ew1, egb1, ew2, egb2, ew3, egb3, ew4, egb4, ew5, egb5,
                     dwx1, dwf1, dgb1, dw2, dgb2, dw3, dgb3, dw4, dgb4,
                     dw5, dgb5,
                     out_ref, *, batch, npts):
    x = x_ref[...]                                               # (M, pd) f32

    # -------- encoder: 5x (conv1x1 + BN + ReLU) --------
    h = _bn_relu_bf16(_small_cin_matmul(x, ew1[...]), egb1[...])   # (M, 64)
    h = _bn_relu_bf16(_mxu(h, ew2[...]), egb2[...])                # (M, 64)
    h = _bn_relu_bf16(_mxu(h, ew3[...]), egb3[...])                # (M, 64)
    h = _bn_relu_bf16(_mxu(h, ew4[...]), egb4[...])                # (M, 128)
    h5 = _bn_relu(_mxu(h, ew5[...]), egb5[...])                    # (M, 1024) f32

    # Global max over the point axis, fused (no HBM round-trip for the
    # (M, 1024) activation).  One vectorized reduce over a (B, N, C) view
    # (layout-free because npts % 8 == 0).
    feat_dim = h5.shape[-1]
    feat = jnp.max(h5.reshape(batch, npts, feat_dim), axis=1)      # (B, 1024)
    feat = feat.astype(BF16)

    # -------- decoder --------
    # Layer 1 (input = concat(x, feat)) is split so the (M, 1024) feature
    # broadcast is never materialized:  x @ Wx (VPU) + rows(feat @ Wf) (MXU).
    yx = _small_cin_matmul(x, dwx1[...])                           # (M, 512) f32
    yf = _mxu(feat, dwf1[...])                                     # (B, 512) f32
    c1 = yx.shape[-1]
    y1 = (yx.reshape(batch, npts, c1) + yf[:, None, :]
          ).reshape(batch * npts, c1)                              # (M, 512)

    h = _bn_relu_bf16(y1, dgb1[...])                               # (M, 512)
    h = _bn_relu_bf16(_mxu(h, dw2[...]), dgb2[...])                # (M, 256)
    h = _bn_relu_bf16(_mxu(h, dw3[...]), dgb3[...])                # (M, 128)
    h = _bn_relu_bf16(_mxu(h, dw4[...]), dgb4[...])                # (M, 64)

    # Last layer: conv1x1 + BN, no ReLU.
    out_ref[...] = _bn_train(_mxu(h, dw5[...]), dgb5[...])         # (M, pd) f32


# ---------------------------------------------------------------------------
# Parameters (shapes follow the PyTorch module; deterministic init).
# ---------------------------------------------------------------------------
def _make_layer(key, cin, cout):
    kw, kb, kg, kbe = jax.random.split(key, 4)
    w = jax.random.normal(kw, (cin, cout), F32) * (1.0 / jnp.sqrt(cin))
    # Conv bias kept for parity with the torch module (use_bias=True) but it
    # is exactly cancelled by training-mode BN mean subtraction, so the
    # kernel never loads it.
    b = jax.random.normal(kb, (1, cout), F32) * 0.01
    gamma = 1.0 + 0.1 * jax.random.normal(kg, (1, cout), F32)
    beta = 0.1 * jax.random.normal(kbe, (1, cout), F32)
    return {"w": w, "b": b, "gb": jnp.concatenate([gamma, beta], axis=0)}


def init_params(key, point_dim=3, feat_dim=1024):
    enc_dims = [(point_dim, 64), (64, 64), (64, 64), (64, 128), (128, feat_dim)]
    dec_dims = [(point_dim + feat_dim, 512), (512, 256), (256, 128), (128, 64),
                (64, point_dim)]
    keys = jax.random.split(key, len(enc_dims) + len(dec_dims))
    encoder = [_make_layer(k, ci, co) for k, (ci, co) in zip(keys[:5], enc_dims)]
    decoder = [_make_layer(k, ci, co) for k, (ci, co) in zip(keys[5:], dec_dims)]
    return {"encoder": encoder, "decoder": decoder}


# ---------------------------------------------------------------------------
# Full forward:  (B, point_dim, N) -> (B, point_dim, N)
# ---------------------------------------------------------------------------
_VMEM = pl.BlockSpec(memory_space=pltpu.MemorySpace.VMEM)


def pointnet_denoiser_forward(x_ncl, params):
    B, pd, N = x_ncl.shape
    assert N % 8 == 0, "N must be sublane-aligned for layout-free reshapes"
    M = B * N
    # points-major, channels on lanes
    x2d = jnp.transpose(x_ncl, (0, 2, 1)).reshape(M, pd)

    enc = params["encoder"]
    dec = params["decoder"]

    # Assemble kernel args.  MXU-path weights pre-cast to bf16 (halves weight
    # DMA + VMEM bytes); VPU-path (Cin = pd) weights and BN params stay f32.
    args = [x2d]
    args += [enc[0]["w"], enc[0]["gb"]]                      # encoder layer 1 (VPU)
    for layer in enc[1:]:
        args += [layer["w"].astype(BF16), layer["gb"]]       # encoder layers 2..5

    w1 = dec[0]["w"]                                         # (pd + 1024, 512)
    args += [w1[:pd, :], w1[pd:, :].astype(BF16), dec[0]["gb"]]
    for layer in dec[1:]:
        args += [layer["w"].astype(BF16), layer["gb"]]       # decoder layers 2..5

    out2d = pl.pallas_call(
        functools.partial(_denoiser_kernel, batch=B, npts=N),
        out_shape=jax.ShapeDtypeStruct((M, pd), F32),
        in_specs=[_VMEM] * len(args),
        out_specs=_VMEM,
    )(*args)

    return out2d.reshape(B, N, pd).transpose(0, 2, 1)        # back to (B, C, N)


if __name__ == "__main__":
    key = jax.random.PRNGKey(0)
    k_x, k_p = jax.random.split(key)

    B, point_dim, N = 2, 3, 64
    x = jax.random.normal(k_x, (B, point_dim, N), F32)
    params = init_params(k_p, point_dim=point_dim)

    fwd = jax.jit(pointnet_denoiser_forward)
    out = fwd(x, params)
    jax.block_until_ready(out)

    assert out.shape == (B, point_dim, N), out.shape
    assert bool(jnp.all(jnp.isfinite(out)))
    print("KERNEL_OK")
</pallas_src>

<mosaic_0001>
module attributes {stable_mosaic.version = 11 : i64} {
  func.func @_denoiser_kernel(%arg0: memref<128x3xf32, #tpu.memory_space<vmem>>, %arg1: memref<3x64xf32, #tpu.memory_space<vmem>>, %arg2: memref<2x64xf32, #tpu.memory_space<vmem>>, %arg3: memref<64x64xbf16, #tpu.memory_space<vmem>>, %arg4: memref<2x64xf32, #tpu.memory_space<vmem>>, %arg5: memref<64x64xbf16, #tpu.memory_space<vmem>>, %arg6: memref<2x64xf32, #tpu.memory_space<vmem>>, %arg7: memref<64x128xbf16, #tpu.memory_space<vmem>>, %arg8: memref<2x128xf32, #tpu.memory_space<vmem>>, %arg9: memref<128x1024xbf16, #tpu.memory_space<vmem>>, %arg10: memref<2x1024xf32, #tpu.memory_space<vmem>>, %arg11: memref<3x512xf32, #tpu.memory_space<vmem>>, %arg12: memref<1024x512xbf16, #tpu.memory_space<vmem>>, %arg13: memref<2x512xf32, #tpu.memory_space<vmem>>, %arg14: memref<512x256xbf16, #tpu.memory_space<vmem>>, %arg15: memref<2x256xf32, #tpu.memory_space<vmem>>, %arg16: memref<256x128xbf16, #tpu.memory_space<vmem>>, %arg17: memref<2x128xf32, #tpu.memory_space<vmem>>, %arg18: memref<128x64xbf16, #tpu.memory_space<vmem>>, %arg19: memref<2x64xf32, #tpu.memory_space<vmem>>, %arg20: memref<64x3xbf16, #tpu.memory_space<vmem>>, %arg21: memref<2x3xf32, #tpu.memory_space<vmem>>, %arg22: memref<128x3xf32, #tpu.memory_space<vmem>>) attributes {dimension_semantics = [], scalar_prefetch = 0 : i64, scratch_operands = 0 : i64, tpu.core_type = #tpu.core_type<tc>} {
    %c0 = arith.constant 0 : index
    %c0_0 = arith.constant 0 : index
    %0 = vector.load %arg0[%c0, %c0_0] : memref<128x3xf32, #tpu.memory_space<vmem>>, vector<128x3xf32>
    %c0_1 = arith.constant 0 : index
    %c0_2 = arith.constant 0 : index
    %1 = vector.load %arg1[%c0_1, %c0_2] : memref<3x64xf32, #tpu.memory_space<vmem>>, vector<3x64xf32>
    %2 = vector.extract_strided_slice %0 {offsets = [0, 0], sizes = [128, 1], strides = [1, 1]} : vector<128x3xf32> to vector<128x1xf32>
    %3 = vector.extract_strided_slice %1 {offsets = [0, 0], sizes = [1, 64], strides = [1, 1]} : vector<3x64xf32> to vector<1x64xf32>
    %4 = vector.broadcast %2 : vector<128x1xf32> to vector<128x64xf32>
    %5 = vector.broadcast %3 : vector<1x64xf32> to vector<128x64xf32>
    %6 = arith.mulf %4, %5 : vector<128x64xf32>
    %7 = vector.extract_strided_slice %0 {offsets = [0, 1], sizes = [128, 1], strides = [1, 1]} : vector<128x3xf32> to vector<128x1xf32>
    %8 = vector.extract_strided_slice %1 {offsets = [1, 0], sizes = [1, 64], strides = [1, 1]} : vector<3x64xf32> to vector<1x64xf32>
    %9 = vector.broadcast %7 : vector<128x1xf32> to vector<128x64xf32>
    %10 = vector.broadcast %8 : vector<1x64xf32> to vector<128x64xf32>
    %11 = arith.mulf %9, %10 : vector<128x64xf32>
    %12 = arith.addf %6, %11 : vector<128x64xf32>
    %13 = vector.extract_strided_slice %0 {offsets = [0, 2], sizes = [128, 1], strides = [1, 1]} : vector<128x3xf32> to vector<128x1xf32>
    %14 = vector.extract_strided_slice %1 {offsets = [2, 0], sizes = [1, 64], strides = [1, 1]} : vector<3x64xf32> to vector<1x64xf32>
    %15 = vector.broadcast %13 : vector<128x1xf32> to vector<128x64xf32>
    %16 = vector.broadcast %14 : vector<1x64xf32> to vector<128x64xf32>
    %17 = arith.mulf %15, %16 : vector<128x64xf32>
    %18 = arith.addf %12, %17 : vector<128x64xf32>
    %c0_3 = arith.constant 0 : index
    %c0_4 = arith.constant 0 : index
    %19 = vector.load %arg2[%c0_3, %c0_4] : memref<2x64xf32, #tpu.memory_space<vmem>>, vector<2x64xf32>
    %cst = arith.constant dense<0.000000e+00> : vector<64xf32>
    %20 = vector.multi_reduction <add>, %18, %cst [0] : vector<128x64xf32> to vector<64xf32>
    %21 = vector.shape_cast %20 : vector<64xf32> to vector<1x64xf32>
    %cst_5 = arith.constant 1.280000e+02 : f32
    %22 = vector.broadcast %cst_5 : f32 to vector<1x64xf32>
    %23 = arith.divf %21, %22 : vector<1x64xf32>
    %24 = arith.mulf %18, %18 : vector<128x64xf32>
    %cst_6 = arith.constant dense<0.000000e+00> : vector<64xf32>
    %25 = vector.multi_reduction <add>, %24, %cst_6 [0] : vector<128x64xf32> to vector<64xf32>
    %26 = vector.shape_cast %25 : vector<64xf32> to vector<1x64xf32>
    %cst_7 = arith.constant 1.280000e+02 : f32
    %27 = vector.broadcast %cst_7 : f32 to vector<1x64xf32>
    %28 = arith.divf %26, %27 : vector<1x64xf32>
    %29 = arith.mulf %23, %23 : vector<1x64xf32>
    %30 = arith.subf %28, %29 : vector<1x64xf32>
    %cst_8 = arith.constant 0.000000e+00 : f32
    %31 = vector.broadcast %cst_8 : f32 to vector<1x64xf32>
    %32 = arith.maximumf %30, %31 : vector<1x64xf32>
    %33 = vector.extract_strided_slice %19 {offsets = [0, 0], sizes = [1, 64], strides = [1, 1]} : vector<2x64xf32> to vector<1x64xf32>
    %cst_9 = arith.constant 9.99999974E-6 : f32
    %34 = vector.broadcast %cst_9 : f32 to vector<1x64xf32>
    %35 = arith.addf %32, %34 : vector<1x64xf32>
    %36 = math.rsqrt %35 : vector<1x64xf32>
    %37 = arith.mulf %33, %36 : vector<1x64xf32>
    %38 = vector.extract_strided_slice %19 {offsets = [1, 0], sizes = [1, 64], strides = [1, 1]} : vector<2x64xf32> to vector<1x64xf32>
    %39 = arith.mulf %23, %37 : vector<1x64xf32>
    %40 = arith.subf %38, %39 : vector<1x64xf32>
    %41 = vector.broadcast %37 : vector<1x64xf32> to vector<128x64xf32>
    %42 = arith.mulf %18, %41 : vector<128x64xf32>
    %43 = vector.broadcast %40 : vector<1x64xf32> to vector<128x64xf32>
    %44 = arith.addf %42, %43 : vector<128x64xf32>
    %cst_10 = arith.constant 0.000000e+00 : f32
    %45 = vector.broadcast %cst_10 : f32 to vector<128x64xf32>
    %46 = arith.maximumf %44, %45 : vector<128x64xf32>
    %47 = arith.truncf %46 : vector<128x64xf32> to vector<128x64xbf16>
    %c0_11 = arith.constant 0 : index
    %c0_12 = arith.constant 0 : index
    %48 = vector.load %arg3[%c0_11, %c0_12] : memref<64x64xbf16, #tpu.memory_space<vmem>>, vector<64x64xbf16>
    %cst_13 = arith.constant dense<0.000000e+00> : vector<128x64xf32>
    %49 = tpu.matmul %47, %48, %cst_13 {dimension_numbers = #tpu.dot_dimension_numbers<[1], [0], [0], [1], [0, 0, 1, 1], [], []>} : vector<128x64xbf16>, vector<64x64xbf16>, vector<128x64xf32> -> vector<128x64xf32>
    %c0_14 = arith.constant 0 : index
    %c0_15 = arith.constant 0 : index
    %50 = vector.load %arg4[%c0_14, %c0_15] : memref<2x64xf32, #tpu.memory_space<vmem>>, vector<2x64xf32>
    %cst_16 = arith.constant dense<0.000000e+00> : vector<64xf32>
    %51 = vector.multi_reduction <add>, %49, %cst_16 [0] : vector<128x64xf32> to vector<64xf32>
    %52 = vector.shape_cast %51 : vector<64xf32> to vector<1x64xf32>
    %cst_17 = arith.constant 1.280000e+02 : f32
    %53 = vector.broadcast %cst_17 : f32 to vector<1x64xf32>
    %54 = arith.divf %52, %53 : vector<1x64xf32>
    %55 = arith.mulf %49, %49 : vector<128x64xf32>
    %cst_18 = arith.constant dense<0.000000e+00> : vector<64xf32>
    %56 = vector.multi_reduction <add>, %55, %cst_18 [0] : vector<128x64xf32> to vector<64xf32>
    %57 = vector.shape_cast %56 : vector<64xf32> to vector<1x64xf32>
    %cst_19 = arith.constant 1.280000e+02 : f32
    %58 = vector.broadcast %cst_19 : f32 to vector<1x64xf32>
    %59 = arith.divf %57, %58 : vector<1x64xf32>
    %60 = arith.mulf %54, %54 : vector<1x64xf32>
    %61 = arith.subf %59, %60 : vector<1x64xf32>
    %cst_20 = arith.constant 0.000000e+00 : f32
    %62 = vector.broadcast %cst_20 : f32 to vector<1x64xf32>
    %63 = arith.maximumf %61, %62 : vector<1x64xf32>
    %64 = vector.extract_strided_slice %50 {offsets = [0, 0], sizes = [1, 64], strides = [1, 1]} : vector<2x64xf32> to vector<1x64xf32>
    %cst_21 = arith.constant 9.99999974E-6 : f32
    %65 = vector.broadcast %cst_21 : f32 to vector<1x64xf32>
    %66 = arith.addf %63, %65 : vector<1x64xf32>
    %67 = math.rsqrt %66 : vector<1x64xf32>
    %68 = arith.mulf %64, %67 : vector<1x64xf32>
    %69 = vector.extract_strided_slice %50 {offsets = [1, 0], sizes = [1, 64], strides = [1, 1]} : vector<2x64xf32> to vector<1x64xf32>
    %70 = arith.mulf %54, %68 : vector<1x64xf32>
    %71 = arith.subf %69, %70 : vector<1x64xf32>
    %72 = vector.broadcast %68 : vector<1x64xf32> to vector<128x64xf32>
    %73 = arith.mulf %49, %72 : vector<128x64xf32>
    %74 = vector.broadcast %71 : vector<1x64xf32> to vector<128x64xf32>
    %75 = arith.addf %73, %74 : vector<128x64xf32>
    %cst_22 = arith.constant 0.000000e+00 : f32
    %76 = vector.broadcast %cst_22 : f32 to vector<128x64xf32>
    %77 = arith.maximumf %75, %76 : vector<128x64xf32>
    %78 = arith.truncf %77 : vector<128x64xf32> to vector<128x64xbf16>
    %c0_23 = arith.constant 0 : index
    %c0_24 = arith.constant 0 : index
    %79 = vector.load %arg5[%c0_23, %c0_24] : memref<64x64xbf16, #tpu.memory_space<vmem>>, vector<64x64xbf16>
    %cst_25 = arith.constant dense<0.000000e+00> : vector<128x64xf32>
    %80 = tpu.matmul %78, %79, %cst_25 {dimension_numbers = #tpu.dot_dimension_numbers<[1], [0], [0], [1], [0, 0, 1, 1], [], []>} : vector<128x64xbf16>, vector<64x64xbf16>, vector<128x64xf32> -> vector<128x64xf32>
    %c0_26 = arith.constant 0 : index
    %c0_27 = arith.constant 0 : index
    %81 = vector.load %arg6[%c0_26, %c0_27] : memref<2x64xf32, #tpu.memory_space<vmem>>, vector<2x64xf32>
    %cst_28 = arith.constant dense<0.000000e+00> : vector<64xf32>
    %82 = vector.multi_reduction <add>, %80, %cst_28 [0] : vector<128x64xf32> to vector<64xf32>
    %83 = vector.shape_cast %82 : vector<64xf32> to vector<1x64xf32>
    %cst_29 = arith.constant 1.280000e+02 : f32
    %84 = vector.broadcast %cst_29 : f32 to vector<1x64xf32>
    %85 = arith.divf %83, %84 : vector<1x64xf32>
    %86 = arith.mulf %80, %80 : vector<128x64xf32>
    %cst_30 = arith.constant dense<0.000000e+00> : vector<64xf32>
    %87 = vector.multi_reduction <add>, %86, %cst_30 [0] : vector<128x64xf32> to vector<64xf32>
    %88 = vector.shape_cast %87 : vector<64xf32> to vector<1x64xf32>
    %cst_31 = arith.constant 1.280000e+02 : f32
    %89 = vector.broadcast %cst_31 : f32 to vector<1x64xf32>
    %90 = arith.divf %88, %89 : vector<1x64xf32>
    %91 = arith.mulf %85, %85 : vector<1x64xf32>
    %92 = arith.subf %90, %91 : vector<1x64xf32>
    %cst_32 = arith.constant 0.000000e+00 : f32
    %93 = vector.broadcast %cst_32 : f32 to vector<1x64xf32>
    %94 = arith.maximumf %92, %93 : vector<1x64xf32>
    %95 = vector.extract_strided_slice %81 {offsets = [0, 0], sizes = [1, 64], strides = [1, 1]} : vector<2x64xf32> to vector<1x64xf32>
    %cst_33 = arith.constant 9.99999974E-6 : f32
    %96 = vector.broadcast %cst_33 : f32 to vector<1x64xf32>
    %97 = arith.addf %94, %96 : vector<1x64xf32>
    %98 = math.rsqrt %97 : vector<1x64xf32>
    %99 = arith.mulf %95, %98 : vector<1x64xf32>
    %100 = vector.extract_strided_slice %81 {offsets = [1, 0], sizes = [1, 64], strides = [1, 1]} : vector<2x64xf32> to vector<1x64xf32>
    %101 = arith.mulf %85, %99 : vector<1x64xf32>
    %102 = arith.subf %100, %101 : vector<1x64xf32>
    %103 = vector.broadcast %99 : vector<1x64xf32> to vector<128x64xf32>
    %104 = arith.mulf %80, %103 : vector<128x64xf32>
    %105 = vector.broadcast %102 : vector<1x64xf32> to vector<128x64xf32>
    %106 = arith.addf %104, %105 : vector<128x64xf32>
    %cst_34 = arith.constant 0.000000e+00 : f32
    %107 = vector.broadcast %cst_34 : f32 to vector<128x64xf32>
    %108 = arith.maximumf %106, %107 : vector<128x64xf32>
    %109 = arith.truncf %108 : vector<128x64xf32> to vector<128x64xbf16>
    %c0_35 = arith.constant 0 : index
    %c0_36 = arith.constant 0 : index
    %110 = vector.load %arg7[%c0_35, %c0_36] : memref<64x128xbf16, #tpu.memory_space<vmem>>, vector<64x128xbf16>
    %cst_37 = arith.constant dense<0.000000e+00> : vector<128x128xf32>
    %111 = tpu.matmul %109, %110, %cst_37 {dimension_numbers = #tpu.dot_dimension_numbers<[1], [0], [0], [1], [0, 0, 1, 1], [], []>} : vector<128x64xbf16>, vector<64x128xbf16>, vector<128x128xf32> -> vector<128x128xf32>
    %c0_38 = arith.constant 0 : index
    %c0_39 = arith.constant 0 : index
    %112 = vector.load %arg8[%c0_38, %c0_39] : memref<2x128xf32, #tpu.memory_space<vmem>>, vector<2x128xf32>
    %cst_40 = arith.constant dense<0.000000e+00> : vector<128xf32>
    %113 = vector.multi_reduction <add>, %111, %cst_40 [0] : vector<128x128xf32> to vector<128xf32>
    %114 = vector.shape_cast %113 : vector<128xf32> to vector<1x128xf32>
    %cst_41 = arith.constant 1.280000e+02 : f32
    %115 = vector.broadcast %cst_41 : f32 to vector<1x128xf32>
    %116 = arith.divf %114, %115 : vector<1x128xf32>
    %117 = arith.mulf %111, %111 : vector<128x128xf32>
    %cst_42 = arith.constant dense<0.000000e+00> : vector<128xf32>
    %118 = vector.multi_reduction <add>, %117, %cst_42 [0] : vector<128x128xf32> to vector<128xf32>
    %119 = vector.shape_cast %118 : vector<128xf32> to vector<1x128xf32>
    %cst_43 = arith.constant 1.280000e+02 : f32
    %120 = vector.broadcast %cst_43 : f32 to vector<1x128xf32>
    %121 = arith.divf %119, %120 : vector<1x128xf32>
    %122 = arith.mulf %116, %116 : vector<1x128xf32>
    %123 = arith.subf %121, %122 : vector<1x128xf32>
    %cst_44 = arith.constant 0.000000e+00 : f32
    %124 = vector.broadcast %cst_44 : f32 to vector<1x128xf32>
    %125 = arith.maximumf %123, %124 : vector<1x128xf32>
    %126 = vector.extract_strided_slice %112 {offsets = [0, 0], sizes = [1, 128], strides = [1, 1]} : vector<2x128xf32> to vector<1x128xf32>
    %cst_45 = arith.constant 9.99999974E-6 : f32
    %127 = vector.broadcast %cst_45 : f32 to vector<1x128xf32>
    %128 = arith.addf %125, %127 : vector<1x128xf32>
    %129 = math.rsqrt %128 : vector<1x128xf32>
    %130 = arith.mulf %126, %129 : vector<1x128xf32>
    %131 = vector.extract_strided_slice %112 {offsets = [1, 0], sizes = [1, 128], strides = [1, 1]} : vector<2x128xf32> to vector<1x128xf32>
    %132 = arith.mulf %116, %130 : vector<1x128xf32>
    %133 = arith.subf %131, %132 : vector<1x128xf32>
    %134 = vector.broadcast %130 : vector<1x128xf32> to vector<128x128xf32>
    %135 = arith.mulf %111, %134 : vector<128x128xf32>
    %136 = vector.broadcast %133 : vector<1x128xf32> to vector<128x128xf32>
    %137 = arith.addf %135, %136 : vector<128x128xf32>
    %cst_46 = arith.constant 0.000000e+00 : f32
    %138 = vector.broadcast %cst_46 : f32 to vector<128x128xf32>
    %139 = arith.maximumf %137, %138 : vector<128x128xf32>
    %140 = arith.truncf %139 : vector<128x128xf32> to vector<128x128xbf16>
    %c0_47 = arith.constant 0 : index
    %c0_48 = arith.constant 0 : index
    %141 = vector.load %arg9[%c0_47, %c0_48] : memref<128x1024xbf16, #tpu.memory_space<vmem>>, vector<128x1024xbf16>
    %cst_49 = arith.constant dense<0.000000e+00> : vector<128x1024xf32>
    %142 = tpu.matmul %140, %141, %cst_49 {dimension_numbers = #tpu.dot_dimension_numbers<[1], [0], [0], [1], [0, 0, 1, 1], [], []>} : vector<128x128xbf16>, vector<128x1024xbf16>, vector<128x1024xf32> -> vector<128x1024xf32>
    %c0_50 = arith.constant 0 : index
    %c0_51 = arith.constant 0 : index
    %143 = vector.load %arg10[%c0_50, %c0_51] : memref<2x1024xf32, #tpu.memory_space<vmem>>, vector<2x1024xf32>
    %cst_52 = arith.constant dense<0.000000e+00> : vector<1024xf32>
    %144 = vector.multi_reduction <add>, %142, %cst_52 [0] : vector<128x1024xf32> to vector<1024xf32>
    %145 = vector.shape_cast %144 : vector<1024xf32> to vector<1x1024xf32>
    %cst_53 = arith.constant 1.280000e+02 : f32
    %146 = vector.broadcast %cst_53 : f32 to vector<1x1024xf32>
    %147 = arith.divf %145, %146 : vector<1x1024xf32>
    %148 = arith.mulf %142, %142 : vector<128x1024xf32>
    %cst_54 = arith.constant dense<0.000000e+00> : vector<1024xf32>
    %149 = vector.multi_reduction <add>, %148, %cst_54 [0] : vector<128x1024xf32> to vector<1024xf32>
    %150 = vector.shape_cast %149 : vector<1024xf32> to vector<1x1024xf32>
    %cst_55 = arith.constant 1.280000e+02 : f32
    %151 = vector.broadcast %cst_55 : f32 to vector<1x1024xf32>
    %152 = arith.divf %150, %151 : vector<1x1024xf32>
    %153 = arith.mulf %147, %147 : vector<1x1024xf32>
    %154 = arith.subf %152, %153 : vector<1x1024xf32>
    %cst_56 = arith.constant 0.000000e+00 : f32
    %155 = vector.broadcast %cst_56 : f32 to vector<1x1024xf32>
    %156 = arith.maximumf %154, %155 : vector<1x1024xf32>
    %157 = vector.extract_strided_slice %143 {offsets = [0, 0], sizes = [1, 1024], strides = [1, 1]} : vector<2x1024xf32> to vector<1x1024xf32>
    %cst_57 = arith.constant 9.99999974E-6 : f32
    %158 = vector.broadcast %cst_57 : f32 to vector<1x1024xf32>
    %159 = arith.addf %156, %158 : vector<1x1024xf32>
    %160 = math.rsqrt %159 : vector<1x1024xf32>
    %161 = arith.mulf %157, %160 : vector<1x1024xf32>
    %162 = vector.extract_strided_slice %143 {offsets = [1, 0], sizes = [1, 1024], strides = [1, 1]} : vector<2x1024xf32> to vector<1x1024xf32>
    %163 = arith.mulf %147, %161 : vector<1x1024xf32>
    %164 = arith.subf %162, %163 : vector<1x1024xf32>
    %165 = vector.broadcast %161 : vector<1x1024xf32> to vector<128x1024xf32>
    %166 = arith.mulf %142, %165 : vector<128x1024xf32>
    %167 = vector.broadcast %164 : vector<1x1024xf32> to vector<128x1024xf32>
    %168 = arith.addf %166, %167 : vector<128x1024xf32>
    %cst_58 = arith.constant 0.000000e+00 : f32
    %169 = vector.broadcast %cst_58 : f32 to vector<128x1024xf32>
    %170 = arith.maximumf %168, %169 : vector<128x1024xf32>
    %171 = vector.shape_cast %170 : vector<128x1024xf32> to vector<2x64x1024xf32>
    %cst_59 = arith.constant dense<0xFF800000> : vector<2x1024xf32>
    %172 = vector.multi_reduction <maximumf>, %171, %cst_59 [1] : vector<2x64x1024xf32> to vector<2x1024xf32>
    %173 = arith.truncf %172 : vector<2x1024xf32> to vector<2x1024xbf16>
    %c0_60 = arith.constant 0 : index
    %c0_61 = arith.constant 0 : index
    %174 = vector.load %arg11[%c0_60, %c0_61] : memref<3x512xf32, #tpu.memory_space<vmem>>, vector<3x512xf32>
    %175 = vector.extract_strided_slice %0 {offsets = [0, 0], sizes = [128, 1], strides = [1, 1]} : vector<128x3xf32> to vector<128x1xf32>
    %176 = vector.extract_strided_slice %174 {offsets = [0, 0], sizes = [1, 512], strides = [1, 1]} : vector<3x512xf32> to vector<1x512xf32>
    %177 = vector.broadcast %175 : vector<128x1xf32> to vector<128x512xf32>
    %178 = vector.broadcast %176 : vector<1x512xf32> to vector<128x512xf32>
    %179 = arith.mulf %177, %178 : vector<128x512xf32>
    %180 = vector.extract_strided_slice %0 {offsets = [0, 1], sizes = [128, 1], strides = [1, 1]} : vector<128x3xf32> to vector<128x1xf32>
    %181 = vector.extract_strided_slice %174 {offsets = [1, 0], sizes = [1, 512], strides = [1, 1]} : vector<3x512xf32> to vector<1x512xf32>
    %182 = vector.broadcast %180 : vector<128x1xf32> to vector<128x512xf32>
    %183 = vector.broadcast %181 : vector<1x512xf32> to vector<128x512xf32>
    %184 = arith.mulf %182, %183 : vector<128x512xf32>
    %185 = arith.addf %179, %184 : vector<128x512xf32>
    %186 = vector.extract_strided_slice %0 {offsets = [0, 2], sizes = [128, 1], strides = [1, 1]} : vector<128x3xf32> to vector<128x1xf32>
    %187 = vector.extract_strided_slice %174 {offsets = [2, 0], sizes = [1, 512], strides = [1, 1]} : vector<3x512xf32> to vector<1x512xf32>
    %188 = vector.broadcast %186 : vector<128x1xf32> to vector<128x512xf32>
    %189 = vector.broadcast %187 : vector<1x512xf32> to vector<128x512xf32>
    %190 = arith.mulf %188, %189 : vector<128x512xf32>
    %191 = arith.addf %185, %190 : vector<128x512xf32>
    %c0_62 = arith.constant 0 : index
    %c0_63 = arith.constant 0 : index
    %192 = vector.load %arg12[%c0_62, %c0_63] : memref<1024x512xbf16, #tpu.memory_space<vmem>>, vector<1024x512xbf16>
    %cst_64 = arith.constant dense<0.000000e+00> : vector<2x512xf32>
    %193 = tpu.matmul %173, %192, %cst_64 {dimension_numbers = #tpu.dot_dimension_numbers<[1], [0], [0], [1], [0, 0, 1, 1], [], []>} : vector<2x1024xbf16>, vector<1024x512xbf16>, vector<2x512xf32> -> vector<2x512xf32>
    %194 = vector.shape_cast %191 : vector<128x512xf32> to vector<2x64x512xf32>
    %195 = vector.shape_cast %193 : vector<2x512xf32> to vector<2x1x512xf32>
    %196 = vector.broadcast %195 : vector<2x1x512xf32> to vector<2x64x512xf32>
    %197 = arith.addf %194, %196 : vector<2x64x512xf32>
    %198 = vector.shape_cast %197 : vector<2x64x512xf32> to vector<128x512xf32>
    %c0_65 = arith.constant 0 : index
    %c0_66 = arith.constant 0 : index
    %199 = vector.load %arg13[%c0_65, %c0_66] : memref<2x512xf32, #tpu.memory_space<vmem>>, vector<2x512xf32>
    %cst_67 = arith.constant dense<0.000000e+00> : vector<512xf32>
    %200 = vector.multi_reduction <add>, %198, %cst_67 [0] : vector<128x512xf32> to vector<512xf32>
    %201 = vector.shape_cast %200 : vector<512xf32> to vector<1x512xf32>
    %cst_68 = arith.constant 1.280000e+02 : f32
    %202 = vector.broadcast %cst_68 : f32 to vector<1x512xf32>
    %203 = arith.divf %201, %202 : vector<1x512xf32>
    %204 = arith.mulf %198, %198 : vector<128x512xf32>
    %cst_69 = arith.constant dense<0.000000e+00> : vector<512xf32>
    %205 = vector.multi_reduction <add>, %204, %cst_69 [0] : vector<128x512xf32> to vector<512xf32>
    %206 = vector.shape_cast %205 : vector<512xf32> to vector<1x512xf32>
    %cst_70 = arith.constant 1.280000e+02 : f32
    %207 = vector.broadcast %cst_70 : f32 to vector<1x512xf32>
    %208 = arith.divf %206, %207 : vector<1x512xf32>
    %209 = arith.mulf %203, %203 : vector<1x512xf32>
    %210 = arith.subf %208, %209 : vector<1x512xf32>
    %cst_71 = arith.constant 0.000000e+00 : f32
    %211 = vector.broadcast %cst_71 : f32 to vector<1x512xf32>
    %212 = arith.maximumf %210, %211 : vector<1x512xf32>
    %213 = vector.extract_strided_slice %199 {offsets = [0, 0], sizes = [1, 512], strides = [1, 1]} : vector<2x512xf32> to vector<1x512xf32>
    %cst_72 = arith.constant 9.99999974E-6 : f32
    %214 = vector.broadcast %cst_72 : f32 to vector<1x512xf32>
    %215 = arith.addf %212, %214 : vector<1x512xf32>
    %216 = math.rsqrt %215 : vector<1x512xf32>
    %217 = arith.mulf %213, %216 : vector<1x512xf32>
    %218 = vector.extract_strided_slice %199 {offsets = [1, 0], sizes = [1, 512], strides = [1, 1]} : vector<2x512xf32> to vector<1x512xf32>
    %219 = arith.mulf %203, %217 : vector<1x512xf32>
    %220 = arith.subf %218, %219 : vector<1x512xf32>
    %221 = vector.broadcast %217 : vector<1x512xf32> to vector<128x512xf32>
    %222 = arith.mulf %198, %221 : vector<128x512xf32>
    %223 = vector.broadcast %220 : vector<1x512xf32> to vector<128x512xf32>
    %224 = arith.addf %222, %223 : vector<128x512xf32>
    %cst_73 = arith.constant 0.000000e+00 : f32
    %225 = vector.broadcast %cst_73 : f32 to vector<128x512xf32>
    %226 = arith.maximumf %224, %225 : vector<128x512xf32>
    %227 = arith.truncf %226 : vector<128x512xf32> to vector<128x512xbf16>
    %c0_74 = arith.constant 0 : index
    %c0_75 = arith.constant 0 : index
    %228 = vector.load %arg14[%c0_74, %c0_75] : memref<512x256xbf16, #tpu.memory_space<vmem>>, vector<512x256xbf16>
    %cst_76 = arith.constant dense<0.000000e+00> : vector<128x256xf32>
    %229 = tpu.matmul %227, %228, %cst_76 {dimension_numbers = #tpu.dot_dimension_numbers<[1], [0], [0], [1], [0, 0, 1, 1], [], []>} : vector<128x512xbf16>, vector<512x256xbf16>, vector<128x256xf32> -> vector<128x256xf32>
    %c0_77 = arith.constant 0 : index
    %c0_78 = arith.constant 0 : index
    %230 = vector.load %arg15[%c0_77, %c0_78] : memref<2x256xf32, #tpu.memory_space<vmem>>, vector<2x256xf32>
    %cst_79 = arith.constant dense<0.000000e+00> : vector<256xf32>
    %231 = vector.multi_reduction <add>, %229, %cst_79 [0] : vector<128x256xf32> to vector<256xf32>
    %232 = vector.shape_cast %231 : vector<256xf32> to vector<1x256xf32>
    %cst_80 = arith.constant 1.280000e+02 : f32
    %233 = vector.broadcast %cst_80 : f32 to vector<1x256xf32>
    %234 = arith.divf %232, %233 : vector<1x256xf32>
    %235 = arith.mulf %229, %229 : vector<128x256xf32>
    %cst_81 = arith.constant dense<0.000000e+00> : vector<256xf32>
    %236 = vector.multi_reduction <add>, %235, %cst_81 [0] : vector<128x256xf32> to vector<256xf32>
    %237 = vector.shape_cast %236 : vector<256xf32> to vector<1x256xf32>
    %cst_82 = arith.constant 1.280000e+02 : f32
    %238 = vector.broadcast %cst_82 : f32 to vector<1x256xf32>
    %239 = arith.divf %237, %238 : vector<1x256xf32>
    %240 = arith.mulf %234, %234 : vector<1x256xf32>
    %241 = arith.subf %239, %240 : vector<1x256xf32>
    %cst_83 = arith.constant 0.000000e+00 : f32
    %242 = vector.broadcast %cst_83 : f32 to vector<1x256xf32>
    %243 = arith.maximumf %241, %242 : vector<1x256xf32>
    %244 = vector.extract_strided_slice %230 {offsets = [0, 0], sizes = [1, 256], strides = [1, 1]} : vector<2x256xf32> to vector<1x256xf32>
    %cst_84 = arith.constant 9.99999974E-6 : f32
    %245 = vector.broadcast %cst_84 : f32 to vector<1x256xf32>
    %246 = arith.addf %243, %245 : vector<1x256xf32>
    %247 = math.rsqrt %246 : vector<1x256xf32>
    %248 = arith.mulf %244, %247 : vector<1x256xf32>
    %249 = vector.extract_strided_slice %230 {offsets = [1, 0], sizes = [1, 256], strides = [1, 1]} : vector<2x256xf32> to vector<1x256xf32>
    %250 = arith.mulf %234, %248 : vector<1x256xf32>
    %251 = arith.subf %249, %250 : vector<1x256xf32>
    %252 = vector.broadcast %248 : vector<1x256xf32> to vector<128x256xf32>
    %253 = arith.mulf %229, %252 : vector<128x256xf32>
    %254 = vector.broadcast %251 : vector<1x256xf32> to vector<128x256xf32>
    %255 = arith.addf %253, %254 : vector<128x256xf32>
    %cst_85 = arith.constant 0.000000e+00 : f32
    %256 = vector.broadcast %cst_85 : f32 to vector<128x256xf32>
    %257 = arith.maximumf %255, %256 : vector<128x256xf32>
    %258 = arith.truncf %257 : vector<128x256xf32> to vector<128x256xbf16>
    %c0_86 = arith.constant 0 : index
    %c0_87 = arith.constant 0 : index
    %259 = vector.load %arg16[%c0_86, %c0_87] : memref<256x128xbf16, #tpu.memory_space<vmem>>, vector<256x128xbf16>
    %cst_88 = arith.constant dense<0.000000e+00> : vector<128x128xf32>
    %260 = tpu.matmul %258, %259, %cst_88 {dimension_numbers = #tpu.dot_dimension_numbers<[1], [0], [0], [1], [0, 0, 1, 1], [], []>} : vector<128x256xbf16>, vector<256x128xbf16>, vector<128x128xf32> -> vector<128x128xf32>
    %c0_89 = arith.constant 0 : index
    %c0_90 = arith.constant 0 : index
    %261 = vector.load %arg17[%c0_89, %c0_90] : memref<2x128xf32, #tpu.memory_space<vmem>>, vector<2x128xf32>
    %cst_91 = arith.constant dense<0.000000e+00> : vector<128xf32>
    %262 = vector.multi_reduction <add>, %260, %cst_91 [0] : vector<128x128xf32> to vector<128xf32>
    %263 = vector.shape_cast %262 : vector<128xf32> to vector<1x128xf32>
    %cst_92 = arith.constant 1.280000e+02 : f32
    %264 = vector.broadcast %cst_92 : f32 to vector<1x128xf32>
    %265 = arith.divf %263, %264 : vector<1x128xf32>
    %266 = arith.mulf %260, %260 : vector<128x128xf32>
    %cst_93 = arith.constant dense<0.000000e+00> : vector<128xf32>
    %267 = vector.multi_reduction <add>, %266, %cst_93 [0] : vector<128x128xf32> to vector<128xf32>
    %268 = vector.shape_cast %267 : vector<128xf32> to vector<1x128xf32>
    %cst_94 = arith.constant 1.280000e+02 : f32
    %269 = vector.broadcast %cst_94 : f32 to vector<1x128xf32>
    %270 = arith.divf %268, %269 : vector<1x128xf32>
    %271 = arith.mulf %265, %265 : vector<1x128xf32>
    %272 = arith.subf %270, %271 : vector<1x128xf32>
    %cst_95 = arith.constant 0.000000e+00 : f32
    %273 = vector.broadcast %cst_95 : f32 to vector<1x128xf32>
    %274 = arith.maximumf %272, %273 : vector<1x128xf32>
    %275 = vector.extract_strided_slice %261 {offsets = [0, 0], sizes = [1, 128], strides = [1, 1]} : vector<2x128xf32> to vector<1x128xf32>
    %cst_96 = arith.constant 9.99999974E-6 : f32
    %276 = vector.broadcast %cst_96 : f32 to vector<1x128xf32>
    %277 = arith.addf %274, %276 : vector<1x128xf32>
    %278 = math.rsqrt %277 : vector<1x128xf32>
    %279 = arith.mulf %275, %278 : vector<1x128xf32>
    %280 = vector.extract_strided_slice %261 {offsets = [1, 0], sizes = [1, 128], strides = [1, 1]} : vector<2x128xf32> to vector<1x128xf32>
    %281 = arith.mulf %265, %279 : vector<1x128xf32>
    %282 = arith.subf %280, %281 : vector<1x128xf32>
    %283 = vector.broadcast %279 : vector<1x128xf32> to vector<128x128xf32>
    %284 = arith.mulf %260, %283 : vector<128x128xf32>
    %285 = vector.broadcast %282 : vector<1x128xf32> to vector<128x128xf32>
    %286 = arith.addf %284, %285 : vector<128x128xf32>
    %cst_97 = arith.constant 0.000000e+00 : f32
    %287 = vector.broadcast %cst_97 : f32 to vector<128x128xf32>
    %288 = arith.maximumf %286, %287 : vector<128x128xf32>
    %289 = arith.truncf %288 : vector<128x128xf32> to vector<128x128xbf16>
    %c0_98 = arith.constant 0 : index
    %c0_99 = arith.constant 0 : index
    %290 = vector.load %arg18[%c0_98, %c0_99] : memref<128x64xbf16, #tpu.memory_space<vmem>>, vector<128x64xbf16>
    %cst_100 = arith.constant dense<0.000000e+00> : vector<128x64xf32>
    %291 = tpu.matmul %289, %290, %cst_100 {dimension_numbers = #tpu.dot_dimension_numbers<[1], [0], [0], [1], [0, 0, 1, 1], [], []>} : vector<128x128xbf16>, vector<128x64xbf16>, vector<128x64xf32> -> vector<128x64xf32>
    %c0_101 = arith.constant 0 : index
    %c0_102 = arith.constant 0 : index
    %292 = vector.load %arg19[%c0_101, %c0_102] : memref<2x64xf32, #tpu.memory_space<vmem>>, vector<2x64xf32>
    %cst_103 = arith.constant dense<0.000000e+00> : vector<64xf32>
    %293 = vector.multi_reduction <add>, %291, %cst_103 [0] : vector<128x64xf32> to vector<64xf32>
    %294 = vector.shape_cast %293 : vector<64xf32> to vector<1x64xf32>
    %cst_104 = arith.constant 1.280000e+02 : f32
    %295 = vector.broadcast %cst_104 : f32 to vector<1x64xf32>
    %296 = arith.divf %294, %295 : vector<1x64xf32>
    %297 = arith.mulf %291, %291 : vector<128x64xf32>
    %cst_105 = arith.constant dense<0.000000e+00> : vector<64xf32>
    %298 = vector.multi_reduction <add>, %297, %cst_105 [0] : vector<128x64xf32> to vector<64xf32>
    %299 = vector.shape_cast %298 : vector<64xf32> to vector<1x64xf32>
    %cst_106 = arith.constant 1.280000e+02 : f32
    %300 = vector.broadcast %cst_106 : f32 to vector<1x64xf32>
    %301 = arith.divf %299, %300 : vector<1x64xf32>
    %302 = arith.mulf %296, %296 : vector<1x64xf32>
    %303 = arith.subf %301, %302 : vector<1x64xf32>
    %cst_107 = arith.constant 0.000000e+00 : f32
    %304 = vector.broadcast %cst_107 : f32 to vector<1x64xf32>
    %305 = arith.maximumf %303, %304 : vector<1x64xf32>
    %306 = vector.extract_strided_slice %292 {offsets = [0, 0], sizes = [1, 64], strides = [1, 1]} : vector<2x64xf32> to vector<1x64xf32>
    %cst_108 = arith.constant 9.99999974E-6 : f32
    %307 = vector.broadcast %cst_108 : f32 to vector<1x64xf32>
    %308 = arith.addf %305, %307 : vector<1x64xf32>
    %309 = math.rsqrt %308 : vector<1x64xf32>
    %310 = arith.mulf %306, %309 : vector<1x64xf32>
    %311 = vector.extract_strided_slice %292 {offsets = [1, 0], sizes = [1, 64], strides = [1, 1]} : vector<2x64xf32> to vector<1x64xf32>
    %312 = arith.mulf %296, %310 : vector<1x64xf32>
    %313 = arith.subf %311, %312 : vector<1x64xf32>
    %314 = vector.broadcast %310 : vector<1x64xf32> to vector<128x64xf32>
    %315 = arith.mulf %291, %314 : vector<128x64xf32>
    %316 = vector.broadcast %313 : vector<1x64xf32> to vector<128x64xf32>
    %317 = arith.addf %315, %316 : vector<128x64xf32>
    %cst_109 = arith.constant 0.000000e+00 : f32
    %318 = vector.broadcast %cst_109 : f32 to vector<128x64xf32>
    %319 = arith.maximumf %317, %318 : vector<128x64xf32>
    %320 = arith.truncf %319 : vector<128x64xf32> to vector<128x64xbf16>
    %c0_110 = arith.constant 0 : index
    %c0_111 = arith.constant 0 : index
    %321 = vector.load %arg20[%c0_110, %c0_111] : memref<64x3xbf16, #tpu.memory_space<vmem>>, vector<64x3xbf16>
    %cst_112 = arith.constant dense<0.000000e+00> : vector<128x3xf32>
    %322 = tpu.matmul %320, %321, %cst_112 {dimension_numbers = #tpu.dot_dimension_numbers<[1], [0], [0], [1], [0, 0, 1, 1], [], []>} : vector<128x64xbf16>, vector<64x3xbf16>, vector<128x3xf32> -> vector<128x3xf32>
    %c0_113 = arith.constant 0 : index
    %c0_114 = arith.constant 0 : index
    %323 = vector.load %arg21[%c0_113, %c0_114] : memref<2x3xf32, #tpu.memory_space<vmem>>, vector<2x3xf32>
    %cst_115 = arith.constant dense<0.000000e+00> : vector<3xf32>
    %324 = vector.multi_reduction <add>, %322, %cst_115 [0] : vector<128x3xf32> to vector<3xf32>
    %325 = vector.shape_cast %324 : vector<3xf32> to vector<1x3xf32>
    %cst_116 = arith.constant 1.280000e+02 : f32
    %326 = vector.broadcast %cst_116 : f32 to vector<1x3xf32>
    %327 = arith.divf %325, %326 : vector<1x3xf32>
    %328 = arith.mulf %322, %322 : vector<128x3xf32>
    %cst_117 = arith.constant dense<0.000000e+00> : vector<3xf32>
    %329 = vector.multi_reduction <add>, %328, %cst_117 [0] : vector<128x3xf32> to vector<3xf32>
    %330 = vector.shape_cast %329 : vector<3xf32> to vector<1x3xf32>
    %cst_118 = arith.constant 1.280000e+02 : f32
    %331 = vector.broadcast %cst_118 : f32 to vector<1x3xf32>
    %332 = arith.divf %330, %331 : vector<1x3xf32>
    %333 = arith.mulf %327, %327 : vector<1x3xf32>
    %334 = arith.subf %332, %333 : vector<1x3xf32>
    %cst_119 = arith.constant 0.000000e+00 : f32
    %335 = vector.broadcast %cst_119 : f32 to vector<1x3xf32>
    %336 = arith.maximumf %334, %335 : vector<1x3xf32>
    %337 = vector.extract_strided_slice %323 {offsets = [0, 0], sizes = [1, 3], strides = [1, 1]} : vector<2x3xf32> to vector<1x3xf32>
    %cst_120 = arith.constant 9.99999974E-6 : f32
    %338 = vector.broadcast %cst_120 : f32 to vector<1x3xf32>
    %339 = arith.addf %336, %338 : vector<1x3xf32>
    %340 = math.rsqrt %339 : vector<1x3xf32>
    %341 = arith.mulf %337, %340 : vector<1x3xf32>
    %342 = vector.extract_strided_slice %323 {offsets = [1, 0], sizes = [1, 3], strides = [1, 1]} : vector<2x3xf32> to vector<1x3xf32>
    %343 = arith.mulf %327, %341 : vector<1x3xf32>
    %344 = arith.subf %342, %343 : vector<1x3xf32>
    %345 = vector.broadcast %341 : vector<1x3xf32> to vector<128x3xf32>
    %346 = arith.mulf %322, %345 : vector<128x3xf32>
    %347 = vector.broadcast %344 : vector<1x3xf32> to vector<128x3xf32>
    %348 = arith.addf %346, %347 : vector<128x3xf32>
    %c0_121 = arith.constant 0 : index
    %c0_122 = arith.constant 0 : index
    %349 = vector.load %arg22[%c0_121, %c0_122] : memref<128x3xf32, #tpu.memory_space<vmem>>, vector<128x3xf32>
    tpu.vector_store %arg22[%c0_121, %c0_122], %348 {strides = array<i32>} : memref<128x3xf32, #tpu.memory_space<vmem>>, vector<128x3xf32>,
    return
  }
}

</mosaic_0001>

<bundles_post_ra>
// kernel: pointnet_denoiser_forward.1
= control target key start
LH: loop header
LB: loop body
LE: loop exit
PB: predicated region body
PF: predicated region fallthrough
CT: control target
= control target key end

     0   :  { %v10100_v0 = vmov 2   ;;  %v10101_v1 = vmov 1   ;;  %v16094_v10 = vmov 0   ;;  %v169_v21 = vlaneseq  ;;  %s16067_s0 = inlined_call_operand.vmem [shape: f32[128,3], index: 0, kind: input, shape index: {}]   ;;  %s16068_s11 = inlined_call_operand.vmem [shape: f32[3,512], index: 11, kind: input, shape index: {}]   ;;  %s16069_s1 = inlined_call_operand.vmem [shape: f32[3,64], index: 1, kind: input, shape index: {}]   ;;  %s16070_s3 = inlined_call_operand.vmem [shape: bf16[64,64], index: 3, kind: input, shape index: {}]   ;;  %s16071_s2 = inlined_call_operand.vmem [shape: f32[2,64], index: 2, kind: input, shape index: {}]   ;;  %s16072_s5 = inlined_call_operand.vmem [shape: bf16[64,64], index: 5, kind: input, shape index: {}]   ;;  %s16073_s4 = inlined_call_operand.vmem [shape: f32[2,64], index: 4, kind: input, shape index: {}]   ;;  %s16074_s7 = inlined_call_operand.vmem [shape: bf16[64,128], index: 7, kind: input, shape index: {}]   ;;  %s16075_s6 = inlined_call_operand.vmem [shape: f32[2,64], index: 6, kind: input, shape index: {}]   ;;  %s16076_s9 = inlined_call_operand.vmem [shape: bf16[128,1024], index: 9, kind: input, shape index: {}]   ;;  %s16077_s8 = inlined_call_operand.vmem [shape: f32[2,128], index: 8, kind: input, shape index: {}]   ;;  %s16078_s12 = inlined_call_operand.vmem [shape: bf16[1024,512], index: 12, kind: input, shape index: {}]   ;;  %s16079_s10 = inlined_call_operand.vmem [shape: f32[2,1024], index: 10, kind: input, shape index: {}]   ;;  %s16080_s14 = inlined_call_operand.vmem [shape: bf16[512,256], index: 14, kind: input, shape index: {}]   ;;  %s16081_s13 = inlined_call_operand.vmem [shape: f32[2,512], index: 13, kind: input, shape index: {}]   ;;  %s16082_s16 = inlined_call_operand.vmem [shape: bf16[256,128], index: 16, kind: input, shape index: {}]   ;;  %s16083_s15 = inlined_call_operand.vmem [shape: f32[2,256], index: 15, kind: input, shape index: {}]   ;;  %s16084_s18 = inlined_call_operand.vmem [shape: bf16[128,64], index: 18, kind: input, shape index: {}]   ;;  %s16085_s17 = inlined_call_operand.vmem [shape: f32[2,128], index: 17, kind: input, shape index: {}]   ;;  %s16086_s20 = inlined_call_operand.vmem [shape: bf16[64,3], index: 20, kind: input, shape index: {}]   ;;  %s16087_s19 = inlined_call_operand.vmem [shape: f32[2,64], index: 19, kind: input, shape index: {}]   ;;  %s16088_s21 = inlined_call_operand.vmem [shape: f32[2,3], index: 21, kind: input, shape index: {}]   ;;  %s16089_s22 = inlined_call_operand.vmem [shape: f32[128,3], index: 22, kind: output, shape index: {}]  }
   0x1   :  { %16282 = sst [smem:[#allocation179_spill]] %s16067_s0  ;;  %9509 = vset.pattern.permute.xlu0 %v10100_v0  ;;  %9508 = vset.pattern.permute.xlu1 %v10101_v1  ;;  %vm390_vm0 = vcmask 523264   ;;  %vm4426_vm1 = vcmask 1041409   ;;  %vm8571_vm2 = vcmask 23552  }
   0x2   :  { %16283 = sst [smem:[#allocation180_spill]] %s16068_s11  ;;  %s16289_s29 = sld [smem:[#allocation179_spill]]  ;;  %v10306_v24 = vshrl.u32 %v169_v21, 7 }
   0x3   :  { %16284 = sst [smem:[#allocation181_spill]] %s16069_s1 }
   0x4   :  { %16285 = sst [smem:[#allocation182_spill]] %s16070_s3  ;;  %16290 = vst [vmem:[#allocation2_spill] sm:$0xff] %v10306_v24  ;;  %v10313_v27 = vsub.s32 0, %v10306_v24  ;;  %v10316_v28 = vsub.s32 4, %v10306_v24  ;;  %v10319_v29 = vsub.s32 1, %v10306_v24  ;;  %v10322_v30 = vsub.s32 5, %v10306_v24 }
   0x5   :  { %16286 = sst [smem:[#allocation183_spill]] %s16071_s2  ;;  %v10333_v34 = vsub.s32 2, %v10306_v24  ;;  %s16297_s25 = sld [smem:[#allocation182_spill]]  ;;  %v10343_v39 = vsub.s32 6, %v10306_v24 }
   0x6   :  { %16287 = sst [smem:[#allocation184_spill]] %s16072_s5  ;;  %16291 = vst [vmem:[#allocation3_spill] sm:$0xff] %v10313_v27  ;;  %16292 = vst [vmem:[#allocation4_spill] sm:$0xff] %v10316_v28  ;;  %s16295_s5 = sld [smem:[#allocation180_spill]] }
   0x7   :  { %16288 = sst [smem:[#allocation185_spill]] %s16073_s4  ;;  %16293 = vst [vmem:[#allocation5_spill] sm:$0xff] %v10319_v29  ;;  %16294 = vst [vmem:[#allocation6_spill] sm:$0xff] %v10322_v30  ;;  %s16299_s28 = sld [smem:[#allocation181_spill]] }
   0x8   :  { %v72_v2 = vld [vmem:[%s16289_s29] sm:$0xff]  ;;  %v77_v3 = vld [vmem:[%s16289_s29 + $0x28] sm:$0xff]  ;;  %v78_v5 = vld [vmem:[%s16289_s29 + $0x30] sm:$0xff]  ;;  %16296 = vst [vmem:[#allocation7_spill] sm:$0xff] %v10333_v34  ;;  %s16443_s11 = sld [smem:[#allocation183_spill]]  ;;  %s16458_s0 = sld [smem:[#allocation185_spill]] }
   0x9   :  { %290 = vperm.xlu0 %9509, %v72_v2   ;;  %190 = vperm.xlu1 %9508, %v72_v2   ;;  %v73_v4 = vld [vmem:[%s16289_s29 + $0x8] sm:$0xff]  ;;  %v74_v6 = vld [vmem:[%s16289_s29 + $0x10] sm:$0xff]  ;;  %v83_v8 = vld [vmem:[%s16289_s29 + $0x58] sm:$0xff]  ;;  %16298 = vst [vmem:[#allocation8_spill] sm:$0xff] %v10343_v39 }
   0xa   :  { %v82_v7 = vld [vmem:[%s16289_s29 + $0x50] sm:$0xff]  ;;  %v75_v9 = vld [vmem:[%s16289_s29 + $0x18] sm:$0xff]  ;;  %v76_v11 = vld [vmem:[%s16289_s29 + $0x20] sm:$0xff] }
   0xb   :  { %v80_v12 = vld [vmem:[%s16289_s29 + $0x40] sm:$0xff]  ;;  %v81_v13 = vld [vmem:[%s16289_s29 + $0x48] sm:$0xff]  ;;  %v86_v15 = vld [vmem:[%s16289_s29 + $0x70] sm:$0xff] }
   0xc   :  { %v85_v14 = vld [vmem:[%s16289_s29 + $0x68] sm:$0xff]  ;;  %v79_v16 = vld [vmem:[%s16289_s29 + $0x38] sm:$0xff]  ;;  %v84_v18 = vld [vmem:[%s16289_s29 + $0x60] sm:$0xff] }
   0xd   :  { %310 = vperm.xlu0 %9509, %v77_v3   ;;  %194 = vperm.xlu1 %9508, %v73_v4   ;;  %v87_v17 = vld [vmem:[%s16289_s29 + $0x78] sm:$0xff]  ;;  %v3706_v31 = vld [vmem:[%s16295_s5] sm:$0x77]  ;;  %v3707_v32 = vld [vmem:[%s16295_s5 + $0x8] sm:$0x77] }
   0xe   :  { %v3713_v36 = vrot.slane %v3706_v31, %v10313_v27  ;;  %v3717_v37 = vrot.slane %v3706_v31, %v10316_v28  ;;  %v9538_v38 = vld [vmem:[%s16297_s25] sm:$0xff]   ;;  %v3721_v40 = vrot.slane %v3707_v32, %v10313_v27  ;;  %v9539_v41 = vld [vmem:[%s16297_s25 + $0x8] sm:$0xff]   ;;  %v3725_v43 = vrot.slane %v3707_v32, %v10316_v28  ;;  %v9540_v52 = vld [vmem:[%s16297_s25 + $0x10] sm:$0xff]  }
   0xf   :  { %v88_v42 = vld [vmem:[%s16299_s28] sm:$0x7]  ;;  %9319 = vmatprep.subr.bf16.mxu0 %v9538_v38  ;;  %v3813_v44 = vrot.slane %v3706_v31, %v10319_v29  ;;  %v3817_v45 = vrot.slane %v3706_v31, %v10322_v30  ;;  %v3821_v46 = vrot.slane %v3707_v32, %v10319_v29  ;;  %v3825_v48 = vrot.slane %v3707_v32, %v10322_v30 }
  0x10   :  { %9320 = vmatpush3.bf16.msra.mxu0 %v9538_v38  ;;  %v3977_v49 = vrot.slane %v3706_v31, %v10333_v34  ;;  %v10361_v50 = vrot.slane %v3713_v36, %v10313_v27  ;;  %v10364_v51 = vrot.slane %v3717_v37, %v10313_v27  ;;  %v10370_v53 = vrot.slane %v88_v42, %v10319_v29 }
  0x11   :  { %314 = vperm.xlu0 %9509, %v78_v5   ;;  %198 = vperm.xlu1 %9508, %v74_v6   ;;  %v10373_v54 = vrot.slane %v3721_v40, %v10313_v27  ;;  %v10378_v56 = vrot.slane %v88_v42, %v10333_v34  ;;  %v3981_v57 = vrot.slane %v3706_v31, %v10343_v39 }
  0x12   :  { %9321 = vmatprep.subr.bf16.mxu0 %v9539_v41  ;;  %v3985_v58 = vrot.slane %v3707_v32, %v10333_v34  ;;  %v10383_v59 = vrot.slane %v3725_v43, %v10313_v27  ;;  %v10386_v60 = vrot.slane %v3813_v44, %v10319_v29  ;;  %v10389_v61 = vrot.slane %v3817_v45, %v10319_v29 }
  0x13   :  { %v10392_v62 = vrot.slane %v3821_v46, %v10319_v29  ;;  %v3989_v63 = vrot.slane %v3707_v32, %v10343_v39  ;;  %v10442_v36 = vrot.slane %v88_v42, %v10313_v27 }
  0x14   :  { %9322 = vmatpush3.bf16.msra.mxu0 %v9539_v41 }
  0x15   :  { %330 = vperm.xlu0 %9509, %v82_v7   ;;  %9510 = vset.pattern.permute.xlu1 %v10100_v0 }
  0x16   :  { %294 = vperm.xlu1 %9510, %v73_v4   ;;  %9323 = vmatprep.subr.bf16.mxu0 %v9540_v52 }
  0x18   :  { %9324 = vmatpush3.bf16.msra.mxu0 %v9540_v52 }
  0x19   :  { %334 = vperm.xlu0 %9509, %v83_v8  }
  0x1a   :  { %9511 = vset.pattern.permute.xlu1 %v16094_v10 }
  0x1b   :  { %106 = vperm.xlu1 %9511, %v75_v9  }
  0x1d   :  { %9529 = vset.pattern.permute.xlu0 %v10101_v1 }
  0x1e   :  { %202 = vperm.xlu0 %9529, %v75_v9  }
  0x1f   :  { %9512 = vset.pattern.permute.xlu1 %v10100_v0 }
  0x20   :  { %298 = vperm.xlu1 %9512, %v74_v6  }
  0x22   :  { %206 = vperm.xlu0 %9529, %v76_v11  }
  0x24   :  { %9513 = vset.pattern.permute.xlu1 %v16094_v10 }
  0x25   :  { %111 = vperm.xlu1 %9513, %v76_v11  }
  0x26   :  { %222 = vperm.xlu0 %9529, %v80_v12  }
  0x29   :  { %9514 = vset.pattern.permute.xlu1 %v10100_v0 }
  0x2a   :  { %226 = vperm.xlu0 %9529, %v81_v13   ;;  %302 = vperm.xlu1 %9514, %v75_v9  }
  0x2e   :  { %242 = vperm.xlu0 %9529, %v85_v14   ;;  %9515 = vset.pattern.permute.xlu1 %v10101_v1 }
  0x2f   :  { %210 = vperm.xlu1 %9515, %v77_v3  }
  0x32   :  { %246 = vperm.xlu0 %9529, %v86_v15  }
  0x33   :  { %9516 = vset.pattern.permute.xlu1 %v10100_v0 }
  0x34   :  { %306 = vperm.xlu1 %9516, %v76_v11   ;;  %v10419_v11 = vrot.slane %v3981_v57, %v10333_v34 }
  0x36   :  { %9533 = vset.pattern.permute.xlu0 %v16094_v10  ;;  %16301 = vst [vmem:[#allocation10_spill] sm:$0xff] %v10419_v11 }
  0x37   :  { %91 = vperm.xlu0 %9533, %v72_v2  }
  0x38   :  { %9517 = vset.pattern.permute.xlu1 %v10101_v1 }
  0x39   :  { %214 = vperm.xlu1 %9517, %v78_v5  }
  0x3b   :  { %96 = vperm.xlu0 %9533, %v73_v4  }
  0x3d   :  { %9518 = vset.pattern.permute.xlu1 %v16094_v10 }
  0x3e   :  { %126 = vperm.xlu1 %9518, %v79_v16  }
  0x3f   :  { %101 = vperm.xlu0 %9533, %v74_v6  }
  0x42   :  { %9519 = vset.pattern.permute.xlu1 %v10101_v1 }
  0x43   :  { %116 = vperm.xlu0 %9533, %v77_v3   ;;  %218 = vperm.xlu1 %9519, %v79_v16  }
  0x47   :  { %121 = vperm.xlu0 %9533, %v78_v5   ;;  %9520 = vset.pattern.permute.xlu1 %v16094_v10  ;;  %v9541_v5 = vld [vmem:[%s16297_s25 + $0x18] sm:$0xff]   ;;  %s16457_s25 = sld [smem:[#allocation184_spill]] }
  0x48   :  { %131 = vperm.xlu1 %9520, %v80_v12   ;;  %9325 = vmatprep.subr.bf16.mxu0 %v9541_v5 }
  0x49   :  { %9326 = vmatpush3.bf16.msra.mxu0 %v9541_v5 }
  0x4b   :  { %141 = vperm.xlu0 %9533, %v82_v7  }
  0x4c   :  { %9521 = vset.pattern.permute.xlu1 %v10100_v0 }
  0x4d   :  { %318 = vperm.xlu1 %9521, %v79_v16   ;;  %v10431_v16 = vrot.slane %v3989_v63, %v10333_v34 }
  0x4f   :  { %146 = vperm.xlu0 %9533, %v83_v8   ;;  %16303 = vst [vmem:[#allocation12_spill] sm:$0xff] %v10431_v16 }
  0x51   :  { %9522 = vset.pattern.permute.xlu1 %v16094_v10 }
  0x52   :  { %136 = vperm.xlu1 %9522, %v81_v13  }
  0x53   :  { %166 = vperm.xlu0 %9533, %v87_v17  }
  0x56   :  { %9523 = vset.pattern.permute.xlu1 %v10100_v0 }
  0x57   :  { %322 = vperm.xlu1 %9523, %v80_v12   ;;  %9537 = vset.pattern.permute.xlu0 %v10100_v0  ;;  %v10422_v12 = vrot.slane %v3985_v58, %v10333_v34 }
  0x58   :  { %350 = vperm.xlu0 %9537, %v87_v17  }
  0x59   :  { %16302 = vst [vmem:[#allocation11_spill] sm:$0xff] %v10422_v12 }
  0x5b   :  { %9524 = vset.pattern.permute.xlu1 %v10101_v1 }
  0x5c   :  { %230 = vperm.xlu1 %9524, %v82_v7  }
  0x60   :  { %9525 = vset.pattern.permute.xlu1 %v10100_v0 }
  0x61   :  { %326 = vperm.xlu1 %9525, %v81_v13  }
  0x65   :  { %9526 = vset.pattern.permute.xlu1 %v10101_v1 }
  0x66   :  { %234 = vperm.xlu1 %9526, %v83_v8  }
  0x6a   :  { %9527 = vset.pattern.permute.xlu1 %v16094_v10 }
  0x6b   :  { %151 = vperm.xlu1 %9527, %v84_v18  }
  0x6f   :  { %9528 = vset.pattern.permute.xlu1 %v10101_v1 }
  0x70   :  { %238 = vperm.xlu1 %9528, %v84_v18  }
  0x74   :  { %9530 = vset.pattern.permute.xlu1 %v16094_v10 }
  0x75   :  { %156 = vperm.xlu1 %9530, %v85_v14  }
  0x79   :  { %9531 = vset.pattern.permute.xlu1 %v10100_v0 }
  0x7a   :  { %338 = vperm.xlu1 %9531, %v84_v18  }
  0x7e   :  { %9532 = vset.pattern.permute.xlu1 %v16094_v10 }
  0x7f   :  { %161 = vperm.xlu1 %9532, %v86_v15  }
  0x83   :  { %9534 = vset.pattern.permute.xlu1 %v10100_v0 }
  0x84   :  { %342 = vperm.xlu1 %9534, %v85_v14  }
  0x88   :  { %9535 = vset.pattern.permute.xlu1 %v10101_v1  ;;  %v10297_v19 = vpop.permute.xlu1 %190  ;;  %v10299_v20 = vpop.permute.xlu0 %290  ;;  %v10399_v1 = vrot.slane %v3977_v49, %v10333_v34 }
  0x89   :  { %250 = vperm.xlu1 %9535, %v87_v17   ;;  %v10435_v31 = vmul.f32 %v10370_v53, %v10297_v19  ;;  %v10439_v32 = vmul.f32 %v10386_v60, %v10297_v19  ;;  %v10448_v40 = vmul.f32 %v10389_v61, %v10297_v19  ;;  %v10452_v41 = vmul.f32 %v10392_v62, %v10297_v19 }
  0x8a   :  { %16300 = vst [vmem:[#allocation9_spill] sm:$0xff] %v10399_v1  ;;  %v10460_v42 = vmul.f32 %v10378_v56, %v10299_v20  ;;  %v10464_v44 = vmul.f32 %v10399_v1, %v10299_v20  ;;  %v10478_v49 = vmul.f32 %v10422_v12, %v10299_v20  ;;  %v10482_v52 = vmul.f32 %v10431_v16, %v10299_v20 }
  0x8b   :  { %16304 = vst [vmem:[#allocation13_spill] sm:$0xff] %v10435_v31 }
  0x8c   :  { %v10301_v22 = vpop.permute.xlu1 %194  ;;  %v10303_v23 = vpop.permute.xlu0 %310  ;;  %16305 = vst [vmem:[#allocation14_spill] sm:$0xff] %v10460_v42 }
  0x8d   :  { %9536 = vset.pattern.permute.xlu1 %v10100_v0  ;;  %v10396_v0 = vrot.slane %v3825_v48, %v10319_v29  ;;  %v10490_v63 = vmul.f32 %v10370_v53, %v10301_v22  ;;  %v10506_v5 = vmul.f32 %v10389_v61, %v10301_v22  ;;  %v10526_v39 = vmul.f32 %v10378_v56, %v10303_v23 }
  0x8e   :  { %346 = vperm.xlu1 %9536, %v86_v15   ;;  %v10530_v28 = vmul.f32 %v10399_v1, %v10303_v23  ;;  %v10534_v34 = vmul.f32 %v10419_v11, %v10303_v23 }
  0x8f   :  { %v10456_v43 = vmul.f32 %v10396_v0, %v10297_v19  ;;  %v10474_v19 = vmul.f32 %v10419_v11, %v10299_v20  ;;  %16306 = vst [vmem:[#allocation15_spill] sm:$0xff] %v10490_v63  ;;  %16307 = vst [vmem:[#allocation16_spill] sm:$0xff] %v10526_v39 }
  0x90   :  { %v10308_v25 = vpop.permute.xlu1 %198  ;;  %v10310_v26 = vpop.permute.xlu0 %314  ;;  %16308 = vst [vmem:[#allocation17_spill] sm:$0xff] %v10530_v28  ;;  %16309 = vst [vmem:[#allocation18_spill] sm:$0xff] %v10534_v34 }
  0x91   :  { %v10565_v29 = vmul.f32 %v10392_v62, %v10308_v25  ;;  %v10569_v27 = vmul.f32 %v10396_v0, %v10308_v25  ;;  %v10573_v42 = vmul.f32 %v10378_v56, %v10310_v26  ;;  %v10578_v63 = vmul.f32 %v10399_v1, %v10310_v26 }
  0x92   :  { %v10592_v34 = vmul.f32 %v10422_v12, %v10310_v26 }
  0x93   :  { %16312 = vst [vmem:[#allocation21_spill] sm:$0xff] %v10573_v42  ;;  %v10596_v42 = vmul.f32 %v10431_v16, %v10310_v26 }
  0x94   :  { %v10330_v33 = vpop.permute.xlu0 %330  ;;  %16317 = vst [vmem:[#allocation26_spill] sm:$0xff] %v10592_v34 }
  0x95   :  { %v10335_v35 = vpop.permute.xlu1 %294  ;;  %16318 = vst [vmem:[#allocation27_spill] sm:$0xff] %v10596_v42 }
  0x98   :  { %v10356_v47 = vpop.permute.xlu0 %334 }
  0x9a   :  { %v10375_v55 = vpop.permute.xlu1 %106 }
  0x9b   :  { %v3758_v2 = vmul.f32 %v10361_v50, %v10375_v55  ;;  %v3759_v3 = vmul.f32 %v10364_v51, %v10375_v55  ;;  %v3760_v6 = vmul.f32 %v10373_v54, %v10375_v55  ;;  %v3761_v13 = vmul.f32 %v10383_v59, %v10375_v55 }
  0x9d   :  { %v10405_v4 = vpop.permute.xlu0 %202 }
  0x9e   :  { %v3858_v7 = vmul.f32 %v10386_v60, %v10405_v4  ;;  %v3859_v8 = vmul.f32 %v10389_v61, %v10405_v4  ;;  %v3860_v9 = vmul.f32 %v10392_v62, %v10405_v4  ;;  %v3861_v14 = vmul.f32 %v10396_v0, %v10405_v4 }
  0x9f   :  { %v10428_v15 = vpop.permute.xlu1 %298 }
  0xa0   :  { %v3922_v17 = vadd.f32 %v3858_v7, %v3758_v2  ;;  %v3923_v18 = vadd.f32 %v3859_v8, %v3759_v3  ;;  %v3924_v21 = vadd.f32 %v3860_v9, %v3760_v6  ;;  %v3925_v37 = vadd.f32 %v3861_v14, %v3761_v13 }
  0xa1   :  { %v10444_v38 = vpop.permute.xlu0 %206  ;;  %v10502_v7 = vmul.f32 %v10386_v60, %v10301_v22  ;;  %v10510_v8 = vmul.f32 %v10392_v62, %v10301_v22  ;;  %v10516_v13 = vmul.f32 %v10396_v0, %v10301_v22  ;;  %v10701_v34 = vmul.f32 %v10431_v16, %v10428_v15 }
  0xa2   :  { %v3862_v45 = vmul.f32 %v10386_v60, %v10444_v38  ;;  %v3863_v46 = vmul.f32 %v10389_v61, %v10444_v38  ;;  %v3864_v48 = vmul.f32 %v10392_v62, %v10444_v38  ;;  %v3865_v57 = vmul.f32 %v10396_v0, %v10444_v38 }
  0xa4   :  { %v10486_v58 = vpop.permute.xlu1 %111 }
  0xa5   :  { %v3762_v2 = vmul.f32 %v10361_v50, %v10486_v58  ;;  %v3763_v3 = vmul.f32 %v10364_v51, %v10486_v58  ;;  %v3764_v20 = vmul.f32 %v10373_v54, %v10486_v58  ;;  %v10498_v6 = vpop.permute.xlu0 %222  ;;  %v3765_v9 = vmul.f32 %v10383_v59, %v10486_v58 }
  0xa7   :  { %v10518_v14 = vadd.f32 %v3862_v45, %v3762_v2  ;;  %v10520_v10 = vadd.f32 %v3863_v46, %v3763_v3  ;;  %v10522_v30 = vadd.f32 %v3864_v48, %v3764_v20  ;;  %v10536_v22 = vadd.f32 %v3865_v57, %v3765_v9 }
  0xa8   :  { %v10540_v45 = vmul.f32 %v10422_v12, %v10303_v23  ;;  %v10544_v46 = vmul.f32 %v10431_v16, %v10303_v23  ;;  %v10548_v48 = vmul.f32 %v10370_v53, %v10308_v25  ;;  %v10552_v2 = vmul.f32 %v10386_v60, %v10308_v25 }
  0xa9   :  { %v303_v3 = vpop.permute.xlu1 %302  ;;  %v10554_v20 = vpop.permute.xlu0 %226  ;;  %v10558_v57 = vmul.f32 %v10389_v61, %v10308_v25  ;;  %v10588_v25 = vmul.f32 %v10419_v11, %v10310_v26  ;;  %v260_v26 = vmul.f32 %v10370_v53, %v10405_v4  ;;  %v10636_v4 = vmul.f32 %v10419_v11, %v10335_v35 }
  0xaa   :  { %16310 = vst [vmem:[#allocation19_spill] sm:$0xff] %v10540_v45  ;;  %16311 = vst [vmem:[#allocation20_spill] sm:$0xff] %v10544_v46  ;;  %v4022_v9 = vmul.f32 %v10399_v1, %v303_v3  ;;  %v4023_v23 = vmul.f32 %v10419_v11, %v303_v3  ;;  %v4024_v24 = vmul.f32 %v10422_v12, %v303_v3 }
  0xab   :  { %v4025_v39 = vmul.f32 %v10431_v16, %v303_v3  ;;  %16316 = vst [vmem:[#allocation25_spill] sm:$0xff] %v10588_v25 }
  0xac   :  { %v10580_v31 = vadd.f32 %v4022_v9, %v3922_v17  ;;  %v10582_v46 = vadd.f32 %v4023_v23, %v3923_v18  ;;  %v10584_v45 = vadd.f32 %v4024_v24, %v3924_v21  ;;  %v10604_v24 = vmul.f32 %v10378_v56, %v10330_v33 }
  0xad   :  { %v10598_v28 = vadd.f32 %v4025_v39, %v3925_v37  ;;  %v10600_v17 = vpop.permute.xlu0 %242  ;;  %v10608_v18 = vmul.f32 %v10399_v1, %v10330_v33  ;;  %v10612_v21 = vmul.f32 %v10419_v11, %v10330_v33  ;;  %v10620_v39 = vmul.f32 %v10422_v12, %v10330_v33 }
  0xae   :  { %16313 = vst [vmem:[#allocation22_spill] sm:$0xff] %v10580_v31  ;;  %16314 = vst [vmem:[#allocation23_spill] sm:$0xff] %v10582_v46  ;;  %v10616_v9 = vpop.permute.xlu1 %210  ;;  %v10624_v37 = vmul.f32 %v10431_v16, %v10330_v33  ;;  %v10628_v23 = vmul.f32 %v10378_v56, %v10335_v35  ;;  %v10632_v46 = vmul.f32 %v10399_v1, %v10335_v35 }
  0xaf   :  { %16315 = vst [vmem:[#allocation24_spill] sm:$0xff] %v10584_v45  ;;  %16319 = vst [vmem:[#allocation28_spill] sm:$0xff] %v10598_v28  ;;  %v10640_v28 = vmul.f32 %v10422_v12, %v10335_v35  ;;  %v10644_v33 = vmul.f32 %v10431_v16, %v10335_v35  ;;  %v176_v45 = vmul.f32 %v10442_v36, %v10375_v55 }
  0xb0   :  { %16320 = vst [vmem:[#allocation29_spill] sm:$0xff] %v10604_v24  ;;  %16321 = vst [vmem:[#allocation30_spill] sm:$0xff] %v10608_v18  ;;  %v10650_v31 = vmul.f32 %v10378_v56, %v10356_v47  ;;  %v10658_v24 = vmul.f32 %v10419_v11, %v10356_v47  ;;  %v10668_v55 = vmul.f32 %v10431_v16, %v10356_v47 }
  0xb1   :  { %16322 = vst [vmem:[#allocation31_spill] sm:$0xff] %v10612_v21  ;;  %16323 = vst [vmem:[#allocation32_spill] sm:$0xff] %v10620_v39  ;;  %v10664_v35 = vpop.permute.xlu0 %246  ;;  %v10672_v39 = vmul.f32 %v10378_v56, %v10428_v15 }
  0xb2   :  { %16324 = vst [vmem:[#allocation33_spill] sm:$0xff] %v10624_v37  ;;  %16325 = vst [vmem:[#allocation34_spill] sm:$0xff] %v10628_v23  ;;  %v10654_v23 = vmul.f32 %v10399_v1, %v10356_v47  ;;  %v10662_v37 = vmul.f32 %v10422_v12, %v10356_v47  ;;  %v261_v47 = vmul.f32 %v10370_v53, %v10444_v38 }
  0xb3   :  { %16326 = vst [vmem:[#allocation35_spill] sm:$0xff] %v10650_v31  ;;  %16328 = vst [vmem:[#allocation37_spill] sm:$0xff] %v10658_v24  ;;  %v276_v31 = vadd.f32 %v260_v26, %v176_v45  ;;  %v10680_v24 = vmul.f32 %v10419_v11, %v10428_v15  ;;  %v177_v45 = vmul.f32 %v10442_v36, %v10486_v58  ;;  %v10690_v26 = vpop.permute.xlu1 %306 }
  0xb4   :  { %16327 = vst [vmem:[#allocation36_spill] sm:$0xff] %v10654_v23  ;;  %16329 = vst [vmem:[#allocation38_spill] sm:$0xff] %v10662_v37  ;;  %v10676_v23 = vmul.f32 %v10399_v1, %v10428_v15  ;;  %v10684_v37 = vmul.f32 %v10422_v12, %v10428_v15  ;;  %v4026_v21 = vmul.f32 %v10399_v1, %v10690_v26 }
  0xb5   :  { %16330 = vst [vmem:[#allocation39_spill] sm:$0xff] %v10668_v55  ;;  %v360_v55 = vmul.f32 %v10378_v56, %v303_v3  ;;  %v4027_v18 = vmul.f32 %v10419_v11, %v10690_v26  ;;  %v4028_v42 = vmul.f32 %v10422_v12, %v10690_v26  ;;  %v10705_v38 = vmul.f32 %v10370_v53, %v10498_v6 }
  0xb6   :  { %v10709_v58 = vmul.f32 %v10386_v60, %v10498_v6  ;;  %v4029_v3 = vmul.f32 %v10431_v16, %v10690_v26  ;;  %v10715_v11 = vmul.f32 %v10389_v61, %v10498_v6  ;;  %v10718_v12 = vadd.f32 %v4026_v21, %v10518_v14 }
  0xb7   :  { %16331 = vst [vmem:[#allocation40_spill] sm:$0xff] %v10705_v38  ;;  %v10721_v15 = vadd.f32 %v4027_v18, %v10520_v10  ;;  %v10724_v1 = vadd.f32 %v4028_v42, %v10522_v30  ;;  %v10726_v38 = vpop.permute.xlu0 %91  ;;  %v10728_v25 = vadd.f32 %v261_v47, %v177_v45  ;;  %v10739_v10 = vmul.f32 %v10392_v62, %v10498_v6 }
  0xb8   :  { %16332 = vst [vmem:[#allocation41_spill] sm:$0xff] %v10709_v58  ;;  %16333 = vst [vmem:[#allocation42_spill] sm:$0xff] %v10718_v12  ;;  %v10731_v58 = vadd.f32 %v4029_v3, %v10536_v22  ;;  %v3746_v16 = vmul.f32 %v10361_v50, %v10726_v38  ;;  %v3747_v14 = vmul.f32 %v10364_v51, %v10726_v38  ;;  %v10747_v22 = vpop.permute.xlu1 %214 }
  0xb9   :  { %16334 = vst [vmem:[#allocation43_spill] sm:$0xff] %v10721_v15  ;;  %16335 = vst [vmem:[#allocation44_spill] sm:$0xff] %v10724_v1  ;;  %v10741_v18 = vadd.f32 %v360_v55, %v276_v31  ;;  %v3748_v30 = vmul.f32 %v10373_v54, %v10726_v38  ;;  %v3749_v42 = vmul.f32 %v10383_v59, %v10726_v38 }
  0xba   :  { %16336 = vst [vmem:[#allocation45_spill] sm:$0xff] %v10731_v58  ;;  %v10751_v21 = vmul.f32 %v10396_v0, %v10498_v6  ;;  %v10755_v47 = vmul.f32 %v10370_v53, %v10554_v20  ;;  %v3910_v45 = vadd.f32 %v10439_v32, %v3746_v16  ;;  %v3911_v31 = vadd.f32 %v10448_v40, %v3747_v14 }
  0xbb   :  { %16337 = vst [vmem:[#allocation46_spill] sm:$0xff] %v10741_v18  ;;  %v10761_v55 = vmul.f32 %v10386_v60, %v10554_v20  ;;  %v10765_v3 = vmul.f32 %v10389_v61, %v10554_v20  ;;  %v3912_v15 = vadd.f32 %v10452_v41, %v3748_v30  ;;  %v3913_v6 = vadd.f32 %v10456_v43, %v3749_v42  ;;  %v10769_v58 = vpop.permute.xlu0 %96 }
  0xbc   :  { %v10773_v1 = vmul.f32 %v10392_v62, %v10554_v20  ;;  %v10777_v16 = vmul.f32 %v10396_v0, %v10554_v20  ;;  %v10780_v32 = vadd.f32 %v10464_v44, %v3910_v45  ;;  %v10783_v40 = vadd.f32 %v10474_v19, %v3911_v31 }
  0xbd   :  { %v10787_v41 = vsel %vm390_vm0, %v10741_v18, 0.0  ;;  %v10791_v43 = vmul.f32 %v10741_v18, %v10741_v18  ;;  %v10794_v14 = vadd.f32 %v10478_v49, %v3912_v15  ;;  %v10797_v20 = vadd.f32 %v10482_v52, %v3913_v6  ;;  %v10807_v45 = vpop.permute.xlu1 %126 }
  0xbe   :  { %16338 = vst [vmem:[#allocation47_spill] sm:$0xff] %v10780_v32  ;;  %16339 = vst [vmem:[#allocation48_spill] sm:$0xff] %v10783_v40  ;;  %v3750_v44 = vmul.f32 %v10361_v50, %v10769_v58  ;;  %v3751_v19 = vmul.f32 %v10364_v51, %v10769_v58  ;;  %v3752_v30 = vmul.f32 %v10373_v54, %v10769_v58 }
  0xbf   :  { %16340 = vst [vmem:[#allocation49_spill] sm:$0xff] %v10787_v41  ;;  %16341 = vst [vmem:[#allocation50_spill] sm:$0xff] %v10794_v14  ;;  %v3753_v42 = vmul.f32 %v10383_v59, %v10769_v58  ;;  %v10811_v49 = vmul.f32 %v10370_v53, %v10600_v17  ;;  %v10815_v52 = vmul.f32 %v10386_v60, %v10600_v17  ;;  %v102_v6 = vpop.permute.xlu0 %101 }
  0xc0   :  { %16342 = vst [vmem:[#allocation51_spill] sm:$0xff] %v10797_v20  ;;  %v10819_v15 = vmul.f32 %v10389_v61, %v10600_v17  ;;  %v10823_v31 = vmul.f32 %v10392_v62, %v10600_v17  ;;  %v3914_v40 = vadd.f32 %v10502_v7, %v3750_v44  ;;  %v3915_v12 = vadd.f32 %v10506_v5, %v3751_v19 }
  0xc1   :  { %16343 = vst [vmem:[#allocation52_spill] sm:$0xff] %v10811_v49  ;;  %v3916_v20 = vadd.f32 %v10510_v8, %v3752_v30  ;;  %v3917_v14 = vadd.f32 %v10516_v13, %v3753_v42  ;;  %v10831_v32 = vmul.f32 %v10396_v0, %v10600_v17  ;;  %v10835_v18 = vmul.f32 %v10370_v53, %v10616_v9 }
  0xc2   :  { %v175_v49 = vmul.f32 %v10442_v36, %v102_v6  ;;  %v3754_v41 = vmul.f32 %v10361_v50, %v102_v6  ;;  %v10840_v7 = vadd.f32 %v10632_v46, %v3914_v40  ;;  %v10843_v5 = vadd.f32 %v10636_v4, %v3915_v12  ;;  %v10857_v46 = vpop.permute.xlu1 %218 }
  0xc3   :  { %v10846_v8 = vadd.f32 %v10640_v28, %v3916_v20  ;;  %v10849_v13 = vadd.f32 %v10644_v33, %v3917_v14  ;;  %v3755_v44 = vmul.f32 %v10364_v51, %v102_v6  ;;  %v3756_v19 = vmul.f32 %v10373_v54, %v102_v6  ;;  %v10855_v42 = vpop.permute.xlu0 %116 }
  0xc4   :  { %16344 = vst [vmem:[#allocation53_spill] sm:$0xff] %v10840_v7  ;;  %16345 = vst [vmem:[#allocation54_spill] sm:$0xff] %v10843_v5  ;;  %v275_v17 = vadd.f32 %v10548_v48, %v175_v49  ;;  %v3757_v30 = vmul.f32 %v10383_v59, %v102_v6  ;;  %v3866_v12 = vmul.f32 %v10386_v60, %v10616_v9  ;;  %v16380_v7 = vld [vmem:[#allocation13_spill] sm:$0xff] }
  0xc5   :  { %16346 = vst [vmem:[#allocation55_spill] sm:$0xff] %v10846_v8  ;;  %16347 = vst [vmem:[#allocation56_spill] sm:$0xff] %v10849_v13  ;;  %v3918_v28 = vadd.f32 %v10552_v2, %v3754_v41  ;;  %v3766_v4 = vmul.f32 %v10361_v50, %v10855_v42  ;;  %v3767_v48 = vmul.f32 %v10364_v51, %v10855_v42 }
  0xc6   :  { %v10867_v33 = vadd.f32 %v10672_v39, %v275_v17  ;;  %v3919_v40 = vadd.f32 %v10558_v57, %v3755_v44  ;;  %v3920_v14 = vadd.f32 %v10565_v29, %v3756_v19  ;;  %v3921_v20 = vadd.f32 %v10569_v27, %v3757_v30 }
  0xc7   :  { %v3867_v49 = vmul.f32 %v10389_v61, %v10616_v9  ;;  %v10875_v2 = vadd.f32 %v10676_v23, %v3918_v28  ;;  %v3768_v41 = vmul.f32 %v10373_v54, %v10855_v42  ;;  %v3769_v6 = vmul.f32 %v10383_v59, %v10855_v42  ;;  %v10896_v30 = vpop.permute.xlu1 %131 }
  0xc8   :  { %16348 = vst [vmem:[#allocation57_spill] sm:$0xff] %v10867_v33  ;;  %v3868_v39 = vmul.f32 %v10392_v62, %v10616_v9  ;;  %v3869_v29 = vmul.f32 %v10396_v0, %v10616_v9  ;;  %v10886_v27 = vadd.f32 %v10680_v24, %v3919_v40  ;;  %v10889_v57 = vadd.f32 %v10684_v37, %v3920_v14 }
  0xc9   :  { %16349 = vst [vmem:[#allocation58_spill] sm:$0xff] %v10875_v2  ;;  %v361_v23 = vmul.f32 %v10378_v56, %v10690_v26  ;;  %v10894_v17 = vadd.f32 %v10701_v34, %v3921_v20  ;;  %v3930_v44 = vadd.f32 %v3866_v12, %v3766_v4  ;;  %v3931_v19 = vadd.f32 %v3867_v49, %v3767_v48  ;;  %v16353_v34 = vld [vmem:[#allocation17_spill] sm:$0xff]  ;;  %v16355_v12 = vld [vmem:[#allocation18_spill] sm:$0xff]  ;;  %v10912_v48 = vpop.permute.xlu0 %121  ;;  %v16357_v49 = vld [vmem:[#allocation19_spill] sm:$0xff] }
  0xca   :  { %16350 = vst [vmem:[#allocation59_spill] sm:$0xff] %v10886_v27  ;;  %16351 = vst [vmem:[#allocation60_spill] sm:$0xff] %v10889_v57  ;;  %v3870_v28 = vmul.f32 %v10386_v60, %v10747_v22  ;;  %v3871_v24 = vmul.f32 %v10389_v61, %v10747_v22  ;;  %v3932_v9 = vadd.f32 %v3868_v39, %v3768_v41  ;;  %v10948_v57 = vsel %vm390_vm0, %v10791_v43, 0.0 }
  0xcb   :  { %16352 = vst [vmem:[#allocation61_spill] sm:$0xff] %v10894_v17  ;;  %v3933_v40 = vadd.f32 %v3869_v29, %v3769_v6  ;;  %v3774_v37 = vmul.f32 %v10361_v50, %v10807_v45  ;;  %v3775_v26 = vmul.f32 %v10364_v51, %v10807_v45  ;;  %v10907_v14 = vadd.f32 %v16353_v34, %v3930_v44  ;;  %v16359_v6 = vld [vmem:[#allocation20_spill] sm:$0xff] }
  0xcc   :  { %v10910_v4 = vadd.f32 %v16355_v12, %v3931_v19  ;;  %v3776_v20 = vmul.f32 %v10373_v54, %v10807_v45  ;;  %v10917_v41 = vadd.f32 %v16357_v49, %v3932_v9  ;;  %v3874_v29 = vmul.f32 %v10386_v60, %v10857_v46 }
  0xcd   :  { %16354 = vst [vmem:[#allocation17_spill] sm:$0xff] %v10907_v14  ;;  %v10920_v39 = vadd.f32 %v16359_v6, %v3933_v40  ;;  %v3777_v44 = vmul.f32 %v10383_v59, %v10807_v45  ;;  %v3875_v19 = vmul.f32 %v10389_v61, %v10857_v46  ;;  %v3876_v34 = vmul.f32 %v10392_v62, %v10857_v46 }
  0xce   :  { %16356 = vst [vmem:[#allocation18_spill] sm:$0xff] %v10910_v4  ;;  %16358 = vst [vmem:[#allocation19_spill] sm:$0xff] %v10917_v41  ;;  %v3877_v12 = vmul.f32 %v10396_v0, %v10857_v46  ;;  %v3872_v9 = vmul.f32 %v10392_v62, %v10747_v22  ;;  %v3938_v40 = vadd.f32 %v3874_v29, %v3774_v37  ;;  %v10938_v4 = vpop.permute.xlu1 %318 }
  0xcf   :  { %16360 = vst [vmem:[#allocation20_spill] sm:$0xff] %v10920_v39  ;;  %v3770_v49 = vmul.f32 %v10361_v50, %v10912_v48  ;;  %v3771_v6 = vmul.f32 %v10364_v51, %v10912_v48  ;;  %v3939_v27 = vadd.f32 %v3875_v19, %v3775_v26  ;;  %v3940_v5 = vadd.f32 %v3876_v34, %v3776_v20 }
  0xd0   :  { %v3941_v39 = vadd.f32 %v3877_v12, %v3777_v44  ;;  %v3772_v41 = vmul.f32 %v10373_v54, %v10912_v48  ;;  %v3873_v14 = vmul.f32 %v10396_v0, %v10747_v22  ;;  %v3773_v37 = vmul.f32 %v10383_v59, %v10912_v48 }
  0xd1   :  { %v3934_v29 = vadd.f32 %v3870_v28, %v3770_v49  ;;  %v3935_v17 = vadd.f32 %v3871_v24, %v3771_v6  ;;  %v3778_v26 = vmul.f32 %v10361_v50, %v10896_v30  ;;  %v3779_v20 = vmul.f32 %v10364_v51, %v10896_v30  ;;  %v16363_v28 = vld [vmem:[#allocation25_spill] sm:$0xff] }
  0xd2   :  { %v3936_v2 = vadd.f32 %v3872_v9, %v3772_v41  ;;  %v10956_v44 = vmul.f32 %v10370_v53, %v10664_v35  ;;  %v3937_v19 = vadd.f32 %v3873_v14, %v3773_v37  ;;  %v10965_v43 = vadd.f32 %v361_v23, %v10728_v25  ;;  %v16366_v41 = vld [vmem:[#allocation26_spill] sm:$0xff]  ;;  %v10974_v6 = vpop.permute.xlu1 %136  ;;  %v16368_v25 = vld [vmem:[#allocation27_spill] sm:$0xff] }
  0xd3   :  { %v10959_v34 = vadd.f32 %v10578_v63, %v3934_v29  ;;  %v10962_v24 = vadd.f32 %v16363_v28, %v3935_v17  ;;  %v3780_v9 = vmul.f32 %v10373_v54, %v10896_v30  ;;  %v3781_v49 = vmul.f32 %v10383_v59, %v10896_v30 }
  0xd4   :  { %16361 = vst [vmem:[#allocation62_spill] sm:$0xff] %v10956_v44  ;;  %16365 = vst [vmem:[#allocation64_spill] sm:$0xff] %v10965_v43  ;;  %v10968_v12 = vadd.f32 %v16366_v41, %v3936_v2  ;;  %v10978_v63 = vmul.f32 %v10386_v60, %v10664_v35  ;;  %v10982_v17 = vmul.f32 %v10389_v61, %v10664_v35  ;;  %v16370_v2 = vld [vmem:[#allocation41_spill] sm:$0xff] }
  0xd5   :  { %16362 = vst [vmem:[#allocation63_spill] sm:$0xff] %v10959_v34  ;;  %16364 = vst [vmem:[#allocation25_spill] sm:$0xff] %v10962_v24  ;;  %v10985_v23 = vadd.f32 %v16368_v25, %v3937_v19  ;;  %v3942_v14 = vadd.f32 %v16370_v2, %v3778_v26  ;;  %v173_v37 = vmul.f32 %v10442_v36, %v10726_v38  ;;  %v16373_v19 = vld [vmem:[#allocation10_spill] sm:$0xff]  ;;  %v16374_v26 = vld [vmem:[#allocation11_spill] sm:$0xff]  ;;  %v11009_v38 = vsel %vm390_vm0, %v10965_v43, 0.0 }
  0xd6   :  { %16367 = vst [vmem:[#allocation26_spill] sm:$0xff] %v10968_v12  ;;  %v3943_v29 = vadd.f32 %v10715_v11, %v3779_v20  ;;  %v3944_v28 = vadd.f32 %v10739_v10, %v3780_v9  ;;  %v3945_v41 = vadd.f32 %v10751_v21, %v3781_v49  ;;  %v10995_v24 = vmul.f32 %v10392_v62, %v10664_v35  ;;  %v16372_v12 = vld [vmem:[#allocation9_spill] sm:$0xff]  ;;  %v16376_v10 = vld [vmem:[#allocation12_spill] sm:$0xff]  ;;  %v323_v13 = vpop.permute.xlu1 %322 }
  0xd7   :  { %16369 = vst [vmem:[#allocation27_spill] sm:$0xff] %v10985_v23  ;;  %v4038_v34 = vmul.f32 %v16372_v12, %v10938_v4  ;;  %v4039_v25 = vmul.f32 %v16373_v19, %v10938_v4  ;;  %v4040_v2 = vmul.f32 %v16374_v26, %v10938_v4  ;;  %v11005_v11 = vmul.f32 %v10396_v0, %v10664_v35 }
  0xd8   :  { %16371 = vst [vmem:[#allocation41_spill] sm:$0xff] %v10995_v24  ;;  %v4041_v21 = vmul.f32 %v16376_v10, %v10938_v4  ;;  %v3782_v20 = vmul.f32 %v10361_v50, %v10974_v6  ;;  %v3783_v35 = vmul.f32 %v10364_v51, %v10974_v6  ;;  %v434_v8 = vmul.f32 %v10965_v43, %v10965_v43 }
  0xd9   :  { %16375 = vst [vmem:[#allocation9_spill] sm:$0xff] %v11005_v11  ;;  %v11015_v9 = vadd.f32 %v4038_v34, %v3938_v40  ;;  %v11017_v49 = vadd.f32 %v4039_v25, %v3939_v27  ;;  %v11019_v23 = vadd.f32 %v4040_v2, %v3940_v5  ;;  %v11026_v44 = vadd.f32 %v16380_v7, %v173_v37  ;;  %v142_v37 = vpop.permute.xlu0 %141 }
  0xda   :  { %v178_v11 = vmul.f32 %v10442_v36, %v10855_v42  ;;  %v11030_v24 = vadd.f32 %v4041_v21, %v3941_v39  ;;  %v3784_v27 = vmul.f32 %v10373_v54, %v10974_v6  ;;  %v3785_v5 = vmul.f32 %v10383_v59, %v10974_v6 }
  0xdb   :  { %16377 = vst [vmem:[#allocation10_spill] sm:$0xff] %v11015_v9  ;;  %16378 = vst [vmem:[#allocation11_spill] sm:$0xff] %v11017_v49  ;;  %v3946_v40 = vadd.f32 %v10761_v55, %v3782_v20  ;;  %v3947_v34 = vadd.f32 %v10765_v3, %v3783_v35  ;;  %v263_v25 = vmul.f32 %v10370_v53, %v10747_v22  ;;  %v231_v35 = vpop.permute.xlu1 %230 }
  0xdc   :  { %16379 = vst [vmem:[#allocation12_spill] sm:$0xff] %v11019_v23  ;;  %16381 = vst [vmem:[#allocation13_spill] sm:$0xff] %v11030_v24  ;;  %v174_v7 = vmul.f32 %v10442_v36, %v10769_v58  ;;  %v4042_v42 = vmul.f32 %v16372_v12, %v323_v13  ;;  %v4043_v39 = vmul.f32 %v16373_v19, %v323_v13 }
  0xdd   :  { %v3948_v2 = vadd.f32 %v10773_v1, %v3784_v27  ;;  %v3949_v21 = vadd.f32 %v10777_v16, %v3785_v5  ;;  %v4044_v49 = vmul.f32 %v16374_v26, %v323_v13  ;;  %v4045_v55 = vmul.f32 %v16376_v10, %v323_v13  ;;  %v16387_v5 = vld [vmem:[#allocation16_spill] sm:$0xff] }
  0xde   :  { %v278_v3 = vadd.f32 %v10835_v18, %v178_v11  ;;  %v179_v22 = vmul.f32 %v10442_v36, %v10912_v48  ;;  %v11051_v20 = vadd.f32 %v4042_v42, %v3942_v14  ;;  %v11053_v58 = vadd.f32 %v4043_v39, %v3943_v29  ;;  %v16386_v29 = vld [vmem:[#allocation15_spill] sm:$0xff] }
  0xdf   :  { %v11055_v24 = vadd.f32 %v4044_v49, %v3944_v28  ;;  %v11057_v23 = vadd.f32 %v4045_v55, %v3945_v41  ;;  %v3786_v1 = vmul.f32 %v10361_v50, %v142_v37  ;;  %v3787_v16 = vmul.f32 %v10364_v51, %v142_v37 }
  0xe0   :  { %16382 = vst [vmem:[#allocation65_spill] sm:$0xff] %v11051_v20  ;;  %16383 = vst [vmem:[#allocation66_spill] sm:$0xff] %v11053_v58  ;;  %v11062_v27 = vsel %vm390_vm0, %v434_v8, 0.0  ;;  %v264_v18 = vmul.f32 %v10370_v53, %v10857_v46  ;;  %v3788_v48 = vmul.f32 %v10373_v54, %v142_v37  ;;  %v3789_v14 = vmul.f32 %v10383_v59, %v142_v37 }
  0xe1   :  { %16384 = vst [vmem:[#allocation67_spill] sm:$0xff] %v11055_v24  ;;  %16385 = vst [vmem:[#allocation68_spill] sm:$0xff] %v11057_v23  ;;  %v11069_v11 = vadd.f32 %v16386_v29, %v174_v7  ;;  %v3886_v28 = vmul.f32 %v10386_v60, %v231_v35  ;;  %v3887_v41 = vmul.f32 %v10389_v61, %v231_v35  ;;  %v327_v23 = vpop.permute.xlu1 %326 }
  0xe2   :  { %v3888_v49 = vmul.f32 %v10392_v62, %v231_v35  ;;  %v180_v8 = vmul.f32 %v10442_v36, %v10807_v45  ;;  %v11077_v42 = vadd.f32 %v16387_v5, %v278_v3  ;;  %v279_v46 = vadd.f32 %v263_v25, %v179_v22  ;;  %v16389_v3 = vld [vmem:[#allocation30_spill] sm:$0xff]  ;;  %v16391_v22 = vld [vmem:[#allocation31_spill] sm:$0xff] }
  0xe3   :  { %v3889_v39 = vmul.f32 %v10396_v0, %v231_v35  ;;  %v364_v55 = vmul.f32 %v10378_v56, %v10938_v4  ;;  %v3950_v7 = vadd.f32 %v3886_v28, %v3786_v1  ;;  %v3951_v29 = vadd.f32 %v3887_v41, %v3787_v16  ;;  %v16393_v4 = vld [vmem:[#allocation32_spill] sm:$0xff]  ;;  %v11095_v16 = vpop.permute.xlu0 %146 }
  0xe4   :  { %16388 = vst [vmem:[#allocation15_spill] sm:$0xff] %v11077_v42  ;;  %v3952_v58 = vadd.f32 %v3888_v49, %v3788_v48  ;;  %v280_v24 = vadd.f32 %v264_v18, %v180_v8  ;;  %v4046_v9 = vmul.f32 %v16372_v12, %v327_v23  ;;  %v4047_v43 = vmul.f32 %v16373_v19, %v327_v23  ;;  %v16395_v18 = vld [vmem:[#allocation21_spill] sm:$0xff] }
  0xe5   :  { %v3953_v20 = vadd.f32 %v3889_v39, %v3789_v14  ;;  %v181_v45 = vmul.f32 %v10442_v36, %v10896_v30  ;;  %v11087_v25 = vadd.f32 %v16389_v3, %v3950_v7  ;;  %v11090_v5 = vadd.f32 %v16391_v22, %v3951_v29  ;;  %v16397_v14 = vld [vmem:[#allocation33_spill] sm:$0xff]  ;;  %v235_v3 = vpop.permute.xlu1 %234 }
  0xe6   :  { %v11093_v1 = vadd.f32 %v16393_v4, %v3952_v58  ;;  %v11098_v48 = vadd.f32 %v16395_v18, %v279_v46  ;;  %v4048_v41 = vmul.f32 %v16374_v26, %v327_v23  ;;  %v4049_v30 = vmul.f32 %v16376_v10, %v327_v23 }
  0xe7   :  { %16390 = vst [vmem:[#allocation16_spill] sm:$0xff] %v11087_v25  ;;  %16392 = vst [vmem:[#allocation30_spill] sm:$0xff] %v11090_v5  ;;  %v11101_v28 = vadd.f32 %v16397_v14, %v3953_v20  ;;  %v11105_v49 = vadd.f32 %v364_v55, %v280_v24  ;;  %v365_v8 = vmul.f32 %v10378_v56, %v323_v13 }
  0xe8   :  { %16394 = vst [vmem:[#allocation31_spill] sm:$0xff] %v11093_v1  ;;  %16396 = vst [vmem:[#allocation32_spill] sm:$0xff] %v11098_v48  ;;  %v11108_v39 = vadd.f32 %v4046_v9, %v3946_v40  ;;  %v11110_v58 = vadd.f32 %v4047_v43, %v3947_v34  ;;  %v183_v7 = vmul.f32 %v10442_v36, %v142_v37 }
  0xe9   :  { %16398 = vst [vmem:[#allocation21_spill] sm:$0xff] %v11101_v28  ;;  %16399 = vst [vmem:[#allocation33_spill] sm:$0xff] %v11105_v49  ;;  %v11113_v29 = vadd.f32 %v4048_v41, %v3948_v2  ;;  %v11115_v46 = vadd.f32 %v4049_v30, %v3949_v21  ;;  %v3790_v20 = vmul.f32 %v10361_v50, %v11095_v16  ;;  %v16404_v21 = vld [vmem:[#allocation40_spill] sm:$0xff] }
  0xea   :  { %16400 = vst [vmem:[#allocation69_spill] sm:$0xff] %v11108_v39  ;;  %16401 = vst [vmem:[#allocation70_spill] sm:$0xff] %v11110_v58  ;;  %v267_v22 = vmul.f32 %v10370_v53, %v231_v35  ;;  %v3791_v24 = vmul.f32 %v10364_v51, %v11095_v16  ;;  %v3792_v13 = vmul.f32 %v10373_v54, %v11095_v16  ;;  %v11143_v25 = vpop.permute.xlu1 %151  ;;  %v16408_v39 = vld [vmem:[#allocation37_spill] sm:$0xff] }
  0xeb   :  { %16402 = vst [vmem:[#allocation71_spill] sm:$0xff] %v11113_v29  ;;  %16403 = vst [vmem:[#allocation72_spill] sm:$0xff] %v11115_v46  ;;  %v3793_v43 = vmul.f32 %v10383_v59, %v11095_v16  ;;  %v432_v9 = vmul.f32 %v10867_v33, %v10867_v33  ;;  %v435_v40 = vmul.f32 %v11077_v42, %v11077_v42  ;;  %v16406_v46 = vld [vmem:[#allocation36_spill] sm:$0xff] }
  0xec   :  { %v3890_v34 = vmul.f32 %v10386_v60, %v235_v3  ;;  %v3891_v37 = vmul.f32 %v10389_v61, %v235_v3  ;;  %v436_v2 = vmul.f32 %v11098_v48, %v11098_v48  ;;  %v281_v35 = vadd.f32 %v16404_v21, %v181_v45 }
  0xed   :  { %v3892_v55 = vmul.f32 %v10392_v62, %v235_v3  ;;  %v3893_v4 = vmul.f32 %v10396_v0, %v235_v3  ;;  %v437_v18 = vmul.f32 %v11105_v49, %v11105_v49  ;;  %v182_v14 = vmul.f32 %v10442_v36, %v10974_v6 }
  0xee   :  { %v3954_v41 = vadd.f32 %v3890_v34, %v3790_v20  ;;  %v3955_v30 = vadd.f32 %v3891_v37, %v3791_v24  ;;  %v11141_v5 = vadd.f32 %v365_v8, %v281_v35  ;;  %v283_v58 = vadd.f32 %v267_v22, %v183_v7  ;;  %v16410_v20 = vld [vmem:[#allocation38_spill] sm:$0xff]  ;;  %v16412_v24 = vld [vmem:[#allocation39_spill] sm:$0xff]  ;;  %v16414_v34 = vld [vmem:[#allocation29_spill] sm:$0xff] }
  0xef   :  { %v3956_v28 = vadd.f32 %v3892_v55, %v3792_v13  ;;  %v3957_v1 = vadd.f32 %v3893_v4, %v3793_v43  ;;  %v394_v45 = vsel %vm390_vm0, %v10867_v33, 0.0  ;;  %v11148_v21 = vsel %vm390_vm0, %v432_v9, 0.0  ;;  %v11194_v55 = vpop.permute.xlu1 %238 }
  0xf0   :  { %16405 = vst [vmem:[#allocation40_spill] sm:$0xff] %v11141_v5  ;;  %v11151_v29 = vadd.f32 %v16406_v46, %v3954_v41  ;;  %v11154_v6 = vadd.f32 %v16408_v39, %v3955_v30  ;;  %v11158_v8 = vsel %vm390_vm0, %v11077_v42, 0.0  ;;  %v11161_v7 = vsel %vm390_vm0, %v435_v40, 0.0 }
  0xf1   :  { %v11164_v22 = vadd.f32 %v16410_v20, %v3956_v28  ;;  %v11167_v13 = vadd.f32 %v16412_v24, %v3957_v1  ;;  %v11171_v46 = vsel %vm390_vm0, %v11098_v48, 0.0  ;;  %v11174_v39 = vsel %vm390_vm0, %v436_v2, 0.0 }
  0xf2   :  { %16407 = vst [vmem:[#allocation36_spill] sm:$0xff] %v11151_v29  ;;  %16409 = vst [vmem:[#allocation37_spill] sm:$0xff] %v11154_v6  ;;  %v11178_v43 = vsel %vm390_vm0, %v11105_v49, 0.0  ;;  %v366_v9 = vmul.f32 %v10378_v56, %v327_v23  ;;  %v11182_v40 = vsel %vm390_vm0, %v437_v18, 0.0  ;;  %v282_v28 = vadd.f32 %v10755_v47, %v182_v14  ;;  %v16416_v23 = vld [vmem:[#allocation14_spill] sm:$0xff] }
  0xf3   :  { %16411 = vst [vmem:[#allocation38_spill] sm:$0xff] %v11164_v22  ;;  %16413 = vst [vmem:[#allocation39_spill] sm:$0xff] %v11167_v13  ;;  %v438_v1 = vmul.f32 %v11141_v5, %v11141_v5  ;;  %v11188_v37 = vadd.f32 %v16414_v34, %v283_v58  ;;  %v3794_v2 = vmul.f32 %v10361_v50, %v11143_v25  ;;  %v16418_v47 = vld [vmem:[#allocation34_spill] sm:$0xff]  ;;  %v11229_v29 = vsel %vm390_vm0, %v11141_v5, 0.0  ;;  %v167_v5 = vpop.permute.xlu0 %166 }
  0xf4   :  { %v3795_v35 = vmul.f32 %v10364_v51, %v11143_v25  ;;  %v11198_v4 = vadd.f32 %v16416_v23, %v11026_v44  ;;  %v11202_v18 = vadd.f32 %v16418_v47, %v11069_v11  ;;  %v3796_v58 = vmul.f32 %v10373_v54, %v11143_v25 }
  0xf5   :  { %16415 = vst [vmem:[#allocation29_spill] sm:$0xff] %v11188_v37  ;;  %v3894_v14 = vmul.f32 %v10386_v60, %v11194_v55  ;;  %v3895_v41 = vmul.f32 %v10389_v61, %v11194_v55  ;;  %v3896_v30 = vmul.f32 %v10392_v62, %v11194_v55  ;;  %v11212_v20 = vadd.f32 %v366_v9, %v282_v28 }
  0xf6   :  { %16417 = vst [vmem:[#allocation14_spill] sm:$0xff] %v11198_v4  ;;  %16419 = vst [vmem:[#allocation34_spill] sm:$0xff] %v11202_v18  ;;  %v3797_v44 = vmul.f32 %v10383_v59, %v11143_v25  ;;  %v3897_v11 = vmul.f32 %v10396_v0, %v11194_v55  ;;  %v392_v24 = vsel %vm390_vm0, %v11202_v18, 0.0  ;;  %v184_v34 = vmul.f32 %v10442_v36, %v11095_v16  ;;  %v11233_v16 = vpop.permute.xlu1 %156 }
  0xf7   :  { %16420 = vst [vmem:[#allocation73_spill] sm:$0xff] %v11212_v20  ;;  %v3958_v23 = vadd.f32 %v3894_v14, %v3794_v2  ;;  %v3959_v47 = vadd.f32 %v3895_v41, %v3795_v35  ;;  %v3960_v6 = vadd.f32 %v3896_v30, %v3796_v58  ;;  %v268_v13 = vmul.f32 %v10370_v53, %v235_v3 }
  0xf8   :  { %v3961_v22 = vadd.f32 %v3897_v11, %v3797_v44  ;;  %v391_v9 = vsel %vm390_vm0, %v11198_v4, 0.0  ;;  %v431_v28 = vmul.f32 %v11202_v18, %v11202_v18  ;;  %v440_v49 = vmul.f32 %v11188_v37, %v11188_v37 }
  0xf9   :  { %v393_v2 = vadd.f32 %v392_v24, %v391_v9  ;;  %v430_v3 = vmul.f32 %v11198_v4, %v11198_v4  ;;  %v439_v35 = vmul.f32 %v11212_v20, %v11212_v20  ;;  %v3798_v58 = vmul.f32 %v10361_v50, %v11233_v16 }
  0xfa   :  { %v3799_v14 = vmul.f32 %v10364_v51, %v11233_v16  ;;  %v3800_v41 = vmul.f32 %v10373_v54, %v11233_v16  ;;  %v11246_v30 = vsel %vm390_vm0, %v438_v1, 0.0  ;;  %v3801_v44 = vmul.f32 %v10383_v59, %v11233_v16 }
  0xfb   :  { %v395_v11 = vadd.f32 %v394_v45, %v393_v2  ;;  %v447_v24 = vsel %vm390_vm0, %v431_v28, 0.0  ;;  %v284_v9 = vadd.f32 %v268_v13, %v184_v34  ;;  %v11252_v48 = vadd.f32 %v10815_v52, %v3798_v58  ;;  %v16421_v45 = vld [vmem:[#allocation49_spill] sm:$0xff]  ;;  %v339_v34 = vpop.permute.xlu1 %338 }
  0xfc   :  { %v11255_v42 = vadd.f32 %v10819_v15, %v3799_v14  ;;  %v11258_v33 = vadd.f32 %v10823_v31, %v3800_v41  ;;  %v11262_v1 = vsel %vm390_vm0, %v11188_v37, 0.0  ;;  %v11265_v18 = vadd.f32 %v10831_v32, %v3801_v44  ;;  %v16422_v41 = vld [vmem:[#allocation35_spill] sm:$0xff] }
  0xfd   :  { %v397_v28 = vadd.f32 %v16421_v45, %v395_v11  ;;  %v446_v13 = vsel %vm390_vm0, %v430_v3, 0.0  ;;  %v11270_v52 = vsel %vm390_vm0, %v440_v49, 0.0  ;;  %v408_v15 = vsel %vm390_vm0, %v11212_v20, 0.0 }
  0xfe   :  { %v11275_v31 = vsel %vm390_vm0, %v439_v35, 0.0  ;;  %v448_v2 = vadd.f32 %v447_v24, %v446_v13  ;;  %v11278_v58 = vmul.f32 %v10442_v36, %v167_v5  ;;  %v4058_v32 = vmul.f32 %v16372_v12, %v339_v34 }
  0xff   :  { %v4059_v14 = vmul.f32 %v16373_v19, %v339_v34  ;;  %v4060_v3 = vmul.f32 %v16374_v26, %v339_v34  ;;  %v11284_v49 = vadd.f32 %v16422_v41, %v284_v9  ;;  %v4061_v44 = vmul.f32 %v16376_v10, %v339_v34 }
 0x100   :  { %v399_v11 = vadd.f32 %v11009_v38, %v397_v28  ;;  %v450_v35 = vadd.f32 %v11148_v21, %v448_v2  ;;  %v11290_v24 = vmul.f32 %v10361_v50, %v167_v5  ;;  %v11292_v45 = vadd.f32 %v4058_v32, %v3958_v23  ;;  %v351_v2 = vpop.permute.xlu0 %350 }
 0x101   :  { %v11294_v13 = vadd.f32 %v4059_v14, %v3959_v47  ;;  %v11296_v37 = vadd.f32 %v4060_v3, %v3960_v6  ;;  %v3807_v20 = vmul.f32 %v10364_v51, %v167_v5  ;;  %v11299_v4 = vadd.f32 %v4061_v44, %v3961_v22  ;;  %v162_v6 = vpop.permute.xlu1 %161 }
 0x102   :  { %16423 = vst [vmem:[#allocation49_spill] sm:$0xff] %v11292_v45  ;;  %v401_v9 = vadd.f32 %v11158_v8, %v399_v11  ;;  %v452_v41 = vadd.f32 %v10948_v57, %v450_v35  ;;  %v185_v38 = vmul.f32 %v10442_v36, %v11143_v25  ;;  %v3808_v21 = vmul.f32 %v10373_v54, %v167_v5  ;;  %v16428_v35 = vld [vmem:[#allocation9_spill] sm:$0xff] }
 0x103   :  { %16424 = vst [vmem:[#allocation35_spill] sm:$0xff] %v11294_v13  ;;  %16425 = vst [vmem:[#allocation74_spill] sm:$0xff] %v11296_v37  ;;  %v3809_v23 = vmul.f32 %v10383_v59, %v167_v5  ;;  %v269_v47 = vmul.f32 %v10370_v53, %v11194_v55  ;;  %v412_v28 = vsel %vm390_vm0, %v11284_v49, 0.0  ;;  %v3802_v22 = vmul.f32 %v10361_v50, %v162_v6  ;;  %v16427_v50 = vld [vmem:[#allocation41_spill] sm:$0xff] }
 0x104   :  { %16426 = vst [vmem:[#allocation75_spill] sm:$0xff] %v11299_v4  ;;  %v3803_v8 = vmul.f32 %v10364_v51, %v162_v6  ;;  %v3804_v57 = vmul.f32 %v10373_v54, %v162_v6  ;;  %v441_v25 = vmul.f32 %v11284_v49, %v11284_v49  ;;  %v369_v32 = vmul.f32 %v10378_v56, %v339_v34 }
 0x105   :  { %v3805_v5 = vmul.f32 %v10383_v59, %v162_v6  ;;  %v454_v55 = vadd.f32 %v11062_v27, %v452_v41  ;;  %v11320_v14 = vadd.f32 %v10978_v63, %v3802_v22  ;;  %v403_v54 = vadd.f32 %v11171_v46, %v401_v9  ;;  %v343_v27 = vpop.permute.xlu1 %342 }
 0x106   :  { %v11323_v3 = vadd.f32 %v10982_v17, %v3803_v8  ;;  %v11326_v51 = vadd.f32 %v16427_v50, %v3804_v57  ;;  %v285_v44 = vadd.f32 %v269_v47, %v185_v38  ;;  %v372_v11 = vmul.f32 %v10378_v56, %v351_v2 }
 0x107   :  { %v11331_v34 = vadd.f32 %v16428_v35, %v3805_v5  ;;  %v456_v59 = vadd.f32 %v11161_v7, %v454_v55  ;;  %v186_v63 = vmul.f32 %v10442_v36, %v11233_v16  ;;  %v4070_v17 = vmul.f32 %v16372_v12, %v351_v2 }
 0x108   :  { %v4071_v41 = vmul.f32 %v16373_v19, %v351_v2  ;;  %v405_v22 = vadd.f32 %v11178_v43, %v403_v54  ;;  %v11339_v8 = vadd.f32 %v369_v32, %v285_v44  ;;  %v4062_v46 = vmul.f32 %v16372_v12, %v343_v27 }
 0x109   :  { %v4063_v9 = vmul.f32 %v16373_v19, %v343_v27  ;;  %v4064_v38 = vmul.f32 %v16374_v26, %v343_v27  ;;  %v370_v7 = vmul.f32 %v10378_v56, %v343_v27  ;;  %v4065_v47 = vmul.f32 %v16376_v10, %v343_v27 }
 0x10a   :  { %v4072_v16 = vmul.f32 %v16374_v26, %v351_v2  ;;  %v407_v57 = vadd.f32 %v11229_v29, %v405_v22  ;;  %v11349_v5 = vadd.f32 %v4062_v46, %v11252_v48  ;;  %v458_v55 = vadd.f32 %v11174_v39, %v456_v59  ;;  %v16433_v29 = vld [vmem:[#allocation52_spill] sm:$0xff]  ;;  %v251_v22 = vpop.permute.xlu1 %250 }
 0x10b   :  { %v11352_v43 = vadd.f32 %v4063_v9, %v11255_v42  ;;  %v11355_v32 = vadd.f32 %v4064_v38, %v11258_v33  ;;  %v467_v50 = vsel %vm390_vm0, %v441_v25, 0.0  ;;  %v11360_v54 = vadd.f32 %v4065_v47, %v11265_v18  ;;  %v16434_v9 = vld [vmem:[#allocation62_spill] sm:$0xff] }
 0x10c   :  { %16429 = vst [vmem:[#allocation41_spill] sm:$0xff] %v11349_v5  ;;  %v4073_v44 = vmul.f32 %v16376_v10, %v351_v2  ;;  %v409_v35 = vadd.f32 %v408_v15, %v407_v57  ;;  %v286_v27 = vadd.f32 %v16433_v29, %v186_v63  ;;  %v414_v48 = vsel %vm390_vm0, %v11339_v8, 0.0 }
 0x10d   :  { %16430 = vst [vmem:[#allocation9_spill] sm:$0xff] %v11352_v43  ;;  %16431 = vst [vmem:[#allocation76_spill] sm:$0xff] %v11355_v32  ;;  %v187_v42 = vmul.f32 %v10442_v36, %v162_v6  ;;  %v460_v33 = vadd.f32 %v11182_v40, %v458_v55  ;;  %v272_v39 = vmul.f32 %v10370_v53, %v251_v22 }
 0x10e   :  { %16432 = vst [vmem:[#allocation77_spill] sm:$0xff] %v11360_v54  ;;  %v3906_v25 = vmul.f32 %v10386_v60, %v251_v22  ;;  %v3907_v18 = vmul.f32 %v10389_v61, %v251_v22  ;;  %v3908_v59 = vmul.f32 %v10392_v62, %v251_v22  ;;  %v442_v15 = vmul.f32 %v11339_v8, %v11339_v8 }
 0x10f   :  { %v11374_v2 = vadd.f32 %v370_v7, %v286_v27  ;;  %v3909_v63 = vmul.f32 %v10396_v0, %v251_v22  ;;  %v411_v36 = vadd.f32 %v11262_v1, %v409_v35  ;;  %v462_v53 = vadd.f32 %v11246_v30, %v460_v33  ;;  %v347_v0 = vpop.permute.xlu1 %346 }
 0x110   :  { %v3970_v6 = vadd.f32 %v3906_v25, %v11290_v24  ;;  %v3971_v40 = vadd.f32 %v3907_v18, %v3807_v20  ;;  %v3972_v46 = vadd.f32 %v3908_v59, %v3808_v21  ;;  %v288_v60 = vadd.f32 %v272_v39, %v11278_v58 }
 0x111   :  { %v3973_v61 = vadd.f32 %v3909_v63, %v3809_v23  ;;  %v287_v62 = vadd.f32 %v16434_v9, %v187_v42  ;;  %v413_v38 = vadd.f32 %v412_v28, %v411_v36  ;;  %v464_v1 = vadd.f32 %v11275_v31, %v462_v53 }
 0x112   :  { %v11382_v47 = vadd.f32 %v4070_v17, %v3970_v6  ;;  %v11384_v7 = vadd.f32 %v4071_v41, %v3971_v40  ;;  %v11386_v57 = vadd.f32 %v4072_v16, %v3972_v46  ;;  %v371_v20 = vmul.f32 %v10378_v56, %v347_v0 }
 0x113   :  { %v11389_v24 = vadd.f32 %v4073_v44, %v3973_v61  ;;  %v4066_v30 = vmul.f32 %v16372_v12, %v347_v0  ;;  %v4067_v58 = vmul.f32 %v16373_v19, %v347_v0  ;;  %v416_v21 = vsel %vm390_vm0, %v11374_v2, 0.0 }
 0x114   :  { %16435 = vst [vmem:[#allocation52_spill] sm:$0xff] %v11382_v47  ;;  %16436 = vst [vmem:[#allocation62_spill] sm:$0xff] %v11384_v7  ;;  %v443_v23 = vmul.f32 %v11374_v2, %v11374_v2  ;;  %v4068_v28 = vmul.f32 %v16374_v26, %v347_v0  ;;  %v4069_v17 = vmul.f32 %v16376_v10, %v347_v0  ;;  %v469_v10 = vsel %vm390_vm0, %v442_v15, 0.0 }
 0x115   :  { %16437 = vst [vmem:[#allocation78_spill] sm:$0xff] %v11386_v57  ;;  %16438 = vst [vmem:[#allocation79_spill] sm:$0xff] %v11389_v24  ;;  %v11400_v41 = vadd.f32 %v371_v20, %v287_v62  ;;  %v11403_v31 = vadd.f32 %v4066_v30, %v11320_v14  ;;  %v11406_v56 = vadd.f32 %v4067_v58, %v11323_v3  ;;  %v389_v20 = vld [vmem:[%s16443_s11] sm:$0x3]  ;;  %v9576_v57 = vld [vmem:[%s16078_s12 + $0x84] ss:$16 sps:$4 sm:$0xff]  }
 0x116   :  { %v415_v12 = vadd.f32 %v414_v48, %v413_v38  ;;  %v11408_v19 = vadd.f32 %v372_v11, %v288_v60  ;;  %v11411_v16 = vadd.f32 %v4068_v28, %v11326_v51  ;;  %v11414_v55 = vadd.f32 %v4069_v17, %v11331_v34 }
 0x117   :  { %16439 = vst [vmem:[#allocation80_spill] sm:$0xff] %v11403_v31  ;;  %16440 = vst [vmem:[#allocation81_spill] sm:$0xff] %v11406_v56  ;;  %v466_v26 = vadd.f32 %v11270_v52, %v464_v1  ;;  %v418_v14 = vsel %vm390_vm0, %v11400_v41, 0.0  ;;  %v444_v3 = vmul.f32 %v11400_v41, %v11400_v41  ;;  %v471_v11 = vsel %vm390_vm0, %v443_v23, 0.0  ;;  %v16444_v23 = vld [vmem:[#allocation3_spill] sm:$0xff] }
 0x118   :  { %16441 = vst [vmem:[#allocation82_spill] sm:$0xff] %v11411_v16  ;;  %16442 = vst [vmem:[#allocation83_spill] sm:$0xff] %v11414_v55  ;;  %v417_v44 = vadd.f32 %v416_v21, %v415_v12  ;;  %v420_v51 = vsel %vm390_vm0, %v11408_v19, 0.0  ;;  %v445_v52 = vmul.f32 %v11408_v19, %v11408_v19 }
 0x119   :  { %v468_v35 = vadd.f32 %v467_v50, %v466_v26  ;;  %v473_v27 = vsel %vm390_vm0, %v444_v3, 0.0  ;;  %v16445_v26 = vld [vmem:[#allocation14_spill] sm:$0xff] }
 0x11a   :  { %v419_v29 = vadd.f32 %v418_v14, %v417_v44  ;;  %v475_v39 = vsel %vm390_vm0, %v445_v52, 0.0  ;;  %v16446_v14 = vld [vmem:[#allocation34_spill] sm:$0xff]  ;;  %v16447_v44 = vld [vmem:[#allocation5_spill] sm:$0xff]  ;;  %v16450_v52 = vld [vmem:[#allocation64_spill] sm:$0xff] }
 0x11b   :  { %v470_v34 = vadd.f32 %v469_v10, %v468_v35 }
 0x11c   :  { %v421_v48 = vadd.f32 %v420_v51, %v419_v29  ;;  %v16449_v51 = vld [vmem:[#allocation46_spill] sm:$0xff] }
 0x11d   :  { %v472_v42 = vadd.f32 %v471_v11, %v470_v34  ;;  %v16448_v11 = vld [vmem:[#allocation57_spill] sm:$0xff] }
 0x11e   :  { %v422_v22 = vrot.slane %v421_v48, 4 }
 0x11f   :  { %v474_v33 = vadd.f32 %v473_v27, %v472_v42 }
 0x120   :  { %v423_v25 = vadd.f32 %v422_v22, %v421_v48  ;;  %v16451_v48 = vld [vmem:[#allocation15_spill] sm:$0xff] }
 0x121   :  { %v476_v50 = vadd.f32 %v475_v39, %v474_v33 }
 0x122   :  { %v424_v18 = vrot.slane %v423_v25, 2 }
 0x123   :  { %v477_v59 = vrot.slane %v476_v50, 4 }
 0x124   :  { %v425_v15 = vadd.f32 %v424_v18, %v423_v25 }
 0x125   :  { %v478_v63 = vadd.f32 %v477_v59, %v476_v50 }
 0x126   :  { %v426_v36 = vrot.slane %v425_v15, 1 }
 0x127   :  { %v479_v6 = vrot.slane %v478_v63, 2 }
 0x128   :  { %v427_v40 = vadd.f32 %v426_v36, %v425_v15 }
 0x129   :  { %v480_v46 = vadd.f32 %v479_v6, %v478_v63 }
 0x12a   :  { %v429_v53 = vmul.f32 0.0078125, %v427_v40 }
 0x12b   :  { %v481_v60 = vrot.slane %v480_v46, 1 }
 0x12c   :  { %v484_v9 = vmul.f32 %v429_v53, %v429_v53 }
 0x12d   :  { %v482_v61 = vadd.f32 %v481_v60, %v480_v46  ;;  %v16452_v46 = vld [vmem:[#allocation32_spill] sm:$0xff]  ;;  %v16453_v60 = vld [vmem:[#allocation33_spill] sm:$0xff] }
 0x12f   :  { %v483_v62 = vmul.f32 0.0078125, %v482_v61 }
 0x131   :  { %v485_v38 = vsub.f32 %v483_v62, %v484_v9 }
 0x133   :  { %v486_v0 = vmax.f32 %v485_v38, 0.0  ;;  %v16454_v38 = vld [vmem:[#allocation40_spill] sm:$0xff] }
 0x135   :  { %v487_v1 = vadd.f32 1e-05, %v486_v0 }
 0x137   :  { %10058 = vrsqrt.f32 %v487_v1  ;;  %v16455_v1 = vld [vmem:[#allocation73_spill] sm:$0xff] }
 0x141   :  { %v10059_v30 = vpop.eup %10058 }
 0x142   :  { %v489_v58 = vmul.f32 %v10059_v30, %v389_v20 }
 0x144   :  { %v490_v21 = vmul.f32 %v489_v58, %v429_v53  ;;  %v498_v28 = vrot.slane %v489_v58, %v16444_v23 }
 0x146   :  { %v492_v17 = vrot.slane %v490_v21, 7  ;;  %v499_v10 = vmul.f32 %v498_v28, %v16445_v26  ;;  %v500_v3 = vmul.f32 %v498_v28, %v16446_v14  ;;  %v501_v29 = vmul.f32 %v498_v28, %v16448_v11 }
 0x147   :  { %v502_v34 = vmul.f32 %v498_v28, %v16449_v51  ;;  %v503_v27 = vmul.f32 %v498_v28, %v16450_v52  ;;  %v504_v42 = vmul.f32 %v498_v28, %v16451_v48  ;;  %v505_v53 = vmul.f32 %v498_v28, %v16452_v46 }
 0x148   :  { %v494_v12 = vsub.f32 %v389_v20, %v492_v17  ;;  %v506_v61 = vmul.f32 %v498_v28, %v16453_v60  ;;  %v507_v0 = vmul.f32 %v498_v28, %v16454_v38  ;;  %v508_v20 = vmul.f32 %v498_v28, %v16455_v1 }
 0x149   :  { %v513_v21 = vmul.f32 %v498_v28, %v11400_v41  ;;  %v514_v17 = vmul.f32 %v498_v28, %v11408_v19  ;;  %v16456_v41 = vld [vmem:[#allocation29_spill] sm:$0xff]  ;;  %v510_v19 = vmul.f32 %v498_v28, %v11284_v49 }
 0x14a   :  { %v518_v35 = vrot.slane %v494_v12, %v16447_v44  ;;  %v509_v48 = vmul.f32 %v498_v28, %v16456_v41 }
 0x14c   :  { %v519_v22 = vadd.f32 %v518_v35, %v499_v10  ;;  %v520_v33 = vadd.f32 %v518_v35, %v500_v3  ;;  %v521_v39 = vadd.f32 %v518_v35, %v501_v29  ;;  %v522_v25 = vadd.f32 %v518_v35, %v502_v34 }
 0x14d   :  { %v523_v50 = vadd.f32 %v518_v35, %v503_v27  ;;  %v524_v18 = vadd.f32 %v518_v35, %v504_v42  ;;  %v525_v30 = vadd.f32 %v518_v35, %v505_v53  ;;  %v526_v58 = vadd.f32 %v518_v35, %v506_v61 }
 0x14e   :  { %v535_v59 = vmax.f32 %v519_v22, 0.0  ;;  %v536_v15 = vmax.f32 %v520_v33, 0.0  ;;  %v537_v63 = vmax.f32 %v521_v39, 0.0  ;;  %v538_v36 = vmax.f32 %v522_v25, 0.0 }
 0x14f   :  { %v539_v6 = vmax.f32 %v523_v50, 0.0  ;;  %v540_v40 = vmax.f32 %v524_v18, 0.0  ;;  %v527_v26 = vadd.f32 %v518_v35, %v507_v0  ;;  %v528_v10 = vadd.f32 %v518_v35, %v508_v20 }
 0x150   :  { %v551_v9 = vpack.c.bf16 %v536_v15, %v535_v59  ;;  %v552_v62 = vpack.c.bf16 %v538_v36, %v537_v63  ;;  %v533_v14 = vadd.f32 %v518_v35, %v513_v21  ;;  %v534_v3 = vadd.f32 %v518_v35, %v514_v17 }
 0x151   :  { %v553_v12 = vpack.c.bf16 %v540_v40, %v539_v6  ;;  %v541_v11 = vmax.f32 %v525_v30, 0.0  ;;  %v542_v29 = vmax.f32 %v526_v58, 0.0  ;;  %v543_v52 = vmax.f32 %v527_v26, 0.0 }
 0x152   :  { %9327 = vmatprep.mubr.msk.bf16.mxu0 %vm390_vm0, %v551_v9  ;;  %v549_v51 = vmax.f32 %v533_v14, 0.0  ;;  %v550_v34 = vmax.f32 %v534_v3, 0.0  ;;  %v544_v27 = vmax.f32 %v528_v10, 0.0  ;;  %v511_v22 = vmul.f32 %v498_v28, %v11339_v8  ;;  %v9542_v8 = vld [vmem:[%s16457_s25] sm:$0xff]  }
 0x153   :  { %9328 = vmatmul.mubr.msk.bf16.vlgmr.msra.gmra.mrb[0].mxu0 %vm390_vm0, %v552_v62  ;;  %v512_v33 = vmul.f32 %v498_v28, %v11374_v2  ;;  %v554_v39 = vpack.c.bf16 %v542_v29, %v541_v11  ;;  %v529_v25 = vadd.f32 %v518_v35, %v509_v48  ;;  %v530_v50 = vadd.f32 %v518_v35, %v510_v19  ;;  %v9543_v2 = vld [vmem:[%s16457_s25 + $0x8] sm:$0xff]   ;;  %v9544_v28 = vld [vmem:[%s16457_s25 + $0x10] sm:$0xff]  }
 0x154   :  { %9331 = vmatprep.mubr.msk.bf16.mxu0 %vm390_vm0, %v553_v12  ;;  %v558_v42 = vpack.c.bf16 %v550_v34, %v549_v51  ;;  %v555_v18 = vpack.c.bf16 %v544_v27, %v543_v52  ;;  %v531_v59 = vadd.f32 %v518_v35, %v511_v22  ;;  %9343 = vmatprep.subr.bf16.mxu1 %v9542_v8 }
 0x155   :  { %v532_v15 = vadd.f32 %v518_v35, %v512_v33  ;;  %v545_v63 = vmax.f32 %v529_v25, 0.0  ;;  %v546_v36 = vmax.f32 %v530_v50, 0.0  ;;  %9344 = vmatpush3.bf16.msra.mxu1 %v9542_v8  ;;  %v9545_v35 = vld [vmem:[%s16457_s25 + $0x18] sm:$0xff]  }
 0x156   :  { %v547_v6 = vmax.f32 %v531_v59, 0.0  ;;  %9345 = vmatprep.subr.bf16.mxu1 %v9543_v2 }
 0x157   :  { %v548_v40 = vmax.f32 %v532_v15, 0.0  ;;  %v556_v49 = vpack.c.bf16 %v546_v36, %v545_v63 }
 0x159   :  { %v557_v46 = vpack.c.bf16 %v548_v40, %v547_v6  ;;  %9346 = vmatpush3.bf16.msra.mxu1 %v9543_v2 }
 0x15a   :  { %9347 = vmatprep.subr.bf16.mxu1 %v9544_v28 }
 0x15b   :  { %9332 = vmatmul.mubr.msk.bf16.gmra.mrb[4].mxu0 %vm390_vm0, %v554_v39 }
 0x15c   :  { %9335 = vmatprep.mubr.msk.bf16.mxu0 %vm390_vm0, %v555_v18 }
 0x15d   :  { %9348 = vmatpush3.bf16.msra.mxu1 %v9544_v28 }
 0x15e   :  { %9349 = vmatprep.subr.bf16.mxu1 %v9545_v35 }
 0x161   :  { %9350 = vmatpush3.bf16.msra.mxu1 %v9545_v35 }
 0x163   :  { %9336 = vmatmul.mubr.msk.bf16.gmra.mrb[8].mxu0 %vm390_vm0, %v556_v49 }
 0x164   :  { %9339 = vmatprep.mubr.msk.bf16.mxu0 %vm390_vm0, %v557_v46 }
 0x16b   :  { %9340 = vmatmul.mubr.msk.bf16.gmra.mrb[12].mxu0 %vm390_vm0, %v558_v42 }
 0x226   :  { %v11470_v53 = vpop.f32.mrb[0].mxu0 }
 0x227   :  { %v11472_v60 = vpop.f32.mrb[1].mxu0  ;;  %v753_v38 = vmul.f32 %v11470_v53, %v11470_v53  ;;  %v716_v58 = vsel %vm390_vm0, %v11470_v53, 0.0 }
 0x228   :  { %v751_v61 = vmul.f32 %v11472_v60, %v11472_v60  ;;  %v11476_v9 = vpop.f32.mrb[2].mxu0  ;;  %v713_v0 = vsel %vm390_vm0, %v11472_v60, 0.0 }
 0x229   :  { %v11478_v62 = vpop.f32.mrb[3].mxu0  ;;  %v754_v17 = vmul.f32 %v11476_v9, %v11476_v9  ;;  %v770_v14 = vsel %vm390_vm0, %v753_v38, 0.0  ;;  %v718_v3 = vsel %vm390_vm0, %v11476_v9, 0.0 }
 0x22a   :  { %v714_v1 = vsel %vm390_vm0, %v11478_v62, 0.0  ;;  %v752_v20 = vmul.f32 %v11478_v62, %v11478_v62  ;;  %v767_v21 = vsel %vm390_vm0, %v751_v61, 0.0 }
 0x22b   :  { %v715_v30 = vadd.f32 %v714_v1, %v713_v0  ;;  %v772_v52 = vsel %vm390_vm0, %v754_v17, 0.0 }
 0x22c   :  { %v768_v12 = vsel %vm390_vm0, %v752_v20, 0.0 }
 0x22d   :  { %v717_v26 = vadd.f32 %v716_v58, %v715_v30  ;;  %v769_v10 = vadd.f32 %v768_v12, %v767_v21 }
 0x22e   :  { %v11497_v11 = vpop.f32.mrb[4].mxu0 }
 0x22f   :  { %v771_v29 = vadd.f32 %v770_v14, %v769_v10  ;;  %v11499_v51 = vpop.f32.mrb[5].mxu0  ;;  %v719_v34 = vadd.f32 %v718_v3, %v717_v26  ;;  %v757_v33 = vmul.f32 %v11497_v11, %v11497_v11  ;;  %v724_v15 = vsel %vm390_vm0, %v11497_v11, 0.0 }
 0x230   :  { %v720_v27 = vsel %vm390_vm0, %v11499_v51, 0.0  ;;  %v755_v41 = vmul.f32 %v11499_v51, %v11499_v51  ;;  %v11506_v48 = vpop.f32.mrb[6].mxu0 }
 0x231   :  { %v721_v19 = vadd.f32 %v720_v27, %v719_v34  ;;  %v773_v42 = vadd.f32 %v772_v52, %v771_v29  ;;  %v11508_v22 = vpop.f32.mrb[7].mxu0  ;;  %v758_v63 = vmul.f32 %v11506_v48, %v11506_v48  ;;  %v778_v49 = vsel %vm390_vm0, %v757_v33, 0.0 }
 0x232   :  { %v774_v39 = vsel %vm390_vm0, %v755_v41, 0.0  ;;  %v722_v25 = vsel %vm390_vm0, %v11508_v22, 0.0  ;;  %v756_v50 = vmul.f32 %v11508_v22, %v11508_v22  ;;  %v726_v46 = vsel %vm390_vm0, %v11506_v48, 0.0 }
 0x233   :  { %v775_v18 = vadd.f32 %v774_v39, %v773_v42  ;;  %v723_v59 = vadd.f32 %v722_v25, %v721_v19  ;;  %v780_v61 = vsel %vm390_vm0, %v758_v63, 0.0 }
 0x234   :  { %v776_v36 = vsel %vm390_vm0, %v756_v50, 0.0 }
 0x235   :  { %v725_v6 = vadd.f32 %v724_v15, %v723_v59  ;;  %v777_v40 = vadd.f32 %v776_v36, %v775_v18 }
 0x236   :  { %v11525_v8 = vpop.f32.mrb[8].mxu0 }
 0x237   :  { %v779_v2 = vadd.f32 %v778_v49, %v777_v40  ;;  %v11527_v28 = vpop.f32.mrb[9].mxu0  ;;  %v727_v35 = vadd.f32 %v726_v46, %v725_v6  ;;  %v761_v21 = vmul.f32 %v11525_v8, %v11525_v8  ;;  %v732_v3 = vsel %vm390_vm0, %v11525_v8, 0.0 }
 0x238   :  { %v728_v38 = vsel %vm390_vm0, %v11527_v28, 0.0  ;;  %v759_v0 = vmul.f32 %v11527_v28, %v11527_v28  ;;  %v11534_v1 = vpop.f32.mrb[10].mxu0 }
 0x239   :  { %v729_v20 = vadd.f32 %v728_v38, %v727_v35  ;;  %v781_v30 = vadd.f32 %v780_v61, %v779_v2  ;;  %v11536_v58 = vpop.f32.mrb[11].mxu0  ;;  %v762_v29 = vmul.f32 %v11534_v1, %v11534_v1  ;;  %v786_v41 = vsel %vm390_vm0, %v761_v21, 0.0 }
 0x23a   :  { %v782_v17 = vsel %vm390_vm0, %v759_v0, 0.0  ;;  %v730_v12 = vsel %vm390_vm0, %v11536_v58, 0.0  ;;  %v760_v26 = vmul.f32 %v11536_v58, %v11536_v58  ;;  %v734_v19 = vsel %vm390_vm0, %v11534_v1, 0.0 }
 0x23b   :  { %v783_v10 = vadd.f32 %v782_v17, %v781_v30  ;;  %v731_v14 = vadd.f32 %v730_v12, %v729_v20  ;;  %v788_v50 = vsel %vm390_vm0, %v762_v29, 0.0 }
 0x23c   :  { %v784_v34 = vsel %vm390_vm0, %v760_v26, 0.0 }
 0x23d   :  { %v733_v52 = vadd.f32 %v732_v3, %v731_v14  ;;  %v785_v27 = vadd.f32 %v784_v34, %v783_v10 }
 0x23e   :  { %v11553_v42 = vpop.f32.mrb[12].mxu0 }
 0x23f   :  { %v787_v33 = vadd.f32 %v786_v41, %v785_v27  ;;  %v11555_v39 = vpop.f32.mrb[13].mxu0  ;;  %v735_v25 = vadd.f32 %v734_v19, %v733_v52  ;;  %v765_v40 = vmul.f32 %v11553_v42, %v11553_v42  ;;  %v740_v38 = vsel %vm390_vm0, %v11553_v42, 0.0 }
 0x240   :  { %v736_v18 = vsel %vm390_vm0, %v11555_v39, 0.0  ;;  %v763_v59 = vmul.f32 %v11555_v39, %v11555_v39  ;;  %v11562_v15 = vpop.f32.mrb[14].mxu0 }
 0x241   :  { %v737_v63 = vadd.f32 %v736_v18, %v735_v25  ;;  %v789_v36 = vadd.f32 %v788_v50, %v787_v33  ;;  %v700_v6 = vpop.f32.mrb[15].mxu0  ;;  %v766_v0 = vmul.f32 %v11562_v15, %v11562_v15  ;;  %v794_v17 = vsel %vm390_vm0, %v765_v40, 0.0 }
 0x242   :  { %v790_v49 = vsel %vm390_vm0, %v763_v59, 0.0  ;;  %v738_v46 = vsel %vm390_vm0, %v700_v6, 0.0  ;;  %v764_v2 = vmul.f32 %v700_v6, %v700_v6  ;;  %v742_v12 = vsel %vm390_vm0, %v11562_v15, 0.0 }
 0x243   :  { %v791_v35 = vadd.f32 %v790_v49, %v789_v36  ;;  %v739_v61 = vadd.f32 %v738_v46, %v737_v63  ;;  %v796_v14 = vsel %vm390_vm0, %v766_v0, 0.0 }
 0x244   :  { %v792_v20 = vsel %vm390_vm0, %v764_v2, 0.0 }
 0x245   :  { %v741_v30 = vadd.f32 %v740_v38, %v739_v61  ;;  %v793_v21 = vadd.f32 %v792_v20, %v791_v35  ;;  %v712_v61 = vld [vmem:[%s16458_s0] sm:$0x3] }
 0x247   :  { %v743_v26 = vadd.f32 %v742_v12, %v741_v30  ;;  %v795_v10 = vadd.f32 %v794_v17, %v793_v21 }
 0x249   :  { %v744_v3 = vrot.slane %v743_v26, 4  ;;  %v797_v29 = vadd.f32 %v796_v14, %v795_v10 }
 0x24b   :  { %v745_v34 = vadd.f32 %v744_v3, %v743_v26  ;;  %v798_v52 = vrot.slane %v797_v29, 4 }
 0x24d   :  { %v746_v27 = vrot.slane %v745_v34, 2  ;;  %v799_v41 = vadd.f32 %v798_v52, %v797_v29 }
 0x24f   :  { %v747_v19 = vadd.f32 %v746_v27, %v745_v34  ;;  %v800_v33 = vrot.slane %v799_v41, 2 }
 0x251   :  { %v748_v25 = vrot.slane %v747_v19, 1  ;;  %v801_v50 = vadd.f32 %v800_v33, %v799_v41 }
 0x253   :  { %v749_v18 = vadd.f32 %v748_v25, %v747_v19  ;;  %v802_v59 = vrot.slane %v801_v50, 1 }
 0x255   :  { %v750_v63 = vmul.f32 0.0078125, %v749_v18  ;;  %v803_v36 = vadd.f32 %v802_v59, %v801_v50 }
 0x257   :  { %v804_v40 = vmul.f32 0.0078125, %v803_v36  ;;  %v805_v49 = vmul.f32 %v750_v63, %v750_v63 }
 0x259   :  { %v806_v46 = vsub.f32 %v804_v40, %v805_v49 }
 0x25b   :  { %v807_v2 = vmax.f32 %v806_v46, 0.0 }
 0x25d   :  { %v808_v35 = vadd.f32 1e-05, %v807_v2 }
 0x25f   :  { %10060 = vrsqrt.f32 %v808_v35 }
 0x269   :  { %v10061_v38 = vpop.eup %10060 }
 0x26a   :  { %v810_v0 = vmul.f32 %v10061_v38, %v712_v61 }
 0x26c   :  { %v811_v20 = vmul.f32 %v810_v0, %v750_v63  ;;  %v819_v30 = vrot.slane %v810_v0, %v16444_v23 }
 0x26e   :  { %v813_v21 = vrot.slane %v811_v20, 7  ;;  %v833_v17 = vmul.f32 %v819_v30, %v700_v6  ;;  %v820_v12 = vmul.f32 %v819_v30, %v11472_v60  ;;  %v821_v26 = vmul.f32 %v819_v30, %v11478_v62 }
 0x26f   :  { %v822_v10 = vmul.f32 %v11470_v53, %v819_v30  ;;  %v823_v14 = vmul.f32 %v11476_v9, %v819_v30  ;;  %v824_v3 = vmul.f32 %v819_v30, %v11499_v51  ;;  %v825_v29 = vmul.f32 %v819_v30, %v11508_v22 }
 0x270   :  { %v815_v34 = vsub.f32 %v712_v61, %v813_v21  ;;  %v826_v52 = vmul.f32 %v11497_v11, %v819_v30  ;;  %v827_v27 = vmul.f32 %v11506_v48, %v819_v30  ;;  %v828_v41 = vmul.f32 %v819_v30, %v11527_v28 }
 0x271   :  { %v829_v6 = vmul.f32 %v819_v30, %v11536_v58  ;;  %v830_v60 = vmul.f32 %v11525_v8, %v819_v30  ;;  %v831_v62 = vmul.f32 %v11534_v1, %v819_v30  ;;  %v832_v53 = vmul.f32 %v819_v30, %v11555_v39 }
 0x272   :  { %v839_v9 = vrot.slane %v815_v34, %v16447_v44  ;;  %v834_v51 = vmul.f32 %v11553_v42, %v819_v30  ;;  %v835_v22 = vmul.f32 %v11562_v15, %v819_v30 }
 0x274   :  { %v853_v19 = vadd.f32 %v839_v9, %v833_v17  ;;  %v840_v11 = vadd.f32 %v839_v9, %v820_v12  ;;  %v841_v33 = vadd.f32 %v839_v9, %v821_v26  ;;  %v842_v48 = vadd.f32 %v839_v9, %v822_v10 }
 0x275   :  { %v843_v25 = vadd.f32 %v839_v9, %v823_v14  ;;  %v844_v28 = vadd.f32 %v839_v9, %v824_v3  ;;  %v845_v50 = vadd.f32 %v839_v9, %v825_v29  ;;  %v846_v58 = vadd.f32 %v839_v9, %v826_v52 }
 0x276   :  { %v869_v18 = vmax.f32 %v853_v19, 0.0  ;;  %v856_v8 = vmax.f32 %v840_v11, 0.0  ;;  %v857_v59 = vmax.f32 %v841_v33, 0.0  ;;  %v858_v1 = vmax.f32 %v842_v48, 0.0 }
 0x277   :  { %v859_v63 = vmax.f32 %v843_v25, 0.0  ;;  %v860_v39 = vmax.f32 %v844_v28, 0.0  ;;  %v861_v36 = vmax.f32 %v845_v50, 0.0  ;;  %v847_v40 = vadd.f32 %v839_v9, %v827_v27 }
 0x278   :  { %v872_v49 = vpack.c.bf16 %v857_v59, %v856_v8  ;;  %v862_v42 = vmax.f32 %v846_v58, 0.0  ;;  %v848_v46 = vadd.f32 %v839_v9, %v828_v41  ;;  %v849_v15 = vadd.f32 %v839_v9, %v829_v6 }
 0x279   :  { %v873_v2 = vpack.c.bf16 %v859_v63, %v858_v1  ;;  %v874_v35 = vpack.c.bf16 %v861_v36, %v860_v39  ;;  %v863_v61 = vmax.f32 %v847_v40, 0.0  ;;  %v850_v38 = vadd.f32 %v839_v9, %v830_v60 }
 0x27a   :  { %9351 = vmatprep.mubr.msk.bf16.mxu1 %vm390_vm0, %v872_v49  ;;  %v864_v0 = vmax.f32 %v848_v46, 0.0  ;;  %v865_v20 = vmax.f32 %v849_v15, 0.0  ;;  %v851_v30 = vadd.f32 %v839_v9, %v831_v62  ;;  %v852_v21 = vadd.f32 %v839_v9, %v832_v53  ;;  %v9546_v62 = vld [vmem:[%s16074_s7] sm:$0xff]   ;;  %v9547_v53 = vld [vmem:[%s16074_s7 + $0x8] sm:$0xff]  }
 0x27b   :  { %9352 = vmatmul.mubr.msk.bf16.vlgmr.msra.gmra.mrb[0].mxu1 %vm390_vm0, %v873_v2  ;;  %v875_v17 = vpack.c.bf16 %v863_v61, %v862_v42  ;;  %v866_v12 = vmax.f32 %v850_v38, 0.0  ;;  %v854_v26 = vadd.f32 %v839_v9, %v834_v51  ;;  %v855_v10 = vadd.f32 %v839_v9, %v835_v22  ;;  %9367 = vmatprep.subr.bf16.mxu0 %v9546_v62  ;;  %v9548_v9 = vld [vmem:[%s16074_s7 + $0x10] sm:$0xff]   ;;  %v9549_v51 = vld [vmem:[%s16074_s7 + $0x18] sm:$0xff]  }
 0x27c   :  { %9355 = vmatprep.mubr.msk.bf16.mxu1 %vm390_vm0, %v874_v35  ;;  %v876_v14 = vpack.c.bf16 %v865_v20, %v864_v0  ;;  %v867_v3 = vmax.f32 %v851_v30, 0.0  ;;  %v868_v29 = vmax.f32 %v852_v21, 0.0  ;;  %v16459_v60 = vmov 0   ;;  %9368 = vmatpush3.bf16.msra.mxu0 %v9546_v62 }
 0x27d   :  { %v870_v34 = vmax.f32 %v854_v26, 0.0  ;;  %v871_v52 = vmax.f32 %v855_v10, 0.0  ;;  %9369 = vmatprep.subr.bf16.mxu0 %v9547_v53 }
 0x27e   :  { %v877_v27 = vpack.c.bf16 %v867_v3, %v866_v12  ;;  %v878_v41 = vpack.c.bf16 %v869_v18, %v868_v29 }
 0x27f   :  { %v879_v6 = vpack.c.bf16 %v871_v52, %v870_v34 }
 0x280   :  { %9370 = vmatpush3.bf16.msra.mxu0 %v9547_v53 }
 0x281   :  { %9371 = vmatprep.subr.bf16.mxu0 %v9548_v9 }
 0x283   :  { %9356 = vmatmul.mubr.msk.bf16.gmra.mrb[4].mxu1 %vm390_vm0, %v875_v17 }
 0x284   :  { %9359 = vmatprep.mubr.msk.bf16.mxu1 %vm390_vm0, %v876_v14  ;;  %9372 = vmatpush3.bf16.msra.mxu0 %v9548_v9 }
 0x285   :  { %9373 = vmatprep.subr.bf16.mxu0 %v9549_v51 }
 0x288   :  { %9374 = vmatpush3.bf16.msra.mxu0 %v9549_v51 }
 0x28b   :  { %9360 = vmatmul.mubr.msk.bf16.gmra.mrb[8].mxu1 %vm390_vm0, %v877_v27 }
 0x28c   :  { %9363 = vmatprep.mubr.msk.bf16.mxu1 %vm390_vm0, %v878_v41 }
 0x293   :  { %9364 = vmatmul.mubr.msk.bf16.gmra.mrb[12].mxu1 %vm390_vm0, %v879_v6 }
 0x294   :  { %1906 = vmatprep.mubr.bf16.mxu1 %v16459_v60 }
 0x34e   :  { %v11618_v22 = vpop.f32.mrb[0].mxu1 }
 0x34f   :  { %v11620_v19 = vpop.f32.mrb[1].mxu1  ;;  %v1074_v25 = vmul.f32 %v11618_v22, %v11618_v22  ;;  %v1037_v8 = vsel %vm390_vm0, %v11618_v22, 0.0 }
 0x350   :  { %v1072_v11 = vmul.f32 %v11620_v19, %v11620_v19  ;;  %v11624_v33 = vpop.f32.mrb[2].mxu1  ;;  %v1034_v28 = vsel %vm390_vm0, %v11620_v19, 0.0 }
 0x351   :  { %v11626_v48 = vpop.f32.mrb[3].mxu1  ;;  %v1075_v1 = vmul.f32 %v11624_v33, %v11624_v33  ;;  %v1091_v40 = vsel %vm390_vm0, %v1074_v25, 0.0  ;;  %v1039_v49 = vsel %vm390_vm0, %v11624_v33, 0.0 }
 0x352   :  { %v1035_v50 = vsel %vm390_vm0, %v11626_v48, 0.0  ;;  %v1073_v58 = vmul.f32 %v11626_v48, %v11626_v48  ;;  %v1088_v59 = vsel %vm390_vm0, %v1072_v11, 0.0 }
 0x353   :  { %v1036_v18 = vadd.f32 %v1035_v50, %v1034_v28  ;;  %v1093_v35 = vsel %vm390_vm0, %v1075_v1, 0.0 }
 0x354   :  { %v1089_v63 = vsel %vm390_vm0, %v1073_v58, 0.0 }
 0x355   :  { %v1038_v39 = vadd.f32 %v1037_v8, %v1036_v18  ;;  %v1090_v36 = vadd.f32 %v1089_v63, %v1088_v59 }
 0x356   :  { %v11645_v42 = vpop.f32.mrb[4].mxu1 }
 0x357   :  { %v1092_v46 = vadd.f32 %v1091_v40, %v1090_v36  ;;  %v11647_v15 = vpop.f32.mrb[5].mxu1  ;;  %v1040_v2 = vadd.f32 %v1039_v49, %v1038_v39  ;;  %v1078_v17 = vmul.f32 %v11645_v42, %v11645_v42  ;;  %v1045_v29 = vsel %vm390_vm0, %v11645_v42, 0.0 }
 0x358   :  { %v1041_v61 = vsel %vm390_vm0, %v11647_v15, 0.0  ;;  %v1076_v38 = vmul.f32 %v11647_v15, %v11647_v15  ;;  %v11654_v0 = vpop.f32.mrb[6].mxu1 }
 0x359   :  { %v1042_v20 = vadd.f32 %v1041_v61, %v1040_v2  ;;  %v1094_v30 = vadd.f32 %v1093_v35, %v1092_v46  ;;  %v11656_v21 = vpop.f32.mrb[7].mxu1  ;;  %v1079_v34 = vmul.f32 %v11654_v0, %v11654_v0  ;;  %v1099_v6 = vsel %vm390_vm0, %v1078_v17, 0.0 }
 0x35a   :  { %v1095_v12 = vsel %vm390_vm0, %v1076_v38, 0.0  ;;  %v1043_v26 = vsel %vm390_vm0, %v11656_v21, 0.0  ;;  %v1077_v10 = vmul.f32 %v11656_v21, %v11656_v21  ;;  %v1047_v62 = vsel %vm390_vm0, %v11654_v0, 0.0 }
 0x35b   :  { %v1096_v14 = vadd.f32 %v1095_v12, %v1094_v30  ;;  %v1044_v3 = vadd.f32 %v1043_v26, %v1042_v20  ;;  %v1101_v25 = vsel %vm390_vm0, %v1079_v34, 0.0 }
 0x35c   :  { %v1097_v52 = vsel %vm390_vm0, %v1077_v10, 0.0 }
 0x35d   :  { %v1046_v27 = vadd.f32 %v1045_v29, %v1044_v3  ;;  %v1098_v41 = vadd.f32 %v1097_v52, %v1096_v14 }
 0x35e   :  { %v11673_v53 = vpop.f32.mrb[8].mxu1 }
 0x35f   :  { %v1100_v9 = vadd.f32 %v1099_v6, %v1098_v41  ;;  %v11675_v51 = vpop.f32.mrb[9].mxu1  ;;  %v1048_v11 = vadd.f32 %v1047_v62, %v1046_v27  ;;  %v1082_v1 = vmul.f32 %v11673_v53, %v11673_v53  ;;  %v1053_v46 = vsel %vm390_vm0, %v11673_v53, 0.0 }
 0x360   :  { %v1049_v28 = vsel %vm390_vm0, %v11675_v51, 0.0  ;;  %v1080_v50 = vmul.f32 %v11675_v51, %v11675_v51  ;;  %v11682_v58 = vpop.f32.mrb[10].mxu1 }
 0x361   :  { %v1050_v18 = vadd.f32 %v1049_v28, %v1048_v11  ;;  %v1102_v8 = vadd.f32 %v1101_v25, %v1100_v9  ;;  %v11684_v59 = vpop.f32.mrb[11].mxu1  ;;  %v1083_v2 = vmul.f32 %v11682_v58, %v11682_v58  ;;  %v1107_v20 = vsel %vm390_vm0, %v1082_v1, 0.0 }
 0x362   :  { %v1103_v63 = vsel %vm390_vm0, %v1080_v50, 0.0  ;;  %v1051_v39 = vsel %vm390_vm0, %v11684_v59, 0.0  ;;  %v1081_v36 = vmul.f32 %v11684_v59, %v11684_v59  ;;  %v1055_v30 = vsel %vm390_vm0, %v11682_v58, 0.0 }
 0x363   :  { %v1104_v40 = vadd.f32 %v1103_v63, %v1102_v8  ;;  %v1052_v49 = vadd.f32 %v1051_v39, %v1050_v18  ;;  %v1109_v14 = vsel %vm390_vm0, %v1083_v2, 0.0 }
 0x364   :  { %v1105_v35 = vsel %vm390_vm0, %v1081_v36, 0.0 }
 0x365   :  { %v1054_v61 = vadd.f32 %v1053_v46, %v1052_v49  ;;  %v1106_v38 = vadd.f32 %v1105_v35, %v1104_v40 }
 0x366   :  { %v11701_v17 = vpop.f32.mrb[12].mxu1 }
 0x367   :  { %v1108_v12 = vadd.f32 %v1107_v20, %v1106_v38  ;;  %v11703_v26 = vpop.f32.mrb[13].mxu1  ;;  %v1056_v10 = vadd.f32 %v1055_v30, %v1054_v61  ;;  %v1086_v6 = vmul.f32 %v11701_v17, %v11701_v17  ;;  %v1061_v50 = vsel %vm390_vm0, %v11701_v17, 0.0 }
 0x368   :  { %v1057_v3 = vsel %vm390_vm0, %v11703_v26, 0.0  ;;  %v1084_v29 = vmul.f32 %v11703_v26, %v11703_v26  ;;  %v11710_v34 = vpop.f32.mrb[14].mxu1 }
 0x369   :  { %v1058_v52 = vadd.f32 %v1057_v3, %v1056_v10  ;;  %v1110_v27 = vadd.f32 %v1109_v14, %v1108_v12  ;;  %v1021_v41 = vpop.f32.mrb[15].mxu1  ;;  %v1087_v18 = vmul.f32 %v11710_v34, %v11710_v34  ;;  %v1115_v39 = vsel %vm390_vm0, %v1086_v6, 0.0 }
 0x36a   :  { %v1111_v62 = vsel %vm390_vm0, %v1084_v29, 0.0  ;;  %v1059_v9 = vsel %vm390_vm0, %v1021_v41, 0.0  ;;  %v1085_v11 = vmul.f32 %v1021_v41, %v1021_v41  ;;  %v1063_v36 = vsel %vm390_vm0, %v11710_v34, 0.0 }
 0x36b   :  { %v1112_v25 = vadd.f32 %v1111_v62, %v1110_v27  ;;  %v1060_v28 = vadd.f32 %v1059_v9, %v1058_v52  ;;  %v1117_v46 = vsel %vm390_vm0, %v1087_v18, 0.0 }
 0x36c   :  { %v1113_v8 = vsel %vm390_vm0, %v1085_v11, 0.0 }
 0x36d   :  { %v1062_v1 = vadd.f32 %v1061_v50, %v1060_v28  ;;  %v1114_v63 = vadd.f32 %v1113_v8, %v1112_v25  ;;  %v1033_v50 = vld [vmem:[%s16075_s6] sm:$0x3] }
 0x36f   :  { %v1064_v40 = vadd.f32 %v1063_v36, %v1062_v1  ;;  %v1116_v49 = vadd.f32 %v1115_v39, %v1114_v63 }
 0x371   :  { %v1065_v2 = vrot.slane %v1064_v40, 4  ;;  %v1118_v35 = vadd.f32 %v1117_v46, %v1116_v49 }
 0x373   :  { %v1066_v61 = vadd.f32 %v1065_v2, %v1064_v40  ;;  %v1119_v38 = vrot.slane %v1118_v35, 4 }
 0x375   :  { %v1067_v20 = vrot.slane %v1066_v61, 2  ;;  %v1120_v30 = vadd.f32 %v1119_v38, %v1118_v35 }
 0x377   :  { %v1068_v12 = vadd.f32 %v1067_v20, %v1066_v61  ;;  %v1121_v10 = vrot.slane %v1120_v30, 2 }
 0x379   :  { %v1069_v14 = vrot.slane %v1068_v12, 1  ;;  %v1122_v3 = vadd.f32 %v1121_v10, %v1120_v30 }
 0x37b   :  { %v1070_v29 = vadd.f32 %v1069_v14, %v1068_v12  ;;  %v1123_v52 = vrot.slane %v1122_v3, 1 }
 0x37d   :  { %v1071_v27 = vmul.f32 0.0078125, %v1070_v29  ;;  %v1124_v6 = vadd.f32 %v1123_v52, %v1122_v3 }
 0x37f   :  { %v1125_v62 = vmul.f32 0.0078125, %v1124_v6  ;;  %v1126_v9 = vmul.f32 %v1071_v27, %v1071_v27 }
 0x381   :  { %v1127_v11 = vsub.f32 %v1125_v62, %v1126_v9 }
 0x383   :  { %v1128_v25 = vmax.f32 %v1127_v11, 0.0 }
 0x385   :  { %v1129_v28 = vadd.f32 1e-05, %v1128_v25 }
 0x387   :  { %10062 = vrsqrt.f32 %v1129_v28 }
 0x391   :  { %v10063_v18 = vpop.eup %10062 }
 0x392   :  { %v1131_v8 = vmul.f32 %v10063_v18, %v1033_v50 }
 0x394   :  { %v1132_v1 = vmul.f32 %v1131_v8, %v1071_v27  ;;  %v1140_v63 = vrot.slane %v1131_v8, %v16444_v23 }
 0x396   :  { %v1134_v39 = vrot.slane %v1132_v1, 7  ;;  %v1154_v36 = vmul.f32 %v1140_v63, %v1021_v41  ;;  %v1141_v40 = vmul.f32 %v1140_v63, %v11620_v19  ;;  %v1142_v49 = vmul.f32 %v1140_v63, %v11626_v48 }
 0x397   :  { %v1143_v46 = vmul.f32 %v11618_v22, %v1140_v63  ;;  %v1144_v2 = vmul.f32 %v11624_v33, %v1140_v63  ;;  %v1145_v35 = vmul.f32 %v1140_v63, %v11647_v15  ;;  %v1146_v61 = vmul.f32 %v1140_v63, %v11656_v21 }
 0x398   :  { %v1136_v38 = vsub.f32 %v1033_v50, %v1134_v39  ;;  %v1147_v20 = vmul.f32 %v11645_v42, %v1140_v63  ;;  %v1148_v30 = vmul.f32 %v11654_v0, %v1140_v63  ;;  %v1149_v12 = vmul.f32 %v1140_v63, %v11675_v51 }
 0x399   :  { %v1150_v41 = vmul.f32 %v1140_v63, %v11684_v59  ;;  %v1151_v19 = vmul.f32 %v11673_v53, %v1140_v63  ;;  %v1152_v48 = vmul.f32 %v11682_v58, %v1140_v63  ;;  %v1153_v22 = vmul.f32 %v1140_v63, %v11703_v26 }
 0x39a   :  { %v1160_v33 = vrot.slane %v1136_v38, %v16447_v44  ;;  %v1155_v15 = vmul.f32 %v11701_v17, %v1140_v63  ;;  %v1156_v21 = vmul.f32 %v11710_v34, %v1140_v63 }
 0x39c   :  { %v1174_v10 = vadd.f32 %v1160_v33, %v1154_v36  ;;  %v1161_v42 = vadd.f32 %v1160_v33, %v1141_v40  ;;  %v1162_v14 = vadd.f32 %v1160_v33, %v1142_v49  ;;  %v1163_v0 = vadd.f32 %v1160_v33, %v1143_v46 }
 0x39d   :  { %v1164_v3 = vadd.f32 %v1160_v33, %v1144_v2  ;;  %v1165_v51 = vadd.f32 %v1160_v33, %v1145_v35  ;;  %v1166_v29 = vadd.f32 %v1160_v33, %v1146_v61  ;;  %v1167_v59 = vadd.f32 %v1160_v33, %v1147_v20 }
 0x39e   :  { %v1190_v52 = vmax.f32 %v1174_v10, 0.0  ;;  %v1177_v53 = vmax.f32 %v1161_v42, 0.0  ;;  %v1178_v27 = vmax.f32 %v1162_v14, 0.0  ;;  %v1179_v58 = vmax.f32 %v1163_v0, 0.0  ;;  %v1495_v10 = vld [vmem:[%s16076_s9 + $0x28] sm:$0xff]  ;;  %v1498_v42 = vld [vmem:[%s16076_s9 + $0x40] sm:$0xff] }
 0x39f   :  { %v1180_v6 = vmax.f32 %v1164_v3, 0.0  ;;  %v1181_v26 = vmax.f32 %v1165_v51, 0.0  ;;  %v1182_v62 = vmax.f32 %v1166_v29, 0.0  ;;  %v1168_v9 = vadd.f32 %v1160_v33, %v1148_v30  ;;  %v1502_v14 = vld [vmem:[%s16076_s9 + $0x60] sm:$0xff]  ;;  %v1499_v29 = vld [vmem:[%s16076_s9 + $0x48] sm:$0xff] }
 0x3a0   :  { %v1193_v11 = vpack.c.bf16 %v1178_v27, %v1177_v53  ;;  %v1183_v17 = vmax.f32 %v1167_v59, 0.0  ;;  %v1169_v25 = vadd.f32 %v1160_v33, %v1149_v12  ;;  %v1170_v34 = vadd.f32 %v1160_v33, %v1150_v41  ;;  %v1503_v59 = vld [vmem:[%s16076_s9 + $0x68] sm:$0xff]  ;;  %v1510_v27 = vld [vmem:[%s16076_s9 + $0xa0] sm:$0xff] }
 0x3a1   :  { %v1194_v28 = vpack.c.bf16 %v1180_v6, %v1179_v58  ;;  %v1195_v50 = vpack.c.bf16 %v1182_v62, %v1181_v26  ;;  %v1184_v18 = vmax.f32 %v1168_v9, 0.0  ;;  %v1171_v8 = vadd.f32 %v1160_v33, %v1151_v19  ;;  %v1507_v58 = vld [vmem:[%s16076_s9 + $0x88] sm:$0xff] }
 0x3a2   :  { %9375 = vmatprep.mubr.msk.bf16.mxu0 %vm390_vm0, %v1193_v11  ;;  %v1185_v1 = vmax.f32 %v1169_v25, 0.0  ;;  %v1186_v63 = vmax.f32 %v1170_v34, 0.0  ;;  %v1172_v39 = vadd.f32 %v1160_v33, %v1152_v48  ;;  %v1173_v36 = vadd.f32 %v1160_v33, %v1153_v22  ;;  %v1490_v48 = vld [vmem:[%s16076_s9] sm:$0xff]  ;;  %v1511_v6 = vld [vmem:[%s16076_s9 + $0xa8] sm:$0xff] }
 0x3a3   :  { %9376 = vmatmul.mubr.msk.bf16.vlgmr.msra.gmra.mrb[16].mxu0 %vm390_vm0, %v1194_v28  ;;  %v1196_v40 = vpack.c.bf16 %v1184_v18, %v1183_v17  ;;  %v1187_v49 = vmax.f32 %v1171_v8, 0.0  ;;  %v1175_v46 = vadd.f32 %v1160_v33, %v1155_v15  ;;  %v1176_v2 = vadd.f32 %v1160_v33, %v1156_v21  ;;  %v1494_v22 = vld [vmem:[%s16076_s9 + $0x20] sm:$0xff]  ;;  %v1491_v33 = vld [vmem:[%s16076_s9 + $0x8] sm:$0xff] }
 0x3a4   :  { %9379 = vmatprep.mubr.msk.bf16.mxu0 %vm390_vm0, %v1195_v50  ;;  %v1197_v35 = vpack.c.bf16 %v1186_v63, %v1185_v1  ;;  %v1188_v61 = vmax.f32 %v1172_v39, 0.0  ;;  %v1189_v38 = vmax.f32 %v1173_v36, 0.0  ;;  %v8771_v15 = vcombine.low %v1490_v48, %v1494_v22  ;;  %v1514_v17 = vld [vmem:[%s16076_s9 + $0xc0] sm:$0xff]  ;;  %v1515_v34 = vld [vmem:[%s16076_s9 + $0xc8] sm:$0xff] }
 0x3a5   :  { %v1191_v20 = vmax.f32 %v1175_v46, 0.0  ;;  %v1192_v30 = vmax.f32 %v1176_v2, 0.0  ;;  %v8772_v21 = vcombine.high %v1490_v48, %v1494_v22  ;;  %v8773_v0 = vcombine.low %v1491_v33, %v1495_v10  ;;  %v1518_v25 = vld [vmem:[%s16076_s9 + $0xe0] sm:$0xff]  ;;  %v1519_v28 = vld [vmem:[%s16076_s9 + $0xe8] sm:$0xff] }
 0x3a6   :  { %v1198_v12 = vpack.c.bf16 %v1188_v61, %v1187_v49  ;;  %v1199_v41 = vpack.c.bf16 %v1190_v52, %v1189_v38  ;;  %v8774_v3 = vcombine.high %v1491_v33, %v1495_v10  ;;  %v8780_v51 = vcombine.high %v1498_v42, %v1502_v14  ;;  %v1506_v52 = vld [vmem:[%s16076_s9 + $0x80] sm:$0xff]  ;;  %v1523_v36 = vld [vmem:[%s16076_s9 + $0x108] sm:$0xff] }
 0x3a7   :  { %v1200_v19 = vpack.c.bf16 %v1192_v30, %v1191_v20  ;;  %1874 = vmatprep.subr.bf16.mxu1 %v8772_v21  ;;  %v8782_v53 = vcombine.high %v1499_v29, %v1503_v59  ;;  %v8779_v26 = vcombine.low %v1498_v42, %v1502_v14  ;;  %v8781_v62 = vcombine.low %v1499_v29, %v1503_v59  ;;  %v1522_v63 = vld [vmem:[%s16076_s9 + $0x100] sm:$0xff]  ;;  %v1531_v20 = vld [vmem:[%s16076_s9 + $0x148] sm:$0xff] }
 0x3a8   :  { %1987 = vmatprep.subr.bf16.mxu0 %v8774_v3  ;;  %1875 = vmatpush1.bf16.msra.mxu1 %v8771_v15  ;;  %v8788_v9 = vcombine.high %v1506_v52, %v1510_v27  ;;  %v8790_v11 = vcombine.high %v1507_v58, %v1511_v6  ;;  %v8787_v50 = vcombine.low %v1506_v52, %v1510_v27  ;;  %v1526_v39 = vld [vmem:[%s16076_s9 + $0x120] sm:$0xff]  ;;  %v1535_v30 = vld [vmem:[%s16076_s9 + $0x168] sm:$0xff] }
 0x3a9   :  { %1988 = vmatpush1.bf16.msra.mxu0 %v8773_v0  ;;  %1876 = vmatprep.subr.bf16.mxu1 %v8780_v51  ;;  %v8789_v18 = vcombine.low %v1507_v58, %v1511_v6  ;;  %v8796_v8 = vcombine.high %v1514_v17, %v1518_v25  ;;  %v8798_v1 = vcombine.high %v1515_v34, %v1519_v28  ;;  %v1530_v61 = vld [vmem:[%s16076_s9 + $0x140] sm:$0xff]  ;;  %v1539_v15 = vld [vmem:[%s16076_s9 + $0x188] sm:$0xff] }
 0x3aa   :  { %1989 = vmatprep.subr.bf16.mxu0 %v8782_v53  ;;  %v8795_v49 = vcombine.low %v1514_v17, %v1518_v25  ;;  %v8797_v46 = vcombine.low %v1515_v34, %v1519_v28  ;;  %v8804_v2 = vcombine.high %v1522_v63, %v1526_v39  ;;  %v1534_v38 = vld [vmem:[%s16076_s9 + $0x160] sm:$0xff]  ;;  %v8814_v48 = vcombine.high %v1531_v20, %v1535_v30  ;;  %v1543_v21 = vld [vmem:[%s16076_s9 + $0x1a8] sm:$0xff]  ;;  %v11872_v34 = vld [vmem:[%s16076_s9 + $0x38] sm:$0xff] }
 0x3ab   :  { %9380 = vmatmul.mubr.msk.bf16.gmra.mrb[20].mxu0 %vm390_vm0, %v1196_v40  ;;  %v1527_v40 = vld [vmem:[%s16076_s9 + $0x128] sm:$0xff]  ;;  %v1538_v22 = vld [vmem:[%s16076_s9 + $0x180] sm:$0xff]  ;;  %v8811_v10 = vcombine.low %v1530_v61, %v1534_v38  ;;  %v8813_v42 = vcombine.low %v1531_v20, %v1535_v30  ;;  %v8822_v0 = vcombine.high %v1539_v15, %v1543_v21  ;;  %v8821_v53 = vcombine.low %v1539_v15, %v1543_v21 }
 0x3ac   :  { %9383 = vmatprep.mubr.msk.bf16.mxu0 %vm390_vm0, %v1197_v35  ;;  %1877 = vmatpush1.bf16.msra.mxu1 %v8779_v26  ;;  %v8806_v35 = vcombine.high %v1523_v36, %v1527_v40  ;;  %v1542_v33 = vld [vmem:[%s16076_s9 + $0x1a0] sm:$0xff]  ;;  %v1547_v29 = vld [vmem:[%s16076_s9 + $0x1c8] sm:$0xff] }
 0x3ad   :  { %1990 = vmatpush1.bf16.msra.mxu0 %v8781_v62  ;;  %1878 = vmatprep.subr.bf16.mxu1 %v8788_v9  ;;  %v8820_v14 = vcombine.high %v1538_v22, %v1542_v33  ;;  %v1546_v3 = vld [vmem:[%s16076_s9 + $0x1c0] sm:$0xff]  ;;  %v1551_v59 = vld [vmem:[%s16076_s9 + $0x1e8] sm:$0xff]  ;;  %v8819_v52 = vcombine.low %v1538_v22, %v1542_v33  ;;  %v11853_v62 = vld [vmem:[%s16076_s9 + $0x10] sm:$0xff] }
 0x3ae   :  { %1991 = vmatprep.subr.bf16.mxu0 %v8790_v11  ;;  %v1550_v51 = vld [vmem:[%s16076_s9 + $0x1e0] sm:$0xff]  ;;  %v8830_v58 = vcombine.high %v1547_v29, %v1551_v59  ;;  %v8829_v26 = vcombine.low %v1547_v29, %v1551_v59  ;;  %v11858_v9 = vld [vmem:[%s16076_s9 + $0x30] sm:$0xff]  ;;  %v11863_v11 = vld [vmem:[%s16076_s9 + $0x18] sm:$0xff] }
 0x3af   :  { %v8828_v27 = vcombine.high %v1546_v3, %v1550_v51  ;;  %v8827_v6 = vcombine.low %v1546_v3, %v1550_v51  ;;  %v8776_v25 = vcombine.high %v11853_v62, %v11858_v9 }
 0x3b0   :  { %1879 = vmatpush1.bf16.msra.mxu1 %v8787_v50  ;;  %v8778_v50 = vcombine.high %v11863_v11, %v11872_v34 }
 0x3b1   :  { %1992 = vmatpush1.bf16.msra.mxu0 %v8789_v18  ;;  %1880 = vmatprep.subr.bf16.mxu1 %v8796_v8 }
 0x3b2   :  { %1993 = vmatprep.subr.bf16.mxu0 %v8798_v1 }
 0x3b3   :  { %9384 = vmatmul.mubr.msk.bf16.gmra.mrb[24].mxu0 %vm390_vm0, %v1198_v12  ;;  %v8803_v12 = vcombine.low %v1522_v63, %v1526_v39 }
 0x3b4   :  { %9387 = vmatprep.mubr.msk.bf16.mxu0 %vm390_vm0, %v1199_v41  ;;  %1881 = vmatpush1.bf16.msra.mxu1 %v8795_v49  ;;  %v8805_v41 = vcombine.low %v1523_v36, %v1527_v40 }
 0x3b5   :  { %1994 = vmatpush1.bf16.msra.mxu0 %v8797_v46  ;;  %1882 = vmatprep.subr.bf16.mxu1 %v8804_v2 }
 0x3b6   :  { %1995 = vmatprep.subr.bf16.mxu0 %v8806_v35 }
 0x3b8   :  { %1883 = vmatpush1.bf16.msra.mxu1 %v8803_v12 }
 0x3b9   :  { %1996 = vmatpush1.bf16.msra.mxu0 %v8805_v41 }
 0x3ba   :  { %1997 = vmatprep.subr.bf16.mxu0 %v8814_v48 }
 0x3bb   :  { %9388 = vmatmul.mubr.msk.bf16.gmra.mrb[28].mxu0 %vm390_vm0, %v1200_v19  ;;  %v8812_v19 = vcombine.high %v1530_v61, %v1534_v38 }
 0x3bc   :  { %2019 = vmatprep.mubr.bf16.mxu0 %v16459_v60 }
 0x3bd   :  { %1884 = vmatprep.subr.bf16.mxu1 %v8812_v19  ;;  %1998 = vmatpush1.bf16.msra.mxu0 %v8813_v42 }
 0x3be   :  { %1885 = vmatpush1.bf16.msra.mxu1 %v8811_v10  ;;  %1999 = vmatprep.subr.bf16.mxu0 %v8822_v0 }
 0x3bf   :  { %1886 = vmatprep.subr.bf16.mxu1 %v8820_v14 }
 0x3c1   :  { %2000 = vmatpush1.bf16.msra.mxu0 %v8821_v53 }
 0x3c2   :  { %1887 = vmatpush1.bf16.msra.mxu1 %v8819_v52  ;;  %2001 = vmatprep.subr.bf16.mxu0 %v8830_v58 }
 0x3c3   :  { %1888 = vmatprep.subr.bf16.mxu1 %v8828_v27 }
 0x3c5   :  { %2002 = vmatpush1.bf16.msra.mxu0 %v8829_v26 }
 0x3c6   :  { %1889 = vmatpush1.bf16.msra.mxu1 %v8827_v6  ;;  %2213 = vmatprep.subr.bf16.mxu0 %v8778_v50 }
 0x3c7   :  { %2100 = vmatprep.subr.bf16.mxu1 %v8776_v25 }
 0x476   :  { %v11878_v18 = vpop.f32.mrb[16].mxu0 }
 0x477   :  { %v11880_v8 = vpop.f32.mrb[17].mxu0  ;;  %v1379_v49 = vmul.f32 %v11878_v18, %v11878_v18 }
 0x478   :  { %v11882_v1 = vpop.f32.mrb[18].mxu0  ;;  %v1377_v39 = vmul.f32 %v11880_v8, %v11880_v8 }
 0x479   :  { %v11884_v63 = vpop.f32.mrb[19].mxu0  ;;  %v1380_v35 = vmul.f32 %v11882_v1, %v11882_v1 }
 0x47a   :  { %v1355_v36 = vadd.f32 %v11884_v63, %v11880_v8  ;;  %v1378_v40 = vmul.f32 %v11884_v63, %v11884_v63 }
 0x47c   :  { %v1356_v46 = vadd.f32 %v11878_v18, %v1355_v36  ;;  %v1393_v2 = vadd.f32 %v1378_v40, %v1377_v39 }
 0x47e   :  { %v1394_v61 = vadd.f32 %v1393_v2, %v1379_v49  ;;  %v11897_v38 = vpop.f32.mrb[20].mxu0  ;;  %v1357_v20 = vadd.f32 %v11882_v1, %v1356_v46 }
 0x47f   :  { %v11900_v30 = vpop.f32.mrb[21].mxu0  ;;  %v1383_v10 = vmul.f32 %v11897_v38, %v11897_v38 }
 0x480   :  { %v1358_v12 = vadd.f32 %v1357_v20, %v11900_v30  ;;  %v1381_v41 = vmul.f32 %v11900_v30, %v11900_v30  ;;  %v1395_v19 = vadd.f32 %v1394_v61, %v1380_v35  ;;  %v11905_v48 = vpop.f32.mrb[22].mxu0 }
 0x481   :  { %v11907_v22 = vpop.f32.mrb[23].mxu0  ;;  %v1384_v0 = vmul.f32 %v11905_v48, %v11905_v48 }
 0x482   :  { %v1396_v33 = vadd.f32 %v1395_v19, %v1381_v41  ;;  %v1359_v15 = vadd.f32 %v1358_v12, %v11907_v22  ;;  %v1382_v21 = vmul.f32 %v11907_v22, %v11907_v22 }
 0x484   :  { %v1360_v42 = vadd.f32 %v11897_v38, %v1359_v15  ;;  %v1397_v14 = vadd.f32 %v1396_v33, %v1382_v21 }
 0x486   :  { %v1398_v3 = vadd.f32 %v1397_v14, %v1383_v10  ;;  %v11917_v51 = vpop.f32.mrb[24].mxu0  ;;  %v1361_v29 = vadd.f32 %v11905_v48, %v1360_v42 }
 0x487   :  { %v11920_v59 = vpop.f32.mrb[25].mxu0  ;;  %v1387_v39 = vmul.f32 %v11917_v51, %v11917_v51 }
 0x488   :  { %v1362_v52 = vadd.f32 %v1361_v29, %v11920_v59  ;;  %v1385_v53 = vmul.f32 %v11920_v59, %v11920_v59  ;;  %v1399_v27 = vadd.f32 %v1398_v3, %v1384_v0  ;;  %v11925_v58 = vpop.f32.mrb[26].mxu0 }
 0x489   :  { %v11927_v6 = vpop.f32.mrb[27].mxu0  ;;  %v1388_v49 = vmul.f32 %v11925_v58, %v11925_v58 }
 0x48a   :  { %v1400_v26 = vadd.f32 %v1399_v27, %v1385_v53  ;;  %v1363_v25 = vadd.f32 %v1362_v52, %v11927_v6  ;;  %v1386_v50 = vmul.f32 %v11927_v6, %v11927_v6 }
 0x48c   :  { %v1364_v36 = vadd.f32 %v11917_v51, %v1363_v25  ;;  %v1401_v40 = vadd.f32 %v1400_v26, %v1386_v50 }
 0x48e   :  { %v1402_v46 = vadd.f32 %v1401_v40, %v1387_v39  ;;  %v11937_v2 = vpop.f32.mrb[28].mxu0  ;;  %v1365_v35 = vadd.f32 %v11925_v58, %v1364_v36 }
 0x48f   :  { %v1339_v61 = vpop.f32.mrb[29].mxu0  ;;  %v1391_v42 = vmul.f32 %v11937_v2, %v11937_v2 }
 0x490   :  { %v1366_v20 = vadd.f32 %v1365_v35, %v1339_v61  ;;  %v1389_v12 = vmul.f32 %v1339_v61, %v1339_v61  ;;  %v1403_v41 = vadd.f32 %v1402_v46, %v1388_v49  ;;  %v9390_v19 = vpop.f32.mrb[30].mxu0 }
 0x491   :  { %v1342_v33 = vpop.f32.mrb[31].mxu0  ;;  %v1392_v3 = vmul.f32 %v9390_v19, %v9390_v19 }
 0x492   :  { %v1404_v15 = vadd.f32 %v1403_v41, %v1389_v12  ;;  %v1367_v21 = vadd.f32 %v1366_v20, %v1342_v33  ;;  %v1390_v10 = vmul.f32 %v1342_v33, %v1342_v33 }
 0x494   :  { %v1368_v14 = vadd.f32 %v11937_v2, %v1367_v21  ;;  %v1405_v0 = vadd.f32 %v1404_v15, %v1390_v10 }
 0x496   :  { %v1369_v29 = vadd.f32 %v9390_v19, %v1368_v14  ;;  %v1406_v52 = vadd.f32 %v1405_v0, %v1391_v42  ;;  %v1354_v42 = vld [vmem:[%s16077_s8] sm:$0x3] }
 0x498   :  { %v1370_v53 = vrot.slane %v1369_v29, 4  ;;  %v1407_v27 = vadd.f32 %v1406_v52, %v1392_v3 }
 0x49a   :  { %v1371_v26 = vadd.f32 %v1370_v53, %v1369_v29  ;;  %v1408_v25 = vrot.slane %v1407_v27, 4 }
 0x49c   :  { %v1372_v50 = vrot.slane %v1371_v26, 2  ;;  %v1409_v39 = vadd.f32 %v1408_v25, %v1407_v27 }
 0x49e   :  { %v1373_v36 = vadd.f32 %v1372_v50, %v1371_v26  ;;  %v1410_v40 = vrot.slane %v1409_v39, 2 }
 0x4a0   :  { %v1374_v49 = vrot.slane %v1373_v36, 1  ;;  %v1411_v46 = vadd.f32 %v1410_v40, %v1409_v39  ;;  %v11956_v40 = vld [vmem:[%s16076_s9 + $0x50] sm:$0xff] }
 0x4a2   :  { %v1375_v35 = vadd.f32 %v1374_v49, %v1373_v36  ;;  %v1412_v20 = vrot.slane %v1411_v46, 1 }
 0x4a4   :  { %v1376_v12 = vmul.f32 0.0078125, %v1375_v35  ;;  %v1413_v41 = vadd.f32 %v1412_v20, %v1411_v46 }
 0x4a6   :  { %v1414_v28 = vmul.f32 0.0078125, %v1413_v41  ;;  %v1415_v21 = vmul.f32 %v1376_v12, %v1376_v12 }
 0x4a8   :  { %v1416_v15 = vsub.f32 %v1414_v28, %v1415_v21 }
 0x4aa   :  { %v1417_v10 = vmax.f32 %v1416_v15, 0.0 }
 0x4ac   :  { %v1418_v14 = vadd.f32 1e-05, %v1417_v10 }
 0x4ae   :  { %10064 = vrsqrt.f32 %v1418_v14 }
 0x4b8   :  { %v10065_v0 = vpop.eup %10064 }
 0x4b9   :  { %v1420_v3 = vmul.f32 %v10065_v0, %v1354_v42 }
 0x4bb   :  { %v1421_v29 = vmul.f32 %v1420_v3, %v1376_v12  ;;  %v1429_v52 = vrot.slane %v1420_v3, %v16444_v23 }
 0x4bd   :  { %v1423_v53 = vrot.slane %v1421_v29, 7  ;;  %v1443_v27 = vmul.f32 %v1429_v52, %v1342_v33  ;;  %v1430_v26 = vmul.f32 %v1429_v52, %v11880_v8  ;;  %v1431_v25 = vmul.f32 %v1429_v52, %v11884_v63 }
 0x4be   :  { %v1432_v28 = vmul.f32 %v11878_v18, %v1429_v52  ;;  %v1433_v50 = vmul.f32 %v11882_v1, %v1429_v52  ;;  %v1434_v39 = vmul.f32 %v1429_v52, %v11900_v30  ;;  %v1435_v36 = vmul.f32 %v1429_v52, %v11907_v22  ;;  %v11964_v18 = vld [vmem:[%s16076_s9 + $0x70] sm:$0xff]  ;;  %v11969_v1 = vld [vmem:[%s16076_s9 + $0x58] sm:$0xff] }
 0x4bf   :  { %v1425_v49 = vsub.f32 %v1354_v42, %v1423_v53  ;;  %v1436_v33 = vmul.f32 %v11897_v38, %v1429_v52  ;;  %v1437_v8 = vmul.f32 %v11905_v48, %v1429_v52  ;;  %v1438_v63 = vmul.f32 %v1429_v52, %v11920_v59  ;;  %v11974_v30 = vld [vmem:[%s16076_s9 + $0x78] sm:$0xff] }
 0x4c0   :  { %v1439_v38 = vmul.f32 %v1429_v52, %v11927_v6  ;;  %v1440_v48 = vmul.f32 %v11917_v51, %v1429_v52  ;;  %v1441_v22 = vmul.f32 %v11925_v58, %v1429_v52  ;;  %v1442_v59 = vmul.f32 %v1429_v52, %v1339_v61 }
 0x4c1   :  { %v1449_v46 = vrot.slane %v1425_v49, %v16447_v44  ;;  %v1444_v35 = vmul.f32 %v11937_v2, %v1429_v52  ;;  %v1445_v20 = vmul.f32 %v9390_v19, %v1429_v52  ;;  %v8783_v12 = vcombine.low %v11956_v40, %v11964_v18 }
 0x4c2   :  { %v8784_v41 = vcombine.high %v11956_v40, %v11964_v18  ;;  %v8786_v21 = vcombine.high %v11969_v1, %v11974_v30 }
 0x4c3   :  { %v1463_v6 = vadd.f32 %v1449_v46, %v1443_v27  ;;  %v1450_v15 = vadd.f32 %v1449_v46, %v1430_v26  ;;  %v1451_v51 = vadd.f32 %v1449_v46, %v1431_v25  ;;  %v1452_v10 = vadd.f32 %v1449_v46, %v1432_v28 }
 0x4c4   :  { %v1453_v58 = vadd.f32 %v1449_v46, %v1433_v50  ;;  %v1454_v61 = vadd.f32 %v1449_v46, %v1434_v39  ;;  %v1455_v14 = vadd.f32 %v1449_v46, %v1435_v36  ;;  %v1456_v42 = vadd.f32 %v1449_v46, %v1436_v33  ;;  %v1508_v39 = vld [vmem:[%s16076_s9 + $0x90] sm:$0xff] }
 0x4c5   :  { %v1479_v0 = vmax.f32 %v1463_v6, 0.0  ;;  %v1466_v2 = vmax.f32 %v1450_v15, 0.0  ;;  %v1467_v19 = vmax.f32 %v1451_v51, 0.0  ;;  %v1468_v3 = vmax.f32 %v1452_v10, 0.0 }
 0x4c6   :  { %v1469_v29 = vmax.f32 %v1453_v58, 0.0  ;;  %v1470_v52 = vmax.f32 %v1454_v61, 0.0  ;;  %v1471_v53 = vmax.f32 %v1455_v14, 0.0  ;;  %v1457_v49 = vadd.f32 %v1449_v46, %v1437_v8 }
 0x4c7   :  { %v11987_v40 = vpack.c.bf16 %v1467_v19, %v1466_v2  ;;  %v1472_v18 = vmax.f32 %v1456_v42, 0.0  ;;  %v1458_v17 = vadd.f32 %v1449_v46, %v1438_v63  ;;  %v1459_v27 = vadd.f32 %v1449_v46, %v1439_v38  ;;  %v1512_v63 = vld [vmem:[%s16076_s9 + $0xb0] sm:$0xff]  ;;  %v1509_v38 = vld [vmem:[%s16076_s9 + $0x98] sm:$0xff] }
 0x4c8   :  { %v11989_v26 = vpack.c.bf16 %v1469_v29, %v1468_v3  ;;  %v11991_v25 = vpack.c.bf16 %v1471_v53, %v1470_v52  ;;  %v1473_v28 = vmax.f32 %v1457_v49, 0.0  ;;  %v1460_v50 = vadd.f32 %v1449_v46, %v1440_v48  ;;  %v1513_v48 = vld [vmem:[%s16076_s9 + $0xb8] sm:$0xff]  ;;  %v1524_v52 = vld [vmem:[%s16076_s9 + $0x110] sm:$0xff] }
 0x4c9   :  { %1907 = vmatmul.mubr.bf16.vlgmr.msra.gmra.mrb[16].mxu1 %v11987_v40  ;;  %2020 = vmatmul.mubr.bf16.vlgmr.msra.gmra.mrb[32].mxu0 %v11987_v40  ;;  %v1474_v36 = vmax.f32 %v1458_v17, 0.0  ;;  %v1475_v33 = vmax.f32 %v1459_v27, 0.0  ;;  %v1461_v8 = vadd.f32 %v1449_v46, %v1441_v22  ;;  %v1462_v6 = vadd.f32 %v1449_v46, %v1442_v59  ;;  %v1529_v53 = vld [vmem:[%s16076_s9 + $0x138] sm:$0xff] }
 0x4ca   :  { %1916 = vmatprep.mubr.bf16.mxu1 %v16459_v60  ;;  %2029 = vmatprep.mubr.bf16.mxu0 %v16459_v60  ;;  %v12009_v17 = vpack.c.bf16 %v1473_v28, %v1472_v18  ;;  %v1476_v22 = vmax.f32 %v1460_v50, 0.0  ;;  %v1464_v15 = vadd.f32 %v1449_v46, %v1444_v35  ;;  %v1465_v51 = vadd.f32 %v1449_v46, %v1445_v20  ;;  %v1516_v46 = vld [vmem:[%s16076_s9 + $0xd0] sm:$0xff] }
 0x4cb   :  { %v12011_v10 = vpack.c.bf16 %v1475_v33, %v1474_v36  ;;  %v16460_v58 = vcombine.low %v11853_v62, %v11858_v9  ;;  %v16461_v61 = vcombine.low %v11863_v11, %v11872_v34  ;;  %v8785_v59 = vcombine.low %v11969_v1, %v11974_v30  ;;  %v1520_v11 = vld [vmem:[%s16076_s9 + $0xf0] sm:$0xff]  ;;  %v1517_v34 = vld [vmem:[%s16076_s9 + $0xd8] sm:$0xff] }
 0x4cc   :  { %v1477_v14 = vmax.f32 %v1461_v8, 0.0  ;;  %v1478_v42 = vmax.f32 %v1462_v6, 0.0  ;;  %v8792_v2 = vcombine.high %v1508_v39, %v1512_v63  ;;  %v8794_v35 = vcombine.high %v1509_v38, %v1513_v48  ;;  %v1521_v1 = vld [vmem:[%s16076_s9 + $0xf8] sm:$0xff]  ;;  %v1532_v50 = vld [vmem:[%s16076_s9 + $0x150] sm:$0xff] }
 0x4cd   :  { %2101 = vmatpush1.bf16.msra.mxu1 %v16460_v58  ;;  %2214 = vmatpush1.bf16.msra.mxu0 %v16461_v61  ;;  %v1480_v20 = vmax.f32 %v1464_v15, 0.0  ;;  %v1481_v62 = vmax.f32 %v1465_v51, 0.0  ;;  %v8793_v19 = vcombine.low %v1509_v38, %v1513_v48  ;;  %v8800_v3 = vcombine.high %v1516_v46, %v1520_v11  ;;  %v1533_v36 = vld [vmem:[%s16076_s9 + $0x158] sm:$0xff]  ;;  %v1540_v6 = vld [vmem:[%s16076_s9 + $0x190] sm:$0xff] }
 0x4ce   :  { %2102 = vmatprep.subr.bf16.mxu1 %v8784_v41  ;;  %2215 = vmatprep.subr.bf16.mxu0 %v8786_v21  ;;  %v12024_v9 = vpack.c.bf16 %v1477_v14, %v1476_v22  ;;  %v12035_v30 = vpack.c.bf16 %v1479_v0, %v1478_v42  ;;  %v8791_v21 = vcombine.low %v1508_v39, %v1512_v63  ;;  %v1528_v0 = vld [vmem:[%s16076_s9 + $0x130] sm:$0xff]  ;;  %v1537_v33 = vld [vmem:[%s16076_s9 + $0x178] sm:$0xff] }
 0x4cf   :  { %v12037_v41 = vpack.c.bf16 %v1481_v62, %v1480_v20  ;;  %v8802_v29 = vcombine.high %v1517_v34, %v1521_v1  ;;  %v8799_v49 = vcombine.low %v1516_v46, %v1520_v11  ;;  %v8801_v18 = vcombine.low %v1517_v34, %v1521_v1  ;;  %v1536_v39 = vld [vmem:[%s16076_s9 + $0x170] sm:$0xff]  ;;  %v1541_v15 = vld [vmem:[%s16076_s9 + $0x198] sm:$0xff] }
 0x4d0   :  { %v8808_v27 = vcombine.high %v1524_v52, %v1528_v0  ;;  %v8807_v8 = vcombine.low %v1524_v52, %v1528_v0  ;;  %v8816_v38 = vcombine.high %v1532_v50, %v1536_v39  ;;  %v8818_v48 = vcombine.high %v1533_v36, %v1537_v33  ;;  %v1544_v22 = vld [vmem:[%s16076_s9 + $0x1b0] sm:$0xff]  ;;  %v1545_v51 = vld [vmem:[%s16076_s9 + $0x1b8] sm:$0xff] }
 0x4d1   :  { %2103 = vmatpush1.bf16.msra.mxu1 %v8783_v12  ;;  %2216 = vmatpush1.bf16.msra.mxu0 %v8785_v59  ;;  %v1525_v12 = vld [vmem:[%s16076_s9 + $0x118] sm:$0xff]  ;;  %v8815_v58 = vcombine.low %v1532_v50, %v1536_v39  ;;  %v8817_v61 = vcombine.low %v1533_v36, %v1537_v33  ;;  %v8824_v59 = vcombine.high %v1540_v6, %v1544_v22  ;;  %v1548_v42 = vld [vmem:[%s16076_s9 + $0x1d0] sm:$0xff] }
 0x4d2   :  { %2104 = vmatprep.subr.bf16.mxu1 %v8792_v2  ;;  %2217 = vmatprep.subr.bf16.mxu0 %v8794_v35  ;;  %v8810_v28 = vcombine.high %v1525_v12, %v1529_v53  ;;  %v8809_v63 = vcombine.low %v1525_v12, %v1529_v53  ;;  %v8826_v14 = vcombine.high %v1541_v15, %v1545_v51  ;;  %v1552_v2 = vld [vmem:[%s16076_s9 + $0x1f0] sm:$0xff]  ;;  %v1549_v35 = vld [vmem:[%s16076_s9 + $0x1d8] sm:$0xff] }
 0x4d3   :  { %1917 = vmatmul.mubr.bf16.gmra.mrb[20].mxu1 %v11989_v26  ;;  %2030 = vmatmul.mubr.bf16.gmra.mrb[36].mxu0 %v11989_v26  ;;  %v1553_v46 = vld [vmem:[%s16076_s9 + $0x1f8] sm:$0xff]  ;;  %v8823_v20 = vcombine.low %v1540_v6, %v1544_v22  ;;  %v8825_v62 = vcombine.low %v1541_v15, %v1545_v51  ;;  %v8832_v11 = vcombine.high %v1548_v42, %v1552_v2 }
 0x4d4   :  { %1926 = vmatprep.mubr.bf16.mxu1 %v16459_v60  ;;  %2039 = vmatprep.mubr.bf16.mxu0 %v16459_v60  ;;  %v8834_v34 = vcombine.high %v1549_v35, %v1553_v46  ;;  %v8831_v1 = vcombine.low %v1548_v42, %v1552_v2 }
 0x4d5   :  { %2105 = vmatpush1.bf16.msra.mxu1 %v8791_v21  ;;  %2218 = vmatpush1.bf16.msra.mxu0 %v8793_v19  ;;  %v8833_v21 = vcombine.low %v1549_v35, %v1553_v46 }
 0x4d6   :  { %2106 = vmatprep.subr.bf16.mxu1 %v8800_v3  ;;  %2219 = vmatprep.subr.bf16.mxu0 %v8802_v29 }
 0x4d9   :  { %2107 = vmatpush1.bf16.msra.mxu1 %v8799_v49  ;;  %2220 = vmatpush1.bf16.msra.mxu0 %v8801_v18 }
 0x4da   :  { %2108 = vmatprep.subr.bf16.mxu1 %v8808_v27  ;;  %2221 = vmatprep.subr.bf16.mxu0 %v8810_v28 }
 0x4db   :  { %1927 = vmatmul.mubr.bf16.gmra.mrb[24].mxu1 %v11991_v25  ;;  %2040 = vmatmul.mubr.bf16.gmra.mrb[40].mxu0 %v11991_v25 }
 0x4dc   :  { %1936 = vmatprep.mubr.bf16.mxu1 %v16459_v60  ;;  %2049 = vmatprep.mubr.bf16.mxu0 %v16459_v60 }
 0x4dd   :  { %2109 = vmatpush1.bf16.msra.mxu1 %v8807_v8  ;;  %2222 = vmatpush1.bf16.msra.mxu0 %v8809_v63 }
 0x4de   :  { %2110 = vmatprep.subr.bf16.mxu1 %v8816_v38  ;;  %2223 = vmatprep.subr.bf16.mxu0 %v8818_v48 }
 0x4e1   :  { %2111 = vmatpush1.bf16.msra.mxu1 %v8815_v58  ;;  %2224 = vmatpush1.bf16.msra.mxu0 %v8817_v61 }
 0x4e2   :  { %2112 = vmatprep.subr.bf16.mxu1 %v8824_v59  ;;  %2225 = vmatprep.subr.bf16.mxu0 %v8826_v14 }
 0x4e3   :  { %1937 = vmatmul.mubr.bf16.gmra.mrb[28].mxu1 %v12009_v17  ;;  %2050 = vmatmul.mubr.bf16.gmra.mrb[44].mxu0 %v12009_v17 }
 0x4e4   :  { %1946 = vmatprep.mubr.bf16.mxu1 %v16459_v60  ;;  %2059 = vmatprep.mubr.bf16.mxu0 %v16459_v60 }
 0x4e5   :  { %2113 = vmatpush1.bf16.msra.mxu1 %v8823_v20  ;;  %2226 = vmatpush1.bf16.msra.mxu0 %v8825_v62 }
 0x4e6   :  { %2114 = vmatprep.subr.bf16.mxu1 %v8832_v11  ;;  %2227 = vmatprep.subr.bf16.mxu0 %v8834_v34 }
 0x4e9   :  { %2115 = vmatpush1.bf16.msra.mxu1 %v8831_v1  ;;  %2228 = vmatpush1.bf16.msra.mxu0 %v8833_v21 }
 0x4eb   :  { %1947 = vmatmul.mubr.bf16.gmra.mrb[32].mxu1 %v12011_v10  ;;  %2060 = vmatmul.mubr.bf16.gmra.mrb[48].mxu0 %v12011_v10 }
 0x4ec   :  { %1956 = vmatprep.mubr.bf16.mxu1 %v16459_v60  ;;  %2069 = vmatprep.mubr.bf16.mxu0 %v16459_v60 }
 0x4f3   :  { %1957 = vmatmul.mubr.bf16.gmra.mrb[36].mxu1 %v12024_v9  ;;  %2070 = vmatmul.mubr.bf16.gmra.mrb[52].mxu0 %v12024_v9 }
 0x4f4   :  { %1966 = vmatprep.mubr.bf16.mxu1 %v16459_v60  ;;  %2079 = vmatprep.mubr.bf16.mxu0 %v16459_v60 }
 0x4fb   :  { %1967 = vmatmul.mubr.bf16.gmra.mrb[40].mxu1 %v12035_v30  ;;  %2080 = vmatmul.mubr.bf16.gmra.mrb[56].mxu0 %v12035_v30 }
 0x4fc   :  { %1976 = vmatprep.mubr.bf16.mxu1 %v16459_v60  ;;  %2089 = vmatprep.mubr.bf16.mxu0 %v16459_v60 }
 0x503   :  { %1977 = vmatmul.mubr.bf16.gmra.mrb[44].mxu1 %v12037_v41  ;;  %2090 = vmatmul.mubr.bf16.gmra.mrb[60].mxu0 %v12037_v41 }
 0x504   :  { %2132 = vmatprep.mubr.bf16.mxu1 %v16459_v60  ;;  %2245 = vmatprep.mubr.bf16.mxu0 %v16459_v60 }
 0x50b   :  { %2133 = vmatmul.mubr.bf16.vlgmr.msra.gmra.mrb[48].mxu1 %v11987_v40  ;;  %2246 = vmatmul.mubr.bf16.vlgmr.msra.gmra.mrb[64].mxu0 %v11987_v40 }
 0x50c   :  { %2142 = vmatprep.mubr.bf16.mxu1 %v16459_v60  ;;  %2255 = vmatprep.mubr.bf16.mxu0 %v16459_v60 }
 0x513   :  { %2143 = vmatmul.mubr.bf16.gmra.mrb[52].mxu1 %v11989_v26  ;;  %2256 = vmatmul.mubr.bf16.gmra.mrb[68].mxu0 %v11989_v26 }
 0x514   :  { %2152 = vmatprep.mubr.bf16.mxu1 %v16459_v60  ;;  %2265 = vmatprep.mubr.bf16.mxu0 %v16459_v60 }
 0x51b   :  { %2153 = vmatmul.mubr.bf16.gmra.mrb[56].mxu1 %v11991_v25  ;;  %2266 = vmatmul.mubr.bf16.gmra.mrb[72].mxu0 %v11991_v25 }
 0x51c   :  { %2162 = vmatprep.mubr.bf16.mxu1 %v16459_v60  ;;  %2275 = vmatprep.mubr.bf16.mxu0 %v16459_v60 }
 0x523   :  { %2163 = vmatmul.mubr.bf16.gmra.mrb[60].mxu1 %v12009_v17  ;;  %2276 = vmatmul.mubr.bf16.gmra.mrb[76].mxu0 %v12009_v17 }
 0x524   :  { %2172 = vmatprep.mubr.bf16.mxu1 %v16459_v60  ;;  %2285 = vmatprep.mubr.bf16.mxu0 %v16459_v60 }
 0x52b   :  { %2173 = vmatmul.mubr.bf16.gmra.mrb[64].mxu1 %v12011_v10  ;;  %2286 = vmatmul.mubr.bf16.gmra.mrb[80].mxu0 %v12011_v10 }
 0x52c   :  { %2182 = vmatprep.mubr.bf16.mxu1 %v16459_v60  ;;  %2295 = vmatprep.mubr.bf16.mxu0 %v16459_v60 }
 0x533   :  { %2183 = vmatmul.mubr.bf16.gmra.mrb[68].mxu1 %v12024_v9  ;;  %2296 = vmatmul.mubr.bf16.gmra.mrb[84].mxu0 %v12024_v9 }
 0x534   :  { %2192 = vmatprep.mubr.bf16.mxu1 %v16459_v60  ;;  %2305 = vmatprep.mubr.bf16.mxu0 %v16459_v60 }
 0x53b   :  { %2193 = vmatmul.mubr.bf16.gmra.mrb[72].mxu1 %v12035_v30  ;;  %2306 = vmatmul.mubr.bf16.gmra.mrb[88].mxu0 %v12035_v30 }
 0x53c   :  { %2202 = vmatprep.mubr.bf16.mxu1 %v16459_v60  ;;  %2315 = vmatprep.mubr.bf16.mxu0 %v16459_v60 }
 0x543   :  { %2203 = vmatmul.mubr.bf16.gmra.mrb[76].mxu1 %v12037_v41  ;;  %2316 = vmatmul.mubr.bf16.gmra.mrb[92].mxu0 %v12037_v41 }
 0x59c   :  { %v12145_v40 = vpop.f32.mrb[16].mxu1  ;;  %v12147_v26 = vpop.f32.mrb[32].mxu0 }
 0x59d   :  { %16462 = vst [vmem:[#allocation14_spill] sm:$0xff] %v12145_v40  ;;  %16463 = vst [vmem:[#allocation34_spill] sm:$0xff] %v12147_v26  ;;  %v12149_v25 = vpop.f32.mrb[17].mxu1  ;;  %v12151_v17 = vpop.f32.mrb[33].mxu0  ;;  %v2504_v10 = vmul.f32 %v12145_v40, %v12145_v40  ;;  %v2506_v9 = vmul.f32 %v12147_v26, %v12147_v26 }
 0x59e   :  { %16464 = vst [vmem:[#allocation57_spill] sm:$0xff] %v12151_v17  ;;  %v2505_v60 = vmul.f32 %v12149_v25, %v12149_v25  ;;  %v2507_v30 = vmul.f32 %v12151_v17, %v12151_v17  ;;  %v12161_v41 = vpop.f32.mrb[18].mxu1  ;;  %v12163_v19 = vpop.f32.mrb[34].mxu0 }
 0x59f   :  { %16465 = vst [vmem:[#allocation46_spill] sm:$0xff] %v12161_v41  ;;  %16466 = vst [vmem:[#allocation64_spill] sm:$0xff] %v12163_v19  ;;  %v2328_v3 = vadd.f32 %v12161_v41, %v12145_v40  ;;  %v2512_v29 = vmul.f32 %v12161_v41, %v12161_v41  ;;  %v2370_v52 = vadd.f32 %v12163_v19, %v12147_v26  ;;  %v12173_v12 = vpop.f32.mrb[19].mxu1  ;;  %v12175_v53 = vpop.f32.mrb[35].mxu0 }
 0x5a0   :  { %v2514_v0 = vmul.f32 %v12163_v19, %v12163_v19  ;;  %16467 = vst [vmem:[#allocation15_spill] sm:$0xff] %v12175_v53  ;;  %v2349_v49 = vadd.f32 %v12173_v12, %v12149_v25  ;;  %v2513_v18 = vmul.f32 %v12173_v12, %v12173_v12  ;;  %v2391_v27 = vadd.f32 %v12175_v53, %v12151_v17 }
 0x5a1   :  { %v2515_v28 = vmul.f32 %v12175_v53, %v12175_v53  ;;  %v2632_v50 = vadd.f32 %v2512_v29, %v2504_v10 }
 0x5a2   :  { %v2674_v39 = vadd.f32 %v2514_v0, %v2506_v9  ;;  %v2653_v36 = vadd.f32 %v2513_v18, %v2505_v60  ;;  %v9550_v18 = vld [vmem:[%s16078_s12] ss:$16 sps:$4 sm:$0xff]  }
 0x5a3   :  { %v2695_v33 = vadd.f32 %v2515_v28, %v2507_v30  ;;  %v9553_v28 = vld [vmem:[%s16078_s12 + $0x8] ss:$16 sps:$4 sm:$0xff]  }
 0x5a6   :  { %v12185_v8 = vpop.f32.mrb[20].mxu1  ;;  %v12187_v63 = vpop.f32.mrb[36].mxu0 }
 0x5a7   :  { %16468 = vst [vmem:[#allocation32_spill] sm:$0xff] %v12185_v8  ;;  %16469 = vst [vmem:[#allocation33_spill] sm:$0xff] %v12187_v63  ;;  %v2329_v38 = vadd.f32 %v2328_v3, %v12185_v8  ;;  %v2520_v48 = vmul.f32 %v12185_v8, %v12185_v8  ;;  %v2371_v6 = vadd.f32 %v2370_v52, %v12187_v63  ;;  %v12195_v15 = vpop.f32.mrb[21].mxu1  ;;  %v12197_v51 = vpop.f32.mrb[37].mxu0  ;;  %v9552_v52 = vld [vmem:[%s16078_s12 + $0x4] ss:$16 sps:$4 sm:$0xff]  }
 0x5a8   :  { %v2522_v22 = vmul.f32 %v12187_v63, %v12187_v63  ;;  %16470 = vst [vmem:[#allocation40_spill] sm:$0xff] %v12197_v51  ;;  %v2350_v58 = vadd.f32 %v2349_v49, %v12195_v15  ;;  %v2521_v61 = vmul.f32 %v12195_v15, %v12195_v15  ;;  %v2392_v59 = vadd.f32 %v2391_v27, %v12197_v51  ;;  %v12205_v42 = vpop.f32.mrb[22].mxu1  ;;  %v12207_v2 = vpop.f32.mrb[38].mxu0 }
 0x5a9   :  { %v2523_v14 = vmul.f32 %v12197_v51, %v12197_v51  ;;  %16471 = vst [vmem:[#allocation73_spill] sm:$0xff] %v12205_v42  ;;  %16472 = vst [vmem:[#allocation29_spill] sm:$0xff] %v12207_v2  ;;  %v2633_v35 = vadd.f32 %v2632_v50, %v2520_v48  ;;  %v2330_v20 = vadd.f32 %v2329_v38, %v12205_v42  ;;  %v12212_v11 = vpop.f32.mrb[23].mxu1  ;;  %v12214_v34 = vpop.f32.mrb[39].mxu0  ;;  %5731 = vmatprep.subr.bf16.mxu1 %v9552_v52  ;;  %v9555_v50 = vld [vmem:[%s16078_s12 + $0xc] ss:$16 sps:$4 sm:$0xff]  }
 0x5aa   :  { %v2675_v46 = vadd.f32 %v2674_v39, %v2522_v22  ;;  %v2528_v62 = vmul.f32 %v12205_v42, %v12205_v42  ;;  %16473 = vst [vmem:[#allocation84_spill] sm:$0xff] %v12214_v34  ;;  %v2654_v1 = vadd.f32 %v2653_v36, %v2521_v61  ;;  %v2372_v10 = vadd.f32 %v2371_v6, %v12207_v2 }
 0x5ab   :  { %v2696_v21 = vadd.f32 %v2695_v33, %v2523_v14  ;;  %v2530_v9 = vmul.f32 %v12207_v2, %v12207_v2  ;;  %v2351_v30 = vadd.f32 %v2350_v58, %v12212_v11  ;;  %v2529_v3 = vmul.f32 %v12212_v11, %v12212_v11  ;;  %5732 = vmatpush1.bf16.msra.mxu1 %v9550_v18  ;;  %v9558_v14 = vld [vmem:[%s16078_s12 + $0x24] ss:$16 sps:$4 sm:$0xff]  }
 0x5ac   :  { %v2634_v60 = vadd.f32 %v2633_v35, %v2528_v62  ;;  %v2393_v29 = vadd.f32 %v2392_v59, %v12214_v34  ;;  %v2531_v49 = vmul.f32 %v12214_v34, %v12214_v34  ;;  %5895 = vmatprep.subr.bf16.mxu0 %v9555_v50  ;;  %v9556_v59 = vld [vmem:[%s16078_s12 + $0x20] ss:$16 sps:$4 sm:$0xff]   ;;  %5733 = vmatprep.subr.bf16.mxu1 %v9558_v14 }
 0x5ad   :  { %v2676_v0 = vadd.f32 %v2675_v46, %v2530_v9  ;;  %v2655_v27 = vadd.f32 %v2654_v1, %v2529_v3  ;;  %5896 = vmatpush1.bf16.msra.mxu0 %v9553_v28  ;;  %v9561_v9 = vld [vmem:[%s16078_s12 + $0x2c] ss:$16 sps:$4 sm:$0xff]  }
 0x5ae   :  { %v2697_v39 = vadd.f32 %v2696_v21, %v2531_v49  ;;  %v12237_v36 = vpop.f32.mrb[24].mxu1  ;;  %v12239_v33 = vpop.f32.mrb[40].mxu0  ;;  %5897 = vmatprep.subr.bf16.mxu0 %v9561_v9 }
 0x5af   :  { %16474 = vst [vmem:[#allocation85_spill] sm:$0xff] %v12237_v36  ;;  %16475 = vst [vmem:[#allocation86_spill] sm:$0xff] %v12239_v33  ;;  %v2331_v38 = vadd.f32 %v2330_v20, %v12237_v36  ;;  %v2536_v48 = vmul.f32 %v12237_v36, %v12237_v36  ;;  %v2373_v6 = vadd.f32 %v2372_v10, %v12239_v33  ;;  %v12247_v58 = vpop.f32.mrb[25].mxu1  ;;  %v12249_v61 = vpop.f32.mrb[41].mxu0  ;;  %v9559_v10 = vld [vmem:[%s16078_s12 + $0x28] ss:$16 sps:$4 sm:$0xff]   ;;  %5734 = vmatpush1.bf16.msra.mxu1 %v9556_v59 }
 0x5b0   :  { %v2538_v22 = vmul.f32 %v12239_v33, %v12239_v33  ;;  %16476 = vst [vmem:[#allocation87_spill] sm:$0xff] %v12249_v61  ;;  %v2352_v35 = vadd.f32 %v2351_v30, %v12247_v58  ;;  %v2537_v46 = vmul.f32 %v12247_v58, %v12247_v58  ;;  %v2394_v20 = vadd.f32 %v2393_v29, %v12249_v61  ;;  %v12263_v1 = vpop.f32.mrb[26].mxu1  ;;  %v12265_v21 = vpop.f32.mrb[42].mxu0  ;;  %v9570_v59 = vld [vmem:[%s16078_s12 + $0x64] ss:$16 sps:$4 sm:$0xff]  }
 0x5b1   :  { %v2539_v62 = vmul.f32 %v12249_v61, %v12249_v61  ;;  %16477 = vst [vmem:[#allocation88_spill] sm:$0xff] %v12263_v1  ;;  %16478 = vst [vmem:[#allocation89_spill] sm:$0xff] %v12265_v21  ;;  %v2635_v30 = vadd.f32 %v2634_v60, %v2536_v48  ;;  %v2332_v29 = vadd.f32 %v2331_v38, %v12263_v1  ;;  %v12276_v49 = vpop.f32.mrb[27].mxu1  ;;  %v12278_v18 = vpop.f32.mrb[43].mxu0  ;;  %v9564_v60 = vld [vmem:[%s16078_s12 + $0x44] ss:$16 sps:$4 sm:$0xff]   ;;  %5898 = vmatpush1.bf16.msra.mxu0 %v9559_v10 }
 0x5b2   :  { %v2677_v3 = vadd.f32 %v2676_v0, %v2538_v22  ;;  %v2544_v52 = vmul.f32 %v12263_v1, %v12263_v1  ;;  %16479 = vst [vmem:[#allocation90_spill] sm:$0xff] %v12278_v18  ;;  %v2656_v28 = vadd.f32 %v2655_v27, %v2537_v46  ;;  %v2374_v43 = vadd.f32 %v2373_v6, %v12265_v21  ;;  %v9562_v27 = vld [vmem:[%s16078_s12 + $0x40] ss:$16 sps:$4 sm:$0xff]  }
 0x5b3   :  { %v2698_v50 = vadd.f32 %v2697_v39, %v2539_v62  ;;  %v2546_v13 = vmul.f32 %v12265_v21, %v12265_v21  ;;  %v2353_v38 = vadd.f32 %v2352_v35, %v12276_v49  ;;  %v2545_v48 = vmul.f32 %v12276_v49, %v12276_v49  ;;  %v9567_v39 = vld [vmem:[%s16078_s12 + $0x4c] ss:$16 sps:$4 sm:$0xff]   ;;  %5735 = vmatprep.subr.bf16.mxu1 %v9564_v60  ;;  %v9565_v35 = vld [vmem:[%s16078_s12 + $0x48] ss:$16 sps:$4 sm:$0xff]   ;;  %v9568_v60 = vld [vmem:[%s16078_s12 + $0x60] ss:$16 sps:$4 sm:$0xff]  }
 0x5b4   :  { %v2636_v0 = vadd.f32 %v2635_v30, %v2544_v52  ;;  %v2395_v22 = vadd.f32 %v2394_v20, %v12278_v18  ;;  %v2547_v14 = vmul.f32 %v12278_v18, %v12278_v18  ;;  %5899 = vmatprep.subr.bf16.mxu0 %v9567_v39  ;;  %5736 = vmatpush1.bf16.msra.mxu1 %v9562_v27 }
 0x5b5   :  { %v2678_v6 = vadd.f32 %v2677_v3, %v2546_v13  ;;  %v2657_v46 = vadd.f32 %v2656_v28, %v2545_v48  ;;  %v9573_v13 = vld [vmem:[%s16078_s12 + $0x6c] ss:$16 sps:$4 sm:$0xff]   ;;  %5900 = vmatpush1.bf16.msra.mxu0 %v9565_v35  ;;  %5737 = vmatprep.subr.bf16.mxu1 %v9570_v59 }
 0x5b6   :  { %v2699_v20 = vadd.f32 %v2698_v50, %v2547_v14  ;;  %v12304_v62 = vpop.f32.mrb[28].mxu1  ;;  %v12306_v9 = vpop.f32.mrb[44].mxu0  ;;  %v9579_v35 = vld [vmem:[%s16078_s12 + $0x8c] ss:$16 sps:$4 sm:$0xff]   ;;  %5901 = vmatprep.subr.bf16.mxu0 %v9573_v13  ;;  %v9580_v13 = vld [vmem:[%s16078_s12 + $0xa0] ss:$16 sps:$4 sm:$0xff]  }
 0x5b7   :  { %16480 = vst [vmem:[#allocation91_spill] sm:$0xff] %v12304_v62  ;;  %16481 = vst [vmem:[#allocation92_spill] sm:$0xff] %v12306_v9  ;;  %v2333_v10 = vadd.f32 %v2332_v29, %v12304_v62  ;;  %v2552_v30 = vmul.f32 %v12304_v62, %v12304_v62  ;;  %v2375_v3 = vadd.f32 %v2374_v43, %v12306_v9  ;;  %v12317_v28 = vpop.f32.mrb[29].mxu1  ;;  %v12319_v50 = vpop.f32.mrb[45].mxu0  ;;  %v9571_v29 = vld [vmem:[%s16078_s12 + $0x68] ss:$16 sps:$4 sm:$0xff]  }
 0x5b8   :  { %v2554_v52 = vmul.f32 %v12306_v9, %v12306_v9  ;;  %16482 = vst [vmem:[#allocation93_spill] sm:$0xff] %v12317_v28  ;;  %16483 = vst [vmem:[#allocation94_spill] sm:$0xff] %v12319_v50  ;;  %v2354_v48 = vadd.f32 %v2353_v38, %v12317_v28  ;;  %v2553_v43 = vmul.f32 %v12317_v28, %v12317_v28  ;;  %v12333_v24 = vpop.f32.mrb[30].mxu1  ;;  %v12335_v27 = vpop.f32.mrb[46].mxu0  ;;  %5738 = vmatpush1.bf16.msra.mxu1 %v9568_v60 }
 0x5b9   :  { %v2396_v39 = vadd.f32 %v2395_v22, %v12319_v50  ;;  %v2555_v14 = vmul.f32 %v12319_v50, %v12319_v50  ;;  %16484 = vst [vmem:[#allocation95_spill] sm:$0xff] %v12333_v24  ;;  %16485 = vst [vmem:[#allocation96_spill] sm:$0xff] %v12335_v27  ;;  %v2637_v7 = vadd.f32 %v2636_v0, %v2552_v30  ;;  %v12343_v22 = vpop.f32.mrb[31].mxu1  ;;  %v12345_v16 = vpop.f32.mrb[47].mxu0  ;;  %5902 = vmatpush1.bf16.msra.mxu0 %v9571_v29  ;;  %v9588_v29 = vld [vmem:[%s16078_s12 + $0xc4] ss:$16 sps:$4 sm:$0xff]  }
 0x5ba   :  { %v2679_v47 = vadd.f32 %v2678_v6, %v2554_v52  ;;  %v2334_v38 = vadd.f32 %v2333_v10, %v12333_v24  ;;  %v2560_v55 = vmul.f32 %v12333_v24, %v12333_v24  ;;  %16486 = vst [vmem:[#allocation97_spill] sm:$0xff] %v12343_v22  ;;  %16487 = vst [vmem:[#allocation98_spill] sm:$0xff] %v12345_v16  ;;  %5739 = vmatprep.subr.bf16.mxu1 %v9576_v57  ;;  %v9582_v52 = vld [vmem:[%s16078_s12 + $0xa4] ss:$16 sps:$4 sm:$0xff]   ;;  %v9583_v57 = vld [vmem:[%s16078_s12 + $0xa8] ss:$16 sps:$4 sm:$0xff]  }
 0x5bb   :  { %v2658_v56 = vadd.f32 %v2657_v46, %v2553_v43  ;;  %v2700_v31 = vadd.f32 %v2699_v20, %v2555_v14  ;;  %v2376_v54 = vadd.f32 %v2375_v3, %v12335_v27  ;;  %v2562_v0 = vmul.f32 %v12335_v27, %v12335_v27  ;;  %v9574_v46 = vld [vmem:[%s16078_s12 + $0x80] ss:$16 sps:$4 sm:$0xff]   ;;  %5903 = vmatprep.subr.bf16.mxu0 %v9579_v35 }
 0x5bc   :  { %v2638_v6 = vadd.f32 %v2637_v7, %v2560_v55  ;;  %v2355_v10 = vadd.f32 %v2354_v48, %v12343_v22  ;;  %v2561_v30 = vmul.f32 %v12343_v22, %v12343_v22  ;;  %v2397_v59 = vadd.f32 %v2396_v39, %v12345_v16  ;;  %v9577_v7 = vld [vmem:[%s16078_s12 + $0x88] ss:$16 sps:$4 sm:$0xff]   ;;  %5740 = vmatpush1.bf16.msra.mxu1 %v9574_v46 }
 0x5bd   :  { %v2680_v20 = vadd.f32 %v2679_v47, %v2562_v0  ;;  %v2563_v3 = vmul.f32 %v12345_v16, %v12345_v16  ;;  %5904 = vmatpush1.bf16.msra.mxu0 %v9577_v7  ;;  %5741 = vmatprep.subr.bf16.mxu1 %v9582_v52  ;;  %v9589_v52 = vld [vmem:[%s16078_s12 + $0xc8] ss:$16 sps:$4 sm:$0xff]  }
 0x5be   :  { %v2659_v55 = vadd.f32 %v2658_v56, %v2561_v30  ;;  %v12371_v60 = vpop.f32.mrb[32].mxu1  ;;  %v12373_v48 = vpop.f32.mrb[48].mxu0  ;;  %v9585_v56 = vld [vmem:[%s16078_s12 + $0xac] ss:$16 sps:$4 sm:$0xff]  }
 0x5bf   :  { %v2701_v47 = vadd.f32 %v2700_v31, %v2563_v3  ;;  %16488 = vst [vmem:[#allocation99_spill] sm:$0xff] %v12371_v60  ;;  %16489 = vst [vmem:[#allocation100_spill] sm:$0xff] %v12373_v48  ;;  %v2335_v43 = vadd.f32 %v2334_v38, %v12371_v60  ;;  %v2568_v31 = vmul.f32 %v12371_v60, %v12371_v60  ;;  %v12390_v35 = vpop.f32.mrb[33].mxu1  ;;  %v12392_v0 = vpop.f32.mrb[49].mxu0  ;;  %v9591_v30 = vld [vmem:[%s16078_s12 + $0xcc] ss:$16 sps:$4 sm:$0xff]   ;;  %5905 = vmatprep.subr.bf16.mxu0 %v9585_v56 }
 0x5c0   :  { %v2377_v39 = vadd.f32 %v2376_v54, %v12373_v48  ;;  %v2570_v14 = vmul.f32 %v12373_v48, %v12373_v48  ;;  %16490 = vst [vmem:[#allocation101_spill] sm:$0xff] %v12390_v35  ;;  %v2356_v3 = vadd.f32 %v2355_v10, %v12390_v35  ;;  %v2569_v38 = vmul.f32 %v12390_v35, %v12390_v35  ;;  %v12403_v5 = vpop.f32.mrb[34].mxu1  ;;  %v12405_v4 = vpop.f32.mrb[50].mxu0 }
 0x5c1   :  { %v2398_v32 = vadd.f32 %v2397_v59, %v12392_v0  ;;  %v2571_v54 = vmul.f32 %v12392_v0, %v12392_v0  ;;  %16491 = vst [vmem:[#allocation102_spill] sm:$0xff] %v12403_v5  ;;  %16492 = vst [vmem:[#allocation103_spill] sm:$0xff] %v12405_v4  ;;  %v2639_v46 = vadd.f32 %v2638_v6, %v2568_v31  ;;  %v12410_v48 = vpop.f32.mrb[35].mxu1  ;;  %v12412_v27 = vpop.f32.mrb[51].mxu0  ;;  %5742 = vmatpush1.bf16.msra.mxu1 %v9580_v13 }
 0x5c2   :  { %v2681_v37 = vadd.f32 %v2680_v20, %v2570_v14  ;;  %v2336_v45 = vadd.f32 %v2335_v43, %v12403_v5  ;;  %v2576_v10 = vmul.f32 %v12403_v5, %v12403_v5  ;;  %16493 = vst [vmem:[#allocation104_spill] sm:$0xff] %v12410_v48  ;;  %v2660_v59 = vadd.f32 %v2659_v55, %v2569_v38  ;;  %v9586_v55 = vld [vmem:[%s16078_s12 + $0xc0] ss:$16 sps:$4 sm:$0xff]  }
 0x5c3   :  { %v2702_v9 = vadd.f32 %v2701_v47, %v2571_v54  ;;  %v2378_v21 = vadd.f32 %v2377_v39, %v12405_v4  ;;  %v2578_v33 = vmul.f32 %v12405_v4, %v12405_v4  ;;  %v2357_v20 = vadd.f32 %v2356_v3, %v12410_v48  ;;  %v9594_v47 = vld [vmem:[%s16078_s12 + $0xe4] ss:$16 sps:$4 sm:$0xff]   ;;  %5906 = vmatpush1.bf16.msra.mxu0 %v9583_v57  ;;  %v9592_v39 = vld [vmem:[%s16078_s12 + $0xe0] ss:$16 sps:$4 sm:$0xff]   ;;  %v9595_v57 = vld [vmem:[%s16078_s12 + $0xe8] ss:$16 sps:$4 sm:$0xff]  }
 0x5c4   :  { %v2640_v6 = vadd.f32 %v2639_v46, %v2576_v10  ;;  %v2577_v7 = vmul.f32 %v12410_v48, %v12410_v48  ;;  %v2399_v43 = vadd.f32 %v2398_v32, %v12412_v27  ;;  %v2579_v31 = vmul.f32 %v12412_v27, %v12412_v27  ;;  %5743 = vmatprep.subr.bf16.mxu1 %v9588_v29  ;;  %v9597_v32 = vld [vmem:[%s16078_s12 + $0xec] ss:$16 sps:$4 sm:$0xff]  }
 0x5c5   :  { %v2682_v56 = vadd.f32 %v2681_v37, %v2578_v33  ;;  %5907 = vmatprep.subr.bf16.mxu0 %v9591_v30  ;;  %v10103_v37 = vmov 1983009808   ;;  %5744 = vmatpush1.bf16.msra.mxu1 %v9586_v55 }
 0x5c6   :  { %v2661_v13 = vadd.f32 %v2660_v59, %v2577_v7  ;;  %v2703_v14 = vadd.f32 %v2702_v9, %v2579_v31  ;;  %v12438_v3 = vpop.f32.mrb[36].mxu1  ;;  %v12440_v38 = vpop.f32.mrb[52].mxu0  ;;  %v12442_v33 = vunpack.c.l.s4 %v10103_v37  ;;  %5745 = vmatprep.subr.bf16.mxu1 %v9594_v47  ;;  %v9600_v47 = vld [vmem:[%s16078_s12 + $0x104] ss:$16 sps:$4 sm:$0xff]  }
 0x5c7   :  { %16494 = vst [vmem:[#allocation105_spill] sm:$0xff] %v12438_v3  ;;  %16495 = vst [vmem:[#allocation106_spill] sm:$0xff] %v12440_v38  ;;  %v2337_v29 = vadd.f32 %v2336_v45, %v12438_v3  ;;  %v2584_v30 = vmul.f32 %v12438_v3, %v12438_v3  ;;  %v2379_v54 = vadd.f32 %v2378_v21, %v12440_v38  ;;  %v12453_v46 = vpop.f32.mrb[37].mxu1  ;;  %v12455_v10 = vpop.f32.mrb[53].mxu0  ;;  %5908 = vmatpush1.bf16.msra.mxu0 %v9589_v52 }
 0x5c8   :  { %v2586_v9 = vmul.f32 %v12440_v38, %v12440_v38  ;;  %16496 = vst [vmem:[#allocation107_spill] sm:$0xff] %v12453_v46  ;;  %v2358_v59 = vadd.f32 %v2357_v20, %v12453_v46  ;;  %v2585_v7 = vmul.f32 %v12453_v46, %v12453_v46  ;;  %v2400_v45 = vadd.f32 %v2399_v43, %v12455_v10  ;;  %v12463_v37 = vpop.f32.mrb[38].mxu1  ;;  %v12465_v21 = vpop.f32.mrb[54].mxu0 }
 0x5c9   :  { %v2587_v31 = vmul.f32 %v12455_v10, %v12455_v10  ;;  %16497 = vst [vmem:[#allocation108_spill] sm:$0xff] %v12463_v37  ;;  %16498 = vst [vmem:[#allocation109_spill] sm:$0xff] %v12465_v21  ;;  %v2641_v38 = vadd.f32 %v2640_v6, %v2584_v30  ;;  %v2338_v2 = vadd.f32 %v2337_v29, %v12463_v37  ;;  %v12470_v55 = vpop.f32.mrb[39].mxu1  ;;  %v12472_v63 = vpop.f32.mrb[55].mxu0  ;;  %5909 = vmatprep.subr.bf16.mxu0 %v9597_v32 }
 0x5ca   :  { %v2683_v4 = vadd.f32 %v2682_v56, %v2586_v9  ;;  %v2592_v20 = vmul.f32 %v12463_v37, %v12463_v37  ;;  %16499 = vst [vmem:[#allocation110_spill] sm:$0xff] %v12470_v55  ;;  %v2662_v43 = vadd.f32 %v2661_v13, %v2585_v7  ;;  %v2380_v26 = vadd.f32 %v2379_v54, %v12465_v21  ;;  %v9603_v13 = vld [vmem:[%s16078_s12 + $0x10c] ss:$16 sps:$4 sm:$0xff]  }
 0x5cb   :  { %v2704_v19 = vadd.f32 %v2703_v14, %v2587_v31  ;;  %v2594_v16 = vmul.f32 %v12465_v21, %v12465_v21  ;;  %v2359_v52 = vadd.f32 %v2358_v59, %v12470_v55  ;;  %v2593_v56 = vmul.f32 %v12470_v55, %v12470_v55  ;;  %5746 = vmatpush1.bf16.msra.mxu1 %v9592_v39  ;;  %v9601_v39 = vld [vmem:[%s16078_s12 + $0x108] ss:$16 sps:$4 sm:$0xff]  }
 0x5cc   :  { %v2642_v6 = vadd.f32 %v2641_v38, %v2592_v20  ;;  %v2401_v29 = vadd.f32 %v2400_v45, %v12472_v63  ;;  %v2595_v32 = vmul.f32 %v12472_v63, %v12472_v63  ;;  %5910 = vmatpush1.bf16.msra.mxu0 %v9595_v57  ;;  %v9598_v38 = vld [vmem:[%s16078_s12 + $0x100] ss:$16 sps:$4 sm:$0xff]   ;;  %5747 = vmatprep.subr.bf16.mxu1 %v9600_v47 }
 0x5cd   :  { %v2684_v14 = vadd.f32 %v2683_v4, %v2594_v16  ;;  %v2663_v30 = vadd.f32 %v2662_v43, %v2593_v56  ;;  %5911 = vmatprep.subr.bf16.mxu0 %v9603_v13  ;;  %v2860_v4 = vunpack.c.0.s8 %v12442_v33 }
 0x5ce   :  { %v2705_v54 = vadd.f32 %v2704_v19, %v2595_v32  ;;  %v12495_v9 = vpop.f32.mrb[40].mxu1  ;;  %v12497_v59 = vpop.f32.mrb[56].mxu0  ;;  %v9606_v19 = vld [vmem:[%s16078_s12 + $0x124] ss:$16 sps:$4 sm:$0xff]   ;;  %v9604_v32 = vld [vmem:[%s16078_s12 + $0x120] ss:$16 sps:$4 sm:$0xff]  }
 0x5cf   :  { %16500 = vst [vmem:[#allocation111_spill] sm:$0xff] %v12495_v9  ;;  %16501 = vst [vmem:[#allocation112_spill] sm:$0xff] %v12497_v59  ;;  %v2339_v16 = vadd.f32 %v2338_v2, %v12495_v9  ;;  %v2600_v57 = vmul.f32 %v12495_v9, %v12495_v9  ;;  %v2381_v7 = vadd.f32 %v2380_v26, %v12497_v59  ;;  %v12506_v31 = vpop.f32.mrb[41].mxu1  ;;  %v12508_v20 = vpop.f32.mrb[57].mxu0  ;;  %5748 = vmatpush1.bf16.msra.mxu1 %v9598_v38  ;;  %v9609_v2 = vld [vmem:[%s16078_s12 + $0x12c] ss:$16 sps:$4 sm:$0xff]  }
 0x5d0   :  { %v2602_v45 = vmul.f32 %v12497_v59, %v12497_v59  ;;  %16502 = vst [vmem:[#allocation113_spill] sm:$0xff] %v12506_v31  ;;  %v2360_v33 = vadd.f32 %v2359_v52, %v12506_v31  ;;  %v2601_v26 = vmul.f32 %v12506_v31, %v12506_v31  ;;  %v2402_v43 = vadd.f32 %v2401_v29, %v12508_v20  ;;  %v12522_v47 = vpop.f32.mrb[42].mxu1  ;;  %v12524_v13 = vpop.f32.mrb[58].mxu0 }
 0x5d1   :  { %v2603_v56 = vmul.f32 %v12508_v20, %v12508_v20  ;;  %16503 = vst [vmem:[#allocation114_spill] sm:$0xff] %v12522_v47  ;;  %16504 = vst [vmem:[#allocation115_spill] sm:$0xff] %v12524_v13  ;;  %5912 = vmatpush1.bf16.msra.mxu0 %v9601_v39  ;;  %v2643_v38 = vadd.f32 %v2642_v6, %v2600_v57  ;;  %v2340_v52 = vadd.f32 %v2339_v16, %v12522_v47  ;;  %v12532_v29 = vpop.f32.mrb[43].mxu1  ;;  %v12534_v50 = vpop.f32.mrb[59].mxu0  ;;  %v9607_v39 = vld [vmem:[%s16078_s12 + $0x128] ss:$16 sps:$4 sm:$0xff]  }
 0x5d2   :  { %v2685_v59 = vadd.f32 %v2684_v14, %v2602_v45  ;;  %v2608_v21 = vmul.f32 %v12522_v47, %v12522_v47  ;;  %16505 = vst [vmem:[#allocation116_spill] sm:$0xff] %v12532_v29  ;;  %5749 = vmatprep.subr.bf16.mxu1 %v9606_v19  ;;  %v2664_v18 = vadd.f32 %v2663_v30, %v2601_v26  ;;  %v9612_v30 = vld [vmem:[%s16078_s12 + $0x144] ss:$16 sps:$4 sm:$0xff]   ;;  %v9610_v19 = vld [vmem:[%s16078_s12 + $0x140] ss:$16 sps:$4 sm:$0xff]  }
 0x5d3   :  { %v2706_v61 = vadd.f32 %v2705_v54, %v2603_v56  ;;  %v2382_v34 = vadd.f32 %v2381_v7, %v12524_v13  ;;  %v2610_v6 = vmul.f32 %v12524_v13, %v12524_v13  ;;  %5913 = vmatprep.subr.bf16.mxu0 %v9609_v2  ;;  %v2361_v16 = vadd.f32 %v2360_v33, %v12532_v29  ;;  %v9615_v54 = vld [vmem:[%s16078_s12 + $0x14c] ss:$16 sps:$4 sm:$0xff]   ;;  %v9613_v2 = vld [vmem:[%s16078_s12 + $0x148] ss:$16 sps:$4 sm:$0xff]   ;;  %v9616_v13 = vld [vmem:[%s16078_s12 + $0x160] ss:$16 sps:$4 sm:$0xff]  }
 0x5d4   :  { %v2644_v14 = vadd.f32 %v2643_v38, %v2608_v21  ;;  %v2609_v57 = vmul.f32 %v12532_v29, %v12532_v29  ;;  %v2403_v45 = vadd.f32 %v2402_v43, %v12534_v50  ;;  %5750 = vmatpush1.bf16.msra.mxu1 %v9604_v32  ;;  %v2611_v21 = vmul.f32 %v12534_v50, %v12534_v50 }
 0x5d5   :  { %v2686_v7 = vadd.f32 %v2685_v59, %v2610_v6  ;;  %5914 = vmatpush1.bf16.msra.mxu0 %v9607_v39  ;;  %5751 = vmatprep.subr.bf16.mxu1 %v9612_v30  ;;  %v16508_v59 = vld [vmem:[#allocation2_spill] sm:$0xff] }
 0x5d6   :  { %v2665_v33 = vadd.f32 %v2664_v18, %v2609_v57  ;;  %5915 = vmatprep.subr.bf16.mxu0 %v9615_v54  ;;  %v2707_v26 = vadd.f32 %v2706_v61, %v2611_v21  ;;  %v12560_v43 = vpop.f32.mrb[44].mxu1  ;;  %v12562_v56 = vpop.f32.mrb[60].mxu0  ;;  %v12565_v32 = vsub.s32 %v2860_v4, %v16508_v59  ;;  %v9618_v4 = vld [vmem:[%s16078_s12 + $0x164] ss:$16 sps:$4 sm:$0xff]  }
 0x5d7   :  { %16506 = vst [vmem:[#allocation117_spill] sm:$0xff] %v12560_v43  ;;  %16507 = vst [vmem:[#allocation118_spill] sm:$0xff] %v12562_v56  ;;  %v2341_v38 = vadd.f32 %v2340_v52, %v12560_v43  ;;  %v2616_v39 = vmul.f32 %v12560_v43, %v12560_v43  ;;  %v2383_v6 = vadd.f32 %v2382_v34, %v12562_v56  ;;  %v12573_v57 = vpop.f32.mrb[45].mxu1  ;;  %v12575_v61 = vpop.f32.mrb[61].mxu0  ;;  %v9621_v52 = vld [vmem:[%s16078_s12 + $0x16c] ss:$16 sps:$4 sm:$0xff]  }
 0x5d8   :  { %16509 = vst [vmem:[#allocation119_spill] sm:$0xff] %v12565_v32  ;;  %v2618_v18 = vmul.f32 %v12562_v56, %v12562_v56  ;;  %16510 = vst [vmem:[#allocation120_spill] sm:$0xff] %v12573_v57  ;;  %5752 = vmatpush1.bf16.msra.mxu1 %v9610_v19  ;;  %v2362_v30 = vadd.f32 %v2361_v16, %v12573_v57  ;;  %v2617_v34 = vmul.f32 %v12573_v57, %v12573_v57  ;;  %v12589_v56 = vpop.f32.mrb[46].mxu1  ;;  %v12591_v19 = vpop.f32.mrb[62].mxu0  ;;  %v9619_v16 = vld [vmem:[%s16078_s12 + $0x168] ss:$16 sps:$4 sm:$0xff]  }
 0x5d9   :  { %v2404_v54 = vadd.f32 %v2403_v45, %v12575_v61  ;;  %v2619_v21 = vmul.f32 %v12575_v61, %v12575_v61  ;;  %16511 = vst [vmem:[#allocation121_spill] sm:$0xff] %v12589_v56  ;;  %16512 = vst [vmem:[#allocation122_spill] sm:$0xff] %v12591_v19  ;;  %5916 = vmatpush1.bf16.msra.mxu0 %v9613_v2  ;;  %v2645_v51 = vadd.f32 %v2644_v14, %v2616_v39  ;;  %v12602_v43 = vpop.f32.mrb[47].mxu1  ;;  %v12604_v47 = vpop.f32.mrb[63].mxu0 }
 0x5da   :  { %v2687_v53 = vadd.f32 %v2686_v7, %v2618_v18  ;;  %v2342_v45 = vadd.f32 %v2341_v38, %v12589_v56  ;;  %v2624_v17 = vmul.f32 %v12589_v56, %v12589_v56  ;;  %16513 = vst [vmem:[#allocation123_spill] sm:$0xff] %v12602_v43  ;;  %5753 = vmatprep.subr.bf16.mxu1 %v9618_v4  ;;  %v9624_v18 = vld [vmem:[%s16078_s12 + $0x184] ss:$16 sps:$4 sm:$0xff]  }
 0x5db   :  { %v2666_v2 = vadd.f32 %v2665_v33, %v2617_v34  ;;  %v2708_v9 = vadd.f32 %v2707_v26, %v2619_v21  ;;  %v2384_v37 = vadd.f32 %v2383_v6, %v12591_v19  ;;  %v2626_v3 = vmul.f32 %v12591_v19, %v12591_v19  ;;  %5917 = vmatprep.subr.bf16.mxu0 %v9621_v52  ;;  %v9627_v33 = vld [vmem:[%s16078_s12 + $0x18c] ss:$16 sps:$4 sm:$0xff]  }
 0x5dc   :  { %v2343_v14 = vrot.slane %v2342_v45, 4  ;;  %v2646_v7 = vadd.f32 %v2645_v51, %v2624_v17  ;;  %v2363_v38 = vadd.f32 %v2362_v30, %v12602_v43  ;;  %v2625_v39 = vmul.f32 %v12602_v43, %v12602_v43  ;;  %5754 = vmatpush1.bf16.msra.mxu1 %v9616_v13  ;;  %v9622_v51 = vld [vmem:[%s16078_s12 + $0x180] ss:$16 sps:$4 sm:$0xff]   ;;  %v9625_v13 = vld [vmem:[%s16078_s12 + $0x188] ss:$16 sps:$4 sm:$0xff]  }
 0x5dd   :  { %v2385_v26 = vrot.slane %v2384_v37, 4  ;;  %v2688_v6 = vadd.f32 %v2687_v53, %v2626_v3  ;;  %v2405_v4 = vadd.f32 %v2404_v54, %v12604_v47  ;;  %v2627_v17 = vmul.f32 %v12604_v47, %v12604_v47  ;;  %5918 = vmatpush1.bf16.msra.mxu0 %v9619_v16  ;;  %5755 = vmatprep.subr.bf16.mxu1 %v9624_v18 }
 0x5de   :  { %v2344_v52 = vadd.f32 %v2343_v14, %v2342_v45  ;;  %v2647_v30 = vrot.slane %v2646_v7, 4  ;;  %v2364_v34 = vrot.slane %v2363_v38, 4  ;;  %v2667_v21 = vadd.f32 %v2666_v2, %v2625_v39  ;;  %5919 = vmatprep.subr.bf16.mxu0 %v9627_v33  ;;  %v12627_v56 = vpop.f32.mrb[48].mxu1  ;;  %v12629_v16 = vpop.f32.mrb[64].mxu0 }
 0x5df   :  { %v2386_v53 = vadd.f32 %v2385_v26, %v2384_v37  ;;  %v2689_v3 = vrot.slane %v2688_v6, 4  ;;  %v2406_v54 = vrot.slane %v2405_v4, 4  ;;  %v2709_v19 = vadd.f32 %v2708_v9, %v2627_v17  ;;  %16514 = vst [vmem:[#allocation124_spill] sm:$0xff] %v12627_v56  ;;  %16515 = vst [vmem:[#allocation125_spill] sm:$0xff] %v12629_v16  ;;  %v12631_v1 = vpop.f32.mrb[49].mxu1  ;;  %v12633_v45 = vpop.f32.mrb[65].mxu0 }
 0x5e0   :  { %v2345_v5 = vrot.slane %v2344_v52, 2  ;;  %v2648_v60 = vadd.f32 %v2647_v30, %v2646_v7  ;;  %v2365_v24 = vadd.f32 %v2364_v34, %v2363_v38  ;;  %v2668_v62 = vrot.slane %v2667_v21, 4  ;;  %16516 = vst [vmem:[#allocation126_spill] sm:$0xff] %v12631_v1  ;;  %16517 = vst [vmem:[#allocation127_spill] sm:$0xff] %v12633_v45  ;;  %5756 = vmatpush1.bf16.msra.mxu1 %v9622_v51  ;;  %v9630_v37 = vld [vmem:[%s16078_s12 + $0x1a4] ss:$16 sps:$4 sm:$0xff]  }
 0x5e1   :  { %v2387_v2 = vrot.slane %v2386_v53, 2  ;;  %v2690_v14 = vadd.f32 %v2689_v3, %v2688_v6  ;;  %v2407_v9 = vadd.f32 %v2406_v54, %v2405_v4  ;;  %v2710_v39 = vrot.slane %v2709_v19, 4  ;;  %v12638_v18 = vpop.f32.mrb[50].mxu1  ;;  %v12640_v33 = vpop.f32.mrb[66].mxu0  ;;  %5920 = vmatpush1.bf16.msra.mxu0 %v9625_v13  ;;  %v9628_v7 = vld [vmem:[%s16078_s12 + $0x1a0] ss:$16 sps:$4 sm:$0xff]   ;;  %5757 = vmatprep.subr.bf16.mxu1 %v9630_v37 }
 0x5e2   :  { %16518 = vst [vmem:[#allocation128_spill] sm:$0xff] %v12638_v18  ;;  %16519 = vst [vmem:[#allocation129_spill] sm:$0xff] %v12640_v33  ;;  %v2346_v38 = vadd.f32 %v2345_v5, %v2344_v52  ;;  %v2649_v26 = vrot.slane %v2648_v60, 2  ;;  %v2366_v17 = vrot.slane %v2365_v24, 2  ;;  %v2669_v51 = vadd.f32 %v2668_v62, %v2667_v21  ;;  %v12645_v30 = vpop.f32.mrb[51].mxu1  ;;  %v12647_v34 = vpop.f32.mrb[67].mxu0 }
 0x5e3   :  { %16520 = vst [vmem:[#allocation130_spill] sm:$0xff] %v12645_v30  ;;  %16521 = vst [vmem:[#allocation131_spill] sm:$0xff] %v12647_v34  ;;  %v9631_v6 = vld [vmem:[%s16078_s12 + $0x1a8] ss:$16 sps:$4 sm:$0xff]   ;;  %v2388_v4 = vadd.f32 %v2387_v2, %v2386_v53  ;;  %v2691_v3 = vrot.slane %v2690_v14, 2  ;;  %v2408_v13 = vrot.slane %v2407_v9, 2  ;;  %v2711_v54 = vadd.f32 %v2710_v39, %v2709_v19 }
 0x5e4   :  { %v9633_v5 = vld [vmem:[%s16078_s12 + $0x1ac] ss:$16 sps:$4 sm:$0xff]   ;;  %v2347_v52 = vrot.slane %v2346_v38, 1  ;;  %v2650_v36 = vadd.f32 %v2649_v26, %v2648_v60  ;;  %v2367_v62 = vadd.f32 %v2366_v17, %v2365_v24  ;;  %v2670_v21 = vrot.slane %v2669_v51, 2  ;;  %5758 = vmatpush1.bf16.msra.mxu1 %v9628_v7  ;;  %v9636_v37 = vld [vmem:[%s16078_s12 + $0x1c4] ss:$16 sps:$4 sm:$0xff]  }
 0x5e5   :  { %v9639_v53 = vld [vmem:[%s16078_s12 + $0x1cc] ss:$16 sps:$4 sm:$0xff]   ;;  %v2389_v2 = vrot.slane %v2388_v4, 1  ;;  %v2692_v42 = vadd.f32 %v2691_v3, %v2690_v14  ;;  %v2409_v19 = vadd.f32 %v2408_v13, %v2407_v9  ;;  %v2712_v39 = vrot.slane %v2711_v54, 2  ;;  %5921 = vmatprep.subr.bf16.mxu0 %v9633_v5  ;;  %v9634_v60 = vld [vmem:[%s16078_s12 + $0x1c0] ss:$16 sps:$4 sm:$0xff]   ;;  %5759 = vmatprep.subr.bf16.mxu1 %v9636_v37 }
 0x5e6   :  { %v9637_v24 = vld [vmem:[%s16078_s12 + $0x1c8] ss:$16 sps:$4 sm:$0xff]   ;;  %v2348_v7 = vadd.f32 %v2347_v52, %v2346_v38  ;;  %v2651_v26 = vrot.slane %v2650_v36, 1  ;;  %v2368_v17 = vrot.slane %v2367_v62, 1  ;;  %v2671_v8 = vadd.f32 %v2670_v21, %v2669_v51  ;;  %5922 = vmatpush1.bf16.msra.mxu0 %v9631_v6  ;;  %v12667_v3 = vpop.f32.mrb[52].mxu1  ;;  %v12669_v13 = vpop.f32.mrb[68].mxu0 }
 0x5e7   :  { %v2390_v41 = vadd.f32 %v2389_v2, %v2388_v4  ;;  %v2693_v40 = vrot.slane %v2692_v42, 1  ;;  %v2410_v14 = vrot.slane %v2409_v19, 1  ;;  %v2713_v9 = vadd.f32 %v2712_v39, %v2711_v54  ;;  %16522 = vst [vmem:[#allocation132_spill] sm:$0xff] %v12667_v3  ;;  %16523 = vst [vmem:[#allocation133_spill] sm:$0xff] %v12669_v13  ;;  %5923 = vmatprep.subr.bf16.mxu0 %v9639_v53  ;;  %v12673_v38 = vpop.f32.mrb[53].mxu1  ;;  %v12675_v52 = vpop.f32.mrb[69].mxu0 }
 0x5e8   :  { %v12671_v5 = vmul.f32 0.0078125, %v2348_v7  ;;  %v2652_v43 = vadd.f32 %v2651_v26, %v2650_v36  ;;  %v2369_v57 = vadd.f32 %v2368_v17, %v2367_v62  ;;  %v2672_v29 = vrot.slane %v2671_v8, 1  ;;  %16524 = vst [vmem:[#allocation134_spill] sm:$0xff] %v12673_v38  ;;  %16525 = vst [vmem:[#allocation135_spill] sm:$0xff] %v12675_v52  ;;  %5760 = vmatpush1.bf16.msra.mxu1 %v9634_v60  ;;  %v9642_v51 = vld [vmem:[%s16078_s12 + $0x1e4] ss:$16 sps:$4 sm:$0xff]  }
 0x5e9   :  { %v12680_v6 = vmul.f32 0.0078125, %v2390_v41  ;;  %v2694_v4 = vadd.f32 %v2693_v40, %v2692_v42  ;;  %v2411_v54 = vadd.f32 %v2410_v14, %v2409_v19  ;;  %v2714_v21 = vrot.slane %v2713_v9, 1  ;;  %v12682_v37 = vpop.f32.mrb[54].mxu1  ;;  %v12684_v53 = vpop.f32.mrb[70].mxu0  ;;  %v9640_v36 = vld [vmem:[%s16078_s12 + $0x1e0] ss:$16 sps:$4 sm:$0xff]   ;;  %5761 = vmatprep.subr.bf16.mxu1 %v9642_v51 }
 0x5ea   :  { %16526 = vst [vmem:[#allocation136_spill] sm:$0xff] %v12682_v37  ;;  %16527 = vst [vmem:[#allocation137_spill] sm:$0xff] %v12684_v53  ;;  %v2800_v62 = vmul.f32 0.0078125, %v2652_v43  ;;  %v2808_v2 = vmul.f32 %v12671_v5, %v12671_v5  ;;  %v12691_v39 = vmul.f32 0.0078125, %v2369_v57  ;;  %v2673_v60 = vadd.f32 %v2672_v29, %v2671_v8  ;;  %v12693_v41 = vpop.f32.mrb[55].mxu1  ;;  %v12695_v40 = vpop.f32.mrb[71].mxu0  ;;  %5924 = vmatpush1.bf16.msra.mxu0 %v9637_v24 }
 0x5eb   :  { %16528 = vst [vmem:[#allocation138_spill] sm:$0xff] %v12693_v41  ;;  %16529 = vst [vmem:[#allocation139_spill] sm:$0xff] %v12695_v40  ;;  %v9643_v42 = vld [vmem:[%s16078_s12 + $0x1e8] ss:$16 sps:$4 sm:$0xff]   ;;  %v2802_v19 = vmul.f32 0.0078125, %v2694_v4  ;;  %v2810_v43 = vmul.f32 %v12680_v6, %v12680_v6  ;;  %v12702_v7 = vmul.f32 0.0078125, %v2411_v54  ;;  %v2715_v26 = vadd.f32 %v2714_v21, %v2713_v9 }
 0x5ec   :  { %v9645_v8 = vld [vmem:[%s16078_s12 + $0x1ec] ss:$16 sps:$4 sm:$0xff]   ;;  %v2816_v29 = vsub.f32 %v2800_v62, %v2808_v2  ;;  %v2801_v57 = vmul.f32 0.0078125, %v2673_v60  ;;  %v2809_v24 = vmul.f32 %v12691_v39, %v12691_v39  ;;  %v2508_v17 = vmul.f32 %v12627_v56, %v12627_v56  ;;  %5762 = vmatpush1.bf16.msra.mxu1 %v9640_v36 }
 0x5ed   :  { %v2818_v14 = vsub.f32 %v2802_v19, %v2810_v43  ;;  %v2803_v51 = vmul.f32 0.0078125, %v2715_v26  ;;  %v2811_v4 = vmul.f32 %v12702_v7, %v12702_v7  ;;  %v2510_v9 = vmul.f32 %v12629_v16, %v12629_v16  ;;  %5925 = vmatprep.subr.bf16.mxu0 %v9645_v8 }
 0x5ee   :  { %v2824_v54 = vmax.f32 %v2816_v29, 0.0  ;;  %v2817_v21 = vsub.f32 %v2801_v57, %v2809_v24  ;;  %v2509_v62 = vmul.f32 %v12631_v1, %v12631_v1  ;;  %v2511_v2 = vmul.f32 %v12633_v45, %v12633_v45  ;;  %5926 = vmatpush1.bf16.msra.mxu0 %v9643_v42  ;;  %v12723_v26 = vpop.f32.mrb[56].mxu1  ;;  %v12725_v8 = vpop.f32.mrb[72].mxu0 }
 0x5ef   :  { %v2826_v60 = vmax.f32 %v2818_v14, 0.0  ;;  %v2819_v36 = vsub.f32 %v2803_v51, %v2811_v4  ;;  %v2412_v19 = vadd.f32 %v12638_v18, %v12627_v56  ;;  %v2516_v43 = vmul.f32 %v12638_v18, %v12638_v18  ;;  %16530 = vst [vmem:[#allocation140_spill] sm:$0xff] %v12723_v26  ;;  %16531 = vst [vmem:[#allocation141_spill] sm:$0xff] %v12725_v8  ;;  %v12731_v14 = vpop.f32.mrb[57].mxu1  ;;  %v12733_v51 = vpop.f32.mrb[73].mxu0 }
 0x5f0   :  { %v2832_v29 = vadd.f32 1e-05, %v2824_v54  ;;  %v2825_v57 = vmax.f32 %v2817_v21, 0.0  ;;  %v2454_v24 = vadd.f32 %v12640_v33, %v12629_v16  ;;  %v2518_v42 = vmul.f32 %v12640_v33, %v12640_v33  ;;  %16532 = vst [vmem:[#allocation142_spill] sm:$0xff] %v12731_v14  ;;  %16533 = vst [vmem:[#allocation143_spill] sm:$0xff] %v12733_v51  ;;  %v12737_v55 = vpop.f32.mrb[58].mxu1 }
 0x5f1   :  { %v2834_v4 = vadd.f32 1e-05, %v2826_v60  ;;  %v2827_v56 = vmax.f32 %v2819_v36, 0.0  ;;  %v2716_v31 = vadd.f32 %v2516_v43, %v2508_v17  ;;  %v2433_v18 = vadd.f32 %v12645_v30, %v12631_v1  ;;  %16534 = vst [vmem:[#allocation144_spill] sm:$0xff] %v12737_v55  ;;  %v12739_v54 = vpop.f32.mrb[74].mxu0  ;;  %v12743_v46 = vpop.f32.mrb[59].mxu1 }
 0x5f2   :  { %16535 = vst [vmem:[#allocation145_spill] sm:$0xff] %v12739_v54  ;;  %10066 = vrsqrt.f32 %v2832_v29  ;;  %v2833_v21 = vadd.f32 1e-05, %v2825_v57  ;;  %v2758_v16 = vadd.f32 %v2518_v42, %v2510_v9  ;;  %v2517_v33 = vmul.f32 %v12645_v30, %v12645_v30  ;;  %16536 = vst [vmem:[#allocation146_spill] sm:$0xff] %v12743_v46  ;;  %v12745_v48 = vpop.f32.mrb[75].mxu0 }
 0x5f3   :  { %16537 = vst [vmem:[#allocation147_spill] sm:$0xff] %v12745_v48  ;;  %10068 = vrsqrt.f32 %v2834_v4  ;;  %v2835_v60 = vadd.f32 1e-05, %v2827_v56  ;;  %v2475_v17 = vadd.f32 %v12647_v34, %v12633_v45  ;;  %v2519_v36 = vmul.f32 %v12647_v34, %v12647_v34 }
 0x5f4   :  { %10070 = vrsqrt.f32 %v2833_v21  ;;  %v2737_v43 = vadd.f32 %v2517_v33, %v2509_v62  ;;  %v2413_v29 = vadd.f32 %v2412_v19, %v12667_v3  ;;  %v2524_v9 = vmul.f32 %v12667_v3, %v12667_v3  ;;  %v9648_v62 = vld [vmem:[%s16078_s12 + $0x204] ss:$16 sps:$4 sm:$0xff]  }
 0x5f5   :  { %10072 = vrsqrt.f32 %v2835_v60  ;;  %v2779_v57 = vadd.f32 %v2519_v36, %v2511_v2  ;;  %v2455_v42 = vadd.f32 %v2454_v24, %v12669_v13  ;;  %v2526_v56 = vmul.f32 %v12669_v13, %v12669_v13  ;;  %v9651_v2 = vld [vmem:[%s16078_s12 + $0x20c] ss:$16 sps:$4 sm:$0xff]   ;;  %5772 = vmatprep.subr.bf16.mxu1 %v9648_v62 }
 0x5f6   :  { %v2717_v4 = vadd.f32 %v2716_v31, %v2524_v9  ;;  %v2434_v45 = vadd.f32 %v2433_v18, %v12673_v38  ;;  %v2525_v34 = vmul.f32 %v12673_v38, %v12673_v38  ;;  %v2476_v33 = vadd.f32 %v2475_v17, %v12675_v52  ;;  %v12772_v21 = vpop.f32.mrb[60].mxu1  ;;  %v12774_v60 = vpop.f32.mrb[76].mxu0  ;;  %5936 = vmatprep.subr.bf16.mxu0 %v9651_v2 }
 0x5f7   :  { %v2759_v19 = vadd.f32 %v2758_v16, %v2526_v56  ;;  %v2527_v24 = vmul.f32 %v12675_v52, %v12675_v52  ;;  %v2414_v31 = vadd.f32 %v2413_v29, %v12682_v37  ;;  %v2532_v18 = vmul.f32 %v12682_v37, %v12682_v37  ;;  %16538 = vst [vmem:[#allocation148_spill] sm:$0xff] %v12772_v21  ;;  %v12780_v56 = vpop.f32.mrb[61].mxu1  ;;  %v12782_v13 = vpop.f32.mrb[77].mxu0 }
 0x5f8   :  { %16539 = vst [vmem:[#allocation149_spill] sm:$0xff] %v12774_v60  ;;  %v2738_v17 = vadd.f32 %v2737_v43, %v2525_v34  ;;  %v2456_v36 = vadd.f32 %v2455_v42, %v12684_v53  ;;  %v2534_v9 = vmul.f32 %v12684_v53, %v12684_v53  ;;  %v2435_v16 = vadd.f32 %v2434_v45, %v12693_v41  ;;  %v12787_v34 = vpop.f32.mrb[62].mxu1  ;;  %v12789_v43 = vpop.f32.mrb[78].mxu0 }
 0x5f9   :  { %16540 = vst [vmem:[#allocation150_spill] sm:$0xff] %v12780_v56  ;;  %16541 = vst [vmem:[#allocation151_spill] sm:$0xff] %v12782_v13  ;;  %v2780_v29 = vadd.f32 %v2779_v57, %v2527_v24  ;;  %v2718_v52 = vadd.f32 %v2717_v4, %v2532_v18  ;;  %v2533_v37 = vmul.f32 %v12693_v41, %v12693_v41  ;;  %v12796_v4 = vpop.f32.mrb[63].mxu1  ;;  %v12798_v62 = vpop.f32.mrb[79].mxu0 }
 0x5fa   :  { %v2477_v3 = vadd.f32 %v2476_v33, %v12695_v40  ;;  %16542 = vst [vmem:[#allocation152_spill] sm:$0xff] %v12787_v34  ;;  %16543 = vst [vmem:[#allocation153_spill] sm:$0xff] %v12789_v43  ;;  %v2760_v42 = vadd.f32 %v2759_v19, %v2534_v9  ;;  %v2535_v45 = vmul.f32 %v12695_v40, %v12695_v40 }
 0x5fb   :  { %v2415_v53 = vadd.f32 %v2414_v31, %v12723_v26  ;;  %v2540_v57 = vmul.f32 %v12723_v26, %v12723_v26  ;;  %16544 = vst [vmem:[#allocation154_spill] sm:$0xff] %v12796_v4  ;;  %16545 = vst [vmem:[#allocation155_spill] sm:$0xff] %v12798_v62  ;;  %v2739_v24 = vadd.f32 %v2738_v17, %v2533_v37 }
 0x5fc   :  { %v2457_v33 = vadd.f32 %v2456_v36, %v12725_v8  ;;  %v2542_v18 = vmul.f32 %v12725_v8, %v12725_v8  ;;  %v2436_v2 = vadd.f32 %v2435_v16, %v12731_v14  ;;  %v10067_v19 = vpop.eup %10066  ;;  %v2781_v9 = vadd.f32 %v2780_v29, %v2535_v45 }
 0x5fd   :  { %v2719_v40 = vadd.f32 %v2718_v52, %v2540_v57  ;;  %v2541_v31 = vmul.f32 %v12731_v14, %v12731_v14  ;;  %v2478_v26 = vadd.f32 %v2477_v3, %v12733_v51  ;;  %v10069_v41 = vpop.eup %10068  ;;  %v2543_v37 = vmul.f32 %v12733_v51, %v12733_v51 }
 0x5fe   :  { %v2761_v38 = vadd.f32 %v2760_v42, %v2542_v18  ;;  %v2416_v17 = vadd.f32 %v2415_v53, %v12737_v55  ;;  %v2548_v36 = vmul.f32 %v12737_v55, %v12737_v55  ;;  %v10071_v8 = vpop.eup %10070  ;;  %v2458_v29 = vadd.f32 %v2457_v33, %v12739_v54  ;;  %v12818_v53 = vpop.f32.mrb[64].mxu1 }
 0x5ff   :  { %v2740_v16 = vadd.f32 %v2739_v24, %v2541_v31  ;;  %v2550_v52 = vmul.f32 %v12739_v54, %v12739_v54  ;;  %v2437_v45 = vadd.f32 %v2436_v2, %v12743_v46  ;;  %v10073_v3 = vpop.eup %10072  ;;  %v2856_v57 = vcombine.low %v10067_v19, %v10071_v8  ;;  %16546 = vst [vmem:[#allocation156_spill] sm:$0xff] %v12818_v53  ;;  %v12820_v14 = vpop.f32.mrb[80].mxu0 }
 0x600   :  { %v2782_v42 = vadd.f32 %v2781_v9, %v2543_v37  ;;  %v2720_v18 = vadd.f32 %v2719_v40, %v2548_v36  ;;  %v2549_v51 = vmul.f32 %v12743_v46, %v12743_v46  ;;  %16547 = vst [vmem:[#allocation157_spill] sm:$0xff] %v12820_v14  ;;  %v2857_v55 = vcombine.low %v10069_v41, %v10073_v3  ;;  %v12825_v54 = vpop.f32.mrb[65].mxu1  ;;  %v12827_v2 = vpop.f32.mrb[81].mxu0  ;;  %v12832_v40 = vld [vmem:[%s16079_s10] sm:$0xff] }
 0x601   :  { %v2762_v24 = vadd.f32 %v2761_v38, %v2550_v52  ;;  %v2479_v33 = vadd.f32 %v2478_v26, %v12745_v48  ;;  %v2551_v31 = vmul.f32 %v12745_v48, %v12745_v48  ;;  %16548 = vst [vmem:[#allocation158_spill] sm:$0xff] %v12825_v54  ;;  %16549 = vst [vmem:[#allocation159_spill] sm:$0xff] %v12827_v2  ;;  %v12838_v26 = vpop.f32.mrb[66].mxu1  ;;  %v12840_v9 = vpop.f32.mrb[82].mxu0 }
 0x602   :  { %v2864_v8 = vrot.slane %v2856_v57, %v12565_v32  ;;  %v2741_v19 = vadd.f32 %v2740_v16, %v2549_v51  ;;  %v2417_v41 = vadd.f32 %v2416_v17, %v12772_v21  ;;  %v2556_v38 = vmul.f32 %v12772_v21, %v12772_v21  ;;  %16550 = vst [vmem:[#allocation160_spill] sm:$0xff] %v12838_v26  ;;  %v12846_v48 = vpop.f32.mrb[67].mxu1  ;;  %v12848_v51 = vpop.f32.mrb[83].mxu0 }
 0x603   :  { %16551 = vst [vmem:[#allocation161_spill] sm:$0xff] %v12840_v9  ;;  %v2871_v37 = vrot.slane %v2857_v55, %v12565_v32  ;;  %v2783_v36 = vadd.f32 %v2782_v42, %v2551_v31  ;;  %v2459_v52 = vadd.f32 %v2458_v29, %v12774_v60  ;;  %v2558_v3 = vmul.f32 %v12774_v60, %v12774_v60 }
 0x604   :  { %16552 = vst [vmem:[#allocation162_spill] sm:$0xff] %v12846_v48  ;;  %16553 = vst [vmem:[#allocation163_spill] sm:$0xff] %v12848_v51  ;;  %v2721_v17 = vadd.f32 %v2720_v18, %v2556_v38  ;;  %v2438_v16 = vadd.f32 %v2437_v45, %v12780_v56  ;;  %v2557_v57 = vmul.f32 %v12780_v56, %v12780_v56 }
 0x605   :  { %v2480_v21 = vadd.f32 %v2479_v33, %v12782_v13  ;;  %v2872_v46 = vcombine.low %v2864_v8, %v2871_v37  ;;  %v2763_v55 = vadd.f32 %v2762_v24, %v2558_v3  ;;  %v2559_v29 = vmul.f32 %v12782_v13, %v12782_v13 }
 0x606   :  { %v2418_v42 = vadd.f32 %v2417_v41, %v12787_v34  ;;  %v2742_v31 = vadd.f32 %v2741_v19, %v2557_v57  ;;  %v2564_v60 = vmul.f32 %v12787_v34, %v12787_v34  ;;  %v2460_v18 = vadd.f32 %v2459_v52, %v12789_v43  ;;  %v12869_v3 = vpop.f32.mrb[68].mxu1  ;;  %v12871_v52 = vpop.f32.mrb[84].mxu0 }
 0x607   :  { %v2566_v45 = vmul.f32 %v12789_v43, %v12789_v43  ;;  %v2892_v38 = vmul.f32 %v2872_v46, %v12832_v40  ;;  %v2784_v56 = vadd.f32 %v2783_v36, %v2559_v29  ;;  %v2439_v33 = vadd.f32 %v2438_v16, %v12796_v4  ;;  %16554 = vst [vmem:[#allocation164_spill] sm:$0xff] %v12869_v3  ;;  %v16556_v46 = vld [vmem:[#allocation7_spill] sm:$0xff]  ;;  %v16557_v16 = vld [vmem:[#allocation4_spill] sm:$0xff] }
 0x608   :  { %v2565_v24 = vmul.f32 %v12796_v4, %v12796_v4  ;;  %v2722_v8 = vadd.f32 %v2721_v17, %v2564_v60  ;;  %v2481_v19 = vadd.f32 %v2480_v21, %v12798_v62  ;;  %v2567_v41 = vmul.f32 %v12798_v62, %v12798_v62  ;;  %16555 = vst [vmem:[#allocation165_spill] sm:$0xff] %v12871_v52  ;;  %v16559_v60 = vld [vmem:[#allocation8_spill] sm:$0xff]  ;;  %v12885_v21 = vpop.f32.mrb[85].mxu0 }
 0x609   :  { %v2764_v37 = vadd.f32 %v2763_v55, %v2566_v45  ;;  %v12874_v57 = vrot.slane %v2892_v38, %v16444_v23  ;;  %v12877_v36 = vrot.slane %v2892_v38, %v16556_v46  ;;  %v12880_v29 = vrot.slane %v2892_v38, %v16557_v16  ;;  %v12883_v55 = vpop.f32.mrb[69].mxu1  ;;  %16561 = vst [vmem:[#allocation168_spill] sm:$0xff] %v12885_v21  ;;  %v12892_v4 = vpop.f32.mrb[86].mxu0 }
 0x60a   :  { %v2911_v17 = vrot.slane %v2892_v38, %v16559_v60  ;;  %16560 = vst [vmem:[#allocation167_spill] sm:$0xff] %v12883_v55  ;;  %v2743_v45 = vadd.f32 %v2742_v31, %v2565_v24  ;;  %v2785_v43 = vadd.f32 %v2784_v56, %v2567_v41  ;;  %v2419_v62 = vadd.f32 %v2418_v42, %v12818_v53  ;;  %v12890_v34 = vpop.f32.mrb[70].mxu1  ;;  %v12903_v42 = vpop.f32.mrb[87].mxu0 }
 0x60b   :  { %16558 = vst [vmem:[#allocation166_spill] sm:$0xff] %v12880_v29  ;;  %v2572_v13 = vmul.f32 %v12818_v53, %v12818_v53  ;;  %16562 = vst [vmem:[#allocation169_spill] sm:$0xff] %v12892_v4  ;;  %v2936_v30 = vmul.f32 %v12874_v57, %v12671_v5  ;;  %v2937_v38 = vmul.f32 %v12877_v36, %v12691_v39  ;;  %v12901_v31 = vpop.f32.mrb[71].mxu1  ;;  %v12909_v41 = vsub.s32 7, %v16508_v59 }
 0x60c   :  { %v2938_v1 = vmul.f32 %v12880_v29, %v12680_v6  ;;  %v2939_v56 = vmul.f32 %v2911_v17, %v12702_v7  ;;  %v12906_v24 = vrot.slane %v2911_v17, %v16444_v23  ;;  %v2461_v39 = vadd.f32 %v2460_v18, %v12820_v14 }
 0x60d   :  { %16564 = vst [vmem:[#allocation171_spill] sm:$0xff] %v12909_v41  ;;  %v2952_v53 = vcombine.low %v2936_v30, %v2937_v38  ;;  %v2723_v60 = vadd.f32 %v2722_v8, %v2572_v13  ;;  %v2574_v13 = vmul.f32 %v12820_v14, %v12820_v14  ;;  %v2575_v38 = vmul.f32 %v12827_v2, %v12827_v2 }
 0x60e   :  { %16563 = vst [vmem:[#allocation170_spill] sm:$0xff] %v12906_v24  ;;  %v2953_v5 = vcombine.low %v2938_v1, %v2939_v56  ;;  %v12914_v6 = vmul.f32 %v12906_v24, %v12392_v0  ;;  %v12918_v7 = vmul.f32 %v12906_v24, %v12412_v27  ;;  %v12922_v17 = vmul.f32 %v12906_v24, %v12455_v10  ;;  %v12949_v18 = vpop.f32.mrb[72].mxu1 }
 0x60f   :  { %v12926_v29 = vmul.f32 %v12906_v24, %v12472_v63  ;;  %v2960_v1 = vrot.slane %v2952_v53, %v12565_v32  ;;  %v12932_v0 = vmul.f32 %v12906_v24, %v12508_v20  ;;  %v12936_v27 = vmul.f32 %v12906_v24, %v12534_v50  ;;  %v12951_v20 = vpop.f32.mrb[88].mxu0 }
 0x610   :  { %v2967_v30 = vrot.slane %v2953_v5, %v12565_v32  ;;  %v12940_v10 = vmul.f32 %v12906_v24, %v12575_v61  ;;  %v12944_v63 = vmul.f32 %v12906_v24, %v12604_v47  ;;  %v2440_v53 = vadd.f32 %v2439_v33, %v12825_v54  ;;  %16565 = vst [vmem:[#allocation172_spill] sm:$0xff] %v12951_v20  ;;  %v12958_v47 = vpop.f32.mrb[73].mxu1  ;;  %v12960_v56 = vpop.f32.mrb[89].mxu0 }
 0x611   :  { %v2573_v50 = vmul.f32 %v12825_v54, %v12825_v54  ;;  %v2482_v61 = vadd.f32 %v2481_v19, %v12827_v2  ;;  %v2765_v5 = vadd.f32 %v2764_v37, %v2574_v13  ;;  %v2420_v33 = vadd.f32 %v2419_v62, %v12838_v26  ;;  %v12968_v54 = vpop.f32.mrb[90].mxu0 }
 0x612   :  { %v2968_v8 = vcombine.low %v2960_v1, %v2967_v30  ;;  %v2580_v14 = vmul.f32 %v12838_v26, %v12838_v26  ;;  %v2462_v1 = vadd.f32 %v2461_v39, %v12840_v9  ;;  %v12966_v30 = vpop.f32.mrb[74].mxu1  ;;  %16566 = vst [vmem:[#allocation173_spill] sm:$0xff] %v12968_v54  ;;  %v2786_v16 = vadd.f32 %v2785_v43, %v2575_v38  ;;  %v12974_v37 = vpop.f32.mrb[91].mxu0 }
 0x613   :  { %v2744_v24 = vadd.f32 %v2743_v45, %v2573_v50  ;;  %v2582_v2 = vmul.f32 %v12840_v9, %v12840_v9  ;;  %v12972_v46 = vpop.f32.mrb[75].mxu1  ;;  %v2441_v13 = vadd.f32 %v2440_v53, %v12846_v48  ;;  %v2581_v39 = vmul.f32 %v12846_v48, %v12846_v48 }
 0x614   :  { %v2986_v19 = vrot.slane %v2968_v8, 7  ;;  %v2724_v62 = vadd.f32 %v2723_v60, %v2580_v14  ;;  %v2483_v26 = vadd.f32 %v2482_v61, %v12848_v51  ;;  %v2583_v43 = vmul.f32 %v12848_v51, %v12848_v51 }
 0x615   :  { %v2766_v45 = vadd.f32 %v2765_v5, %v2582_v2  ;;  %v2421_v8 = vadd.f32 %v2420_v33, %v12869_v3  ;;  %v2745_v50 = vadd.f32 %v2744_v24, %v2581_v39  ;;  %v2588_v14 = vmul.f32 %v12869_v3, %v12869_v3 }
 0x616   :  { %v12981_v32 = vsub.f32 %v12832_v40, %v2986_v19  ;;  %v2463_v60 = vadd.f32 %v2462_v1, %v12871_v52  ;;  %v2590_v53 = vmul.f32 %v12871_v52, %v12871_v52  ;;  %v2787_v40 = vadd.f32 %v2786_v16, %v2583_v43  ;;  %v12994_v19 = vpop.f32.mrb[76].mxu1  ;;  %v12996_v33 = vpop.f32.mrb[92].mxu0 }
 0x617   :  { %v2725_v38 = vadd.f32 %v2724_v62, %v2588_v14  ;;  %v2442_v5 = vadd.f32 %v2441_v13, %v12883_v55  ;;  %16567 = vst [vmem:[#allocation174_spill] sm:$0xff] %v12996_v33  ;;  %v13000_v24 = vrot.slane %v12874_v57, %v16444_v23  ;;  %v13004_v1 = vrot.slane %v12877_v36, %v16444_v23  ;;  %v13012_v62 = vpop.f32.mrb[77].mxu1  ;;  %v13014_v13 = vpop.f32.mrb[93].mxu0 }
 0x618   :  { %v3169_v61 = vrot.slane %v12981_v32, %v12909_v41  ;;  %v2767_v2 = vadd.f32 %v2766_v45, %v2590_v53  ;;  %v13007_v39 = vsub.s32 3, %v16508_v59  ;;  %v2589_v45 = vmul.f32 %v12883_v55, %v12883_v55  ;;  %v13022_v14 = vpop.f32.mrb[78].mxu1  ;;  %v13024_v53 = vpop.f32.mrb[94].mxu0 }
 0x619   :  { %16568 = vst [vmem:[#allocation175_spill] sm:$0xff] %v13000_v24  ;;  %v2484_v57 = vadd.f32 %v2483_v26, %v12885_v21  ;;  %v2591_v43 = vmul.f32 %v12885_v21, %v12885_v21  ;;  %v2422_v36 = vadd.f32 %v2421_v8, %v12890_v34  ;;  %16570 = vst [vmem:[#allocation177_spill] sm:$0xff] %v13022_v14  ;;  %v13034_v9 = vpop.f32.mrb[79].mxu1  ;;  %v13036_v3 = vpop.f32.mrb[95].mxu0 }
 0x61a   :  { %16569 = vst [vmem:[#allocation176_spill] sm:$0xff] %v13007_v39  ;;  %v13010_v16 = vrot.slane %v3169_v61, %v16447_v44  ;;  %16571 = vst [vmem:[#allocation178_spill] sm:$0xff] %v13024_v53  ;;  %v2746_v22 = vadd.f32 %v2745_v50, %v2589_v45  ;;  %v2464_v28 = vadd.f32 %v2463_v60, %v12892_v4 }
 0x61b   :  { %v2423_v45 = vadd.f32 %v2422_v36, %v12949_v18  ;;  %v2604_v60 = vmul.f32 %v12949_v18, %v12949_v18 }
 0x61c   :  { %v3293_v61 = vadd.f32 %v13010_v16, %v12914_v6  ;;  %v3301_v59 = vadd.f32 %v13010_v16, %v12918_v7  ;;  %v3309_v52 = vadd.f32 %v13010_v16, %v12922_v17  ;;  %v3317_v26 = vadd.f32 %v13010_v16, %v12926_v29 }
 0x61d   :  { %v3325_v8 = vadd.f32 %v13010_v16, %v12932_v0  ;;  %v3333_v55 = vadd.f32 %v13010_v16, %v12936_v27  ;;  %v3341_v6 = vadd.f32 %v13010_v16, %v12940_v10  ;;  %v3349_v7 = vadd.f32 %v13010_v16, %v12944_v63 }
 0x61e   :  { %v3421_v17 = vmax.f32 %v3293_v61, 0.0  ;;  %v3429_v48 = vmax.f32 %v3301_v59, 0.0  ;;  %v3437_v41 = vmax.f32 %v3309_v52, 0.0  ;;  %v3445_v29 = vmax.f32 %v3317_v26, 0.0 }
 0x61f   :  { %v3453_v21 = vmax.f32 %v3325_v8, 0.0  ;;  %v3461_v51 = vmax.f32 %v3333_v55, 0.0  ;;  %v3469_v23 = vmax.f32 %v3341_v6, 0.0  ;;  %v3477_v24 = vmax.f32 %v3349_v7, 0.0 }
 0x620   :  { %v3625_v35 = vmax.f32 %v3421_v17, %v3429_v48  ;;  %v2788_v0 = vadd.f32 %v2787_v40, %v2591_v43  ;;  %v2596_v27 = vmul.f32 %v12890_v34, %v12890_v34  ;;  %v2598_v10 = vmul.f32 %v12892_v4, %v12892_v4  ;;  %v16599_v4 = vld [vmem:[#allocation117_spill] sm:$0xff] }
 0x621   :  { %v2443_v63 = vadd.f32 %v2442_v5, %v12901_v31  ;;  %v2597_v59 = vmul.f32 %v12901_v31, %v12901_v31  ;;  %v2485_v61 = vadd.f32 %v2484_v57, %v12903_v42  ;;  %v2599_v48 = vmul.f32 %v12903_v42, %v12903_v42 }
 0x622   :  { %v3626_v52 = vmax.f32 %v3625_v35, %v3437_v41  ;;  %v2726_v55 = vadd.f32 %v2725_v38, %v2596_v27  ;;  %v2768_v50 = vadd.f32 %v2767_v2, %v2598_v10  ;;  %v2465_v5 = vadd.f32 %v2464_v28, %v12951_v20 }
 0x623   :  { %v2747_v40 = vadd.f32 %v2746_v22, %v2597_v59  ;;  %v2789_v26 = vadd.f32 %v2788_v0, %v2599_v48  ;;  %v2606_v35 = vmul.f32 %v12951_v20, %v12951_v20  ;;  %v2444_v38 = vadd.f32 %v2443_v63, %v12958_v47  ;;  %v16598_v20 = vld [vmem:[#allocation114_spill] sm:$0xff] }
 0x624   :  { %v3627_v43 = vmax.f32 %v3626_v52, %v3445_v29  ;;  %v2727_v41 = vadd.f32 %v2726_v55, %v2604_v60  ;;  %v2605_v57 = vmul.f32 %v12958_v47, %v12958_v47  ;;  %v2486_v22 = vadd.f32 %v2485_v61, %v12960_v56 }
 0x625   :  { %v2769_v36 = vadd.f32 %v2768_v50, %v2606_v35  ;;  %v2607_v8 = vmul.f32 %v12960_v56, %v12960_v56  ;;  %v2424_v6 = vadd.f32 %v2423_v45, %v12966_v30  ;;  %v2612_v28 = vmul.f32 %v12966_v30, %v12966_v30 }
 0x626   :  { %v3628_v2 = vmax.f32 %v3627_v43, %v3453_v21  ;;  %v2748_v7 = vadd.f32 %v2747_v40, %v2605_v57  ;;  %v2466_v17 = vadd.f32 %v2465_v5, %v12968_v54  ;;  %v2614_v29 = vmul.f32 %v12968_v54, %v12968_v54 }
 0x627   :  { %v2790_v27 = vadd.f32 %v2789_v26, %v2607_v8  ;;  %v2445_v10 = vadd.f32 %v2444_v38, %v12972_v46  ;;  %v2613_v21 = vmul.f32 %v12972_v46, %v12972_v46  ;;  %v2728_v63 = vadd.f32 %v2727_v41, %v2612_v28 }
 0x628   :  { %v3629_v0 = vmax.f32 %v3628_v2, %v3461_v51  ;;  %v2770_v59 = vadd.f32 %v2769_v36, %v2614_v29  ;;  %v2487_v52 = vadd.f32 %v2486_v22, %v12974_v37  ;;  %v2615_v55 = vmul.f32 %v12974_v37, %v12974_v37 }
 0x629   :  { %v2749_v48 = vadd.f32 %v2748_v7, %v2613_v21  ;;  %v2425_v50 = vadd.f32 %v2424_v6, %v12994_v19  ;;  %v2620_v51 = vmul.f32 %v12994_v19, %v12994_v19  ;;  %v2467_v45 = vadd.f32 %v2466_v17, %v12996_v33 }
 0x62a   :  { %v3630_v61 = vmax.f32 %v3629_v0, %v3469_v23  ;;  %v2791_v40 = vadd.f32 %v2790_v27, %v2615_v55  ;;  %v2622_v60 = vmul.f32 %v12996_v33, %v12996_v33  ;;  %v2446_v43 = vadd.f32 %v2445_v10, %v13012_v62 }
 0x62b   :  { %v2729_v5 = vadd.f32 %v2728_v63, %v2620_v51  ;;  %v2621_v23 = vmul.f32 %v13012_v62, %v13012_v62  ;;  %v2488_v35 = vadd.f32 %v2487_v52, %v13014_v13  ;;  %v2623_v38 = vmul.f32 %v13014_v13, %v13014_v13 }
 0x62c   :  { %v13088_v26 = vmax.f32 %v3630_v61, %v3477_v24  ;;  %v2771_v41 = vadd.f32 %v2770_v59, %v2622_v60  ;;  %v2426_v57 = vadd.f32 %v2425_v50, %v13022_v14  ;;  %v2628_v22 = vmul.f32 %v13022_v14, %v13022_v14 }
 0x62d   :  { %v3161_v2 = vrot.slane %v12981_v32, %v13007_v39  ;;  %v2750_v24 = vadd.f32 %v2749_v48, %v2621_v23  ;;  %v2468_v36 = vadd.f32 %v2467_v45, %v13024_v53  ;;  %v2630_v8 = vmul.f32 %v13024_v53, %v13024_v53 }
 0x62e   :  { %v2792_v6 = vadd.f32 %v2791_v40, %v2623_v38  ;;  %v2427_v7 = vrot.slane %v2426_v57, 4  ;;  %v2730_v28 = vadd.f32 %v2729_v5, %v2628_v22  ;;  %v2447_v17 = vadd.f32 %v2446_v43, %v13034_v9 }
 0x62f   :  { %v2469_v0 = vrot.slane %v2468_v36, 4  ;;  %v2772_v27 = vadd.f32 %v2771_v41, %v2630_v8  ;;  %v2629_v10 = vmul.f32 %v13034_v9, %v13034_v9  ;;  %v2489_v52 = vadd.f32 %v2488_v35, %v13036_v3 }
 0x630   :  { %v2428_v21 = vadd.f32 %v2427_v7, %v2426_v57  ;;  %v2731_v63 = vrot.slane %v2730_v28, 4  ;;  %v2448_v59 = vrot.slane %v2447_v17, 4  ;;  %v13110_v55 = vrot.slane %v3161_v2, %v16447_v44 }
 0x631   :  { %v2470_v61 = vadd.f32 %v2469_v0, %v2468_v36  ;;  %v2773_v48 = vrot.slane %v2772_v27, 4  ;;  %v2751_v50 = vadd.f32 %v2750_v24, %v2629_v10  ;;  %v2490_v60 = vrot.slane %v2489_v52, 4 }
 0x632   :  { %v2429_v51 = vrot.slane %v2428_v21, 2  ;;  %v2732_v40 = vadd.f32 %v2731_v63, %v2730_v28  ;;  %v2449_v45 = vadd.f32 %v2448_v59, %v2447_v17  ;;  %v2631_v41 = vmul.f32 %v13036_v3, %v13036_v3 }
 0x633   :  { %v2471_v43 = vrot.slane %v2470_v61, 2  ;;  %v2774_v5 = vadd.f32 %v2773_v48, %v2772_v27  ;;  %v2752_v23 = vrot.slane %v2751_v50, 4  ;;  %v2491_v35 = vadd.f32 %v2490_v60, %v2489_v52 }
 0x634   :  { %v2430_v38 = vadd.f32 %v2429_v51, %v2428_v21  ;;  %v2733_v57 = vrot.slane %v2732_v40, 2  ;;  %v2450_v22 = vrot.slane %v2449_v45, 2  ;;  %v2793_v36 = vadd.f32 %v2792_v6, %v2631_v41 }
 0x635   :  { %v2472_v8 = vadd.f32 %v2471_v43, %v2470_v61  ;;  %v2775_v2 = vrot.slane %v2774_v5, 2  ;;  %v2753_v7 = vadd.f32 %v2752_v23, %v2751_v50  ;;  %v2492_v28 = vrot.slane %v2491_v35, 2 }
 0x636   :  { %v2431_v0 = vrot.slane %v2430_v38, 1  ;;  %v2734_v24 = vadd.f32 %v2733_v57, %v2732_v40  ;;  %v2451_v10 = vadd.f32 %v2450_v22, %v2449_v45  ;;  %v2794_v27 = vrot.slane %v2793_v36, 4 }
 0x637   :  { %v2473_v17 = vrot.slane %v2472_v8, 1  ;;  %v2776_v63 = vadd.f32 %v2775_v2, %v2774_v5  ;;  %v2754_v59 = vrot.slane %v2753_v7, 2  ;;  %v2493_v33 = vadd.f32 %v2492_v28, %v2491_v35 }
 0x638   :  { %v2432_v48 = vadd.f32 %v2431_v0, %v2430_v38  ;;  %v2735_v29 = vrot.slane %v2734_v24, 1  ;;  %v2452_v53 = vrot.slane %v2451_v10, 1  ;;  %v2795_v52 = vadd.f32 %v2794_v27, %v2793_v36 }
 0x639   :  { %v2474_v21 = vadd.f32 %v2473_v17, %v2472_v8  ;;  %v2777_v51 = vrot.slane %v2776_v63, 1  ;;  %v2755_v54 = vadd.f32 %v2754_v59, %v2753_v7  ;;  %v2494_v60 = vrot.slane %v2493_v33, 1 }
 0x63a   :  { %v13114_v61 = vmul.f32 0.0078125, %v2432_v48  ;;  %v2736_v50 = vadd.f32 %v2735_v29, %v2734_v24  ;;  %v2453_v6 = vadd.f32 %v2452_v53, %v2451_v10  ;;  %v2796_v5 = vrot.slane %v2795_v52, 2 }
 0x63b   :  { %v13116_v40 = vmul.f32 0.0078125, %v2474_v21  ;;  %v2778_v45 = vadd.f32 %v2777_v51, %v2776_v63  ;;  %v2756_v43 = vrot.slane %v2755_v54, 1  ;;  %v2495_v57 = vadd.f32 %v2494_v60, %v2493_v33  ;;  %v16572_v51 = vld [vmem:[#allocation93_spill] sm:$0xff] }
 0x63c   :  { %v2804_v23 = vmul.f32 0.0078125, %v2736_v50  ;;  %v2812_v41 = vmul.f32 %v13114_v61, %v13114_v61  ;;  %v13120_v38 = vmul.f32 0.0078125, %v2453_v6  ;;  %v2797_v29 = vadd.f32 %v2796_v5, %v2795_v52  ;;  %v16573_v50 = vld [vmem:[#allocation97_spill] sm:$0xff]  ;;  %v16575_v5 = vld [vmem:[#allocation104_spill] sm:$0xff] }
 0x63d   :  { %v2806_v22 = vmul.f32 0.0078125, %v2778_v45  ;;  %v2814_v35 = vmul.f32 %v13116_v40, %v13116_v40  ;;  %v2757_v8 = vadd.f32 %v2756_v43, %v2755_v54  ;;  %v13126_v7 = vmul.f32 0.0078125, %v2495_v57 }
 0x63e   :  { %v2820_v53 = vsub.f32 %v2804_v23, %v2812_v41  ;;  %v2813_v2 = vmul.f32 %v13120_v38, %v13120_v38  ;;  %v3025_v36 = vmul.f32 %v13004_v1, %v12149_v25  ;;  %v2798_v10 = vrot.slane %v2797_v29, 1  ;;  %v16576_v23 = vld [vmem:[#allocation107_spill] sm:$0xff] }
 0x63f   :  { %v2822_v0 = vsub.f32 %v2806_v22, %v2814_v35  ;;  %v2805_v24 = vmul.f32 0.0078125, %v2757_v8  ;;  %v3033_v33 = vmul.f32 %v13004_v1, %v12173_v12  ;;  %v2815_v54 = vmul.f32 %v13126_v7, %v13126_v7  ;;  %v16578_v8 = vld [vmem:[#allocation113_spill] sm:$0xff] }
 0x640   :  { %v2828_v28 = vmax.f32 %v2820_v53, 0.0  ;;  %v3041_v17 = vmul.f32 %v13004_v1, %v12195_v15  ;;  %v3049_v63 = vmul.f32 %v13004_v1, %v12212_v11  ;;  %v2799_v48 = vadd.f32 %v2798_v10, %v2797_v29  ;;  %v16574_v11 = vld [vmem:[#allocation101_spill] sm:$0xff]  ;;  %v16579_v53 = vld [vmem:[#allocation116_spill] sm:$0xff]  ;;  %v16581_v10 = vld [vmem:[#allocation123_spill] sm:$0xff] }
 0x641   :  { %v2830_v59 = vmax.f32 %v2822_v0, 0.0  ;;  %v2821_v27 = vsub.f32 %v2805_v24, %v2813_v2  ;;  %v3057_v25 = vmul.f32 %v13004_v1, %v12247_v58  ;;  %v3065_v12 = vmul.f32 %v13004_v1, %v12276_v49  ;;  %v16577_v49 = vld [vmem:[#allocation110_spill] sm:$0xff]  ;;  %v16580_v0 = vld [vmem:[#allocation120_spill] sm:$0xff] }
 0x642   :  { %v2836_v21 = vadd.f32 1e-05, %v2828_v28  ;;  %v3073_v52 = vmul.f32 %v13004_v1, %v16572_v51  ;;  %v3081_v6 = vmul.f32 %v13004_v1, %v16573_v50  ;;  %v2807_v45 = vmul.f32 0.0078125, %v2799_v48 }
 0x643   :  { %v2838_v15 = vadd.f32 1e-05, %v2830_v59  ;;  %v2829_v60 = vmax.f32 %v2821_v27, 0.0  ;;  %v3089_v43 = vmul.f32 %v13004_v1, %v16574_v11  ;;  %v3097_v58 = vmul.f32 %v13004_v1, %v16575_v5 }
 0x644   :  { %10074 = vrsqrt.f32 %v2836_v21  ;;  %v3105_v41 = vmul.f32 %v13004_v1, %v16576_v23  ;;  %v3113_v57 = vmul.f32 %v13004_v1, %v16577_v49  ;;  %v2823_v35 = vsub.f32 %v2807_v45, %v2815_v54 }
 0x645   :  { %10076 = vrsqrt.f32 %v2838_v15  ;;  %v2837_v22 = vadd.f32 1e-05, %v2829_v60  ;;  %v3121_v29 = vmul.f32 %v13004_v1, %v16578_v8  ;;  %v3129_v2 = vmul.f32 %v13004_v1, %v16579_v53 }
 0x646   :  { %v3137_v24 = vmul.f32 %v13004_v1, %v16580_v0  ;;  %v3145_v28 = vmul.f32 %v13004_v1, %v16581_v10  ;;  %v3227_v59 = vadd.f32 %v13110_v55, %v3025_v36  ;;  %v2831_v27 = vmax.f32 %v2823_v35, 0.0 }
 0x647   :  { %10078 = vrsqrt.f32 %v2837_v22  ;;  %v3235_v48 = vadd.f32 %v13110_v55, %v3033_v33  ;;  %v3243_v54 = vadd.f32 %v13110_v55, %v3041_v17  ;;  %v3251_v21 = vadd.f32 %v13110_v55, %v3049_v63 }
 0x648   :  { %v3259_v51 = vadd.f32 %v13110_v55, %v3057_v25  ;;  %v13168_v50 = vadd.f32 %v13110_v55, %v3065_v12  ;;  %v13171_v15 = vadd.f32 %v13110_v55, %v3073_v52  ;;  %v2839_v60 = vadd.f32 1e-05, %v2831_v27 }
 0x649   :  { %v13174_v1 = vadd.f32 %v13110_v55, %v3081_v6  ;;  %v3291_v36 = vadd.f32 %v13110_v55, %v3089_v43  ;;  %v3299_v33 = vadd.f32 %v13110_v55, %v3097_v58  ;;  %v3307_v17 = vadd.f32 %v13110_v55, %v3105_v41 }
 0x64a   :  { %v3315_v63 = vadd.f32 %v13110_v55, %v3113_v57  ;;  %v3323_v25 = vadd.f32 %v13110_v55, %v3121_v29  ;;  %v3331_v12 = vadd.f32 %v13110_v55, %v3129_v2  ;;  %10080 = vrsqrt.f32 %v2839_v60 }
 0x64b   :  { %v13183_v52 = vadd.f32 %v13110_v55, %v3137_v24  ;;  %v13186_v45 = vadd.f32 %v13110_v55, %v3145_v28  ;;  %v3355_v6 = vmax.f32 %v3227_v59, 0.0  ;;  %v16582_v11 = vrot.slane %v12981_v32, %v16447_v44 }
 0x64c   :  { %v3363_v5 = vmax.f32 %v3235_v48, 0.0  ;;  %v3371_v58 = vmax.f32 %v3243_v54, 0.0  ;;  %v3379_v23 = vmax.f32 %v3251_v21, 0.0  ;;  %v3387_v41 = vmax.f32 %v3259_v51, 0.0  ;;  %v16583_v48 = vld [vmem:[#allocation14_spill] sm:$0xff]  ;;  %v16584_v54 = vld [vmem:[#allocation175_spill] sm:$0xff] }
 0x64d   :  { %v13192_v43 = vrot.slane %v16582_v11, %v16447_v44  ;;  %v3395_v49 = vmax.f32 %v13168_v50, 0.0  ;;  %v3403_v57 = vmax.f32 %v13171_v15, 0.0  ;;  %v3419_v22 = vmax.f32 %v3291_v36, 0.0  ;;  %v16585_v51 = vld [vmem:[#allocation46_spill] sm:$0xff]  ;;  %v16590_v11 = vld [vmem:[#allocation91_spill] sm:$0xff] }
 0x64e   :  { %v10075_v35 = vpop.eup %10074  ;;  %v3411_v55 = vmax.f32 %v13174_v1, 0.0  ;;  %v3427_v8 = vmax.f32 %v3299_v33, 0.0  ;;  %v3435_v29 = vmax.f32 %v3307_v17, 0.0  ;;  %v3443_v53 = vmax.f32 %v3315_v63, 0.0  ;;  %v16586_v1 = vld [vmem:[#allocation32_spill] sm:$0xff]  ;;  %v16587_v33 = vld [vmem:[#allocation73_spill] sm:$0xff] }
 0x64f   :  { %v10077_v2 = vpop.eup %10076  ;;  %v3451_v0 = vmax.f32 %v3323_v25, 0.0  ;;  %v3459_v24 = vmax.f32 %v3331_v12, 0.0  ;;  %v3467_v10 = vmax.f32 %v13183_v52, 0.0  ;;  %v3495_v28 = vmax.f32 %v3355_v6, %v3363_v5  ;;  %v16588_v63 = vld [vmem:[#allocation85_spill] sm:$0xff] }
 0x650   :  { %v3475_v59 = vmax.f32 %v13186_v45, 0.0  ;;  %v3599_v27 = vmax.f32 %v3419_v22, %v3427_v8  ;;  %v3024_v21 = vmul.f32 %v16584_v54, %v16583_v48  ;;  %v3032_v50 = vmul.f32 %v16584_v54, %v16585_v51  ;;  %v16589_v45 = vld [vmem:[#allocation88_spill] sm:$0xff]  ;;  %v16591_v8 = vld [vmem:[#allocation95_spill] sm:$0xff]  ;;  %v16593_v51 = vld [vmem:[#allocation102_spill] sm:$0xff] }
 0x651   :  { %v10079_v15 = vpop.eup %10078  ;;  %v3496_v60 = vmax.f32 %v3495_v28, %v3371_v58  ;;  %v3040_v36 = vmul.f32 %v16584_v54, %v16586_v1  ;;  %v3048_v17 = vmul.f32 %v16584_v54, %v16587_v33  ;;  %v3056_v25 = vmul.f32 %v16584_v54, %v16588_v63  ;;  %v16592_v28 = vld [vmem:[#allocation99_spill] sm:$0xff] }
 0x652   :  { %v2873_v12 = vcombine.low %v10075_v35, %v10079_v15  ;;  %v3600_v52 = vmax.f32 %v3599_v27, %v3435_v29  ;;  %v3064_v6 = vmul.f32 %v16584_v54, %v16589_v45  ;;  %v3072_v5 = vmul.f32 %v16584_v54, %v16590_v11  ;;  %v16594_v33 = vld [vmem:[#allocation119_spill] sm:$0xff]  ;;  %v16595_v29 = vld [vmem:[#allocation105_spill] sm:$0xff]  ;;  %v16596_v15 = vld [vmem:[#allocation108_spill] sm:$0xff] }
 0x653   :  { %v3497_v22 = vmax.f32 %v3496_v60, %v3379_v23  ;;  %v3080_v58 = vmul.f32 %v16584_v54, %v16591_v8  ;;  %v3088_v48 = vmul.f32 %v16584_v54, %v16592_v28  ;;  %v3096_v1 = vmul.f32 %v16584_v54, %v16593_v51  ;;  %v16597_v60 = vld [vmem:[#allocation111_spill] sm:$0xff] }
 0x654   :  { %v2881_v63 = vrot.slane %v2873_v12, %v16594_v33  ;;  %v3601_v35 = vmax.f32 %v3600_v52, %v3443_v53  ;;  %v3104_v27 = vmul.f32 %v16584_v54, %v16595_v29  ;;  %v3112_v45 = vmul.f32 %v16584_v54, %v16596_v15  ;;  %v10081_v11 = vpop.eup %10080  ;;  %v16600_v53 = vld [vmem:[#allocation121_spill] sm:$0xff] }
 0x655   :  { %v3498_v23 = vmax.f32 %v3497_v22, %v3387_v41  ;;  %v3120_v8 = vmul.f32 %v16584_v54, %v16597_v60  ;;  %v3128_v28 = vmul.f32 %v16584_v54, %v16598_v20  ;;  %v3136_v51 = vmul.f32 %v16584_v54, %v16599_v4 }
 0x656   :  { %v2874_v14 = vcombine.low %v10077_v2, %v10081_v11  ;;  %v3602_v12 = vmax.f32 %v3601_v35, %v3451_v0  ;;  %v3144_v52 = vmul.f32 %v16584_v54, %v16600_v53  ;;  %v13233_v29 = vadd.f32 %v13192_v43, %v3024_v21 }
 0x657   :  { %v3499_v15 = vmax.f32 %v3498_v23, %v3395_v49  ;;  %v13236_v41 = vadd.f32 %v13192_v43, %v3032_v50  ;;  %v13239_v22 = vadd.f32 %v13192_v43, %v3040_v36  ;;  %v13242_v20 = vadd.f32 %v13192_v43, %v3048_v17  ;;  %v13254_v49 = vld [vmem:[%s16079_s10 + $0x8] sm:$0xff] }
 0x658   :  { %v2888_v4 = vrot.slane %v2874_v14, %v16594_v33  ;;  %v3603_v2 = vmax.f32 %v3602_v12, %v3459_v24  ;;  %v13246_v0 = vadd.f32 %v13192_v43, %v3056_v25  ;;  %v13249_v54 = vadd.f32 %v13192_v43, %v3064_v6  ;;  %v16602_v23 = vld [vmem:[#allocation7_spill] sm:$0xff]  ;;  %v16604_v12 = vld [vmem:[#allocation8_spill] sm:$0xff] }
 0x659   :  { %v3500_v21 = vmax.f32 %v3499_v15, %v3403_v57  ;;  %v13257_v50 = vadd.f32 %v13192_v43, %v3072_v5  ;;  %v13260_v36 = vadd.f32 %v13192_v43, %v3080_v58  ;;  %v13263_v14 = vadd.f32 %v13192_v43, %v3088_v48 }
 0x65a   :  { %v2889_v24 = vcombine.low %v2881_v63, %v2888_v4  ;;  %v3604_v17 = vmax.f32 %v3603_v2, %v3467_v10  ;;  %v3298_v25 = vadd.f32 %v13192_v43, %v3096_v1  ;;  %v13267_v6 = vadd.f32 %v13192_v43, %v3104_v27  ;;  %v16601_v27 = vld [vmem:[#allocation3_spill] sm:$0xff]  ;;  %v16605_v2 = vld [vmem:[#allocation6_spill] sm:$0xff] }
 0x65b   :  { %v3501_v35 = vmax.f32 %v3500_v21, %v3411_v55  ;;  %v13270_v11 = vadd.f32 %v13192_v43, %v3112_v45  ;;  %v13273_v57 = vadd.f32 %v13192_v43, %v3120_v8  ;;  %v13276_v5 = vadd.f32 %v13192_v43, %v3128_v28  ;;  %v16603_v8 = vld [vmem:[#allocation4_spill] sm:$0xff] }
 0x65c   :  { %v2893_v58 = vmul.f32 %v2889_v24, %v13254_v49  ;;  %v3605_v48 = vmax.f32 %v3604_v17, %v3475_v59  ;;  %v13280_v10 = vadd.f32 %v13192_v43, %v3136_v51  ;;  %v13283_v1 = vadd.f32 %v13192_v43, %v3144_v52 }
 0x65d   :  { %v3632_v55 = vrot.slane %v13088_v26, 4  ;;  %v3502_v63 = vrot.slane %v3501_v35, 4  ;;  %v3165_v21 = vrot.slane %v12981_v32, %v16605_v2 }
 0x65e   :  { %v13287_v45 = vrot.slane %v2893_v58, %v16601_v27  ;;  %v13290_v60 = vrot.slane %v2893_v58, %v16602_v23  ;;  %v13293_v28 = vrot.slane %v2893_v58, %v16603_v8  ;;  %v2927_v59 = vrot.slane %v2893_v58, %v16604_v12  ;;  %v16606_v12 = vld [vmem:[#allocation159_spill] sm:$0xff] }
 0x65f   :  { %v3503_v53 = vmax.f32 %v3501_v35, %v3502_v63  ;;  %v3606_v51 = vrot.slane %v3605_v48, 4  ;;  %v13306_v24 = vmax.f32 %v13088_v26, %v3632_v55  ;;  %v16607_v8 = vld [vmem:[#allocation163_spill] sm:$0xff] }
 0x660   :  { %v2940_v43 = vmul.f32 %v13287_v45, %v13114_v61  ;;  %v2941_v52 = vmul.f32 %v13290_v60, %v13120_v38  ;;  %v2942_v15 = vmul.f32 %v13293_v28, %v13116_v40  ;;  %v2943_v4 = vmul.f32 %v2927_v59, %v13126_v7  ;;  %v16608_v7 = vld [vmem:[#allocation168_spill] sm:$0xff] }
 0x661   :  { %v13309_v17 = vrot.slane %v2927_v59, %v16601_v27  ;;  %v3504_v61 = vrot.slane %v3503_v53, 2  ;;  %v3607_v63 = vmax.f32 %v3605_v48, %v3606_v51 }
 0x662   :  { %v2969_v35 = vcombine.low %v2940_v43, %v2941_v52  ;;  %v2970_v58 = vcombine.low %v2942_v15, %v2943_v4  ;;  %v3362_v15 = vmax.f32 %v13236_v41, 0.0  ;;  %v3378_v41 = vmax.f32 %v13242_v20, 0.0 }
 0x663   :  { %v3095_v38 = vmul.f32 %v13309_v17, %v16606_v12  ;;  %v3103_v40 = vmul.f32 %v13309_v17, %v16607_v8  ;;  %v3111_v23 = vmul.f32 %v13309_v17, %v16608_v7  ;;  %v3119_v32 = vmul.f32 %v13309_v17, %v12903_v42 }
 0x664   :  { %v2977_v26 = vrot.slane %v2969_v35, %v16594_v33  ;;  %v2984_v55 = vrot.slane %v2970_v58, %v16594_v33  ;;  %v3127_v59 = vmul.f32 %v13309_v17, %v12960_v56  ;;  %v3135_v48 = vmul.f32 %v13309_v17, %v12974_v37  ;;  %v16609_v37 = vld [vmem:[#allocation166_spill] sm:$0xff] }
 0x665   :  { %v3143_v12 = vmul.f32 %v13309_v17, %v13014_v13  ;;  %v3151_v8 = vmul.f32 %v13309_v17, %v13036_v3  ;;  %v3505_v51 = vmax.f32 %v3503_v53, %v3504_v61  ;;  %v3608_v43 = vrot.slane %v3607_v63, 2  ;;  %v16611_v33 = vld [vmem:[#allocation170_spill] sm:$0xff] }
 0x666   :  { %v2985_v52 = vcombine.low %v2977_v26, %v2984_v55  ;;  %v3354_v42 = vmax.f32 %v13233_v29, 0.0  ;;  %v3418_v56 = vmax.f32 %v13263_v14, 0.0  ;;  %v3426_v58 = vmax.f32 %v3298_v25, 0.0 }
 0x667   :  { %v3506_v4 = vrot.slane %v3505_v51, 1  ;;  %v3609_v35 = vmax.f32 %v3607_v63, %v3608_v43  ;;  %v13334_v7 = vrot.slane %v16609_v37, %v16601_v27  ;;  %v13337_v13 = vrot.slane %v3165_v21, %v16447_v44  ;;  %v16610_v37 = vld [vmem:[#allocation57_spill] sm:$0xff] }
 0x668   :  { %v2987_v53 = vrot.slane %v2985_v52, 7  ;;  %v3370_v29 = vmax.f32 %v13239_v22, 0.0  ;;  %v3434_v25 = vmax.f32 %v13267_v6, 0.0  ;;  %v3482_v63 = vmax.f32 %v3354_v42, %v3362_v15  ;;  %v16612_v52 = vld [vmem:[#allocation15_spill] sm:$0xff] }
 0x669   :  { %v3507_v61 = vmax.f32 %v3505_v51, %v3506_v4  ;;  %v3610_v26 = vrot.slane %v3609_v35, 1  ;;  %v3586_v55 = vmax.f32 %v3418_v56, %v3426_v58  ;;  %v3027_v3 = vmul.f32 %v16611_v33, %v16610_v37  ;;  %v16613_v4 = vld [vmem:[#allocation171_spill] sm:$0xff] }
 0x66a   :  { %v13343_v14 = vsub.f32 %v13254_v49, %v2987_v53  ;;  %v3035_v51 = vmul.f32 %v16611_v33, %v16612_v52  ;;  %v3386_v20 = vmax.f32 %v13246_v0, 0.0  ;;  %v3394_v49 = vmax.f32 %v13249_v54, 0.0 }
 0x66b   :  { %v3611_v43 = vmax.f32 %v3609_v35, %v3610_v26  ;;  %v3691_v21 = vpack.c.bf16 %v3507_v61, %v3507_v61  ;;  %v3402_v53 = vmax.f32 %v13257_v50, 0.0  ;;  %v3442_v42 = vmax.f32 %v13270_v11, 0.0 }
 0x66c   :  { %v3185_v22 = vrot.slane %v13343_v14, %v16613_v4  ;;  %v3483_v15 = vmax.f32 %v3482_v63, %v3370_v29  ;;  %v3587_v35 = vmax.f32 %v3586_v55, %v3434_v25  ;;  %v3410_v61 = vmax.f32 %v13260_v36, 0.0  ;;  %v16614_v4 = vld [vmem:[#allocation40_spill] sm:$0xff] }
 0x66d   :  { %v3699_v6 = vpack.c.bf16 %v3611_v43, %v3611_v43  ;;  %v4411_v58 = vunpack.c.l.b16 %v3691_v21  ;;  %v3450_v26 = vmax.f32 %v13273_v57, 0.0  ;;  %v3043_v54 = vmul.f32 %v16611_v33, %v16614_v4 }
 0x66e   :  { %v13357_v56 = vrot.slane %v3185_v22, %v16447_v44  ;;  %v3484_v52 = vmax.f32 %v3483_v15, %v3378_v41  ;;  %v3588_v0 = vmax.f32 %v3587_v35, %v3442_v42  ;;  %v3458_v21 = vmax.f32 %v13276_v5, 0.0  ;;  %v16616_v15 = vld [vmem:[#allocation87_spill] sm:$0xff]  ;;  %v16617_v5 = vld [vmem:[#allocation90_spill] sm:$0xff] }
 0x66f   :  { %v4419_v37 = vunpack.c.l.b16 %v3699_v6  ;;  %v3059_v35 = vmul.f32 %v16611_v33, %v16616_v15 }
 0x670   :  { %v3297_v50 = vadd.f32 %v13357_v56, %v3095_v38  ;;  %v3305_v11 = vadd.f32 %v13357_v56, %v3103_v40  ;;  %v3313_v29 = vadd.f32 %v13357_v56, %v3111_v23  ;;  %v3321_v25 = vadd.f32 %v13357_v56, %v3119_v32 }
 0x671   :  { %v3329_v63 = vadd.f32 %v13357_v56, %v3127_v59  ;;  %v3337_v36 = vadd.f32 %v13357_v56, %v3135_v48  ;;  %v3345_v57 = vadd.f32 %v13357_v56, %v3143_v12  ;;  %v3353_v41 = vadd.f32 %v13357_v56, %v3151_v8  ;;  %v16615_v12 = vld [vmem:[#allocation84_spill] sm:$0xff] }
 0x672   :  { %v3425_v55 = vmax.f32 %v3297_v50, 0.0  ;;  %v3433_v43 = vmax.f32 %v3305_v11, 0.0  ;;  %v3466_v38 = vmax.f32 %v13280_v10, 0.0  ;;  %v3441_v4 = vmax.f32 %v3313_v29, 0.0 }
 0x673   :  { %v3449_v40 = vmax.f32 %v3321_v25, 0.0  ;;  %v3457_v22 = vmax.f32 %v3329_v63, 0.0  ;;  %v3474_v23 = vmax.f32 %v13283_v1, 0.0  ;;  %v4428_v59 = vsel %vm4426_vm1, %v4419_v37, %v4411_v58  ;;  %v16618_v25 = vld [vmem:[#allocation94_spill] sm:$0xff] }
 0x674   :  { %v3677_v32 = vmax.f32 %v3425_v55, %v3433_v43  ;;  %v3485_v6 = vmax.f32 %v3484_v52, %v3386_v20  ;;  %v3589_v48 = vmax.f32 %v3588_v0, %v3450_v26  ;;  %v4436_v42 = vpack.c.b16 %v4428_v59, %v4428_v59  ;;  %v16619_v20 = vld [vmem:[#allocation98_spill] sm:$0xff] }
 0x675   :  { %v3051_v8 = vmul.f32 %v16611_v33, %v16615_v12  ;;  %v3067_v10 = vmul.f32 %v16611_v33, %v16617_v5  ;;  %v3075_v1 = vmul.f32 %v16611_v33, %v16618_v25  ;;  %v3465_v63 = vmax.f32 %v3337_v36, 0.0 }
 0x676   :  { %v3678_v50 = vmax.f32 %v3677_v32, %v3441_v4  ;;  %v3486_v11 = vmax.f32 %v3485_v6, %v3394_v49  ;;  %v3590_v29 = vmax.f32 %v3589_v48, %v3458_v21  ;;  %5763 = vmatprep.mubr.bf16.mxu1 %v4436_v42  ;;  %5927 = vmatprep.mubr.bf16.mxu0 %v4436_v42 }
 0x677   :  { %v3083_v58 = vmul.f32 %v16611_v33, %v16619_v20  ;;  %v3229_v26 = vadd.f32 %v13010_v16, %v3027_v3  ;;  %v3237_v37 = vadd.f32 %v13010_v16, %v3035_v51  ;;  %v3245_v43 = vadd.f32 %v13010_v16, %v3043_v54 }
 0x678   :  { %v3679_v52 = vmax.f32 %v3678_v50, %v3449_v40  ;;  %v3487_v0 = vmax.f32 %v3486_v11, %v3402_v53  ;;  %v3591_v55 = vmax.f32 %v3590_v29, %v3466_v38  ;;  %v3253_v49 = vadd.f32 %v13010_v16, %v3051_v8  ;;  %v16621_v50 = vld [vmem:[#allocation34_spill] sm:$0xff]  ;;  %v16622_v11 = vld [vmem:[#allocation64_spill] sm:$0xff]  ;;  %v16623_v29 = vld [vmem:[#allocation33_spill] sm:$0xff] }
 0x679   :  { %v3261_v21 = vadd.f32 %v13010_v16, %v3059_v35  ;;  %v3269_v36 = vadd.f32 %v13010_v16, %v3067_v10  ;;  %v3277_v4 = vadd.f32 %v13010_v16, %v3075_v1  ;;  %v3285_v3 = vadd.f32 %v13010_v16, %v3083_v58 }
 0x67a   :  { %v3680_v32 = vmax.f32 %v3679_v52, %v3457_v22  ;;  %v3488_v59 = vmax.f32 %v3487_v0, %v3410_v61  ;;  %v3592_v33 = vmax.f32 %v3591_v55, %v3474_v23  ;;  %v3173_v51 = vrot.slane %v13343_v14, %v16447_v44  ;;  %v16626_v55 = vld [vmem:[#allocation89_spill] sm:$0xff] }
 0x67b   :  { %v3473_v53 = vmax.f32 %v3345_v57, 0.0  ;;  %v3357_v38 = vmax.f32 %v3229_v26, 0.0  ;;  %v3365_v40 = vmax.f32 %v3237_v37, 0.0  ;;  %v3481_v54 = vmax.f32 %v3353_v41, 0.0  ;;  %v16624_v37 = vld [vmem:[#allocation29_spill] sm:$0xff] }
 0x67c   :  { %v3681_v6 = vmax.f32 %v3680_v32, %v3465_v63  ;;  %v3489_v48 = vrot.slane %v3488_v59, 4  ;;  %v3593_v42 = vrot.slane %v3592_v33, 4  ;;  %v3373_v12 = vmax.f32 %v3245_v43, 0.0 }
 0x67d   :  { %v3381_v8 = vmax.f32 %v3253_v49, 0.0  ;;  %v3389_v15 = vmax.f32 %v3261_v21, 0.0  ;;  %v3521_v35 = vmax.f32 %v3357_v38, %v3365_v40  ;;  %v16620_v23 = vrot.slane %v13306_v24, 2  ;;  %v16628_v40 = vld [vmem:[#allocation96_spill] sm:$0xff] }
 0x67e   :  { %v3682_v5 = vmax.f32 %v3681_v6, %v3473_v53  ;;  %v3490_v22 = vmax.f32 %v3488_v59, %v3489_v48  ;;  %v3594_v61 = vmax.f32 %v3592_v33, %v3593_v42  ;;  %v3026_v57 = vmul.f32 %v13334_v7, %v16621_v50  ;;  %v16627_v53 = vld [vmem:[#allocation92_spill] sm:$0xff] }
 0x67f   :  { %v3635_v16 = vmax.f32 %v13306_v24, %v16620_v23  ;;  %v3522_v10 = vmax.f32 %v3521_v35, %v3373_v12  ;;  %v3034_v41 = vmul.f32 %v13334_v7, %v16622_v11  ;;  %v3042_v25 = vmul.f32 %v13334_v7, %v16623_v29  ;;  %v16625_v24 = vld [vmem:[#allocation86_spill] sm:$0xff]  ;;  %v16629_v6 = vld [vmem:[#allocation100_spill] sm:$0xff]  ;;  %v16632_v23 = vld [vmem:[#allocation109_spill] sm:$0xff] }
 0x680   :  { %v13404_v1 = vmax.f32 %v3682_v5, %v3481_v54  ;;  %v3491_v63 = vrot.slane %v3490_v22, 2  ;;  %v3595_v20 = vrot.slane %v3594_v61, 2  ;;  %v3050_v52 = vmul.f32 %v13334_v7, %v16624_v37  ;;  %v16635_v37 = vld [vmem:[#allocation118_spill] sm:$0xff] }
 0x681   :  { %v3636_v58 = vrot.slane %v3635_v16, 1  ;;  %v3523_v26 = vmax.f32 %v3522_v10, %v3381_v8  ;;  %v3058_v0 = vmul.f32 %v13334_v7, %v16625_v24  ;;  %v3066_v43 = vmul.f32 %v13334_v7, %v16626_v55 }
 0x682   :  { %v3492_v49 = vmax.f32 %v3490_v22, %v3491_v63  ;;  %v3596_v21 = vmax.f32 %v3594_v61, %v3595_v20  ;;  %v3397_v32 = vmax.f32 %v3269_v36, 0.0  ;;  %v3074_v38 = vmul.f32 %v13334_v7, %v16627_v53  ;;  %v16630_v36 = vld [vmem:[#allocation103_spill] sm:$0xff]  ;;  %v16633_v20 = vld [vmem:[#allocation112_spill] sm:$0xff] }
 0x683   :  { %v13412_v59 = vmax.f32 %v3635_v16, %v3636_v58  ;;  %v3524_v33 = vmax.f32 %v3523_v26, %v3389_v15  ;;  %v3082_v54 = vmul.f32 %v13334_v7, %v16628_v40  ;;  %v3090_v48 = vmul.f32 %v13334_v7, %v16629_v6  ;;  %v16631_v15 = vld [vmem:[#allocation106_spill] sm:$0xff]  ;;  %v16634_v58 = vld [vmem:[#allocation115_spill] sm:$0xff] }
 0x684   :  { %v3177_v42 = vrot.slane %v13343_v14, %v13007_v39  ;;  %v3493_v12 = vrot.slane %v3492_v49, 1  ;;  %v3597_v8 = vrot.slane %v3596_v21, 1  ;;  %v3405_v35 = vmax.f32 %v3277_v4, 0.0 }
 0x685   :  { %v3525_v5 = vmax.f32 %v3524_v33, %v3397_v32  ;;  %v3098_v22 = vmul.f32 %v13334_v7, %v16630_v36  ;;  %v3106_v61 = vmul.f32 %v13334_v7, %v16631_v15  ;;  %v3114_v16 = vmul.f32 %v13334_v7, %v16632_v23  ;;  %v16636_v33 = vld [vmem:[#allocation122_spill] sm:$0xff]  ;;  %v9657_v23 = vld [vmem:[%s16078_s12 + $0x22c] ss:$16 sps:$4 sm:$0xff]  }
 0x686   :  { %v3494_v10 = vmax.f32 %v3492_v49, %v3493_v12  ;;  %v3598_v50 = vmax.f32 %v3596_v21, %v3597_v8  ;;  %v3413_v11 = vmax.f32 %v3285_v3, 0.0  ;;  %v3701_v29 = vpack.c.bf16 %v13412_v59, %v13412_v59 }
 0x687   :  { %v3526_v63 = vmax.f32 %v3525_v5, %v3405_v35  ;;  %v3122_v4 = vmul.f32 %v13334_v7, %v16633_v20  ;;  %v3130_v26 = vmul.f32 %v13334_v7, %v16634_v58  ;;  %v3138_v24 = vmul.f32 %v13334_v7, %v16635_v37 }
 0x688   :  { %v3690_v55 = vpack.c.bf16 %v3494_v10, %v3494_v10  ;;  %v3698_v32 = vpack.c.bf16 %v3598_v50, %v3598_v50  ;;  %v3146_v49 = vmul.f32 %v13334_v7, %v16636_v33  ;;  %v3228_v3 = vadd.f32 %v13337_v13, %v3026_v57 }
 0x689   :  { %v3527_v21 = vmax.f32 %v3526_v63, %v3413_v11  ;;  %v3236_v59 = vadd.f32 %v13337_v13, %v3034_v41  ;;  %v13441_v53 = vadd.f32 %v13337_v13, %v3042_v25  ;;  %v13444_v40 = vadd.f32 %v13337_v13, %v3050_v52  ;;  %v9646_v52 = vld [vmem:[%s16078_s12 + $0x200] ss:$16 sps:$4 sm:$0xff]  }
 0x68a   :  { %v4410_v6 = vunpack.c.l.b16 %v3690_v55  ;;  %v4418_v12 = vunpack.c.l.b16 %v3698_v32  ;;  %v13447_v8 = vadd.f32 %v13337_v13, %v3058_v0  ;;  %v13450_v35 = vadd.f32 %v13337_v13, %v3066_v43  ;;  %v9649_v0 = vld [vmem:[%s16078_s12 + $0x208] ss:$16 sps:$4 sm:$0xff]  }
 0x68b   :  { %v3528_v7 = vrot.slane %v3527_v21, 4  ;;  %v13453_v57 = vadd.f32 %v13337_v13, %v3074_v38  ;;  %v13456_v41 = vadd.f32 %v13337_v13, %v3082_v54  ;;  %v3292_v25 = vadd.f32 %v13337_v13, %v3090_v48  ;;  %v9654_v48 = vld [vmem:[%s16078_s12 + $0x224] ss:$16 sps:$4 sm:$0xff]  }
 0x68c   :  { %v4427_v43 = vsel %vm4426_vm1, %v4418_v12, %v4410_v6  ;;  %v3300_v5 = vadd.f32 %v13337_v13, %v3098_v22  ;;  %v3308_v38 = vadd.f32 %v13337_v13, %v3106_v61  ;;  %v13469_v36 = vadd.f32 %v13337_v13, %v3114_v16 }
 0x68d   :  { %v4435_v54 = vpack.c.b16 %v4427_v43, %v4427_v43  ;;  %v3529_v15 = vmax.f32 %v3527_v21, %v3528_v7  ;;  %v13478_v10 = vadd.f32 %v13337_v13, %v3122_v4  ;;  %v13481_v22 = vadd.f32 %v13337_v13, %v3130_v26  ;;  %v9660_v26 = vld [vmem:[%s16078_s12 + $0x244] ss:$16 sps:$4 sm:$0xff]  }
 0x68e   :  { %v13485_v61 = vrot.slane %v13287_v45, %v16601_v27  ;;  %v13489_v16 = vrot.slane %v13290_v60, %v16601_v27  ;;  %v13492_v50 = vadd.f32 %v13337_v13, %v3138_v24  ;;  %v13495_v11 = vadd.f32 %v13337_v13, %v3146_v49  ;;  %v9652_v60 = vld [vmem:[%s16078_s12 + $0x220] ss:$16 sps:$4 sm:$0xff]  }
 0x68f   :  { %v13501_v63 = vrot.slane %v3173_v51, %v16447_v44  ;;  %5764 = vmatmul.mubr.bf16.vlgmr.msra.gmra.mrb[80].mxu1 %v4435_v54  ;;  %5928 = vmatmul.mubr.bf16.vlgmr.msra.gmra.mrb[96].mxu0 %v4435_v54  ;;  %v3530_v45 = vrot.slane %v3529_v15, 2  ;;  %v3356_v20 = vmax.f32 %v3228_v3, 0.0  ;;  %v3364_v4 = vmax.f32 %v3236_v59, 0.0  ;;  %v9655_v51 = vld [vmem:[%s16078_s12 + $0x228] ss:$16 sps:$4 sm:$0xff]   ;;  %v16637_v7 = vld [vmem:[#allocation126_spill] sm:$0xff] }
 0x690   :  { %v13507_v58 = vrot.slane %v3177_v42, %v16447_v44  ;;  %5773 = vmatpush1.bf16.msra.mxu1 %v9646_v52  ;;  %5937 = vmatpush1.bf16.msra.mxu0 %v9649_v0  ;;  %v13509_v13 = vunpack.c.l.b16 %v3701_v29  ;;  %v3372_v37 = vmax.f32 %v13441_v53, 0.0  ;;  %v3420_v24 = vmax.f32 %v3292_v25, 0.0  ;;  %v9663_v42 = vld [vmem:[%s16078_s12 + $0x24c] ss:$16 sps:$4 sm:$0xff]   ;;  %v16638_v52 = vld [vmem:[#allocation130_spill] sm:$0xff] }
 0x691   :  { %v3531_v55 = vmax.f32 %v3529_v15, %v3530_v45  ;;  %5774 = vmatprep.subr.bf16.mxu1 %v9654_v48  ;;  %5938 = vmatprep.subr.bf16.mxu0 %v9657_v23  ;;  %v3380_v29 = vmax.f32 %v13444_v40, 0.0  ;;  %v3388_v32 = vmax.f32 %v13447_v8, 0.0  ;;  %v3428_v33 = vmax.f32 %v3300_v5, 0.0  ;;  %v9658_v40 = vld [vmem:[%s16078_s12 + $0x240] ss:$16 sps:$4 sm:$0xff]  }
 0x692   :  { %v3396_v49 = vmax.f32 %v13450_v35, 0.0  ;;  %v3404_v3 = vmax.f32 %v13453_v57, 0.0  ;;  %v3436_v21 = vmax.f32 %v3308_v38, 0.0  ;;  %v3444_v59 = vmax.f32 %v13469_v36, 0.0  ;;  %v9661_v8 = vld [vmem:[%s16078_s12 + $0x248] ss:$16 sps:$4 sm:$0xff]  }
 0x693   :  { %v3532_v53 = vrot.slane %v3531_v55, 1  ;;  %v3508_v6 = vmax.f32 %v3356_v20, %v3364_v4  ;;  %v3612_v12 = vmax.f32 %v3420_v24, %v3428_v33  ;;  %v3029_v25 = vmul.f32 %v13489_v16, %v16637_v7  ;;  %v16639_v43 = vld [vmem:[#allocation134_spill] sm:$0xff]  ;;  %v9669_v48 = vld [vmem:[%s16078_s12 + $0x26c] ss:$16 sps:$4 sm:$0xff]  }
 0x694   :  { %5775 = vmatpush1.bf16.msra.mxu1 %v9652_v60  ;;  %5939 = vmatpush1.bf16.msra.mxu0 %v9655_v51  ;;  %v3452_v35 = vmax.f32 %v13478_v10, 0.0  ;;  %v3037_v0 = vmul.f32 %v13489_v16, %v16638_v52  ;;  %v3045_v5 = vmul.f32 %v13489_v16, %v16639_v43  ;;  %v16640_v38 = vld [vmem:[#allocation138_spill] sm:$0xff]  ;;  %v3460_v23 = vmax.f32 %v13481_v22, 0.0 }
 0x695   :  { %v3053_v36 = vmul.f32 %v13489_v16, %v16640_v38  ;;  %v3533_v54 = vmax.f32 %v3531_v55, %v3532_v53  ;;  %5776 = vmatprep.subr.bf16.mxu1 %v9660_v26  ;;  %5940 = vmatprep.subr.bf16.mxu0 %v9663_v42  ;;  %v9666_v15 = vld [vmem:[%s16078_s12 + $0x264] ss:$16 sps:$4 sm:$0xff]   ;;  %v3509_v10 = vmax.f32 %v3508_v6, %v3372_v37  ;;  %v9664_v37 = vld [vmem:[%s16078_s12 + $0x260] ss:$16 sps:$4 sm:$0xff]   ;;  %v3468_v6 = vmax.f32 %v13492_v50, 0.0 }
 0x696   :  { %v3613_v45 = vmax.f32 %v3612_v12, %v3436_v21  ;;  %v16641_v60 = vld [vmem:[#allocation142_spill] sm:$0xff]  ;;  %v9667_v21 = vld [vmem:[%s16078_s12 + $0x268] ss:$16 sps:$4 sm:$0xff]   ;;  %v9675_v50 = vld [vmem:[%s16078_s12 + $0x28c] ss:$16 sps:$4 sm:$0xff]  }
 0x697   :  { %v3061_v20 = vmul.f32 %v13489_v16, %v16641_v60  ;;  %v16642_v4 = vld [vmem:[#allocation146_spill] sm:$0xff]  ;;  %v3693_v33 = vpack.c.bf16 %v3533_v54, %v3533_v54  ;;  %v3510_v53 = vmax.f32 %v3509_v10, %v3380_v29  ;;  %v16647_v29 = vld [vmem:[#allocation167_spill] sm:$0xff]  ;;  %v3133_v60 = vmul.f32 %v13489_v16, %v12972_v46 }
 0x698   :  { %v3069_v51 = vmul.f32 %v13489_v16, %v16642_v4  ;;  %v16643_v26 = vld [vmem:[#allocation150_spill] sm:$0xff]  ;;  %v3614_v7 = vmax.f32 %v3613_v45, %v3444_v59  ;;  %5777 = vmatpush1.bf16.msra.mxu1 %v9658_v40  ;;  %5941 = vmatpush1.bf16.msra.mxu0 %v9661_v8  ;;  %v3109_v59 = vmul.f32 %v13489_v16, %v16647_v29 }
 0x699   :  { %v3077_v24 = vmul.f32 %v13489_v16, %v16643_v26  ;;  %v16644_v55 = vld [vmem:[#allocation154_spill] sm:$0xff]  ;;  %v3117_v40 = vmul.f32 %v13489_v16, %v12901_v31  ;;  %v4413_v8 = vunpack.c.l.b16 %v3693_v33  ;;  %5778 = vmatprep.subr.bf16.mxu1 %v9666_v15  ;;  %5942 = vmatprep.subr.bf16.mxu0 %v9669_v48  ;;  %v3511_v54 = vmax.f32 %v3510_v53, %v3388_v32 }
 0x69a   :  { %v3085_v42 = vmul.f32 %v13489_v16, %v16644_v55  ;;  %v16645_v52 = vld [vmem:[#allocation158_spill] sm:$0xff]  ;;  %v3615_v10 = vmax.f32 %v3614_v7, %v3452_v35  ;;  %v3125_v45 = vmul.f32 %v13489_v16, %v12958_v47  ;;  %v3141_v31 = vmul.f32 %v13489_v16, %v13012_v62 }
 0x69b   :  { %v3093_v22 = vmul.f32 %v13489_v16, %v16645_v52  ;;  %v16646_v12 = vld [vmem:[#allocation162_spill] sm:$0xff]  ;;  %v3149_v15 = vmul.f32 %v13489_v16, %v13034_v9  ;;  %v13586_v48 = vadd.f32 %v13507_v58, %v3029_v25  ;;  %v4430_v4 = vsel %vm4426_vm1, %v13509_v13, %v4413_v8  ;;  %v9673_v9 = vld [vmem:[%s16078_s12 + $0x288] ss:$16 sps:$4 sm:$0xff]   ;;  %v9681_v25 = vld [vmem:[%s16078_s12 + $0x2ac] ss:$16 sps:$4 sm:$0xff]  }
 0x69c   :  { %v3101_v43 = vmul.f32 %v13489_v16, %v16646_v12  ;;  %v9672_v38 = vld [vmem:[%s16078_s12 + $0x284] ss:$16 sps:$4 sm:$0xff]   ;;  %v3512_v32 = vmax.f32 %v3511_v54, %v3396_v49  ;;  %v3616_v35 = vmax.f32 %v3615_v10, %v3460_v23  ;;  %v13591_v26 = vadd.f32 %v13507_v58, %v3037_v0  ;;  %5779 = vmatpush1.bf16.msra.mxu1 %v9664_v37  ;;  %v9670_v46 = vld [vmem:[%s16078_s12 + $0x280] ss:$16 sps:$4 sm:$0xff]  }
 0x69d   :  { %v4438_v47 = vpack.c.b16 %v4430_v4, %v4430_v4  ;;  %5943 = vmatpush1.bf16.msra.mxu0 %v9667_v21  ;;  %v3412_v62 = vmax.f32 %v13456_v41, 0.0  ;;  %v13601_v16 = vadd.f32 %v13507_v58, %v3045_v5  ;;  %v13604_v13 = vadd.f32 %v13507_v58, %v3053_v36  ;;  %5780 = vmatprep.subr.bf16.mxu1 %v9672_v38  ;;  %v9678_v49 = vld [vmem:[%s16078_s12 + $0x2a4] ss:$16 sps:$4 sm:$0xff]   ;;  %v9682_v8 = vld [vmem:[%s16078_s12 + $0x2c0] ss:$16 sps:$4 sm:$0xff]  }
 0x69e   :  { %5944 = vmatprep.subr.bf16.mxu0 %v9675_v50  ;;  %v3476_v0 = vmax.f32 %v13495_v11, 0.0  ;;  %v3513_v41 = vmax.f32 %v3512_v32, %v3404_v3  ;;  %v3617_v5 = vmax.f32 %v3616_v35, %v3468_v6  ;;  %v13616_v23 = vadd.f32 %v13507_v58, %v3061_v20  ;;  %v9676_v20 = vld [vmem:[%s16078_s12 + $0x2a0] ss:$16 sps:$4 sm:$0xff]   ;;  %v9684_v52 = vld [vmem:[%s16078_s12 + $0x2c4] ss:$16 sps:$4 sm:$0xff]  }
 0x69f   :  { %5804 = vmatprep.mubr.bf16.mxu1 %v4438_v47  ;;  %5968 = vmatprep.mubr.bf16.mxu0 %v4438_v47  ;;  %v13619_v36 = vadd.f32 %v13507_v58, %v3069_v51  ;;  %v13622_v55 = vadd.f32 %v13507_v58, %v3077_v24  ;;  %v13625_v33 = vadd.f32 %v13507_v58, %v3085_v42  ;;  %v9679_v51 = vld [vmem:[%s16078_s12 + $0x2a8] ss:$16 sps:$4 sm:$0xff]   ;;  %v3359_v29 = vmax.f32 %v13586_v48, 0.0  ;;  %v9693_v4 = vld [vmem:[%s16078_s12 + $0x2ec] ss:$16 sps:$4 sm:$0xff]  }
 0x6a0   :  { %v3514_v53 = vmax.f32 %v3513_v41, %v3412_v62  ;;  %v3618_v11 = vmax.f32 %v3617_v5, %v3476_v0  ;;  %v3295_v57 = vadd.f32 %v13507_v58, %v3093_v22  ;;  %v3303_v3 = vadd.f32 %v13507_v58, %v3101_v43  ;;  %5781 = vmatpush1.bf16.msra.mxu1 %v9670_v46  ;;  %v9687_v22 = vld [vmem:[%s16078_s12 + $0x2cc] ss:$16 sps:$4 sm:$0xff]   ;;  %v9685_v38 = vld [vmem:[%s16078_s12 + $0x2c8] ss:$16 sps:$4 sm:$0xff]   ;;  %v16649_v0 = vld [vmem:[#allocation128_spill] sm:$0xff] }
 0x6a1   :  { %5945 = vmatpush1.bf16.msra.mxu0 %v9673_v9  ;;  %v3311_v24 = vadd.f32 %v13507_v58, %v3109_v59  ;;  %v3319_v42 = vadd.f32 %v13507_v58, %v3117_v40  ;;  %v13638_v7 = vadd.f32 %v13507_v58, %v3125_v45  ;;  %5782 = vmatprep.subr.bf16.mxu1 %v9678_v49  ;;  %v3367_v59 = vmax.f32 %v13591_v26, 0.0  ;;  %v9690_v45 = vld [vmem:[%s16078_s12 + $0x2e4] ss:$16 sps:$4 sm:$0xff]  }
 0x6a2   :  { %5946 = vmatprep.subr.bf16.mxu0 %v9681_v25  ;;  %v3515_v37 = vrot.slane %v3514_v53, 4  ;;  %v3619_v21 = vrot.slane %v3618_v11, 4  ;;  %v13647_v6 = vadd.f32 %v13507_v58, %v3133_v60  ;;  %v13650_v12 = vadd.f32 %v13507_v58, %v3141_v31  ;;  %v16650_v5 = vld [vmem:[#allocation132_spill] sm:$0xff] }
 0x6a3   :  { %v13653_v43 = vadd.f32 %v13507_v58, %v3149_v15  ;;  %v3375_v40 = vmax.f32 %v13601_v16, 0.0  ;;  %v3383_v10 = vmax.f32 %v13604_v13, 0.0  ;;  %v3423_v58 = vmax.f32 %v3295_v57, 0.0  ;;  %v16648_v16 = vld [vmem:[#allocation124_spill] sm:$0xff] }
 0x6a4   :  { %v3516_v50 = vmax.f32 %v3514_v53, %v3515_v37  ;;  %v3620_v54 = vmax.f32 %v3618_v11, %v3619_v21  ;;  %5783 = vmatpush1.bf16.msra.mxu1 %v9676_v20  ;;  %v3391_v60 = vmax.f32 %v13616_v23, 0.0  ;;  %v3399_v31 = vmax.f32 %v13619_v36, 0.0  ;;  %v9688_v36 = vld [vmem:[%s16078_s12 + $0x2e0] ss:$16 sps:$4 sm:$0xff]   ;;  %v9691_v53 = vld [vmem:[%s16078_s12 + $0x2e8] ss:$16 sps:$4 sm:$0xff]  }
 0x6a5   :  { %5947 = vmatpush1.bf16.msra.mxu0 %v9679_v51  ;;  %v3407_v15 = vmax.f32 %v13622_v55, 0.0  ;;  %v3431_v48 = vmax.f32 %v3303_v3, 0.0  ;;  %5784 = vmatprep.subr.bf16.mxu1 %v9684_v52  ;;  %v3415_v26 = vmax.f32 %v13625_v33, 0.0  ;;  %v3439_v47 = vmax.f32 %v3311_v24, 0.0  ;;  %v16651_v20 = vld [vmem:[#allocation136_spill] sm:$0xff] }
 0x6a6   :  { %5948 = vmatprep.subr.bf16.mxu0 %v9687_v22  ;;  %v3517_v32 = vrot.slane %v3516_v50, 2  ;;  %v3621_v35 = vrot.slane %v3620_v54, 2  ;;  %v3447_v46 = vmax.f32 %v3319_v42, 0.0  ;;  %v3547_v9 = vmax.f32 %v3359_v29, %v3367_v59  ;;  %v9696_v24 = vld [vmem:[%s16078_s12 + $0x304] ss:$16 sps:$4 sm:$0xff]  }
 0x6a7   :  { %v3651_v62 = vmax.f32 %v3423_v58, %v3431_v48  ;;  %v3028_v13 = vmul.f32 %v13485_v61, %v16648_v16  ;;  %v13679_v41 = vmul.f32 %v13485_v61, %v16649_v0  ;;  %v13683_v23 = vmul.f32 %v13485_v61, %v16650_v5  ;;  %v9699_v42 = vld [vmem:[%s16078_s12 + $0x30c] ss:$16 sps:$4 sm:$0xff]   ;;  %v16652_v37 = vld [vmem:[#allocation140_spill] sm:$0xff] }
 0x6a8   :  { %v3518_v49 = vmax.f32 %v3516_v50, %v3517_v32  ;;  %v3622_v25 = vmax.f32 %v3620_v54, %v3621_v35  ;;  %5785 = vmatpush1.bf16.msra.mxu1 %v9682_v8  ;;  %v3455_v11 = vmax.f32 %v13638_v7, 0.0  ;;  %v3548_v57 = vmax.f32 %v3547_v9, %v3375_v40  ;;  %v16653_v21 = vld [vmem:[#allocation144_spill] sm:$0xff]  ;;  %v9705_v0 = vld [vmem:[%s16078_s12 + $0x32c] ss:$16 sps:$4 sm:$0xff]  }
 0x6a9   :  { %5949 = vmatpush1.bf16.msra.mxu0 %v9685_v38  ;;  %v3652_v3 = vmax.f32 %v3651_v62, %v3439_v47  ;;  %v3052_v51 = vmul.f32 %v13485_v61, %v16651_v20  ;;  %5786 = vmatprep.subr.bf16.mxu1 %v9690_v45  ;;  %v3060_v7 = vmul.f32 %v13485_v61, %v16652_v37  ;;  %v16654_v8 = vld [vmem:[#allocation148_spill] sm:$0xff]  ;;  %v9697_v47 = vld [vmem:[%s16078_s12 + $0x308] ss:$16 sps:$4 sm:$0xff]   ;;  %v9711_v37 = vld [vmem:[%s16078_s12 + $0x34c] ss:$16 sps:$4 sm:$0xff]  }
 0x6aa   :  { %5950 = vmatprep.subr.bf16.mxu0 %v9693_v4  ;;  %v3519_v52 = vrot.slane %v3518_v49, 1  ;;  %v3623_v22 = vrot.slane %v3622_v25, 1  ;;  %v3068_v29 = vmul.f32 %v13485_v61, %v16653_v21  ;;  %v3549_v59 = vmax.f32 %v3548_v57, %v3383_v10  ;;  %v16655_v50 = vld [vmem:[#allocation152_spill] sm:$0xff] }
 0x6ab   :  { %v3653_v40 = vmax.f32 %v3652_v3, %v3447_v46  ;;  %v3076_v38 = vmul.f32 %v13485_v61, %v16654_v8  ;;  %v3084_v54 = vmul.f32 %v13485_v61, %v16655_v50  ;;  %v16656_v48 = vld [vmem:[#allocation156_spill] sm:$0xff]  ;;  %v3463_v46 = vmax.f32 %v13647_v6, 0.0 }
 0x6ac   :  { %v3520_v58 = vmax.f32 %v3518_v49, %v3519_v52  ;;  %v3624_v45 = vmax.f32 %v3622_v25, %v3623_v22  ;;  %v3092_v4 = vmul.f32 %v13485_v61, %v16656_v48  ;;  %v16657_v32 = vld [vmem:[#allocation160_spill] sm:$0xff]  ;;  %5787 = vmatpush1.bf16.msra.mxu1 %v9688_v36  ;;  %v3550_v9 = vmax.f32 %v3549_v59, %v3391_v60  ;;  %v16659_v52 = vld [vmem:[#allocation177_spill] sm:$0xff] }
 0x6ad   :  { %v3100_v35 = vmul.f32 %v13485_v61, %v16657_v32  ;;  %5951 = vmatpush1.bf16.msra.mxu0 %v9691_v53  ;;  %v9694_v10 = vld [vmem:[%s16078_s12 + $0x300] ss:$16 sps:$4 sm:$0xff]   ;;  %v3654_v62 = vmax.f32 %v3653_v40, %v3455_v11  ;;  %5788 = vmatprep.subr.bf16.mxu1 %v9696_v24  ;;  %v9702_v25 = vld [vmem:[%s16078_s12 + $0x324] ss:$16 sps:$4 sm:$0xff]   ;;  %v3471_v53 = vmax.f32 %v13650_v12, 0.0  ;;  %v3116_v6 = vmul.f32 %v13485_v61, %v12890_v34 }
 0x6ae   :  { %v16658_v16 = vld [vmem:[#allocation164_spill] sm:$0xff]  ;;  %5952 = vmatprep.subr.bf16.mxu0 %v9699_v42  ;;  %v3692_v5 = vpack.c.bf16 %v3520_v58, %v3520_v58  ;;  %v3700_v36 = vpack.c.bf16 %v3624_v45, %v3624_v45  ;;  %v3551_v60 = vmax.f32 %v3550_v9, %v3399_v31  ;;  %v3124_v57 = vmul.f32 %v13485_v61, %v12949_v18  ;;  %v9703_v18 = vld [vmem:[%s16078_s12 + $0x328] ss:$16 sps:$4 sm:$0xff]   ;;  %v9717_v58 = vld [vmem:[%s16078_s12 + $0x36c] ss:$16 sps:$4 sm:$0xff]  }
 0x6af   :  { %v3108_v49 = vmul.f32 %v13485_v61, %v16658_v16  ;;  %v3655_v11 = vmax.f32 %v3654_v62, %v3463_v46  ;;  %v3132_v3 = vmul.f32 %v13485_v61, %v12966_v30  ;;  %v3140_v42 = vmul.f32 %v13485_v61, %v12994_v19  ;;  %v9700_v34 = vld [vmem:[%s16078_s12 + $0x320] ss:$16 sps:$4 sm:$0xff]   ;;  %v9715_v16 = vld [vmem:[%s16078_s12 + $0x368] ss:$16 sps:$4 sm:$0xff]  }
 0x6b0   :  { %v4412_v20 = vunpack.c.l.b16 %v3692_v5  ;;  %v4420_v24 = vunpack.c.l.b16 %v3700_v36  ;;  %v3148_v22 = vmul.f32 %v13485_v61, %v16659_v52  ;;  %5789 = vmatpush1.bf16.msra.mxu1 %v9694_v10  ;;  %v3479_v30 = vmax.f32 %v13653_v43, 0.0  ;;  %v9708_v61 = vld [vmem:[%s16078_s12 + $0x344] ss:$16 sps:$4 sm:$0xff]   ;;  %v9706_v33 = vld [vmem:[%s16078_s12 + $0x340] ss:$16 sps:$4 sm:$0xff]  }
 0x6b1   :  { %5953 = vmatpush1.bf16.msra.mxu0 %v9697_v47  ;;  %v3552_v12 = vmax.f32 %v3551_v60, %v3407_v15  ;;  %v3656_v31 = vmax.f32 %v3655_v11, %v3471_v53  ;;  %v13748_v19 = vadd.f32 %v13501_v63, %v3028_v13  ;;  %5790 = vmatprep.subr.bf16.mxu1 %v9702_v25  ;;  %v9712_v9 = vld [vmem:[%s16078_s12 + $0x360] ss:$16 sps:$4 sm:$0xff]   ;;  %v9723_v53 = vld [vmem:[%s16078_s12 + $0x38c] ss:$16 sps:$4 sm:$0xff]  }
 0x6b2   :  { %5954 = vmatprep.subr.bf16.mxu0 %v9705_v0  ;;  %v13757_v21 = vsel %vm4426_vm1, %v4420_v24, %v4412_v20  ;;  %v3238_v55 = vadd.f32 %v13501_v63, %v13679_v41  ;;  %v13763_v43 = vadd.f32 %v13501_v63, %v13683_v23  ;;  %v13768_v59 = vadd.f32 %v13501_v63, %v3052_v51 }
 0x6b3   :  { %v3553_v15 = vmax.f32 %v3552_v12, %v3415_v26  ;;  %v3657_v13 = vmax.f32 %v3656_v31, %v3479_v30  ;;  %v13771_v40 = vadd.f32 %v13501_v63, %v3060_v7  ;;  %v13774_v8 = vadd.f32 %v13501_v63, %v3068_v29  ;;  %v9709_v26 = vld [vmem:[%s16078_s12 + $0x348] ss:$16 sps:$4 sm:$0xff]  }
 0x6b4   :  { %v13777_v50 = vadd.f32 %v13501_v63, %v3076_v38  ;;  %v13780_v41 = vadd.f32 %v13501_v63, %v3084_v54  ;;  %5791 = vmatpush1.bf16.msra.mxu1 %v9700_v34  ;;  %v3294_v7 = vadd.f32 %v13501_v63, %v3092_v4  ;;  %v3302_v29 = vadd.f32 %v13501_v63, %v3100_v35  ;;  %v9714_v54 = vld [vmem:[%s16078_s12 + $0x364] ss:$16 sps:$4 sm:$0xff]   ;;  %v9721_v34 = vld [vmem:[%s16078_s12 + $0x388] ss:$16 sps:$4 sm:$0xff]  }
 0x6b5   :  { %5955 = vmatpush1.bf16.msra.mxu0 %v9703_v18  ;;  %v3554_v23 = vrot.slane %v3553_v15, 4  ;;  %v3658_v51 = vrot.slane %v3657_v13, 4  ;;  %v3684_v38 = vrot.slane %v13404_v1, 4  ;;  %5792 = vmatprep.subr.bf16.mxu1 %v9708_v61  ;;  %v3310_v45 = vadd.f32 %v13501_v63, %v3108_v49  ;;  %v9729_v61 = vld [vmem:[%s16078_s12 + $0x3ac] ss:$16 sps:$4 sm:$0xff]  }
 0x6b6   :  { %5956 = vmatprep.subr.bf16.mxu0 %v9711_v37  ;;  %v13799_v48 = vadd.f32 %v13501_v63, %v3116_v6  ;;  %v13802_v4 = vadd.f32 %v13501_v63, %v3124_v57  ;;  %v13805_v10 = vadd.f32 %v13501_v63, %v3132_v3  ;;  %v13808_v47 = vadd.f32 %v13501_v63, %v3140_v42 }
 0x6b7   :  { %v3555_v32 = vmax.f32 %v3553_v15, %v3554_v23  ;;  %v3659_v35 = vmax.f32 %v3657_v13, %v3658_v51  ;;  %v13812_v46 = vrot.slane %v13293_v28, %v16601_v27  ;;  %v13818_v62 = vadd.f32 %v13501_v63, %v3148_v22  ;;  %v9720_v63 = vld [vmem:[%s16078_s12 + $0x384] ss:$16 sps:$4 sm:$0xff]   ;;  %v9718_v22 = vld [vmem:[%s16078_s12 + $0x380] ss:$16 sps:$4 sm:$0xff]   ;;  %v16661_v15 = vld [vmem:[#allocation131_spill] sm:$0xff] }
 0x6b8   :  { %5793 = vmatpush1.bf16.msra.mxu1 %v9706_v33  ;;  %v3358_v0 = vmax.f32 %v13748_v19, 0.0  ;;  %v3366_v5 = vmax.f32 %v3238_v55, 0.0  ;;  %v3181_v28 = vrot.slane %v13343_v14, %v16605_v2  ;;  %v13827_v36 = vmax.f32 %v13404_v1, %v3684_v38  ;;  %v9726_v19 = vld [vmem:[%s16078_s12 + $0x3a4] ss:$16 sps:$4 sm:$0xff]   ;;  %v16660_v55 = vld [vmem:[#allocation127_spill] sm:$0xff] }
 0x6b9   :  { %5957 = vmatpush1.bf16.msra.mxu0 %v9709_v26  ;;  %v3556_v49 = vrot.slane %v3555_v32, 2  ;;  %v3660_v25 = vrot.slane %v3659_v35, 2  ;;  %5794 = vmatprep.subr.bf16.mxu1 %v9714_v54  ;;  %v3422_v6 = vmax.f32 %v3294_v7, 0.0  ;;  %v3430_v60 = vmax.f32 %v3302_v29, 0.0  ;;  %v16663_v51 = vld [vmem:[#allocation139_spill] sm:$0xff] }
 0x6ba   :  { %5958 = vmatprep.subr.bf16.mxu0 %v9717_v58  ;;  %v3374_v3 = vmax.f32 %v13763_v43, 0.0  ;;  %v3382_v20 = vmax.f32 %v13768_v59, 0.0  ;;  %v3390_v1 = vmax.f32 %v13771_v40, 0.0  ;;  %v3398_v24 = vmax.f32 %v13774_v8, 0.0  ;;  %v16662_v59 = vld [vmem:[#allocation135_spill] sm:$0xff] }
 0x6bb   :  { %v3557_v11 = vmax.f32 %v3555_v32, %v3556_v49  ;;  %v3661_v57 = vmax.f32 %v3659_v35, %v3660_v25  ;;  %v3406_v42 = vmax.f32 %v13777_v50, 0.0  ;;  %v3438_v52 = vmax.f32 %v3310_v45, 0.0  ;;  %v16664_v29 = vld [vmem:[#allocation143_spill] sm:$0xff]  ;;  %v9724_v32 = vld [vmem:[%s16078_s12 + $0x3a0] ss:$16 sps:$4 sm:$0xff]  }
 0x6bc   :  { %5795 = vmatpush1.bf16.msra.mxu1 %v9712_v9  ;;  %v3534_v12 = vmax.f32 %v3358_v0, %v3366_v5  ;;  %v3638_v31 = vmax.f32 %v3422_v6, %v3430_v60  ;;  %v3446_v37 = vmax.f32 %v13799_v48, 0.0  ;;  %v3031_v43 = vmul.f32 %v13309_v17, %v16660_v55  ;;  %v16665_v54 = vld [vmem:[#allocation147_spill] sm:$0xff]  ;;  %v9732_v0 = vld [vmem:[%s16078_s12 + $0x3c4] ss:$16 sps:$4 sm:$0xff]  }
 0x6bd   :  { %5959 = vmatpush1.bf16.msra.mxu0 %v9715_v16  ;;  %v3558_v18 = vrot.slane %v3557_v11, 1  ;;  %v3662_v30 = vrot.slane %v3661_v57, 1  ;;  %5796 = vmatprep.subr.bf16.mxu1 %v9720_v63  ;;  %v3039_v13 = vmul.f32 %v13309_v17, %v16661_v15  ;;  %v3047_v40 = vmul.f32 %v13309_v17, %v16662_v59  ;;  %v16666_v45 = vld [vmem:[#allocation151_spill] sm:$0xff] }
 0x6be   :  { %5960 = vmatprep.subr.bf16.mxu0 %v9723_v53  ;;  %v3535_v26 = vmax.f32 %v3534_v12, %v3374_v3  ;;  %v3639_v23 = vmax.f32 %v3638_v31, %v3438_v52  ;;  %v3055_v7 = vmul.f32 %v13309_v17, %v16663_v51  ;;  %v3063_v38 = vmul.f32 %v13309_v17, %v16664_v29  ;;  %v9727_v35 = vld [vmem:[%s16078_s12 + $0x3a8] ss:$16 sps:$4 sm:$0xff]   ;;  %v9735_v5 = vld [vmem:[%s16078_s12 + $0x3cc] ss:$16 sps:$4 sm:$0xff]  }
 0x6bf   :  { %v3559_v8 = vmax.f32 %v3557_v11, %v3558_v18  ;;  %v3663_v33 = vmax.f32 %v3661_v57, %v3662_v30  ;;  %v3071_v58 = vmul.f32 %v13309_v17, %v16665_v54  ;;  %v3079_v48 = vmul.f32 %v13309_v17, %v16666_v45  ;;  %v16667_v6 = vld [vmem:[#allocation155_spill] sm:$0xff]  ;;  %v16668_v51 = vld [vmem:[#allocation125_spill] sm:$0xff] }
 0x6c0   :  { %5797 = vmatpush1.bf16.msra.mxu1 %v9718_v22  ;;  %v3454_v49 = vmax.f32 %v13802_v4, 0.0  ;;  %v3536_v25 = vmax.f32 %v3535_v26, %v3382_v20  ;;  %v3462_v63 = vmax.f32 %v13805_v10, 0.0  ;;  %v3640_v53 = vmax.f32 %v3639_v23, %v3446_v37  ;;  %v9733_v10 = vld [vmem:[%s16078_s12 + $0x3c8] ss:$16 sps:$4 sm:$0xff]   ;;  %v9747_v26 = vld [vmem:[%s16078_s12 + $0x40c] ss:$16 sps:$4 sm:$0xff]  }
 0x6c1   :  { %5961 = vmatpush1.bf16.msra.mxu0 %v9721_v34  ;;  %v3695_v9 = vpack.c.bf16 %v3559_v8, %v3559_v8  ;;  %v3703_v16 = vpack.c.bf16 %v3663_v33, %v3663_v33  ;;  %5798 = vmatprep.subr.bf16.mxu1 %v9726_v19  ;;  %v3087_v60 = vmul.f32 %v13309_v17, %v16667_v6  ;;  %v9730_v17 = vld [vmem:[%s16078_s12 + $0x3c0] ss:$16 sps:$4 sm:$0xff]   ;;  %v9738_v19 = vld [vmem:[%s16078_s12 + $0x3e4] ss:$16 sps:$4 sm:$0xff]   ;;  %v3470_v37 = vmax.f32 %v13808_v47, 0.0  ;;  %v16670_v45 = vld [vmem:[#allocation133_spill] sm:$0xff] }
 0x6c2   :  { %5962 = vmatprep.subr.bf16.mxu0 %v9729_v61  ;;  %v3233_v11 = vadd.f32 %v13357_v56, %v3031_v43  ;;  %v3537_v3 = vmax.f32 %v3536_v25, %v3390_v1  ;;  %v3241_v20 = vadd.f32 %v13357_v56, %v3039_v13  ;;  %v3641_v52 = vmax.f32 %v3640_v53, %v3454_v49  ;;  %v9741_v61 = vld [vmem:[%s16078_s12 + $0x3ec] ss:$16 sps:$4 sm:$0xff]  }
 0x6c3   :  { %v4415_v4 = vunpack.c.l.b16 %v3695_v9  ;;  %v4423_v57 = vunpack.c.l.b16 %v3703_v16  ;;  %v3249_v22 = vadd.f32 %v13357_v56, %v3047_v40  ;;  %v3257_v34 = vadd.f32 %v13357_v56, %v3055_v7  ;;  %v16672_v16 = vld [vmem:[#allocation141_spill] sm:$0xff] }
 0x6c4   :  { %v13888_v18 = vadd.f32 %v13357_v56, %v3063_v38  ;;  %5799 = vmatpush1.bf16.msra.mxu1 %v9724_v32  ;;  %v3538_v30 = vmax.f32 %v3537_v3, %v3398_v24  ;;  %v13898_v12 = vadd.f32 %v13357_v56, %v3071_v58  ;;  %v3361_v31 = vmax.f32 %v3233_v11, 0.0  ;;  %v16673_v25 = vld [vmem:[#allocation145_spill] sm:$0xff] }
 0x6c5   :  { %5963 = vmatpush1.bf16.msra.mxu0 %v9727_v35  ;;  %v4432_v1 = vsel %vm4426_vm1, %v4423_v57, %v4415_v4  ;;  %5800 = vmatprep.subr.bf16.mxu1 %v9732_v0  ;;  %v3642_v55 = vmax.f32 %v3641_v52, %v3462_v63  ;;  %v13908_v43 = vadd.f32 %v13357_v56, %v3079_v48  ;;  %v3369_v24 = vmax.f32 %v3241_v20, 0.0  ;;  %v16671_v35 = vld [vmem:[#allocation137_spill] sm:$0xff] }
 0x6c6   :  { %5964 = vmatprep.subr.bf16.mxu0 %v9735_v5  ;;  %v3414_v15 = vmax.f32 %v13780_v41, 0.0  ;;  %v3539_v13 = vmax.f32 %v3538_v30, %v3406_v42  ;;  %v13914_v59 = vadd.f32 %v13357_v56, %v3087_v60  ;;  %v13920_v40 = vrot.slane %v3181_v28, %v16447_v44  ;;  %v9736_v41 = vld [vmem:[%s16078_s12 + $0x3e0] ss:$16 sps:$4 sm:$0xff]   ;;  %v9739_v56 = vld [vmem:[%s16078_s12 + $0x3e8] ss:$16 sps:$4 sm:$0xff]  }
 0x6c7   :  { %v3478_v47 = vmax.f32 %v13818_v62, 0.0  ;;  %v3643_v8 = vmax.f32 %v3642_v55, %v3470_v37  ;;  %v4437_v50 = vpack.c.b16 %v13757_v21, %v13757_v21  ;;  %v3377_v14 = vmax.f32 %v3249_v22, 0.0  ;;  %v9744_v62 = vld [vmem:[%s16078_s12 + $0x404] ss:$16 sps:$4 sm:$0xff]   ;;  %v16669_v21 = vld [vmem:[#allocation129_spill] sm:$0xff] }
 0x6c8   :  { %5801 = vmatpush1.bf16.msra.mxu1 %v9730_v17  ;;  %v3540_v42 = vmax.f32 %v3539_v13, %v3414_v15  ;;  %v3573_v28 = vmax.f32 %v3361_v31, %v3369_v24  ;;  %v3686_v33 = vrot.slane %v13827_v36, 2  ;;  %v3030_v7 = vmul.f32 %v13812_v46, %v16668_v51  ;;  %v9742_v5 = vld [vmem:[%s16078_s12 + $0x400] ss:$16 sps:$4 sm:$0xff]   ;;  %v9745_v11 = vld [vmem:[%s16078_s12 + $0x408] ss:$16 sps:$4 sm:$0xff]  }
 0x6c9   :  { %5965 = vmatpush1.bf16.msra.mxu0 %v9733_v10  ;;  %5802 = vmatprep.subr.bf16.mxu1 %v9738_v19  ;;  %v3644_v23 = vmax.f32 %v3643_v8, %v3478_v47  ;;  %v3038_v29 = vmul.f32 %v13812_v46, %v16669_v21  ;;  %v3385_v54 = vmax.f32 %v3257_v34, 0.0  ;;  %v3046_v48 = vmul.f32 %v13812_v46, %v16670_v45  ;;  %v16674_v3 = vld [vmem:[#allocation149_spill] sm:$0xff]  ;;  %v9750_v34 = vld [vmem:[%s16078_s12 + $0x424] ss:$16 sps:$4 sm:$0xff]  }
 0x6ca   :  { %5966 = vmatprep.subr.bf16.mxu0 %v9741_v61  ;;  %v3541_v38 = vrot.slane %v3540_v42, 4  ;;  %v3574_v58 = vmax.f32 %v3573_v28, %v3377_v14  ;;  %v3054_v9 = vmul.f32 %v13812_v46, %v16671_v35  ;;  %v3062_v49 = vmul.f32 %v13812_v46, %v16672_v16  ;;  %v16675_v52 = vld [vmem:[#allocation153_spill] sm:$0xff]  ;;  %v9754_v16 = vld [vmem:[%s16078_s12 + $0x440] ss:$16 sps:$4 sm:$0xff]  }
 0x6cb   :  { %v3645_v32 = vrot.slane %v3644_v23, 4  ;;  %v3070_v0 = vmul.f32 %v13812_v46, %v16673_v25  ;;  %v4440_v63 = vpack.c.b16 %v4432_v1, %v4432_v1  ;;  %v3393_v6 = vmax.f32 %v13888_v18, 0.0  ;;  %v9753_v18 = vld [vmem:[%s16078_s12 + $0x42c] ss:$16 sps:$4 sm:$0xff]  }
 0x6cc   :  { %5803 = vmatpush1.bf16.msra.mxu1 %v9736_v41  ;;  %v3542_v53 = vmax.f32 %v3540_v42, %v3541_v38  ;;  %v3575_v60 = vmax.f32 %v3574_v58, %v3385_v54  ;;  %v3401_v57 = vmax.f32 %v13898_v12, 0.0  ;;  %v3078_v20 = vmul.f32 %v13812_v46, %v16674_v3  ;;  %v16676_v30 = vld [vmem:[#allocation157_spill] sm:$0xff]  ;;  %v16680_v41 = vld [vmem:[#allocation172_spill] sm:$0xff]  ;;  %v16683_v38 = vld [vmem:[#allocation178_spill] sm:$0xff] }
 0x6cd   :  { %5967 = vmatpush1.bf16.msra.mxu0 %v9739_v56  ;;  %5813 = vmatprep.subr.bf16.mxu1 %v9744_v62  ;;  %v3646_v4 = vmax.f32 %v3644_v23, %v3645_v32  ;;  %v3086_v22 = vmul.f32 %v13812_v46, %v16675_v52  ;;  %v13969_v1 = vmax.f32 %v13827_v36, %v3686_v33  ;;  %v16677_v19 = vld [vmem:[#allocation161_spill] sm:$0xff]  ;;  %v9748_v36 = vld [vmem:[%s16078_s12 + $0x420] ss:$16 sps:$4 sm:$0xff]   ;;  %v3409_v47 = vmax.f32 %v13908_v43, 0.0  ;;  %v9756_v42 = vld [vmem:[%s16078_s12 + $0x444] ss:$16 sps:$4 sm:$0xff]  }
 0x6ce   :  { %5977 = vmatprep.subr.bf16.mxu0 %v9747_v26  ;;  %v3543_v17 = vrot.slane %v3542_v53, 2  ;;  %v3576_v10 = vmax.f32 %v3575_v60, %v3393_v6  ;;  %v3094_v12 = vmul.f32 %v13812_v46, %v16676_v30  ;;  %v3102_v61 = vmul.f32 %v13812_v46, %v16677_v19  ;;  %v16678_v37 = vld [vmem:[#allocation165_spill] sm:$0xff]  ;;  %v16682_v62 = vld [vmem:[#allocation174_spill] sm:$0xff] }
 0x6cf   :  { %5805 = vmatmul.mubr.bf16.vlgmr.msra.gmra.mrb[80].mxu1 %v4437_v50  ;;  %v3647_v31 = vrot.slane %v3646_v4, 2  ;;  %v3110_v55 = vmul.f32 %v13812_v46, %v16678_v37  ;;  %v16679_v24 = vld [vmem:[#allocation169_spill] sm:$0xff]  ;;  %v3126_v56 = vmul.f32 %v13812_v46, %v16680_v41  ;;  %v3417_v28 = vmax.f32 %v13914_v59, 0.0  ;;  %v9774_v41 = vld [vmem:[%s16078_s12 + $0x4a4] ss:$16 sps:$4 sm:$0xff]  }
 0x6d0   :  { %5969 = vmatmul.mubr.bf16.vlgmr.msra.gmra.mrb[96].mxu0 %v4437_v50  ;;  %v3118_v15 = vmul.f32 %v13812_v46, %v16679_v24  ;;  %5814 = vmatpush1.bf16.msra.mxu1 %v9742_v5  ;;  %v3544_v13 = vmax.f32 %v3542_v53, %v3543_v17  ;;  %v3577_v8 = vmax.f32 %v3576_v10, %v3401_v57  ;;  %v9751_v50 = vld [vmem:[%s16078_s12 + $0x428] ss:$16 sps:$4 sm:$0xff]   ;;  %v9759_v23 = vld [vmem:[%s16078_s12 + $0x44c] ss:$16 sps:$4 sm:$0xff]  }
 0x6d1   :  { %5845 = vmatprep.mubr.bf16.mxu1 %v4440_v63  ;;  %5978 = vmatpush1.bf16.msra.mxu0 %v9745_v11  ;;  %v3648_v14 = vmax.f32 %v3646_v4, %v3647_v31  ;;  %v16681_v33 = vld [vmem:[#allocation173_spill] sm:$0xff]  ;;  %v3142_v26 = vmul.f32 %v13812_v46, %v16682_v62  ;;  %v3150_v54 = vmul.f32 %v13812_v46, %v16683_v38 }
 0x6d2   :  { %6009 = vmatprep.mubr.bf16.mxu0 %v4440_v63  ;;  %v3134_v43 = vmul.f32 %v13812_v46, %v16681_v33  ;;  %5815 = vmatprep.subr.bf16.mxu1 %v9750_v34  ;;  %v3545_v51 = vrot.slane %v3544_v13, 1  ;;  %v3578_v21 = vmax.f32 %v3577_v8, %v3409_v47  ;;  %v14002_v58 = vadd.f32 %v13920_v40, %v3030_v7  ;;  %v9763_v30 = vld [vmem:[%s16078_s12 + $0x468] ss:$16 sps:$4 sm:$0xff]   ;;  %v9771_v37 = vld [vmem:[%s16078_s12 + $0x48c] ss:$16 sps:$4 sm:$0xff]  }
 0x6d3   :  { %5979 = vmatprep.subr.bf16.mxu0 %v9753_v18  ;;  %v3649_v59 = vrot.slane %v3648_v14, 1  ;;  %v3240_v45 = vadd.f32 %v13920_v40, %v3038_v29  ;;  %v14006_v32 = vadd.f32 %v13920_v40, %v3046_v48  ;;  %v14009_v35 = vadd.f32 %v13920_v40, %v3054_v9  ;;  %v9757_v29 = vld [vmem:[%s16078_s12 + $0x448] ss:$16 sps:$4 sm:$0xff]   ;;  %v9762_v48 = vld [vmem:[%s16078_s12 + $0x464] ss:$16 sps:$4 sm:$0xff]  }
 0x6d4   :  { %5816 = vmatpush1.bf16.msra.mxu1 %v9748_v36  ;;  %v3546_v25 = vmax.f32 %v3544_v13, %v3545_v51  ;;  %v3579_v5 = vmax.f32 %v3578_v21, %v3417_v28  ;;  %v14015_v46 = vadd.f32 %v13920_v40, %v3062_v49  ;;  %v14018_v7 = vadd.f32 %v13920_v40, %v3070_v0  ;;  %v9765_v0 = vld [vmem:[%s16078_s12 + $0x46c] ss:$16 sps:$4 sm:$0xff]   ;;  %v9769_v8 = vld [vmem:[%s16078_s12 + $0x488] ss:$16 sps:$4 sm:$0xff]  }
 0x6d5   :  { %5980 = vmatpush1.bf16.msra.mxu0 %v9751_v50  ;;  %5817 = vmatprep.subr.bf16.mxu1 %v9756_v42  ;;  %v3650_v9 = vmax.f32 %v3648_v14, %v3649_v59  ;;  %v3688_v63 = vrot.slane %v13969_v1, 1  ;;  %v14028_v53 = vadd.f32 %v13920_v40, %v3078_v20  ;;  %v14031_v49 = vadd.f32 %v13920_v40, %v3086_v22  ;;  %v9760_v22 = vld [vmem:[%s16078_s12 + $0x460] ss:$16 sps:$4 sm:$0xff]   ;;  %v9777_v42 = vld [vmem:[%s16078_s12 + $0x4ac] ss:$16 sps:$4 sm:$0xff]  }
 0x6d6   :  { %5981 = vmatprep.subr.bf16.mxu0 %v9759_v23  ;;  %v3694_v6 = vpack.c.bf16 %v3546_v25, %v3546_v25  ;;  %v3580_v60 = vrot.slane %v3579_v5, 4  ;;  %v3296_v11 = vadd.f32 %v13920_v40, %v3094_v12  ;;  %v3304_v4 = vadd.f32 %v13920_v40, %v3102_v61  ;;  %v9768_v12 = vld [vmem:[%s16078_s12 + $0x484] ss:$16 sps:$4 sm:$0xff]  }
 0x6d7   :  { %v3702_v57 = vpack.c.bf16 %v3650_v9, %v3650_v9  ;;  %v3312_v3 = vadd.f32 %v13920_v40, %v3110_v55  ;;  %v3320_v20 = vadd.f32 %v13920_v40, %v3118_v15  ;;  %v14041_v52 = vadd.f32 %v13920_v40, %v3126_v56 }
 0x6d8   :  { %5818 = vmatpush1.bf16.msra.mxu1 %v9754_v16  ;;  %v4414_v34 = vunpack.c.l.b16 %v3694_v6  ;;  %v3581_v18 = vmax.f32 %v3579_v5, %v3580_v60  ;;  %v14047_v17 = vadd.f32 %v13920_v40, %v3134_v43  ;;  %v14050_v10 = vadd.f32 %v13920_v40, %v3142_v26  ;;  %v9772_v26 = vld [vmem:[%s16078_s12 + $0x4a0] ss:$16 sps:$4 sm:$0xff]   ;;  %v9781_v6 = vld [vmem:[%s16078_s12 + $0x4c8] ss:$16 sps:$4 sm:$0xff]  }
 0x6d9   :  { %5982 = vmatpush1.bf16.msra.mxu0 %v9757_v29  ;;  %5819 = vmatprep.subr.bf16.mxu1 %v9762_v48  ;;  %v4422_v31 = vunpack.c.l.b16 %v3702_v57  ;;  %v3689_v19 = vmax.f32 %v13969_v1, %v3688_v63  ;;  %v14060_v61 = vadd.f32 %v13920_v40, %v3150_v54  ;;  %v3360_v24 = vmax.f32 %v14002_v58, 0.0  ;;  %v9766_v1 = vld [vmem:[%s16078_s12 + $0x480] ss:$16 sps:$4 sm:$0xff]   ;;  %v9775_v54 = vld [vmem:[%s16078_s12 + $0x4a8] ss:$16 sps:$4 sm:$0xff]  }
 0x6da   :  { %5983 = vmatprep.subr.bf16.mxu0 %v9765_v0  ;;  %v3582_v55 = vrot.slane %v3581_v18, 2  ;;  %v3368_v15 = vmax.f32 %v3240_v45, 0.0  ;;  %v3424_v13 = vmax.f32 %v3296_v11, 0.0  ;;  %v3432_v47 = vmax.f32 %v3304_v4, 0.0  ;;  %v9780_v58 = vld [vmem:[%s16078_s12 + $0x4c4] ss:$16 sps:$4 sm:$0xff]  }
 0x6db   :  { %v14067_v36 = vsel %vm4426_vm1, %v4422_v31, %v4414_v34  ;;  %v3705_v56 = vpack.c.bf16 %v3689_v19, %v3689_v19  ;;  %v3376_v50 = vmax.f32 %v14006_v32, 0.0  ;;  %v3440_v28 = vmax.f32 %v3312_v3, 0.0  ;;  %v9783_v32 = vld [vmem:[%s16078_s12 + $0x4cc] ss:$16 sps:$4 sm:$0xff]   ;;  %v9778_v48 = vld [vmem:[%s16078_s12 + $0x4c0] ss:$16 sps:$4 sm:$0xff]  }
 0x6dc   :  { %5820 = vmatpush1.bf16.msra.mxu1 %v9760_v22  ;;  %v3583_v40 = vmax.f32 %v3581_v18, %v3582_v55  ;;  %v3560_v33 = vmax.f32 %v3360_v24, %v3368_v15  ;;  %v3664_v43 = vmax.f32 %v3424_v13, %v3432_v47  ;;  %v3384_v62 = vmax.f32 %v14009_v35, 0.0  ;;  %v9789_v11 = vld [vmem:[%s16078_s12 + $0x4ec] ss:$16 sps:$4 sm:$0xff]   ;;  %v9790_v31 = vld [vmem:[%s16078_s12 + $0x500] ss:$16 sps:$4 sm:$0xff]  }
 0x6dd   :  { %5984 = vmatpush1.bf16.msra.mxu0 %v9763_v30  ;;  %5821 = vmatprep.subr.bf16.mxu1 %v9768_v12  ;;  %v3448_v51 = vmax.f32 %v3320_v20, 0.0  ;;  %v4425_v59 = vunpack.c.l.b16 %v3705_v56  ;;  %v3392_v45 = vmax.f32 %v14015_v46, 0.0  ;;  %v3456_v16 = vmax.f32 %v14041_v52, 0.0  ;;  %v9784_v52 = vld [vmem:[%s16078_s12 + $0x4e0] ss:$16 sps:$4 sm:$0xff]  }
 0x6de   :  { %5985 = vmatprep.subr.bf16.mxu0 %v9771_v37  ;;  %v3584_v14 = vrot.slane %v3583_v40, 1  ;;  %v3561_v21 = vmax.f32 %v3560_v33, %v3376_v50  ;;  %v3665_v38 = vmax.f32 %v3664_v43, %v3440_v28  ;;  %v3400_v29 = vmax.f32 %v14018_v7, 0.0  ;;  %v9786_v7 = vld [vmem:[%s16078_s12 + $0x4e4] ss:$16 sps:$4 sm:$0xff]   ;;  %v9795_v30 = vld [vmem:[%s16078_s12 + $0x50c] ss:$16 sps:$4 sm:$0xff]  }
 0x6df   :  { %v3464_v46 = vmax.f32 %v14047_v17, 0.0  ;;  %v3408_v60 = vmax.f32 %v14028_v53, 0.0  ;;  %v3472_v57 = vmax.f32 %v14050_v10, 0.0  ;;  %v3416_v22 = vmax.f32 %v14031_v49, 0.0  ;;  %v9787_v17 = vld [vmem:[%s16078_s12 + $0x4e8] ss:$16 sps:$4 sm:$0xff]  }
 0x6e0   :  { %5822 = vmatpush1.bf16.msra.mxu1 %v9766_v1  ;;  %v3585_v23 = vmax.f32 %v3583_v40, %v3584_v14  ;;  %v3562_v25 = vmax.f32 %v3561_v21, %v3384_v62  ;;  %v3666_v5 = vmax.f32 %v3665_v38, %v3448_v51  ;;  %v3480_v53 = vmax.f32 %v14060_v61, 0.0  ;;  %v9792_v10 = vld [vmem:[%s16078_s12 + $0x504] ss:$16 sps:$4 sm:$0xff]   ;;  %v9793_v37 = vld [vmem:[%s16078_s12 + $0x508] ss:$16 sps:$4 sm:$0xff]  }
 0x6e1   :  { %5986 = vmatpush1.bf16.msra.mxu0 %v9769_v8  ;;  %5823 = vmatprep.subr.bf16.mxu1 %v9774_v41  ;;  %v9798_v55 = vld [vmem:[%s16078_s12 + $0x524] ss:$16 sps:$4 sm:$0xff]   ;;  %v9801_v24 = vld [vmem:[%s16078_s12 + $0x52c] ss:$16 sps:$4 sm:$0xff]   ;;  %v9796_v1 = vld [vmem:[%s16078_s12 + $0x520] ss:$16 sps:$4 sm:$0xff]  }
 0x6e2   :  { %5987 = vmatprep.subr.bf16.mxu0 %v9777_v42  ;;  %v3697_v35 = vpack.c.bf16 %v3585_v23, %v3585_v23  ;;  %v3563_v63 = vmax.f32 %v3562_v25, %v3392_v45  ;;  %v3667_v0 = vmax.f32 %v3666_v5, %v3456_v16  ;;  %v9799_v8 = vld [vmem:[%s16078_s12 + $0x528] ss:$16 sps:$4 sm:$0xff]   ;;  %v9804_v41 = vld [vmem:[%s16078_s12 + $0x544] ss:$16 sps:$4 sm:$0xff]   ;;  %v9807_v56 = vld [vmem:[%s16078_s12 + $0x54c] ss:$16 sps:$4 sm:$0xff]  }
 0x6e3   :  { %v9802_v14 = vld [vmem:[%s16078_s12 + $0x540] ss:$16 sps:$4 sm:$0xff]   ;;  %v9805_v43 = vld [vmem:[%s16078_s12 + $0x548] ss:$16 sps:$4 sm:$0xff]   ;;  %v9810_v62 = vld [vmem:[%s16078_s12 + $0x564] ss:$16 sps:$4 sm:$0xff]  }
 0x6e4   :  { %5824 = vmatpush1.bf16.msra.mxu1 %v9772_v26  ;;  %v4417_v9 = vunpack.c.l.b16 %v3697_v35  ;;  %v3564_v3 = vmax.f32 %v3563_v63, %v3400_v29  ;;  %v3668_v20 = vmax.f32 %v3667_v0, %v3464_v46  ;;  %v9813_v26 = vld [vmem:[%s16078_s12 + $0x56c] ss:$16 sps:$4 sm:$0xff]   ;;  %v9808_v21 = vld [vmem:[%s16078_s12 + $0x560] ss:$16 sps:$4 sm:$0xff]   ;;  %v9817_v5 = vld [vmem:[%s16078_s12 + $0x588] ss:$16 sps:$4 sm:$0xff]  }
 0x6e5   :  { %5988 = vmatpush1.bf16.msra.mxu0 %v9775_v54  ;;  %5825 = vmatprep.subr.bf16.mxu1 %v9780_v58  ;;  %v9811_v58 = vld [vmem:[%s16078_s12 + $0x568] ss:$16 sps:$4 sm:$0xff]   ;;  %v9819_v45 = vld [vmem:[%s16078_s12 + $0x58c] ss:$16 sps:$4 sm:$0xff]   ;;  %v9814_v16 = vld [vmem:[%s16078_s12 + $0x580] ss:$16 sps:$4 sm:$0xff]  }
 0x6e6   :  { %5989 = vmatprep.subr.bf16.mxu0 %v9783_v32  ;;  %v14113_v4 = vsel %vm4426_vm1, %v4425_v59, %v4417_v9  ;;  %v3565_v34 = vmax.f32 %v3564_v3, %v3408_v60  ;;  %v3669_v18 = vmax.f32 %v3668_v20, %v3472_v57  ;;  %v9816_v59 = vld [vmem:[%s16078_s12 + $0x584] ss:$16 sps:$4 sm:$0xff]   ;;  %v9820_v9 = vld [vmem:[%s16078_s12 + $0x5a0] ss:$16 sps:$4 sm:$0xff]   ;;  %v9823_v46 = vld [vmem:[%s16078_s12 + $0x5a8] ss:$16 sps:$4 sm:$0xff]  }
 0x6e7   :  { %v9822_v29 = vld [vmem:[%s16078_s12 + $0x5a4] ss:$16 sps:$4 sm:$0xff]   ;;  %v9831_v0 = vld [vmem:[%s16078_s12 + $0x5cc] ss:$16 sps:$4 sm:$0xff]   ;;  %v9832_v57 = vld [vmem:[%s16078_s12 + $0x5e0] ss:$16 sps:$4 sm:$0xff]  }
 0x6e8   :  { %5826 = vmatpush1.bf16.msra.mxu1 %v9778_v48  ;;  %v3566_v49 = vmax.f32 %v3565_v34, %v3416_v22  ;;  %v3670_v12 = vmax.f32 %v3669_v18, %v3480_v53  ;;  %v9825_v48 = vld [vmem:[%s16078_s12 + $0x5ac] ss:$16 sps:$4 sm:$0xff]   ;;  %v9828_v63 = vld [vmem:[%s16078_s12 + $0x5c4] ss:$16 sps:$4 sm:$0xff]   ;;  %v9835_v3 = vld [vmem:[%s16078_s12 + $0x5e8] ss:$16 sps:$4 sm:$0xff]   ;;  %v4439_v53 = vpack.c.b16 %v14067_v36, %v14067_v36 }
 0x6e9   :  { %5990 = vmatpush1.bf16.msra.mxu0 %v9781_v6  ;;  %5827 = vmatprep.subr.bf16.mxu1 %v9786_v7  ;;  %v9826_v6 = vld [vmem:[%s16078_s12 + $0x5c0] ss:$16 sps:$4 sm:$0xff]   ;;  %v9829_v7 = vld [vmem:[%s16078_s12 + $0x5c8] ss:$16 sps:$4 sm:$0xff]   ;;  %v9834_v60 = vld [vmem:[%s16078_s12 + $0x5e4] ss:$16 sps:$4 sm:$0xff]  }
 0x6ea   :  { %5991 = vmatprep.subr.bf16.mxu0 %v9789_v11  ;;  %v3567_v19 = vrot.slane %v3566_v49, 4  ;;  %v3671_v61 = vrot.slane %v3670_v12, 4  ;;  %v9837_v11 = vld [vmem:[%s16078_s12 + $0x5ec] ss:$16 sps:$4 sm:$0xff]   ;;  %v9840_v20 = vld [vmem:[%s16078_s12 + $0x604] ss:$16 sps:$4 sm:$0xff]  }
 0x6eb   :  { %v9838_v22 = vld [vmem:[%s16078_s12 + $0x600] ss:$16 sps:$4 sm:$0xff]   ;;  %v9841_v34 = vld [vmem:[%s16078_s12 + $0x608] ss:$16 sps:$4 sm:$0xff]   ;;  %v9846_v18 = vld [vmem:[%s16078_s12 + $0x624] ss:$16 sps:$4 sm:$0xff]  }
 0x6ec   :  { %5828 = vmatpush1.bf16.msra.mxu1 %v9784_v52  ;;  %v3568_v15 = vmax.f32 %v3566_v49, %v3567_v19  ;;  %v3672_v13 = vmax.f32 %v3670_v12, %v3671_v61  ;;  %v9843_v52 = vld [vmem:[%s16078_s12 + $0x60c] ss:$16 sps:$4 sm:$0xff]   ;;  %v9844_v36 = vld [vmem:[%s16078_s12 + $0x620] ss:$16 sps:$4 sm:$0xff]   ;;  %v9858_v19 = vld [vmem:[%s16078_s12 + $0x664] ss:$16 sps:$4 sm:$0xff]  }
 0x6ed   :  { %5992 = vmatpush1.bf16.msra.mxu0 %v9787_v17  ;;  %5829 = vmatprep.subr.bf16.mxu1 %v9792_v10  ;;  %v4442_v17 = vpack.c.b16 %v14113_v4, %v14113_v4  ;;  %v9849_v10 = vld [vmem:[%s16078_s12 + $0x62c] ss:$16 sps:$4 sm:$0xff]   ;;  %v9852_v4 = vld [vmem:[%s16078_s12 + $0x644] ss:$16 sps:$4 sm:$0xff]   ;;  %v9850_v12 = vld [vmem:[%s16078_s12 + $0x640] ss:$16 sps:$4 sm:$0xff]  }
 0x6ee   :  { %5993 = vmatprep.subr.bf16.mxu0 %v9795_v30  ;;  %v3569_v40 = vrot.slane %v3568_v15, 2  ;;  %v3673_v47 = vrot.slane %v3672_v13, 2  ;;  %v9847_v30 = vld [vmem:[%s16078_s12 + $0x628] ss:$16 sps:$4 sm:$0xff]   ;;  %v9855_v49 = vld [vmem:[%s16078_s12 + $0x64c] ss:$16 sps:$4 sm:$0xff]  }
 0x6ef   :  { %v9861_v61 = vld [vmem:[%s16078_s12 + $0x66c] ss:$16 sps:$4 sm:$0xff]  }
 0x6f0   :  { %5830 = vmatpush1.bf16.msra.mxu1 %v9790_v31  ;;  %v3570_v50 = vmax.f32 %v3568_v15, %v3569_v40  ;;  %v3674_v42 = vmax.f32 %v3672_v13, %v3673_v47  ;;  %v9853_v31 = vld [vmem:[%s16078_s12 + $0x648] ss:$16 sps:$4 sm:$0xff]   ;;  %v9867_v15 = vld [vmem:[%s16078_s12 + $0x68c] ss:$16 sps:$4 sm:$0xff]   ;;  %v9862_v13 = vld [vmem:[%s16078_s12 + $0x680] ss:$16 sps:$4 sm:$0xff]  }
 0x6f1   :  { %5994 = vmatpush1.bf16.msra.mxu0 %v9793_v37  ;;  %5831 = vmatprep.subr.bf16.mxu1 %v9798_v55  ;;  %v9856_v37 = vld [vmem:[%s16078_s12 + $0x660] ss:$16 sps:$4 sm:$0xff]   ;;  %v9859_v55 = vld [vmem:[%s16078_s12 + $0x668] ss:$16 sps:$4 sm:$0xff]   ;;  %v9870_v40 = vld [vmem:[%s16078_s12 + $0x6a4] ss:$16 sps:$4 sm:$0xff]  }
 0x6f2   :  { %5995 = vmatprep.subr.bf16.mxu0 %v9801_v24  ;;  %v3571_v28 = vrot.slane %v3570_v50, 1  ;;  %v3675_v33 = vrot.slane %v3674_v42, 1  ;;  %v9864_v24 = vld [vmem:[%s16078_s12 + $0x684] ss:$16 sps:$4 sm:$0xff]   ;;  %v9873_v47 = vld [vmem:[%s16078_s12 + $0x6ac] ss:$16 sps:$4 sm:$0xff]  }
 0x6f4   :  { %5832 = vmatpush1.bf16.msra.mxu1 %v9796_v1  ;;  %v3572_v23 = vmax.f32 %v3570_v50, %v3571_v28  ;;  %v3676_v51 = vmax.f32 %v3674_v42, %v3675_v33  ;;  %v9865_v1 = vld [vmem:[%s16078_s12 + $0x688] ss:$16 sps:$4 sm:$0xff]   ;;  %v9879_v50 = vld [vmem:[%s16078_s12 + $0x6cc] ss:$16 sps:$4 sm:$0xff]   ;;  %v9874_v42 = vld [vmem:[%s16078_s12 + $0x6c0] ss:$16 sps:$4 sm:$0xff]  }
 0x6f5   :  { %5996 = vmatpush1.bf16.msra.mxu0 %v9799_v8  ;;  %5833 = vmatprep.subr.bf16.mxu1 %v9804_v41  ;;  %v9868_v8 = vld [vmem:[%s16078_s12 + $0x6a0] ss:$16 sps:$4 sm:$0xff]   ;;  %v9871_v41 = vld [vmem:[%s16078_s12 + $0x6a8] ss:$16 sps:$4 sm:$0xff]   ;;  %v9882_v28 = vld [vmem:[%s16078_s12 + $0x6e4] ss:$16 sps:$4 sm:$0xff]  }
 0x6f6   :  { %5997 = vmatprep.subr.bf16.mxu0 %v9807_v56  ;;  %v3696_v38 = vpack.c.bf16 %v3572_v23, %v3572_v23  ;;  %v3704_v54 = vpack.c.bf16 %v3676_v51, %v3676_v51  ;;  %v9876_v56 = vld [vmem:[%s16078_s12 + $0x6c4] ss:$16 sps:$4 sm:$0xff]   ;;  %v9885_v33 = vld [vmem:[%s16078_s12 + $0x6ec] ss:$16 sps:$4 sm:$0xff]   ;;  %v9886_v51 = vld [vmem:[%s16078_s12 + $0x700] ss:$16 sps:$4 sm:$0xff]  }
 0x6f7   :  { %v9891_v23 = vld [vmem:[%s16078_s12 + $0x70c] ss:$16 sps:$4 sm:$0xff]  }
 0x6f8   :  { %5834 = vmatpush1.bf16.msra.mxu1 %v9802_v14  ;;  %v4416_v32 = vunpack.c.l.b16 %v3696_v38  ;;  %v4424_v35 = vunpack.c.l.b16 %v3704_v54  ;;  %v9877_v14 = vld [vmem:[%s16078_s12 + $0x6c8] ss:$16 sps:$4 sm:$0xff]   ;;  %v9894_v38 = vld [vmem:[%s16078_s12 + $0x724] ss:$16 sps:$4 sm:$0xff]   ;;  %v9897_v54 = vld [vmem:[%s16078_s12 + $0x72c] ss:$16 sps:$4 sm:$0xff]  }
 0x6f9   :  { %5998 = vmatpush1.bf16.msra.mxu0 %v9805_v43  ;;  %5835 = vmatprep.subr.bf16.mxu1 %v9810_v62  ;;  %v9880_v43 = vld [vmem:[%s16078_s12 + $0x6e0] ss:$16 sps:$4 sm:$0xff]   ;;  %v9883_v62 = vld [vmem:[%s16078_s12 + $0x6e8] ss:$16 sps:$4 sm:$0xff]  }
 0x6fa   :  { %5999 = vmatprep.subr.bf16.mxu0 %v9813_v26  ;;  %v14182_v25 = vsel %vm4426_vm1, %v4424_v35, %v4416_v32  ;;  %v9888_v26 = vld [vmem:[%s16078_s12 + $0x704] ss:$16 sps:$4 sm:$0xff]   ;;  %v9903_v32 = vld [vmem:[%s16078_s12 + $0x74c] ss:$16 sps:$4 sm:$0xff]   ;;  %v9898_v35 = vld [vmem:[%s16078_s12 + $0x740] ss:$16 sps:$4 sm:$0xff]  }
 0x6fc   :  { %5836 = vmatpush1.bf16.msra.mxu1 %v9808_v21  ;;  %v9889_v21 = vld [vmem:[%s16078_s12 + $0x708] ss:$16 sps:$4 sm:$0xff]  }
 0x6fd   :  { %6000 = vmatpush1.bf16.msra.mxu0 %v9811_v58  ;;  %5837 = vmatprep.subr.bf16.mxu1 %v9816_v59  ;;  %v9892_v58 = vld [vmem:[%s16078_s12 + $0x720] ss:$16 sps:$4 sm:$0xff]   ;;  %v9895_v59 = vld [vmem:[%s16078_s12 + $0x728] ss:$16 sps:$4 sm:$0xff]  }
 0x6fe   :  { %6001 = vmatprep.subr.bf16.mxu0 %v9819_v45  ;;  %v9900_v45 = vld [vmem:[%s16078_s12 + $0x744] ss:$16 sps:$4 sm:$0xff]  }
 0x700   :  { %5838 = vmatpush1.bf16.msra.mxu1 %v9814_v16  ;;  %v9901_v16 = vld [vmem:[%s16078_s12 + $0x748] ss:$16 sps:$4 sm:$0xff]  }
 0x701   :  { %6002 = vmatpush1.bf16.msra.mxu0 %v9817_v5  ;;  %5839 = vmatprep.subr.bf16.mxu1 %v9822_v29  ;;  %v9906_v5 = vld [vmem:[%s16078_s12 + $0x764] ss:$16 sps:$4 sm:$0xff]   ;;  %v9909_v29 = vld [vmem:[%s16078_s12 + $0x76c] ss:$16 sps:$4 sm:$0xff]  }
 0x702   :  { %6003 = vmatprep.subr.bf16.mxu0 %v9825_v48  ;;  %v9904_v48 = vld [vmem:[%s16078_s12 + $0x760] ss:$16 sps:$4 sm:$0xff]  }
 0x704   :  { %5840 = vmatpush1.bf16.msra.mxu1 %v9820_v9  ;;  %v9907_v9 = vld [vmem:[%s16078_s12 + $0x768] ss:$16 sps:$4 sm:$0xff]  }
 0x705   :  { %6004 = vmatpush1.bf16.msra.mxu0 %v9823_v46  ;;  %5841 = vmatprep.subr.bf16.mxu1 %v9828_v63  ;;  %v9912_v46 = vld [vmem:[%s16078_s12 + $0x784] ss:$16 sps:$4 sm:$0xff]   ;;  %v9915_v63 = vld [vmem:[%s16078_s12 + $0x78c] ss:$16 sps:$4 sm:$0xff]  }
 0x706   :  { %6005 = vmatprep.subr.bf16.mxu0 %v9831_v0  ;;  %v9910_v0 = vld [vmem:[%s16078_s12 + $0x780] ss:$16 sps:$4 sm:$0xff]  }
 0x708   :  { %5842 = vmatpush1.bf16.msra.mxu1 %v9826_v6  ;;  %v9913_v6 = vld [vmem:[%s16078_s12 + $0x788] ss:$16 sps:$4 sm:$0xff]  }
 0x709   :  { %6006 = vmatpush1.bf16.msra.mxu0 %v9829_v7  ;;  %5843 = vmatprep.subr.bf16.mxu1 %v9834_v60  ;;  %v9918_v7 = vld [vmem:[%s16078_s12 + $0x7a4] ss:$16 sps:$4 sm:$0xff]   ;;  %v9921_v60 = vld [vmem:[%s16078_s12 + $0x7ac] ss:$16 sps:$4 sm:$0xff]  }
 0x70a   :  { %6007 = vmatprep.subr.bf16.mxu0 %v9837_v11  ;;  %v9916_v11 = vld [vmem:[%s16078_s12 + $0x7a0] ss:$16 sps:$4 sm:$0xff]  }
 0x70c   :  { %5844 = vmatpush1.bf16.msra.mxu1 %v9832_v57  ;;  %v9919_v57 = vld [vmem:[%s16078_s12 + $0x7a8] ss:$16 sps:$4 sm:$0xff]  }
 0x70d   :  { %6008 = vmatpush1.bf16.msra.mxu0 %v9835_v3  ;;  %5854 = vmatprep.subr.bf16.mxu1 %v9840_v20  ;;  %v9924_v3 = vld [vmem:[%s16078_s12 + $0x7c4] ss:$16 sps:$4 sm:$0xff]   ;;  %v9927_v20 = vld [vmem:[%s16078_s12 + $0x7cc] ss:$16 sps:$4 sm:$0xff]  }
 0x70e   :  { %6018 = vmatprep.subr.bf16.mxu0 %v9843_v52  ;;  %v9922_v52 = vld [vmem:[%s16078_s12 + $0x7c0] ss:$16 sps:$4 sm:$0xff]  }
 0x70f   :  { %5846 = vmatmul.mubr.bf16.vlgmr.msra.gmra.mrb[80].mxu1 %v4439_v53 }
 0x710   :  { %6010 = vmatmul.mubr.bf16.vlgmr.msra.gmra.mrb[96].mxu0 %v4439_v53  ;;  %5855 = vmatpush1.bf16.msra.mxu1 %v9838_v22  ;;  %v9925_v22 = vld [vmem:[%s16078_s12 + $0x7c8] ss:$16 sps:$4 sm:$0xff]   ;;  %v9930_v53 = vld [vmem:[%s16078_s12 + $0x7e4] ss:$16 sps:$4 sm:$0xff]  }
 0x711   :  { %5886 = vmatprep.mubr.bf16.mxu1 %v4442_v17  ;;  %6019 = vmatpush1.bf16.msra.mxu0 %v9841_v34  ;;  %v9933_v34 = vld [vmem:[%s16078_s12 + $0x7ec] ss:$16 sps:$4 sm:$0xff]  }
 0x712   :  { %6050 = vmatprep.mubr.bf16.mxu0 %v4442_v17  ;;  %5856 = vmatprep.subr.bf16.mxu1 %v9846_v18  ;;  %v9928_v18 = vld [vmem:[%s16078_s12 + $0x7e0] ss:$16 sps:$4 sm:$0xff]   ;;  %v9931_v17 = vld [vmem:[%s16078_s12 + $0x7e8] ss:$16 sps:$4 sm:$0xff]  }
 0x713   :  { %6020 = vmatprep.subr.bf16.mxu0 %v9849_v10  ;;  %v4441_v10 = vpack.c.b16 %v14182_v25, %v14182_v25  ;;  %v9937_v25 = vld [vmem:[%s16080_s14 + $0x10] ss:$8 sps:$4 sm:$0xff]  }
 0x714   :  { %5857 = vmatpush1.bf16.msra.mxu1 %v9844_v36  ;;  %v9934_v36 = vld [vmem:[%s16080_s14] ss:$8 sps:$4 sm:$0xff]  }
 0x715   :  { %6021 = vmatpush1.bf16.msra.mxu0 %v9847_v30  ;;  %5858 = vmatprep.subr.bf16.mxu1 %v9852_v4  ;;  %v9936_v30 = vld [vmem:[%s16080_s14 + $0x4] ss:$8 sps:$4 sm:$0xff]   ;;  %v9939_v4 = vld [vmem:[%s16080_s14 + $0x14] ss:$8 sps:$4 sm:$0xff]  }
 0x716   :  { %6022 = vmatprep.subr.bf16.mxu0 %v9855_v49  ;;  %v9942_v49 = vld [vmem:[%s16080_s14 + $0x24] ss:$8 sps:$4 sm:$0xff]  }
 0x718   :  { %5859 = vmatpush1.bf16.msra.mxu1 %v9850_v12  ;;  %v9940_v12 = vld [vmem:[%s16080_s14 + $0x20] ss:$8 sps:$4 sm:$0xff]  }
 0x719   :  { %6023 = vmatpush1.bf16.msra.mxu0 %v9853_v31  ;;  %5860 = vmatprep.subr.bf16.mxu1 %v9858_v19  ;;  %v9945_v31 = vld [vmem:[%s16080_s14 + $0x34] ss:$8 sps:$4 sm:$0xff]   ;;  %v9943_v19 = vld [vmem:[%s16080_s14 + $0x30] ss:$8 sps:$4 sm:$0xff]  }
 0x71a   :  { %6024 = vmatprep.subr.bf16.mxu0 %v9861_v61  ;;  %v9948_v61 = vld [vmem:[%s16080_s14 + $0x44] ss:$8 sps:$4 sm:$0xff]  }
 0x71c   :  { %5861 = vmatpush1.bf16.msra.mxu1 %v9856_v37  ;;  %v9946_v37 = vld [vmem:[%s16080_s14 + $0x40] ss:$8 sps:$4 sm:$0xff]  }
 0x71d   :  { %6025 = vmatpush1.bf16.msra.mxu0 %v9859_v55  ;;  %5862 = vmatprep.subr.bf16.mxu1 %v9864_v24  ;;  %v9951_v55 = vld [vmem:[%s16080_s14 + $0x54] ss:$8 sps:$4 sm:$0xff]   ;;  %v9949_v24 = vld [vmem:[%s16080_s14 + $0x50] ss:$8 sps:$4 sm:$0xff]  }
 0x71e   :  { %6026 = vmatprep.subr.bf16.mxu0 %v9867_v15  ;;  %v9954_v15 = vld [vmem:[%s16080_s14 + $0x64] ss:$8 sps:$4 sm:$0xff]  }
 0x720   :  { %5863 = vmatpush1.bf16.msra.mxu1 %v9862_v13  ;;  %v10104_v13 = vmov 1966171168  }
 0x721   :  { %6027 = vmatpush1.bf16.msra.mxu0 %v9865_v1  ;;  %5864 = vmatprep.subr.bf16.mxu1 %v9870_v40  ;;  %v6066_v1 = vunpack.c.l.s4 %v10104_v13  ;;  %v9952_v40 = vld [vmem:[%s16080_s14 + $0x60] ss:$8 sps:$4 sm:$0xff]   ;;  %v16706_v13 = vld [vmem:[#allocation24_spill] sm:$0xff] }
 0x722   :  { %6028 = vmatprep.subr.bf16.mxu0 %v9873_v47  ;;  %v9957_v47 = vld [vmem:[%s16080_s14 + $0x74] ss:$8 sps:$4 sm:$0xff]  }
 0x724   :  { %5865 = vmatpush1.bf16.msra.mxu1 %v9868_v8  ;;  %v6067_v8 = vunpack.c.0.s8 %v6066_v1 }
 0x725   :  { %6029 = vmatpush1.bf16.msra.mxu0 %v9871_v41  ;;  %5866 = vmatprep.subr.bf16.mxu1 %v9876_v56  ;;  %v9955_v41 = vld [vmem:[%s16080_s14 + $0x70] ss:$8 sps:$4 sm:$0xff]   ;;  %v9960_v56 = vld [vmem:[%s16080_s14 + $0x84] ss:$8 sps:$4 sm:$0xff]  }
 0x726   :  { %6030 = vmatprep.subr.bf16.mxu0 %v9879_v50 }
 0x728   :  { %5867 = vmatpush1.bf16.msra.mxu1 %v9874_v42  ;;  %v16684_v42 = vld [vmem:[#allocation2_spill] sm:$0xff] }
 0x729   :  { %6031 = vmatpush1.bf16.msra.mxu0 %v9877_v14  ;;  %5868 = vmatprep.subr.bf16.mxu1 %v9882_v28  ;;  %v6070_v14 = vsub.s32 %v6067_v8, %v16684_v42  ;;  %v9972_v8 = vld [vmem:[%s16080_s14 + $0xc4] ss:$8 sps:$4 sm:$0xff]  }
 0x72a   :  { %6032 = vmatprep.subr.bf16.mxu0 %v9885_v33 }
 0x72c   :  { %5869 = vmatpush1.bf16.msra.mxu1 %v9880_v43 }
 0x72d   :  { %6033 = vmatpush1.bf16.msra.mxu0 %v9883_v62  ;;  %5870 = vmatprep.subr.bf16.mxu1 %v9888_v26 }
 0x72e   :  { %6034 = vmatprep.subr.bf16.mxu0 %v9891_v23  ;;  %v9958_v23 = vld [vmem:[%s16080_s14 + $0x80] ss:$8 sps:$4 sm:$0xff]  }
 0x730   :  { %5871 = vmatpush1.bf16.msra.mxu1 %v9886_v51 }
 0x731   :  { %6035 = vmatpush1.bf16.msra.mxu0 %v9889_v21  ;;  %5872 = vmatprep.subr.bf16.mxu1 %v9894_v38 }
 0x732   :  { %6036 = vmatprep.subr.bf16.mxu0 %v9897_v54  ;;  %v9963_v54 = vld [vmem:[%s16080_s14 + $0x94] ss:$8 sps:$4 sm:$0xff]  }
 0x734   :  { %5873 = vmatpush1.bf16.msra.mxu1 %v9892_v58 }
 0x735   :  { %6037 = vmatpush1.bf16.msra.mxu0 %v9895_v59  ;;  %5874 = vmatprep.subr.bf16.mxu1 %v9900_v45 }
 0x736   :  { %6038 = vmatprep.subr.bf16.mxu0 %v9903_v32  ;;  %v9961_v32 = vld [vmem:[%s16080_s14 + $0x90] ss:$8 sps:$4 sm:$0xff]  }
 0x738   :  { %5875 = vmatpush1.bf16.msra.mxu1 %v9898_v35 }
 0x739   :  { %6039 = vmatpush1.bf16.msra.mxu0 %v9901_v16  ;;  %5876 = vmatprep.subr.bf16.mxu1 %v9906_v5  ;;  %v9966_v5 = vld [vmem:[%s16080_s14 + $0xa4] ss:$8 sps:$4 sm:$0xff]  }
 0x73a   :  { %6040 = vmatprep.subr.bf16.mxu0 %v9909_v29 }
 0x73c   :  { %5877 = vmatpush1.bf16.msra.mxu1 %v9904_v48 }
 0x73d   :  { %6041 = vmatpush1.bf16.msra.mxu0 %v9907_v9  ;;  %5878 = vmatprep.subr.bf16.mxu1 %v9912_v46  ;;  %v9964_v9 = vld [vmem:[%s16080_s14 + $0xa0] ss:$8 sps:$4 sm:$0xff]  }
 0x73e   :  { %6042 = vmatprep.subr.bf16.mxu0 %v9915_v63  ;;  %v16685_v63 = vld [vmem:[#allocation7_spill] sm:$0xff] }
 0x740   :  { %5879 = vmatpush1.bf16.msra.mxu1 %v9910_v0 }
 0x741   :  { %6043 = vmatpush1.bf16.msra.mxu0 %v9913_v6  ;;  %5880 = vmatprep.subr.bf16.mxu1 %v9918_v7  ;;  %v9969_v7 = vld [vmem:[%s16080_s14 + $0xb4] ss:$8 sps:$4 sm:$0xff]  }
 0x742   :  { %6044 = vmatprep.subr.bf16.mxu0 %v9921_v60 }
 0x744   :  { %5881 = vmatpush1.bf16.msra.mxu1 %v9916_v11 }
 0x745   :  { %6045 = vmatpush1.bf16.msra.mxu0 %v9919_v57  ;;  %5882 = vmatprep.subr.bf16.mxu1 %v9924_v3 }
 0x746   :  { %6046 = vmatprep.subr.bf16.mxu0 %v9927_v20  ;;  %v16686_v20 = vld [vmem:[#allocation47_spill] sm:$0xff] }
 0x748   :  { %5883 = vmatpush1.bf16.msra.mxu1 %v9922_v52 }
 0x749   :  { %6047 = vmatpush1.bf16.msra.mxu0 %v9925_v22  ;;  %5884 = vmatprep.subr.bf16.mxu1 %v9930_v53  ;;  %v16688_v22 = vld [vmem:[#allocation50_spill] sm:$0xff] }
 0x74a   :  { %6048 = vmatprep.subr.bf16.mxu0 %v9933_v34  ;;  %v16690_v34 = vld [vmem:[#allocation51_spill] sm:$0xff] }
 0x74c   :  { %5885 = vmatpush1.bf16.msra.mxu1 %v9928_v18 }
 0x74d   :  { %6049 = vmatpush1.bf16.msra.mxu0 %v9931_v17  ;;  %7193 = vmatprep.subr.bf16.mxu1 %v9936_v30  ;;  %v16692_v17 = vld [vmem:[#allocation53_spill] sm:$0xff] }
 0x74f   :  { %5887 = vmatmul.mubr.bf16.vlgmr.msra.gmra.mrb[80].mxu1 %v4441_v10 }
 0x750   :  { %6051 = vmatmul.mubr.bf16.vlgmr.msra.gmra.mrb[96].mxu0 %v4441_v10  ;;  %7194 = vmatpush1.bf16.msra.mxu1 %v9934_v36  ;;  %v16694_v36 = vld [vmem:[#allocation55_spill] sm:$0xff] }
 0x751   :  { %7195 = vmatprep.subr.bf16.mxu1 %v9939_v4  ;;  %v16696_v4 = vld [vmem:[#allocation56_spill] sm:$0xff] }
 0x754   :  { %7196 = vmatpush1.bf16.msra.mxu1 %v9937_v25 }
 0x755   :  { %7197 = vmatprep.subr.bf16.mxu1 %v9942_v49  ;;  %v16698_v49 = vld [vmem:[#allocation58_spill] sm:$0xff] }
 0x758   :  { %7198 = vmatpush1.bf16.msra.mxu1 %v9940_v12 }
 0x759   :  { %7199 = vmatprep.subr.bf16.mxu1 %v9945_v31  ;;  %v16700_v31 = vld [vmem:[#allocation60_spill] sm:$0xff] }
 0x75c   :  { %7200 = vmatpush1.bf16.msra.mxu1 %v9943_v19 }
 0x75d   :  { %7201 = vmatprep.subr.bf16.mxu1 %v9948_v61  ;;  %v9967_v61 = vld [vmem:[%s16080_s14 + $0xb0] ss:$8 sps:$4 sm:$0xff]  }
 0x760   :  { %7202 = vmatpush1.bf16.msra.mxu1 %v9946_v37  ;;  %v16702_v37 = vld [vmem:[#allocation61_spill] sm:$0xff] }
 0x761   :  { %7203 = vmatprep.subr.bf16.mxu1 %v9951_v55 }
 0x764   :  { %7204 = vmatpush1.bf16.msra.mxu1 %v9949_v24  ;;  %v16704_v24 = vld [vmem:[#allocation22_spill] sm:$0xff] }
 0x765   :  { %7205 = vmatprep.subr.bf16.mxu1 %v9954_v15 }
 0x768   :  { %7206 = vmatpush1.bf16.msra.mxu1 %v9952_v40  ;;  %v16708_v40 = vld [vmem:[#allocation28_spill] sm:$0xff] }
 0x769   :  { %7207 = vmatprep.subr.bf16.mxu1 %v9957_v47 }
 0x76c   :  { %7208 = vmatpush1.bf16.msra.mxu1 %v9955_v41  ;;  %v16710_v41 = vld [vmem:[#allocation42_spill] sm:$0xff] }
 0x76d   :  { %7209 = vmatprep.subr.bf16.mxu1 %v9960_v56 }
 0x770   :  { %7210 = vmatpush1.bf16.msra.mxu1 %v9958_v23  ;;  %v16720_v23 = vld [vmem:[#allocation20_spill] sm:$0xff] }
 0x771   :  { %7211 = vmatprep.subr.bf16.mxu1 %v9963_v54  ;;  %v16724_v54 = vld [vmem:[#allocation26_spill] sm:$0xff] }
 0x774   :  { %7212 = vmatpush1.bf16.msra.mxu1 %v9961_v32  ;;  %v16728_v32 = vld [vmem:[#allocation10_spill] sm:$0xff] }
 0x775   :  { %7213 = vmatprep.subr.bf16.mxu1 %v9966_v5 }
 0x778   :  { %7214 = vmatpush1.bf16.msra.mxu1 %v9964_v9 }
 0x779   :  { %7215 = vmatprep.subr.bf16.mxu1 %v9969_v7  ;;  %v9970_v7 = vld [vmem:[%s16080_s14 + $0xc0] ss:$8 sps:$4 sm:$0xff]  }
 0x77c   :  { %7216 = vmatpush1.bf16.msra.mxu1 %v9967_v61  ;;  %v16738_v61 = vld [vmem:[#allocation72_spill] sm:$0xff] }
 0x77d   :  { %7217 = vmatprep.subr.bf16.mxu1 %v9972_v8  ;;  %v16744_v8 = vld [vmem:[#allocation36_spill] sm:$0xff] }
 0x780   :  { %7218 = vmatpush1.bf16.msra.mxu1 %v9970_v7  ;;  %v9978_v7 = vld [vmem:[%s16080_s14 + $0xe4] ss:$8 sps:$4 sm:$0xff]  }
 0x822   :  { %v5888_v50 = vpop.f32.mrb[80].mxu1 }
 0x823   :  { %v6052_v28 = vpop.f32.mrb[96].mxu0  ;;  %v5890_v33 = vpop.f32.mrb[81].mxu1 }
 0x824   :  { %v6063_v43 = vcombine.low %v5888_v50, %v5890_v33  ;;  %v6054_v62 = vpop.f32.mrb[97].mxu0  ;;  %v5892_v26 = vpop.f32.mrb[82].mxu1  ;;  %v16712_v50 = vld [vmem:[#allocation44_spill] sm:$0xff]  ;;  %v16716_v33 = vld [vmem:[#allocation17_spill] sm:$0xff] }
 0x825   :  { %v6064_v51 = vcombine.low %v6052_v28, %v6054_v62  ;;  %v6056_v21 = vpop.f32.mrb[98].mxu0  ;;  %v5893_v38 = vpop.f32.mrb[83].mxu1  ;;  %v16718_v62 = vld [vmem:[#allocation19_spill] sm:$0xff] }
 0x826   :  { %v6071_v58 = vrot.slane %v6063_v43, %v6070_v14  ;;  %v6057_v59 = vpop.f32.mrb[99].mxu0  ;;  %v16722_v21 = vld [vmem:[#allocation63_spill] sm:$0xff] }
 0x827   :  { %v6078_v45 = vrot.slane %v6064_v51, %v6070_v14  ;;  %v16726_v59 = vld [vmem:[#allocation27_spill] sm:$0xff] }
 0x829   :  { %v6079_v35 = vcombine.low %v6071_v58, %v6078_v45  ;;  %v6080_v16 = vcombine.high %v6071_v58, %v6078_v45 }
 0x82b   :  { %v14485_v29 = vrot.slane %v6079_v35, %v6070_v14  ;;  %v6094_v48 = vrot.slane %v6080_v16, %v6070_v14  ;;  %v16714_v14 = vld [vmem:[#allocation45_spill] sm:$0xff]  ;;  %v16729_v16 = vld [vmem:[#allocation12_spill] sm:$0xff] }
 0x82d   :  { %v6098_v46 = vrot.slane %v14485_v29, %v16601_v27  ;;  %v6106_v0 = vrot.slane %v14485_v29, %v16685_v63  ;;  %v6110_v6 = vrot.slane %v14485_v29, %v13007_v39  ;;  %v6114_v60 = vrot.slane %v6094_v48, %v16601_v27 }
 0x82e   :  { %v14501_v11 = vrot.slane %v6094_v48, %v16447_v44  ;;  %v6122_v57 = vrot.slane %v6094_v48, %v16685_v63  ;;  %v6126_v3 = vrot.slane %v6094_v48, %v13007_v39  ;;  %v16730_v48 = vld [vmem:[#allocation13_spill] sm:$0xff] }
 0x82f   :  { %v14506_v52 = vadd.f32 %v6098_v46, %v16686_v20  ;;  %v14509_v53 = vadd.f32 %v6106_v0, %v16688_v22  ;;  %v14512_v18 = vadd.f32 %v6110_v6, %v16690_v34  ;;  %v14515_v10 = vadd.f32 %v6098_v46, %v16692_v17  ;;  %v16732_v20 = vld [vmem:[#allocation65_spill] sm:$0xff]  ;;  %v16733_v34 = vld [vmem:[#allocation67_spill] sm:$0xff] }
 0x830   :  { %v14518_v30 = vadd.f32 %v6106_v0, %v16694_v36  ;;  %v14521_v25 = vadd.f32 %v6110_v6, %v16696_v4  ;;  %v14524_v12 = vadd.f32 %v6098_v46, %v16698_v49  ;;  %v14527_v19 = vadd.f32 %v6106_v0, %v16700_v31  ;;  %v16734_v36 = vld [vmem:[#allocation68_spill] sm:$0xff]  ;;  %v16736_v4 = vld [vmem:[#allocation69_spill] sm:$0xff]  ;;  %v16737_v49 = vld [vmem:[#allocation71_spill] sm:$0xff] }
 0x831   :  { %16687 = vst [vmem:[#allocation93_spill] sm:$0xff] %v14506_v52  ;;  %16689 = vst [vmem:[#allocation97_spill] sm:$0xff] %v14509_v53  ;;  %v14533_v55 = vadd.f32 %v6110_v6, %v16702_v37  ;;  %v14536_v15 = vadd.f32 %v6098_v46, %v16704_v24  ;;  %v14539_v1 = vadd.f32 %v6106_v0, %v16706_v13  ;;  %v16740_v24 = vld [vmem:[#allocation16_spill] sm:$0xff] }
 0x832   :  { %16691 = vst [vmem:[#allocation101_spill] sm:$0xff] %v14512_v18  ;;  %16693 = vst [vmem:[#allocation104_spill] sm:$0xff] %v14515_v10  ;;  %v14542_v47 = vadd.f32 %v6110_v6, %v16708_v40  ;;  %v14548_v56 = vadd.f32 %v6098_v46, %v16710_v41  ;;  %v14551_v42 = vadd.f32 %v6106_v0, %v16712_v50  ;;  %v16741_v40 = vld [vmem:[#allocation31_spill] sm:$0xff]  ;;  %v16742_v50 = vld [vmem:[#allocation21_spill] sm:$0xff] }
 0x833   :  { %16695 = vst [vmem:[#allocation107_spill] sm:$0xff] %v14518_v30  ;;  %16697 = vst [vmem:[#allocation110_spill] sm:$0xff] %v14521_v25  ;;  %v14554_v28 = vadd.f32 %v6110_v6, %v16714_v14  ;;  %v14557_v43 = vadd.f32 %v6098_v46, %v16716_v33  ;;  %v14560_v26 = vadd.f32 %v6106_v0, %v16718_v62  ;;  %v16745_v62 = vld [vmem:[#allocation38_spill] sm:$0xff] }
 0x834   :  { %16699 = vst [vmem:[#allocation113_spill] sm:$0xff] %v14524_v12  ;;  %16701 = vst [vmem:[#allocation116_spill] sm:$0xff] %v14527_v19  ;;  %v14563_v51 = vadd.f32 %v6110_v6, %v16720_v23  ;;  %v14566_v38 = vadd.f32 %v6098_v46, %v16722_v21  ;;  %v14569_v58 = vadd.f32 %v6106_v0, %v16724_v54  ;;  %v16746_v21 = vld [vmem:[#allocation39_spill] sm:$0xff] }
 0x835   :  { %16703 = vst [vmem:[#allocation120_spill] sm:$0xff] %v14533_v55  ;;  %16705 = vst [vmem:[#allocation123_spill] sm:$0xff] %v14536_v15  ;;  %v14572_v45 = vadd.f32 %v6110_v6, %v16726_v59  ;;  %v14575_v35 = vadd.f32 %v6098_v46, %v16728_v32  ;;  %v14578_v5 = vadd.f32 %v6106_v0, %v16729_v16  ;;  %v16748_v59 = vld [vmem:[#allocation49_spill] sm:$0xff]  ;;  %v16749_v16 = vld [vmem:[#allocation74_spill] sm:$0xff] }
 0x836   :  { %16707 = vst [vmem:[#allocation14_spill] sm:$0xff] %v14539_v1  ;;  %16709 = vst [vmem:[#allocation175_spill] sm:$0xff] %v14542_v47  ;;  %v14581_v9 = vadd.f32 %v6110_v6, %v16730_v48  ;;  %v14587_v22 = vadd.f32 %v6114_v60, %v16732_v20  ;;  %v14590_v17 = vadd.f32 %v6122_v57, %v16733_v34  ;;  %v9975_v6 = vld [vmem:[%s16080_s14 + $0xd4] ss:$8 sps:$4 sm:$0xff]   ;;  %v16750_v20 = vld [vmem:[#allocation75_spill] sm:$0xff] }
 0x837   :  { %16711 = vst [vmem:[#allocation46_spill] sm:$0xff] %v14548_v56  ;;  %16713 = vst [vmem:[#allocation32_spill] sm:$0xff] %v14551_v42  ;;  %v14593_v46 = vadd.f32 %v6126_v3, %v16734_v36  ;;  %v14596_v0 = vadd.f32 %v6114_v60, %v16736_v4  ;;  %v14602_v31 = vadd.f32 %v6122_v57, %v16737_v49  ;;  %v16752_v36 = vld [vmem:[#allocation41_spill] sm:$0xff]  ;;  %7219 = vmatprep.subr.bf16.mxu1 %v9975_v6  ;;  %v16768_v6 = vld [vmem:[#allocation79_spill] sm:$0xff] }
 0x838   :  { %16715 = vst [vmem:[#allocation73_spill] sm:$0xff] %v14554_v28  ;;  %16717 = vst [vmem:[#allocation85_spill] sm:$0xff] %v14557_v43  ;;  %v14605_v37 = vadd.f32 %v6126_v3, %v16738_v61  ;;  %v14608_v13 = vadd.f32 %v6114_v60, %v16740_v24  ;;  %v14611_v41 = vadd.f32 %v6122_v57, %v16741_v40  ;;  %v9973_v49 = vld [vmem:[%s16080_s14 + $0xd0] ss:$8 sps:$4 sm:$0xff]  }
 0x839   :  { %16719 = vst [vmem:[#allocation88_spill] sm:$0xff] %v14560_v26  ;;  %16721 = vst [vmem:[#allocation91_spill] sm:$0xff] %v14563_v51  ;;  %v14614_v14 = vadd.f32 %v6126_v3, %v16742_v50  ;;  %v14617_v33 = vadd.f32 %v6114_v60, %v16744_v8  ;;  %v14620_v23 = vadd.f32 %v6122_v57, %v16745_v62  ;;  %v16753_v61 = vld [vmem:[#allocation76_spill] sm:$0xff]  ;;  %v16754_v40 = vld [vmem:[#allocation77_spill] sm:$0xff]  ;;  %7220 = vmatpush1.bf16.msra.mxu1 %v9973_v49 }
 0x83a   :  { %16723 = vst [vmem:[#allocation95_spill] sm:$0xff] %v14566_v38  ;;  %16725 = vst [vmem:[#allocation99_spill] sm:$0xff] %v14569_v58  ;;  %v14623_v54 = vadd.f32 %v6126_v3, %v16746_v21  ;;  %v14626_v32 = vadd.f32 %v6114_v60, %v16748_v59  ;;  %v14629_v48 = vadd.f32 %v6122_v57, %v16749_v16  ;;  %v16756_v8 = vld [vmem:[#allocation80_spill] sm:$0xff]  ;;  %v16758_v21 = vld [vmem:[#allocation81_spill] sm:$0xff]  ;;  %7221 = vmatprep.subr.bf16.mxu1 %v9978_v7 }
 0x83b   :  { %16727 = vst [vmem:[#allocation102_spill] sm:$0xff] %v14572_v45  ;;  %16731 = vst [vmem:[#allocation105_spill] sm:$0xff] %v14581_v9  ;;  %v14632_v34 = vadd.f32 %v6126_v3, %v16750_v20  ;;  %v14635_v4 = vadd.f32 %v6114_v60, %v16752_v36  ;;  %v14641_v24 = vadd.f32 %v6122_v57, %v16753_v61  ;;  %v16760_v16 = vld [vmem:[#allocation82_spill] sm:$0xff]  ;;  %v16761_v36 = vld [vmem:[#allocation83_spill] sm:$0xff] }
 0x83c   :  { %16735 = vst [vmem:[#allocation108_spill] sm:$0xff] %v14593_v46  ;;  %16739 = vst [vmem:[#allocation111_spill] sm:$0xff] %v14605_v37  ;;  %v14644_v50 = vadd.f32 %v6126_v3, %v16754_v40  ;;  %v14647_v62 = vadd.f32 %v6114_v60, %v16756_v8  ;;  %v14651_v59 = vadd.f32 %v14501_v11, %v16758_v21  ;;  %v16763_v40 = vld [vmem:[#allocation52_spill] sm:$0xff]  ;;  %v16765_v8 = vld [vmem:[#allocation62_spill] sm:$0xff] }
 0x83d   :  { %16743 = vst [vmem:[#allocation114_spill] sm:$0xff] %v14614_v14  ;;  %16747 = vst [vmem:[#allocation117_spill] sm:$0xff] %v14623_v54  ;;  %v14657_v20 = vadd.f32 %v6122_v57, %v16760_v16  ;;  %v14660_v61 = vadd.f32 %v6126_v3, %v16761_v36  ;;  %v14663_v2 = vadd.f32 %v6114_v60, %v16763_v40  ;;  %v16767_v21 = vld [vmem:[#allocation78_spill] sm:$0xff] }
 0x83e   :  { %16751 = vst [vmem:[#allocation121_spill] sm:$0xff] %v14632_v34  ;;  %16755 = vst [vmem:[#allocation159_spill] sm:$0xff] %v14644_v50  ;;  %v14667_v39 = vadd.f32 %v14501_v11, %v16765_v8  ;;  %v14670_v63 = vadd.f32 %v6122_v57, %v16767_v21  ;;  %v14673_v27 = vadd.f32 %v6126_v3, %v16768_v6  ;;  %v9976_v40 = vld [vmem:[%s16080_s14 + $0xe0] ss:$8 sps:$4 sm:$0xff]   ;;  %v9981_v3 = vld [vmem:[%s16080_s14 + $0xf4] ss:$8 sps:$4 sm:$0xff]  }
 0x83f   :  { %16757 = vst [vmem:[#allocation163_spill] sm:$0xff] %v14647_v62  ;;  %16759 = vst [vmem:[#allocation168_spill] sm:$0xff] %v14651_v59  ;;  %v6200_v16 = vadd.f32 %v14515_v10, %v14506_v52  ;;  %v6242_v36 = vadd.f32 %v14518_v30, %v14509_v53  ;;  %v6263_v60 = vadd.f32 %v14521_v25, %v14512_v18  ;;  %7222 = vmatpush1.bf16.msra.mxu1 %v9976_v40 }
 0x840   :  { %16762 = vst [vmem:[#allocation166_spill] sm:$0xff] %v14660_v61  ;;  %16764 = vst [vmem:[#allocation57_spill] sm:$0xff] %v14663_v2  ;;  %7223 = vmatprep.subr.bf16.mxu1 %v9981_v3  ;;  %v6102_v2 = vrot.slane %v14485_v29, %v16447_v44  ;;  %v6294_v29 = vmul.f32 %v14518_v30, %v14518_v30  ;;  %v6303_v30 = vmul.f32 %v14542_v47, %v14542_v47 }
 0x841   :  { %16766 = vst [vmem:[#allocation170_spill] sm:$0xff] %v14667_v39  ;;  %16769 = vst [vmem:[#allocation15_spill] sm:$0xff] %v14673_v27  ;;  %v6201_v57 = vadd.f32 %v6200_v16, %v14524_v12  ;;  %v6243_v8 = vadd.f32 %v6242_v36, %v14527_v19  ;;  %v6264_v21 = vadd.f32 %v6263_v60, %v14533_v55  ;;  %v9979_v16 = vld [vmem:[%s16080_s14 + $0xf0] ss:$8 sps:$4 sm:$0xff]  }
 0x843   :  { %v6202_v6 = vadd.f32 %v6201_v57, %v14536_v15  ;;  %v6244_v39 = vadd.f32 %v6243_v8, %v14539_v1  ;;  %v6265_v49 = vadd.f32 %v6264_v21, %v14542_v47  ;;  %7224 = vmatpush1.bf16.msra.mxu1 %v9979_v16  ;;  %v6291_v16 = vmul.f32 %v14512_v18, %v14512_v18 }
 0x844   :  { %v6310_v47 = vmul.f32 %v14560_v26, %v14560_v26 }
 0x845   :  { %v6203_v36 = vadd.f32 %v6202_v6, %v14548_v56  ;;  %v6245_v7 = vadd.f32 %v6244_v39, %v14551_v42  ;;  %v6266_v59 = vadd.f32 %v6265_v49, %v14554_v28  ;;  %v6288_v49 = vmul.f32 %v14506_v52, %v14506_v52 }
 0x847   :  { %v6246_v60 = vadd.f32 %v6245_v7, %v14560_v26  ;;  %v6204_v57 = vadd.f32 %v6203_v36, %v14557_v43  ;;  %v6267_v8 = vadd.f32 %v6266_v59, %v14563_v51  ;;  %v6290_v59 = vmul.f32 %v14509_v53, %v14509_v53  ;;  %v16771_v26 = vld [vmem:[#allocation54_spill] sm:$0xff] }
 0x848   :  { %v6292_v36 = vmul.f32 %v14515_v10, %v14515_v10  ;;  %v6295_v7 = vmul.f32 %v14521_v25, %v14521_v25  ;;  %v6302_v25 = vmul.f32 %v14539_v1, %v14539_v1  ;;  %v6311_v1 = vmul.f32 %v14563_v51, %v14563_v51  ;;  %v16770_v10 = vld [vmem:[#allocation48_spill] sm:$0xff] }
 0x849   :  { %v6247_v40 = vadd.f32 %v6246_v60, %v14569_v58  ;;  %v6268_v21 = vadd.f32 %v6267_v8, %v14572_v45  ;;  %v6205_v6 = vadd.f32 %v6204_v57, %v14566_v38  ;;  %v6296_v60 = vmul.f32 %v14524_v12, %v14524_v12 }
 0x84a   :  { %v6298_v57 = vmul.f32 %v14527_v19, %v14527_v19  ;;  %v6299_v8 = vmul.f32 %v14533_v55, %v14533_v55  ;;  %v6304_v19 = vmul.f32 %v14548_v56, %v14548_v56  ;;  %v6307_v12 = vmul.f32 %v14554_v28, %v14554_v28 }
 0x84b   :  { %v6248_v39 = vadd.f32 %v6247_v40, %v14578_v5  ;;  %v6269_v3 = vadd.f32 %v6268_v21, %v14581_v9  ;;  %v6300_v40 = vmul.f32 %v14536_v15, %v14536_v15  ;;  %v9984_v21 = vld [vmem:[%s16080_s14 + $0x104] ss:$8 sps:$4 sm:$0xff]   ;;  %v6206_v18 = vadd.f32 %v6205_v6, %v14575_v35 }
 0x84c   :  { %v6306_v15 = vmul.f32 %v14551_v42, %v14551_v42  ;;  %7306 = vmatprep.subr.bf16.mxu1 %v9984_v21  ;;  %v6308_v6 = vmul.f32 %v14557_v43, %v14557_v43  ;;  %v6315_v42 = vmul.f32 %v14572_v45, %v14572_v45  ;;  %v6352_v28 = vadd.f32 %v6292_v36, %v6288_v49 }
 0x84d   :  { %v6249_v55 = vadd.f32 %v6248_v39, %v14590_v17  ;;  %v6270_v53 = vadd.f32 %v6269_v3, %v14593_v46  ;;  %v6312_v39 = vmul.f32 %v14566_v38, %v14566_v38  ;;  %v6314_v3 = vmul.f32 %v14569_v58, %v14569_v58 }
 0x84e   :  { %v6394_v21 = vadd.f32 %v6294_v29, %v6290_v59  ;;  %v6207_v56 = vadd.f32 %v6206_v18, %v14587_v22  ;;  %v6415_v43 = vadd.f32 %v6295_v7, %v6291_v16  ;;  %v14759_v52 = vadd.f32 %v6102_v2, %v16770_v10  ;;  %v16772_v59 = vld [vmem:[#allocation59_spill] sm:$0xff] }
 0x84f   :  { %v14762_v44 = vadd.f32 %v6102_v2, %v16771_v26  ;;  %v6250_v51 = vadd.f32 %v6249_v55, %v14602_v31  ;;  %v6271_v38 = vadd.f32 %v6270_v53, %v14605_v37  ;;  %v6353_v27 = vadd.f32 %v6352_v28, %v6296_v60  ;;  %v16773_v18 = vld [vmem:[#allocation23_spill] sm:$0xff] }
 0x850   :  { %v6395_v58 = vadd.f32 %v6394_v21, %v6298_v57  ;;  %v6316_v45 = vmul.f32 %v14575_v35, %v14575_v35  ;;  %v6416_v49 = vadd.f32 %v6415_v43, %v6299_v8  ;;  %v14769_v36 = vadd.f32 %v6102_v2, %v16772_v59  ;;  %v16774_v7 = vld [vmem:[#allocation43_spill] sm:$0xff]  ;;  %v16775_v43 = vld [vmem:[#allocation18_spill] sm:$0xff] }
 0x851   :  { %v14772_v16 = vadd.f32 %v6102_v2, %v16773_v18  ;;  %v6318_v10 = vmul.f32 %v14578_v5, %v14578_v5  ;;  %v6319_v55 = vmul.f32 %v14581_v9, %v14581_v9  ;;  %v6354_v26 = vadd.f32 %v6353_v27, %v6300_v40 }
 0x852   :  { %v6396_v53 = vadd.f32 %v6395_v58, %v6302_v25  ;;  %v6208_v28 = vadd.f32 %v6207_v56, %v14596_v0  ;;  %v6417_v29 = vadd.f32 %v6416_v49, %v6303_v30  ;;  %v14780_v60 = vadd.f32 %v6102_v2, %v16774_v7  ;;  %v16776_v25 = vld [vmem:[#allocation25_spill] sm:$0xff]  ;;  %v16777_v30 = vld [vmem:[#allocation11_spill] sm:$0xff] }
 0x853   :  { %v14783_v57 = vadd.f32 %v6102_v2, %v16775_v43  ;;  %v6251_v8 = vadd.f32 %v6250_v51, %v14611_v41  ;;  %v6272_v21 = vadd.f32 %v6271_v38, %v14614_v14  ;;  %v6355_v59 = vadd.f32 %v6354_v26, %v6304_v19  ;;  %v16778_v26 = vld [vmem:[#allocation66_spill] sm:$0xff] }
 0x854   :  { %v6397_v18 = vadd.f32 %v6396_v53, %v6306_v15  ;;  %v6320_v9 = vmul.f32 %v14587_v22, %v14587_v22  ;;  %v6418_v27 = vadd.f32 %v6417_v29, %v6307_v12  ;;  %v14790_v58 = vadd.f32 %v6102_v2, %v16776_v25  ;;  %v16779_v53 = vld [vmem:[#allocation70_spill] sm:$0xff] }
 0x855   :  { %v14793_v56 = vadd.f32 %v6102_v2, %v16777_v30  ;;  %v6322_v40 = vmul.f32 %v14590_v17, %v14590_v17  ;;  %v6323_v51 = vmul.f32 %v14593_v46, %v14593_v46  ;;  %v6356_v49 = vadd.f32 %v6355_v59, %v6308_v6  ;;  %v16781_v59 = vld [vmem:[#allocation37_spill] sm:$0xff] }
 0x856   :  { %v6398_v38 = vadd.f32 %v6397_v18, %v6310_v47  ;;  %v6209_v19 = vadd.f32 %v6208_v28, %v14608_v13  ;;  %v6419_v15 = vadd.f32 %v6418_v27, %v6311_v1  ;;  %v14802_v12 = vadd.f32 %v14501_v11, %v16778_v26  ;;  %v16780_v28 = vld [vmem:[#allocation30_spill] sm:$0xff] }
 0x857   :  { %v14806_v29 = vadd.f32 %v14501_v11, %v16779_v53  ;;  %v6252_v2 = vadd.f32 %v6251_v8, %v14620_v23  ;;  %v6273_v7 = vadd.f32 %v6272_v21, %v14623_v54  ;;  %v6357_v43 = vadd.f32 %v6356_v49, %v6312_v39 }
 0x858   :  { %v6399_v25 = vadd.f32 %v6398_v38, %v6314_v3  ;;  %v6324_v47 = vmul.f32 %v14596_v0, %v14596_v0  ;;  %v6420_v6 = vadd.f32 %v6419_v15, %v6315_v42  ;;  %v14814_v1 = vadd.f32 %v14501_v11, %v16780_v28  ;;  %v16782_v42 = vld [vmem:[#allocation35_spill] sm:$0xff]  ;;  %v16783_v38 = vld [vmem:[#allocation9_spill] sm:$0xff] }
 0x859   :  { %v14818_v18 = vadd.f32 %v14501_v11, %v16781_v59  ;;  %v6326_v27 = vmul.f32 %v14602_v31, %v14602_v31  ;;  %v6327_v8 = vmul.f32 %v14605_v37, %v14605_v37  ;;  %v6358_v39 = vadd.f32 %v6357_v43, %v6316_v45 }
 0x85a   :  { %v6400_v3 = vadd.f32 %v6399_v25, %v6318_v10  ;;  %v6210_v21 = vadd.f32 %v6209_v19, %v14617_v33  ;;  %v6421_v30 = vadd.f32 %v6420_v6, %v6319_v55  ;;  %v14827_v49 = vadd.f32 %v14501_v11, %v16782_v42 }
 0x85b   :  { %v14831_v15 = vadd.f32 %v14501_v11, %v16783_v38  ;;  %v6253_v26 = vadd.f32 %v6252_v2, %v14629_v48  ;;  %v6274_v53 = vadd.f32 %v6273_v7, %v14632_v34  ;;  %v6359_v28 = vadd.f32 %v6358_v39, %v6320_v9 }
 0x85c   :  { %v6401_v59 = vadd.f32 %v6400_v3, %v6322_v40  ;;  %v6328_v45 = vmul.f32 %v14608_v13, %v14608_v13  ;;  %v6330_v10 = vmul.f32 %v14611_v41, %v14611_v41  ;;  %v6422_v55 = vadd.f32 %v6421_v30, %v6323_v51 }
 0x85d   :  { %v6221_v19 = vadd.f32 %v14762_v44, %v14759_v52  ;;  %v6331_v11 = vmul.f32 %v14614_v14, %v14614_v14  ;;  %v6332_v2 = vmul.f32 %v14617_v33, %v14617_v33  ;;  %v6360_v43 = vadd.f32 %v6359_v28, %v6324_v47 }
 0x85e   :  { %v6402_v7 = vadd.f32 %v6401_v59, %v6326_v27  ;;  %v6211_v9 = vadd.f32 %v6210_v21, %v14626_v32  ;;  %v6334_v40 = vmul.f32 %v14620_v23, %v14620_v23  ;;  %v6423_v25 = vadd.f32 %v6422_v55, %v6327_v8 }
 0x85f   :  { %v6222_v6 = vadd.f32 %v6221_v19, %v14769_v36  ;;  %v6254_v51 = vadd.f32 %v6253_v26, %v14641_v24  ;;  %v6275_v39 = vadd.f32 %v6274_v53, %v14644_v50  ;;  %v6361_v3 = vadd.f32 %v6360_v43, %v6328_v45 }
 0x860   :  { %v6403_v30 = vadd.f32 %v6402_v7, %v6330_v10  ;;  %v6335_v42 = vmul.f32 %v14623_v54, %v14623_v54  ;;  %v6424_v38 = vadd.f32 %v6423_v25, %v6331_v11  ;;  %v6336_v27 = vmul.f32 %v14626_v32, %v14626_v32  ;;  %v16787_v54 = vld [vmem:[#allocation170_spill] sm:$0xff] }
 0x861   :  { %v6223_v47 = vadd.f32 %v6222_v6, %v14772_v16  ;;  %v6338_v8 = vmul.f32 %v14629_v48, %v14629_v48  ;;  %v6362_v21 = vadd.f32 %v6361_v3, %v6332_v2  ;;  %v6212_v26 = vadd.f32 %v6211_v9, %v14635_v4 }
 0x862   :  { %v6404_v28 = vadd.f32 %v6403_v30, %v6334_v40  ;;  %v6339_v53 = vmul.f32 %v14632_v34, %v14632_v34  ;;  %v6425_v59 = vadd.f32 %v6424_v38, %v6335_v42  ;;  %v6255_v10 = vadd.f32 %v6254_v51, %v14657_v20  ;;  %v16784_v38 = vld [vmem:[#allocation15_spill] sm:$0xff] }
 0x863   :  { %v6224_v45 = vadd.f32 %v6223_v47, %v14780_v60  ;;  %v6276_v55 = vadd.f32 %v6275_v39, %v14660_v61  ;;  %v6342_v19 = vmul.f32 %v14641_v24, %v14641_v24  ;;  %v6343_v2 = vmul.f32 %v14644_v50, %v14644_v50 }
 0x864   :  { %v6405_v11 = vadd.f32 %v6404_v28, %v6338_v8  ;;  %v6363_v43 = vadd.f32 %v6362_v21, %v6336_v27  ;;  %v6426_v7 = vadd.f32 %v6425_v59, %v6339_v53  ;;  %v6340_v40 = vmul.f32 %v14635_v4, %v14635_v4 }
 0x865   :  { %v6225_v9 = vadd.f32 %v6224_v45, %v14783_v57  ;;  %v6346_v25 = vmul.f32 %v14657_v20, %v14657_v20  ;;  %v6213_v51 = vadd.f32 %v6212_v26, %v14647_v62  ;;  %v6347_v39 = vmul.f32 %v14660_v61, %v14660_v61  ;;  %v16785_v45 = vld [vmem:[#allocation57_spill] sm:$0xff] }
 0x866   :  { %v6406_v6 = vadd.f32 %v6405_v11, %v6342_v19  ;;  %v6427_v3 = vadd.f32 %v6426_v7, %v6343_v2  ;;  %v6256_v42 = vadd.f32 %v6255_v10, %v14670_v63  ;;  %v6277_v47 = vadd.f32 %v6276_v55, %v16784_v38 }
 0x867   :  { %v6226_v30 = vadd.f32 %v6225_v9, %v14790_v58  ;;  %v6289_v8 = vmul.f32 %v14759_v52, %v14759_v52  ;;  %v6364_v21 = vadd.f32 %v6363_v43, %v6340_v40  ;;  %v6293_v26 = vmul.f32 %v14762_v44, %v14762_v44 }
 0x868   :  { %v6407_v27 = vadd.f32 %v6406_v6, %v6346_v25  ;;  %v6428_v28 = vadd.f32 %v6427_v3, %v6347_v39  ;;  %v6350_v59 = vmul.f32 %v14670_v63, %v14670_v63  ;;  %v6214_v19 = vadd.f32 %v6213_v51, %v16785_v45 }
 0x869   :  { %v6227_v53 = vadd.f32 %v6226_v30, %v14793_v56  ;;  %v6344_v10 = vmul.f32 %v14647_v62, %v14647_v62  ;;  %v6351_v55 = vmul.f32 %v16784_v38, %v16784_v38  ;;  %v6257_v2 = vrot.slane %v6256_v42, 4 }
 0x86a   :  { %v6278_v43 = vrot.slane %v6277_v47, 4  ;;  %v6408_v7 = vadd.f32 %v6407_v27, %v6350_v59  ;;  %v6297_v9 = vmul.f32 %v14769_v36, %v14769_v36  ;;  %v6373_v39 = vadd.f32 %v6293_v26, %v6289_v8 }
 0x86b   :  { %v6228_v11 = vadd.f32 %v6227_v53, %v14802_v12  ;;  %v6365_v40 = vadd.f32 %v6364_v21, %v6344_v10  ;;  %v6429_v25 = vadd.f32 %v6428_v28, %v6351_v55  ;;  %v6348_v51 = vmul.f32 %v16785_v45, %v16785_v45 }
 0x86c   :  { %v6215_v3 = vrot.slane %v6214_v19, 4  ;;  %v6301_v53 = vmul.f32 %v14772_v16, %v14772_v16  ;;  %v6374_v38 = vadd.f32 %v6373_v39, %v6297_v9  ;;  %v6258_v61 = vadd.f32 %v6257_v2, %v6256_v42 }
 0x86d   :  { %v6229_v6 = vadd.f32 %v6228_v11, %v14806_v29  ;;  %v6279_v27 = vadd.f32 %v6278_v43, %v6277_v47  ;;  %v6409_v59 = vrot.slane %v6408_v7, 4  ;;  %v6305_v21 = vmul.f32 %v14780_v60, %v14780_v60 }
 0x86e   :  { %v6366_v28 = vadd.f32 %v6365_v40, %v6348_v51  ;;  %v6430_v10 = vrot.slane %v6429_v25, 4  ;;  %v6375_v26 = vadd.f32 %v6374_v38, %v6301_v53  ;;  %v6216_v55 = vadd.f32 %v6215_v3, %v6214_v19  ;;  %v16786_v38 = vld [vmem:[#allocation168_spill] sm:$0xff] }
 0x86f   :  { %v6230_v30 = vadd.f32 %v6229_v6, %v14814_v1  ;;  %v6309_v6 = vmul.f32 %v14783_v57, %v14783_v57  ;;  %v6259_v34 = vrot.slane %v6258_v61, 2  ;;  %v6280_v9 = vrot.slane %v6279_v27, 2 }
 0x870   :  { %v6376_v50 = vadd.f32 %v6375_v26, %v6305_v21  ;;  %v6410_v42 = vadd.f32 %v6409_v59, %v6408_v7  ;;  %v6313_v47 = vmul.f32 %v14790_v58, %v14790_v58  ;;  %v6367_v2 = vrot.slane %v6366_v28, 4 }
 0x871   :  { %v6231_v8 = vadd.f32 %v6230_v30, %v14818_v18  ;;  %v6431_v43 = vadd.f32 %v6430_v10, %v6429_v25  ;;  %v6217_v51 = vrot.slane %v6216_v55, 2  ;;  %v6317_v3 = vmul.f32 %v14793_v56, %v14793_v56 }
 0x872   :  { %v6377_v39 = vadd.f32 %v6376_v50, %v6309_v6  ;;  %v6260_v53 = vadd.f32 %v6259_v34, %v6258_v61  ;;  %v6281_v21 = vadd.f32 %v6280_v9, %v6279_v27  ;;  %v6321_v7 = vmul.f32 %v14802_v12, %v14802_v12 }
 0x873   :  { %v6232_v11 = vadd.f32 %v6231_v8, %v14827_v49  ;;  %v6411_v8 = vrot.slane %v6410_v42, 2  ;;  %v6368_v59 = vadd.f32 %v6367_v2, %v6366_v28  ;;  %v6432_v26 = vrot.slane %v6431_v43, 2 }
 0x874   :  { %v6378_v30 = vadd.f32 %v6377_v39, %v6313_v47  ;;  %v6325_v6 = vmul.f32 %v14806_v29, %v14806_v29  ;;  %v6261_v14 = vrot.slane %v6260_v53, 1  ;;  %v6282_v37 = vrot.slane %v6281_v21, 1 }
 0x875   :  { %v6233_v40 = vadd.f32 %v6232_v11, %v14831_v15  ;;  %v6218_v11 = vadd.f32 %v6217_v51, %v6216_v55  ;;  %v6412_v47 = vadd.f32 %v6411_v8, %v6410_v42  ;;  %v6329_v34 = vmul.f32 %v14814_v1, %v14814_v1 }
 0x876   :  { %v6379_v10 = vadd.f32 %v6378_v30, %v6317_v3  ;;  %v6369_v61 = vrot.slane %v6368_v59, 2  ;;  %v6433_v27 = vadd.f32 %v6432_v26, %v6431_v43  ;;  %v6333_v39 = vmul.f32 %v14818_v18, %v14818_v18 }
 0x877   :  { %v6234_v19 = vadd.f32 %v6233_v40, %v16786_v38  ;;  %v6219_v2 = vrot.slane %v6218_v11, 1  ;;  %v6262_v51 = vadd.f32 %v6261_v14, %v6260_v53  ;;  %v6413_v3 = vrot.slane %v6412_v47, 1 }
 0x878   :  { %v6380_v40 = vadd.f32 %v6379_v10, %v6321_v7  ;;  %v6337_v30 = vmul.f32 %v14827_v49, %v14827_v49  ;;  %v6370_v7 = vadd.f32 %v6369_v61, %v6368_v59  ;;  %v6434_v42 = vrot.slane %v6433_v27, 1 }
 0x879   :  { %v6235_v25 = vadd.f32 %v6234_v19, %v16787_v54  ;;  %v6283_v19 = vadd.f32 %v6282_v37, %v6281_v21  ;;  %v6220_v46 = vadd.f32 %v6219_v2, %v6218_v11  ;;  %v6341_v43 = vmul.f32 %v14831_v15, %v14831_v15 }
 0x87a   :  { %v6381_v28 = vadd.f32 %v6380_v40, %v6325_v6  ;;  %v6414_v6 = vadd.f32 %v6413_v3, %v6412_v47  ;;  %v6345_v37 = vmul.f32 %v16786_v38, %v16786_v38  ;;  %v6371_v14 = vrot.slane %v6370_v7, 1 }
 0x87b   :  { %v6236_v50 = vrot.slane %v6235_v25, 4  ;;  %v6435_v53 = vadd.f32 %v6434_v42, %v6433_v27  ;;  %v6349_v40 = vmul.f32 %v16787_v54, %v16787_v54 }
 0x87c   :  { %v6382_v55 = vadd.f32 %v6381_v28, %v6329_v34  ;;  %v6284_v34 = vmul.f32 0.0078125, %v6220_v46  ;;  %v6438_v61 = vmul.f32 0.0078125, %v6414_v6  ;;  %v6372_v47 = vadd.f32 %v6371_v14, %v6370_v7 }
 0x87d   :  { %v6237_v9 = vadd.f32 %v6236_v50, %v6235_v25  ;;  %v14925_v25 = vmul.f32 0.0078125, %v6262_v51  ;;  %v14927_v50 = vmul.f32 0.0078125, %v6283_v19 }
 0x87e   :  { %v6383_v10 = vadd.f32 %v6382_v55, %v6333_v39  ;;  %v6439_v39 = vmul.f32 0.0078125, %v6435_v53  ;;  %v6440_v27 = vmul.f32 %v6284_v34, %v6284_v34  ;;  %v6436_v3 = vmul.f32 0.0078125, %v6372_v47 }
 0x87f   :  { %v6238_v8 = vrot.slane %v6237_v9, 2  ;;  %v6442_v28 = vmul.f32 %v14925_v25, %v14925_v25  ;;  %v6443_v2 = vmul.f32 %v14927_v50, %v14927_v50 }
 0x880   :  { %v6384_v26 = vadd.f32 %v6383_v10, %v6337_v30 }
 0x881   :  { %v6239_v21 = vadd.f32 %v6238_v8, %v6237_v9  ;;  %v6446_v9 = vsub.f32 %v6438_v61, %v6442_v28  ;;  %v6447_v30 = vsub.f32 %v6439_v39, %v6443_v2 }
 0x882   :  { %v6385_v59 = vadd.f32 %v6384_v26, %v6341_v43  ;;  %v6444_v43 = vsub.f32 %v6436_v3, %v6440_v27  ;;  %v16788_v27 = vld [vmem:[#allocation119_spill] sm:$0xff] }
 0x883   :  { %v6240_v55 = vrot.slane %v6239_v21, 1  ;;  %v6450_v46 = vmax.f32 %v6446_v9, 0.0  ;;  %v6451_v26 = vmax.f32 %v6447_v30, 0.0 }
 0x884   :  { %v6386_v11 = vadd.f32 %v6385_v59, %v6345_v37  ;;  %v6448_v62 = vmax.f32 %v6444_v43, 0.0  ;;  %v16791_v43 = vld [vmem:[#allocation4_spill] sm:$0xff] }
 0x885   :  { %v6241_v42 = vadd.f32 %v6240_v55, %v6239_v21  ;;  %v6454_v45 = vadd.f32 1e-05, %v6450_v46  ;;  %v6455_v7 = vadd.f32 1e-05, %v6451_v26 }
 0x886   :  { %v6387_v51 = vadd.f32 %v6386_v11, %v6349_v40  ;;  %v6452_v11 = vadd.f32 1e-05, %v6448_v62  ;;  %v6199_v62 = vld [vmem:[%s16081_s13] sm:$0xff] }
 0x887   :  { %v6285_v6 = vmul.f32 0.0078125, %v6241_v42  ;;  %10082 = vrsqrt.f32 %v6454_v45  ;;  %v16789_v42 = vld [vmem:[#allocation3_spill] sm:$0xff] }
 0x888   :  { %v6388_v19 = vrot.slane %v6387_v51, 4  ;;  %10084 = vrsqrt.f32 %v6455_v7 }
 0x889   :  { %v6441_v53 = vmul.f32 %v6285_v6, %v6285_v6  ;;  %10086 = vrsqrt.f32 %v6452_v11 }
 0x88a   :  { %v6389_v8 = vadd.f32 %v6388_v19, %v6387_v51 }
 0x88c   :  { %v6390_v10 = vrot.slane %v6389_v8, 2 }
 0x88e   :  { %v6391_v37 = vadd.f32 %v6390_v10, %v6389_v8  ;;  %v16790_v10 = vld [vmem:[#allocation7_spill] sm:$0xff] }
 0x890   :  { %v6392_v59 = vrot.slane %v6391_v37, 1 }
 0x891   :  { %v10083_v2 = vpop.eup %10082 }
 0x892   :  { %v6393_v14 = vadd.f32 %v6392_v59, %v6391_v37  ;;  %v10085_v47 = vpop.eup %10084  ;;  %v16792_v37 = vld [vmem:[#allocation8_spill] sm:$0xff] }
 0x893   :  { %v6465_v39 = vcombine.low %v10083_v2, %v10085_v47  ;;  %v10087_v55 = vpop.eup %10086 }
 0x894   :  { %v6437_v40 = vmul.f32 0.0078125, %v6393_v14 }
 0x895   :  { %v6479_v9 = vrot.slane %v6465_v39, %v16788_v27 }
 0x896   :  { %v6445_v61 = vsub.f32 %v6437_v40, %v6441_v53 }
 0x898   :  { %v6449_v28 = vmax.f32 %v6445_v61, 0.0 }
 0x89a   :  { %v6453_v21 = vadd.f32 1e-05, %v6449_v28 }
 0x89c   :  { %10088 = vrsqrt.f32 %v6453_v21 }
 0x8a6   :  { %v10089_v51 = vpop.eup %10088 }
 0x8a7   :  { %v6464_v19 = vcombine.low %v10087_v55, %v10089_v51 }
 0x8a9   :  { %v6472_v3 = vrot.slane %v6464_v19, %v16788_v27 }
 0x8ab   :  { %v6480_v45 = vcombine.low %v6472_v3, %v6479_v9 }
 0x8ad   :  { %v6482_v30 = vmul.f32 %v6480_v45, %v6199_v62  ;;  %v16795_v45 = vld [vmem:[#allocation93_spill] sm:$0xff] }
 0x8af   :  { %v6487_v8 = vrot.slane %v6482_v30, %v16789_v42  ;;  %v6491_v46 = vrot.slane %v6482_v30, %v16790_v10  ;;  %v14945_v26 = vrot.slane %v6482_v30, %v16791_v43  ;;  %v14948_v59 = vrot.slane %v6482_v30, %v16792_v37 }
 0x8b1   :  { %v6504_v7 = vmul.f32 %v6487_v8, %v6284_v34  ;;  %v6505_v14 = vmul.f32 %v6491_v46, %v6285_v6  ;;  %v6506_v53 = vmul.f32 %v14945_v26, %v14925_v25  ;;  %v6507_v40 = vmul.f32 %v14948_v59, %v14927_v50  ;;  %v16793_v25 = vld [vmem:[#allocation5_spill] sm:$0xff]  ;;  %v16794_v50 = vld [vmem:[#allocation176_spill] sm:$0xff] }
 0x8b2   :  { %v14957_v39 = vrot.slane %v6491_v46, %v16789_v42  ;;  %v14962_v34 = vrot.slane %v6487_v8, %v16789_v42  ;;  %v16796_v8 = vld [vmem:[#allocation104_spill] sm:$0xff] }
 0x8b3   :  { %v6512_v11 = vcombine.low %v6504_v7, %v6505_v14  ;;  %v6513_v61 = vcombine.low %v6506_v53, %v6507_v40 }
 0x8b4   :  { %v6549_v19 = vmul.f32 %v14957_v39, %v14759_v52  ;;  %v6553_v9 = vmul.f32 %v14957_v39, %v14762_v44  ;;  %v6548_v30 = vmul.f32 %v14962_v34, %v16795_v45  ;;  %v6552_v46 = vmul.f32 %v14962_v34, %v16796_v8 }
 0x8b5   :  { %v6520_v28 = vrot.slane %v6512_v11, %v16788_v27  ;;  %v6527_v21 = vrot.slane %v6513_v61, %v16788_v27  ;;  %v6557_v43 = vmul.f32 %v14957_v39, %v14769_v36  ;;  %v6561_v52 = vmul.f32 %v14957_v39, %v14772_v16  ;;  %v16797_v11 = vld [vmem:[#allocation113_spill] sm:$0xff] }
 0x8b6   :  { %v6556_v61 = vmul.f32 %v14962_v34, %v16797_v11 }
 0x8b7   :  { %v6528_v2 = vcombine.low %v6520_v28, %v6527_v21  ;;  %v16798_v28 = vld [vmem:[#allocation123_spill] sm:$0xff] }
 0x8b8   :  { %v6560_v36 = vmul.f32 %v14962_v34, %v16798_v28 }
 0x8b9   :  { %v6529_v47 = vrot.slane %v6528_v2, 7 }
 0x8bb   :  { %v14959_v55 = vsub.f32 %v6199_v62, %v6529_v47 }
 0x8bd   :  { %v6616_v6 = vrot.slane %v14959_v55, %v16793_v25  ;;  %v6620_v51 = vrot.slane %v14959_v55, %v16794_v50 }
 0x8bf   :  { %v14973_v3 = vrot.slane %v6616_v6, %v16793_v25  ;;  %v14976_v62 = vrot.slane %v6620_v51, %v16793_v25 }
 0x8c1   :  { %v6650_v44 = vadd.f32 %v14976_v62, %v6549_v19  ;;  %v6654_v37 = vadd.f32 %v14976_v62, %v6553_v9  ;;  %v6649_v7 = vadd.f32 %v14973_v3, %v6548_v30  ;;  %v6653_v14 = vadd.f32 %v14973_v3, %v6552_v46  ;;  %v9982_v30 = vld [vmem:[%s16080_s14 + $0x100] ss:$8 sps:$4 sm:$0xff]  }
 0x8c2   :  { %v6658_v53 = vadd.f32 %v14976_v62, %v6557_v43  ;;  %v6662_v40 = vadd.f32 %v14976_v62, %v6561_v52  ;;  %v6565_v19 = vmul.f32 %v14957_v39, %v14780_v60  ;;  %v6569_v9 = vmul.f32 %v14957_v39, %v14783_v57  ;;  %v9987_v52 = vld [vmem:[%s16080_s14 + $0x114] ss:$8 sps:$4 sm:$0xff]  }
 0x8c3   :  { %v6714_v21 = vmax.f32 %v6650_v44, 0.0  ;;  %v6718_v16 = vmax.f32 %v6654_v37, 0.0  ;;  %v6713_v2 = vmax.f32 %v6649_v7, 0.0  ;;  %v6717_v47 = vmax.f32 %v6653_v14, 0.0  ;;  %v9985_v37 = vld [vmem:[%s16080_s14 + $0x110] ss:$8 sps:$4 sm:$0xff]  }
 0x8c4   :  { %v6722_v6 = vmax.f32 %v6658_v53, 0.0  ;;  %v6726_v51 = vmax.f32 %v6662_v40, 0.0  ;;  %v6657_v46 = vadd.f32 %v14973_v3, %v6556_v61  ;;  %v6661_v43 = vadd.f32 %v14973_v3, %v6560_v36  ;;  %v9990_v53 = vld [vmem:[%s16080_s14 + $0x124] ss:$8 sps:$4 sm:$0xff]   ;;  %v16800_v36 = vld [vmem:[#allocation85_spill] sm:$0xff] }
 0x8c5   :  { %v6778_v45 = vpack.c.bf16 %v6718_v16, %v6714_v21  ;;  %v6777_v8 = vpack.c.bf16 %v6717_v47, %v6713_v2  ;;  %v6666_v60 = vadd.f32 %v14976_v62, %v6565_v19  ;;  %v6670_v57 = vadd.f32 %v14976_v62, %v6569_v9  ;;  %v16799_v61 = vld [vmem:[#allocation46_spill] sm:$0xff]  ;;  %v9993_v9 = vld [vmem:[%s16080_s14 + $0x134] ss:$8 sps:$4 sm:$0xff]  }
 0x8c6   :  { %v6782_v44 = vpack.c.bf16 %v6726_v51, %v6722_v6  ;;  %v6721_v7 = vmax.f32 %v6657_v46, 0.0  ;;  %v6725_v14 = vmax.f32 %v6661_v43, 0.0  ;;  %v6564_v28 = vmul.f32 %v14962_v34, %v16799_v61  ;;  %v16801_v47 = vld [vmem:[#allocation6_spill] sm:$0xff]  ;;  %v16804_v61 = vld [vmem:[#allocation107_spill] sm:$0xff] }
 0x8c7   :  { %7225 = vmatprep.mubr.bf16.mxu1 %v6778_v45  ;;  %v6730_v40 = vmax.f32 %v6666_v60, 0.0  ;;  %v6734_v11 = vmax.f32 %v6670_v57, 0.0  ;;  %v6568_v21 = vmul.f32 %v14962_v34, %v16800_v36  ;;  %v6573_v16 = vmul.f32 %v14957_v39, %v14790_v58  ;;  %v9988_v51 = vld [vmem:[%s16080_s14 + $0x120] ss:$8 sps:$4 sm:$0xff]  }
 0x8c8   :  { %7226 = vmatmul.mubr.bf16.vlgmr.msra.gmra.mrb[84].mxu1 %v6777_v8  ;;  %v6577_v2 = vmul.f32 %v14957_v39, %v14793_v56  ;;  %v6624_v6 = vrot.slane %v14959_v55, %v16801_v47  ;;  %v6781_v19 = vpack.c.bf16 %v6725_v14, %v6721_v7  ;;  %v6665_v45 = vadd.f32 %v14973_v3, %v6564_v28 }
 0x8c9   :  { %7307 = vmatpush1.bf16.msra.mxu1 %v9982_v30  ;;  %7235 = vmatprep.mubr.bf16.mxu1 %v6782_v44  ;;  %v6669_v58 = vadd.f32 %v14973_v3, %v6568_v21  ;;  %v6674_v56 = vadd.f32 %v14976_v62, %v6573_v16  ;;  %v15038_v8 = vrot.slane %v14945_v26, %v16789_v42  ;;  %v16802_v44 = vld [vmem:[#allocation95_spill] sm:$0xff] }
 0x8ca   :  { %7308 = vmatprep.subr.bf16.mxu1 %v9987_v52  ;;  %v6678_v30 = vadd.f32 %v14976_v62, %v6577_v2  ;;  %v6786_v46 = vpack.c.bf16 %v6734_v11, %v6730_v40  ;;  %v15041_v43 = vrot.slane %v6624_v6, %v16793_v25  ;;  %v9991_v52 = vld [vmem:[%s16080_s14 + $0x130] ss:$8 sps:$4 sm:$0xff]   ;;  %v6572_v60 = vmul.f32 %v14962_v34, %v16802_v44  ;;  %v9996_v26 = vld [vmem:[%s16080_s14 + $0x144] ss:$8 sps:$4 sm:$0xff]   ;;  %v9994_v2 = vld [vmem:[%s16080_s14 + $0x140] ss:$8 sps:$4 sm:$0xff]  }
 0x8cb   :  { %v6729_v57 = vmax.f32 %v6665_v45, 0.0  ;;  %v6738_v7 = vmax.f32 %v6674_v56, 0.0  ;;  %v16803_v40 = vld [vmem:[#allocation97_spill] sm:$0xff]  ;;  %v6554_v28 = vmul.f32 %v15038_v8, %v16804_v61  ;;  %v6581_v21 = vmul.f32 %v14957_v39, %v14802_v12  ;;  %v16807_v61 = vld [vmem:[#allocation32_spill] sm:$0xff] }
 0x8cc   :  { %v6742_v14 = vmax.f32 %v6678_v30, 0.0  ;;  %v6550_v11 = vmul.f32 %v15038_v8, %v16803_v40  ;;  %v6673_v36 = vadd.f32 %v14973_v3, %v6572_v60  ;;  %v6585_v16 = vmul.f32 %v14957_v39, %v14806_v29  ;;  %v9999_v29 = vld [vmem:[%s16080_s14 + $0x154] ss:$8 sps:$4 sm:$0xff]  }
 0x8cd   :  { %7309 = vmatpush1.bf16.msra.mxu1 %v9985_v37  ;;  %v6733_v37 = vmax.f32 %v6669_v58, 0.0  ;;  %v6655_v6 = vadd.f32 %v15041_v43, %v6554_v28  ;;  %v6682_v45 = vadd.f32 %v14976_v62, %v6581_v21  ;;  %v6580_v40 = vmul.f32 %v14962_v34, %v14587_v22 }
 0x8ce   :  { %7310 = vmatprep.subr.bf16.mxu1 %v9990_v53  ;;  %v6576_v53 = vmul.f32 %v14962_v34, %v14575_v35  ;;  %v6651_v47 = vadd.f32 %v15041_v43, %v6550_v11  ;;  %v6790_v12 = vpack.c.bf16 %v6742_v14, %v6738_v7  ;;  %v6686_v58 = vadd.f32 %v14976_v62, %v6585_v16 }
 0x8cf   :  { %v6719_v30 = vmax.f32 %v6655_v6, 0.0  ;;  %v6737_v60 = vmax.f32 %v6673_v36, 0.0  ;;  %v6584_v11 = vmul.f32 %v14962_v34, %v14596_v0  ;;  %v6566_v28 = vmul.f32 %v15038_v8, %v16807_v61  ;;  %v16808_v36 = vld [vmem:[#allocation88_spill] sm:$0xff]  ;;  %v16809_v0 = vld [vmem:[#allocation99_spill] sm:$0xff] }
 0x8d0   :  { %7236 = vmatmul.mubr.bf16.gmra.mrb[88].mxu1 %v6781_v19  ;;  %v6677_v35 = vadd.f32 %v14973_v3, %v6576_v53  ;;  %v6715_v56 = vmax.f32 %v6651_v47, 0.0  ;;  %v10002_v53 = vld [vmem:[%s16080_s14 + $0x164] ss:$8 sps:$4 sm:$0xff]   ;;  %v6570_v21 = vmul.f32 %v15038_v8, %v16808_v36  ;;  %v6746_v16 = vmax.f32 %v6682_v45, 0.0 }
 0x8d1   :  { %7311 = vmatpush1.bf16.msra.mxu1 %v9988_v51  ;;  %7245 = vmatprep.mubr.bf16.mxu1 %v6786_v46  ;;  %v16805_v51 = vld [vmem:[#allocation116_spill] sm:$0xff]  ;;  %v16806_v46 = vld [vmem:[#allocation14_spill] sm:$0xff]  ;;  %v6593_v6 = vmul.f32 %v14957_v39, %v14818_v18  ;;  %v6667_v22 = vadd.f32 %v15041_v43, %v6566_v28 }
 0x8d2   :  { %7312 = vmatprep.subr.bf16.mxu1 %v9993_v9  ;;  %v6558_v19 = vmul.f32 %v15038_v8, %v16805_v51  ;;  %v6785_v9 = vpack.c.bf16 %v6733_v37, %v6729_v57  ;;  %v6741_v57 = vmax.f32 %v6677_v35, 0.0  ;;  %v15081_v37 = vpack.c.bf16 %v6719_v30, %v6715_v56  ;;  %v10005_v18 = vld [vmem:[%s16080_s14 + $0x174] ss:$8 sps:$4 sm:$0xff]  }
 0x8d3   :  { %v6589_v35 = vmul.f32 %v14957_v39, %v14814_v1  ;;  %v6671_v51 = vadd.f32 %v15041_v43, %v6570_v21  ;;  %v6685_v1 = vadd.f32 %v14973_v3, %v6584_v11  ;;  %v6578_v30 = vmul.f32 %v15038_v8, %v14578_v5  ;;  %v10008_v11 = vld [vmem:[%s16080_s14 + $0x184] ss:$8 sps:$4 sm:$0xff]  }
 0x8d4   :  { %v6659_v44 = vadd.f32 %v15041_v43, %v6558_v19  ;;  %v6574_v19 = vmul.f32 %v15038_v8, %v16809_v0  ;;  %v6588_v5 = vmul.f32 %v14962_v34, %v14608_v13  ;;  %v6586_v21 = vmul.f32 %v15038_v8, %v14602_v31  ;;  %v10006_v31 = vld [vmem:[%s16080_s14 + $0x180] ss:$8 sps:$4 sm:$0xff]  }
 0x8d5   :  { %7313 = vmatpush1.bf16.msra.mxu1 %v9991_v52  ;;  %v6562_v52 = vmul.f32 %v15038_v8, %v16806_v46  ;;  %v6735_v56 = vmax.f32 %v6671_v51, 0.0  ;;  %v6749_v28 = vmax.f32 %v6685_v1, 0.0 }
 0x8d6   :  { %7314 = vmatprep.subr.bf16.mxu1 %v9996_v26  ;;  %v9997_v26 = vld [vmem:[%s16080_s14 + $0x150] ss:$8 sps:$4 sm:$0xff]   ;;  %v6723_v14 = vmax.f32 %v6659_v44, 0.0  ;;  %v6675_v46 = vadd.f32 %v15041_v43, %v6574_v19  ;;  %v6690_v44 = vadd.f32 %v14976_v62, %v6589_v35  ;;  %v6601_v35 = vmul.f32 %v14957_v39, %v14831_v15  ;;  %v10011_v15 = vld [vmem:[%s16080_s14 + $0x194] ss:$8 sps:$4 sm:$0xff]  }
 0x8d7   :  { %v6663_v7 = vadd.f32 %v15041_v43, %v6562_v52 }
 0x8d8   :  { %7246 = vmatmul.mubr.bf16.gmra.mrb[92].mxu1 %v6785_v9  ;;  %v10000_v9 = vld [vmem:[%s16080_s14 + $0x160] ss:$8 sps:$4 sm:$0xff]   ;;  %v6702_v1 = vadd.f32 %v14976_v62, %v6601_v35 }
 0x8d9   :  { %7315 = vmatpush1.bf16.msra.mxu1 %v9994_v2  ;;  %7255 = vmatprep.mubr.bf16.mxu1 %v6790_v12  ;;  %v6750_v2 = vmax.f32 %v6686_v58, 0.0  ;;  %v6727_v47 = vmax.f32 %v6663_v7, 0.0  ;;  %v6789_v12 = vpack.c.bf16 %v6741_v57, %v6737_v60  ;;  %v6731_v58 = vmax.f32 %v6667_v22, 0.0 }
 0x8da   :  { %7316 = vmatprep.subr.bf16.mxu1 %v9999_v29  ;;  %v6681_v29 = vadd.f32 %v14973_v3, %v6580_v40  ;;  %v6694_v60 = vadd.f32 %v14976_v62, %v6593_v6  ;;  %v6679_v57 = vadd.f32 %v15041_v43, %v6578_v30  ;;  %v6739_v7 = vmax.f32 %v6675_v46, 0.0  ;;  %v10009_v46 = vld [vmem:[%s16080_s14 + $0x190] ss:$8 sps:$4 sm:$0xff]  }
 0x8db   :  { %v15108_v45 = vpack.c.bf16 %v6727_v47, %v6723_v14  ;;  %v6794_v52 = vpack.c.bf16 %v6750_v2, %v6746_v16  ;;  %v10003_v14 = vld [vmem:[%s16080_s14 + $0x170] ss:$8 sps:$4 sm:$0xff]   ;;  %v6582_v40 = vmul.f32 %v15038_v8, %v14590_v17  ;;  %v6754_v16 = vmax.f32 %v6690_v44, 0.0 }
 0x8dc   :  { %v6745_v61 = vmax.f32 %v6681_v29, 0.0  ;;  %v6743_v36 = vmax.f32 %v6679_v57, 0.0  ;;  %v6758_v2 = vmax.f32 %v6694_v60, 0.0  ;;  %v6597_v17 = vmul.f32 %v14957_v39, %v14827_v49 }
 0x8dd   :  { %7317 = vmatpush1.bf16.msra.mxu1 %v9997_v26  ;;  %v15118_v26 = vpack.c.bf16 %v6735_v56, %v6731_v58  ;;  %v6683_v13 = vadd.f32 %v15041_v43, %v6582_v40  ;;  %v6687_v6 = vadd.f32 %v15041_v43, %v6586_v21  ;;  %v6689_v22 = vadd.f32 %v14973_v3, %v6588_v5 }
 0x8de   :  { %7318 = vmatprep.subr.bf16.mxu1 %v10002_v53  ;;  %v6592_v53 = vmul.f32 %v14962_v34, %v14617_v33  ;;  %v6590_v33 = vmul.f32 %v15038_v8, %v14611_v41  ;;  %v15142_v47 = vpack.c.bf16 %v6743_v36, %v6739_v7  ;;  %v6594_v41 = vmul.f32 %v15038_v8, %v14620_v23  ;;  %v16810_v36 = vld [vmem:[#allocation171_spill] sm:$0xff] }
 0x8df   :  { %v6747_v51 = vmax.f32 %v6683_v13, 0.0  ;;  %v6793_v0 = vpack.c.bf16 %v6749_v28, %v6745_v61  ;;  %v6798_v29 = vpack.c.bf16 %v6758_v2, %v6754_v16  ;;  %v6598_v56 = vmul.f32 %v15038_v8, %v14629_v48  ;;  %v10014_v48 = vld [vmem:[%s16080_s14 + $0x1a4] ss:$8 sps:$4 sm:$0xff]   ;;  %v10012_v16 = vld [vmem:[%s16080_s14 + $0x1a0] ss:$8 sps:$4 sm:$0xff]  }
 0x8e0   :  { %7256 = vmatmul.mubr.bf16.gmra.mrb[96].mxu1 %v6789_v12  ;;  %v6691_v49 = vadd.f32 %v15041_v43, %v6590_v33  ;;  %v6693_v19 = vadd.f32 %v14973_v3, %v6592_v53  ;;  %v6751_v12 = vmax.f32 %v6687_v6, 0.0  ;;  %v6602_v30 = vmul.f32 %v15038_v8, %v14641_v24 }
 0x8e1   :  { %7319 = vmatpush1.bf16.msra.mxu1 %v10000_v9  ;;  %7265 = vmatprep.mubr.bf16.mxu1 %v6794_v52  ;;  %v6698_v9 = vadd.f32 %v14976_v62, %v6597_v17  ;;  %v6596_v52 = vmul.f32 %v14962_v34, %v14626_v32  ;;  %v6600_v44 = vmul.f32 %v14962_v34, %v14635_v4  ;;  %v6753_v57 = vmax.f32 %v6689_v22, 0.0  ;;  %v10015_v22 = vld [vmem:[%s16080_s14 + $0x1b0] ss:$8 sps:$4 sm:$0xff]  }
 0x8e2   :  { %7320 = vmatprep.subr.bf16.mxu1 %v10005_v18  ;;  %v6695_v18 = vadd.f32 %v15041_v43, %v6594_v41  ;;  %v6755_v58 = vmax.f32 %v6691_v49, 0.0  ;;  %v15159_v23 = vpack.c.bf16 %v6751_v12, %v6747_v51  ;;  %v6757_v24 = vmax.f32 %v6693_v19, 0.0 }
 0x8e3   :  { %v6699_v7 = vadd.f32 %v15041_v43, %v6598_v56  ;;  %v6762_v5 = vmax.f32 %v6698_v9, 0.0  ;;  %v6766_v53 = vmax.f32 %v6702_v1, 0.0  ;;  %v6606_v32 = vmul.f32 %v15038_v8, %v14657_v20  ;;  %v16812_v9 = vld [vmem:[#allocation57_spill] sm:$0xff] }
 0x8e4   :  { %v6759_v60 = vmax.f32 %v6695_v18, 0.0  ;;  %v6605_v4 = vmul.f32 %v14957_v39, %v16786_v38  ;;  %v6610_v28 = vmul.f32 %v15038_v8, %v14670_v63  ;;  %v6628_v21 = vrot.slane %v14959_v55, %v16810_v36  ;;  %v10017_v63 = vld [vmem:[%s16080_s14 + $0x1b4] ss:$8 sps:$4 sm:$0xff]  }
 0x8e5   :  { %7321 = vmatpush1.bf16.msra.mxu1 %v10003_v14  ;;  %v6703_v14 = vadd.f32 %v15041_v43, %v6602_v30  ;;  %v6697_v2 = vadd.f32 %v14973_v3, %v6596_v52  ;;  %v6609_v20 = vmul.f32 %v14957_v39, %v16787_v54  ;;  %v6707_v38 = vadd.f32 %v15041_v43, %v6606_v32  ;;  %v16813_v1 = vld [vmem:[#allocation101_spill] sm:$0xff]  ;;  %v16815_v32 = vld [vmem:[#allocation120_spill] sm:$0xff] }
 0x8e6   :  { %7322 = vmatprep.subr.bf16.mxu1 %v10008_v11  ;;  %v15177_v40 = vpack.c.bf16 %v6759_v60, %v6755_v58  ;;  %v6763_v11 = vmax.f32 %v6699_v7, 0.0  ;;  %v6797_v13 = vpack.c.bf16 %v6757_v24, %v6753_v57  ;;  %v6701_v55 = vadd.f32 %v14973_v3, %v6600_v44  ;;  %v16814_v58 = vld [vmem:[#allocation110_spill] sm:$0xff]  ;;  %v10021_v57 = vld [vmem:[%s16080_s14 + $0x1d0] ss:$8 sps:$4 sm:$0xff]   ;;  %v10029_v36 = vld [vmem:[%s16080_s14 + $0x1f4] ss:$8 sps:$4 sm:$0xff]  }
 0x8e7   :  { %v6767_v61 = vmax.f32 %v6703_v14, 0.0  ;;  %v6711_v33 = vadd.f32 %v15041_v43, %v6610_v28  ;;  %v6802_v17 = vpack.c.bf16 %v6766_v53, %v6762_v5  ;;  %v6706_v35 = vadd.f32 %v14976_v62, %v6605_v4  ;;  %v10020_v43 = vld [vmem:[%s16080_s14 + $0x1c4] ss:$8 sps:$4 sm:$0xff]   ;;  %v10024_v53 = vld [vmem:[%s16080_s14 + $0x1e0] ss:$8 sps:$4 sm:$0xff]  }
 0x8e8   :  { %7266 = vmatmul.mubr.bf16.gmra.mrb[100].mxu1 %v6793_v0  ;;  %v6710_v6 = vadd.f32 %v14976_v62, %v6609_v20  ;;  %v6771_v54 = vmax.f32 %v6707_v38, 0.0  ;;  %v6761_v51 = vmax.f32 %v6697_v2, 0.0  ;;  %v6765_v62 = vmax.f32 %v6701_v55, 0.0  ;;  %v10026_v24 = vld [vmem:[%s16080_s14 + $0x1e4] ss:$8 sps:$4 sm:$0xff]  }
 0x8e9   :  { %7323 = vmatpush1.bf16.msra.mxu1 %v10006_v31  ;;  %7275 = vmatprep.mubr.bf16.mxu1 %v6798_v29  ;;  %v15198_v8 = vpack.c.bf16 %v6767_v61, %v6763_v11  ;;  %v6775_v39 = vmax.f32 %v6711_v33, 0.0  ;;  %v15205_v31 = vrot.slane %v14948_v59, %v16789_v42  ;;  %v15216_v49 = vrot.slane %v6628_v21, %v16793_v25  ;;  %v10018_v29 = vld [vmem:[%s16080_s14 + $0x1c0] ss:$8 sps:$4 sm:$0xff]   ;;  %v10027_v20 = vld [vmem:[%s16080_s14 + $0x1f0] ss:$8 sps:$4 sm:$0xff]  }
 0x8ea   :  { %7324 = vmatprep.subr.bf16.mxu1 %v10011_v15  ;;  %v6770_v59 = vmax.f32 %v6706_v35, 0.0  ;;  %v6774_v0 = vmax.f32 %v6710_v6, 0.0  ;;  %v16811_v15 = vld [vmem:[#allocation163_spill] sm:$0xff]  ;;  %v6608_v12 = vmul.f32 %v14962_v34, %v16812_v9  ;;  %v6801_v30 = vpack.c.bf16 %v6765_v62, %v6761_v51  ;;  %v16820_v62 = vld [vmem:[#allocation105_spill] sm:$0xff] }
 0x8eb   :  { %v15213_v41 = vpack.c.bf16 %v6775_v39, %v6771_v54  ;;  %v6604_v19 = vmul.f32 %v14962_v34, %v16811_v15  ;;  %v6551_v18 = vmul.f32 %v15205_v31, %v16813_v1  ;;  %v6555_v56 = vmul.f32 %v15205_v31, %v16814_v58  ;;  %v16816_v11 = vld [vmem:[#allocation175_spill] sm:$0xff] }
 0x8ec   :  { %v6709_v34 = vadd.f32 %v14973_v3, %v6608_v12  ;;  %v6806_v44 = vpack.c.bf16 %v6774_v0, %v6770_v59  ;;  %v6559_v4 = vmul.f32 %v15205_v31, %v16815_v32  ;;  %v6563_v61 = vmul.f32 %v15205_v31, %v16816_v11  ;;  %v16818_v33 = vld [vmem:[#allocation91_spill] sm:$0xff] }
 0x8ed   :  { %7325 = vmatpush1.bf16.msra.mxu1 %v10009_v46  ;;  %v10023_v46 = vld [vmem:[%s16080_s14 + $0x1d4] ss:$8 sps:$4 sm:$0xff]   ;;  %v6705_v52 = vadd.f32 %v14973_v3, %v6604_v19  ;;  %v6652_v60 = vadd.f32 %v15216_v49, %v6551_v18  ;;  %v6579_v59 = vmul.f32 %v15205_v31, %v16820_v62  ;;  %v16822_v1 = vld [vmem:[#allocation111_spill] sm:$0xff] }
 0x8ee   :  { %7326 = vmatprep.subr.bf16.mxu1 %v10014_v48  ;;  %v6656_v48 = vadd.f32 %v15216_v49, %v6555_v56  ;;  %v6773_v14 = vmax.f32 %v6709_v34, 0.0  ;;  %v6664_v2 = vadd.f32 %v15216_v49, %v6563_v61  ;;  %v6587_v18 = vmul.f32 %v15205_v31, %v16822_v1 }
 0x8ef   :  { %v6769_v7 = vmax.f32 %v6705_v52, 0.0  ;;  %v6716_v3 = vmax.f32 %v6652_v60, 0.0  ;;  %v6680_v19 = vadd.f32 %v15216_v49, %v6579_v59 }
 0x8f0   :  { %7276 = vmatmul.mubr.bf16.gmra.mrb[104].mxu1 %v6797_v13  ;;  %v6720_v5 = vmax.f32 %v6656_v48, 0.0  ;;  %v6728_v13 = vmax.f32 %v6664_v2, 0.0 }
 0x8f1   :  { %7327 = vmatpush1.bf16.msra.mxu1 %v10012_v16  ;;  %7285 = vmatprep.mubr.bf16.mxu1 %v6802_v17  ;;  %v6805_v28 = vpack.c.bf16 %v6773_v14, %v6769_v7  ;;  %v6660_v16 = vadd.f32 %v15216_v49, %v6559_v4  ;;  %v6571_v17 = vmul.f32 %v15205_v31, %v16818_v33  ;;  %v6744_v12 = vmax.f32 %v6680_v19, 0.0 }
 0x8f2   :  { %7328 = vmatprep.subr.bf16.mxu1 %v10017_v63  ;;  %v6780_v21 = vpack.c.bf16 %v6720_v5, %v6716_v3  ;;  %v16817_v63 = vld [vmem:[#allocation73_spill] sm:$0xff]  ;;  %v16826_v5 = vld [vmem:[#allocation159_spill] sm:$0xff] }
 0x8f3   :  { %v6724_v38 = vmax.f32 %v6660_v16, 0.0  ;;  %v6567_v55 = vmul.f32 %v15205_v31, %v16817_v63  ;;  %v6672_v54 = vadd.f32 %v15216_v49, %v6571_v17  ;;  %v10036_v17 = vld [vmem:[%s16082_s16 + $0x58] sm:$0xff]  }
 0x8f5   :  { %7329 = vmatpush1.bf16.msra.mxu1 %v10015_v22  ;;  %v6784_v35 = vpack.c.bf16 %v6728_v13, %v6724_v38  ;;  %v6668_v6 = vadd.f32 %v15216_v49, %v6567_v55  ;;  %v6736_v22 = vmax.f32 %v6672_v54, 0.0  ;;  %v10031_v55 = vld [vmem:[%s16082_s16] sm:$0xff]  }
 0x8f6   :  { %7330 = vmatprep.subr.bf16.mxu1 %v10020_v43  ;;  %v16819_v43 = vld [vmem:[#allocation102_spill] sm:$0xff] }
 0x8f7   :  { %v6732_v39 = vmax.f32 %v6668_v6, 0.0  ;;  %v6575_v51 = vmul.f32 %v15205_v31, %v16819_v43 }
 0x8f8   :  { %7286 = vmatmul.mubr.bf16.gmra.mrb[108].mxu1 %v6801_v30  ;;  %v6688_v30 = vadd.f32 %v15216_v49, %v6587_v18 }
 0x8f9   :  { %7331 = vmatpush1.bf16.msra.mxu1 %v10018_v29  ;;  %7295 = vmatprep.mubr.bf16.mxu1 %v6806_v44  ;;  %v6788_v0 = vpack.c.bf16 %v6736_v22, %v6732_v39  ;;  %v6676_v15 = vadd.f32 %v15216_v49, %v6575_v51  ;;  %v16824_v44 = vld [vmem:[#allocation117_spill] sm:$0xff] }
 0x8fa   :  { %7332 = vmatprep.subr.bf16.mxu1 %v10023_v46  ;;  %v6752_v52 = vmax.f32 %v6688_v30, 0.0  ;;  %v6595_v60 = vmul.f32 %v15205_v31, %v16824_v44  ;;  %v10037_v51 = vld [vmem:[%s16082_s16 + $0x18] sm:$0xff]  }
 0x8fb   :  { %v6740_v9 = vmax.f32 %v6676_v15, 0.0  ;;  %v10038_v15 = vld [vmem:[%s16082_s16 + $0x60] sm:$0xff]  }
 0x8fd   :  { %7333 = vmatpush1.bf16.msra.mxu1 %v10021_v57  ;;  %v6792_v58 = vpack.c.bf16 %v6744_v12, %v6740_v9  ;;  %v10039_v12 = vld [vmem:[%s16082_s16 + $0x20] sm:$0xff]  }
 0x8fe   :  { %7334 = vmatprep.subr.bf16.mxu1 %v10026_v24  ;;  %v6696_v24 = vadd.f32 %v15216_v49, %v6595_v60  ;;  %v10041_v60 = vld [vmem:[%s16082_s16 + $0x28] sm:$0xff]  }
 0x900   :  { %7296 = vmatmul.mubr.bf16.gmra.mrb[112].mxu1 %v6805_v28  ;;  %v6760_v14 = vmax.f32 %v6696_v24, 0.0 }
 0x901   :  { %7335 = vmatpush1.bf16.msra.mxu1 %v10024_v53  ;;  %7338 = vmatprep.mubr.bf16.mxu1 %v6780_v21  ;;  %v6603_v53 = vmul.f32 %v15205_v31, %v16826_v5  ;;  %v16828_v21 = vld [vmem:[#allocation15_spill] sm:$0xff] }
 0x902   :  { %7336 = vmatprep.subr.bf16.mxu1 %v10029_v36  ;;  %v6611_v16 = vmul.f32 %v15205_v31, %v16828_v21 }
 0x903   :  { %v6704_v11 = vadd.f32 %v15216_v49, %v6603_v53  ;;  %v10044_v53 = vld [vmem:[%s16082_s16 + $0x78] sm:$0xff]  }
 0x904   :  { %v6712_v38 = vadd.f32 %v15216_v49, %v6611_v16 }
 0x905   :  { %7337 = vmatpush1.bf16.msra.mxu1 %v10027_v20  ;;  %v6768_v28 = vmax.f32 %v6704_v11, 0.0 }
 0x906   :  { %v6776_v63 = vmax.f32 %v6712_v38, 0.0 }
 0x908   :  { %7339 = vmatmul.mubr.bf16.vlgmr.msra.gmra.mrb[84].mxu1 %v15081_v37  ;;  %v16821_v37 = vld [vmem:[#allocation108_spill] sm:$0xff] }
 0x909   :  { %7348 = vmatprep.mubr.bf16.mxu1 %v6784_v35  ;;  %v6583_v29 = vmul.f32 %v15205_v31, %v16821_v37 }
 0x90b   :  { %v6684_v56 = vadd.f32 %v15216_v49, %v6583_v29  ;;  %v10040_v29 = vld [vmem:[%s16082_s16 + $0x68] sm:$0xff]  }
 0x90d   :  { %v6748_v46 = vmax.f32 %v6684_v56, 0.0 }
 0x90f   :  { %v6796_v48 = vpack.c.bf16 %v6752_v52, %v6748_v46 }
 0x910   :  { %7349 = vmatmul.mubr.bf16.gmra.mrb[88].mxu1 %v15108_v45  ;;  %v16823_v45 = vld [vmem:[#allocation114_spill] sm:$0xff] }
 0x911   :  { %7358 = vmatprep.mubr.bf16.mxu1 %v6788_v0  ;;  %v6591_v34 = vmul.f32 %v15205_v31, %v16823_v45 }
 0x913   :  { %v6692_v57 = vadd.f32 %v15216_v49, %v6591_v34 }
 0x915   :  { %v6756_v7 = vmax.f32 %v6692_v57, 0.0 }
 0x917   :  { %v6800_v32 = vpack.c.bf16 %v6760_v14, %v6756_v7  ;;  %v10042_v7 = vld [vmem:[%s16082_s16 + $0x70] sm:$0xff]  }
 0x918   :  { %7359 = vmatmul.mubr.bf16.gmra.mrb[92].mxu1 %v15118_v26  ;;  %v16825_v26 = vld [vmem:[#allocation121_spill] sm:$0xff] }
 0x919   :  { %7368 = vmatprep.mubr.bf16.mxu1 %v6792_v58  ;;  %v6599_v3 = vmul.f32 %v15205_v31, %v16825_v26 }
 0x91b   :  { %v6700_v4 = vadd.f32 %v15216_v49, %v6599_v3  ;;  %v10043_v3 = vld [vmem:[%s16082_s16 + $0x30] sm:$0xff]  }
 0x91d   :  { %v6764_v61 = vmax.f32 %v6700_v4, 0.0 }
 0x91f   :  { %v6804_v2 = vpack.c.bf16 %v6768_v28, %v6764_v61 }
 0x920   :  { %7369 = vmatmul.mubr.bf16.gmra.mrb[96].mxu1 %v15142_v47  ;;  %v16827_v47 = vld [vmem:[#allocation166_spill] sm:$0xff] }
 0x921   :  { %7378 = vmatprep.mubr.bf16.mxu1 %v6796_v48  ;;  %v6607_v36 = vmul.f32 %v15205_v31, %v16827_v47  ;;  %v10030_v31 = vld [vmem:[%s16082_s16 + $0x40] sm:$0xff]  }
 0x922   :  { %9227 = vmatprep.subr.bf16.mxu0 %v10030_v31 }
 0x923   :  { %v6708_v20 = vadd.f32 %v15216_v49, %v6607_v36  ;;  %9228 = vmatpush3.bf16.msra.mxu0 %v10031_v55  ;;  %v10035_v49 = vld [vmem:[%s16082_s16 + $0x10] sm:$0xff]  }
 0x925   :  { %v6772_v13 = vmax.f32 %v6708_v20, 0.0  ;;  %v10045_v20 = vld [vmem:[%s16082_s16 + $0x38] sm:$0xff]  }
 0x928   :  { %7379 = vmatmul.mubr.bf16.gmra.mrb[100].mxu1 %v15159_v23  ;;  %v6808_v23 = vpack.c.bf16 %v6776_v63, %v6772_v13 }
 0x929   :  { %7388 = vmatprep.mubr.bf16.mxu1 %v6800_v32 }
 0x930   :  { %7389 = vmatmul.mubr.bf16.gmra.mrb[104].mxu1 %v15177_v40  ;;  %v10032_v40 = vld [vmem:[%s16082_s16 + $0x48] sm:$0xff]  }
 0x931   :  { %7398 = vmatprep.mubr.bf16.mxu1 %v6804_v2  ;;  %9229 = vmatprep.subr.bf16.mxu0 %v10032_v40 }
 0x938   :  { %7399 = vmatmul.mubr.bf16.gmra.mrb[108].mxu1 %v15198_v8  ;;  %v10033_v8 = vld [vmem:[%s16082_s16 + $0x8] sm:$0xff]  }
 0x939   :  { %7408 = vmatprep.mubr.bf16.mxu1 %v6808_v23  ;;  %9230 = vmatpush3.bf16.msra.mxu0 %v10033_v8 }
 0x940   :  { %7409 = vmatmul.mubr.bf16.gmra.mrb[112].mxu1 %v15213_v41  ;;  %v10034_v41 = vld [vmem:[%s16082_s16 + $0x50] sm:$0xff]  }
 0x941   :  { %9231 = vmatprep.subr.bf16.mxu0 %v10034_v41 }
 0x942   :  { %9232 = vmatpush3.bf16.msra.mxu0 %v10035_v49 }
 0x943   :  { %9233 = vmatprep.subr.bf16.mxu0 %v10036_v17 }
 0x946   :  { %9234 = vmatpush3.bf16.msra.mxu0 %v10037_v51 }
 0x947   :  { %9235 = vmatprep.subr.bf16.mxu0 %v10038_v15 }
 0x94a   :  { %9236 = vmatpush3.bf16.msra.mxu0 %v10039_v12 }
 0x94b   :  { %9237 = vmatprep.subr.bf16.mxu0 %v10040_v29 }
 0x94e   :  { %9238 = vmatpush3.bf16.msra.mxu0 %v10041_v60 }
 0x94f   :  { %9239 = vmatprep.subr.bf16.mxu0 %v10042_v7 }
 0x952   :  { %9240 = vmatpush3.bf16.msra.mxu0 %v10043_v3 }
 0x953   :  { %9241 = vmatprep.subr.bf16.mxu0 %v10044_v53 }
 0x956   :  { %9242 = vmatpush3.bf16.msra.mxu0 %v10045_v20 }
 0x9db   :  { %v15319_v33 = vpop.f32.mrb[84].mxu1 }
 0x9dc   :  { %v15324_v35 = vpop.f32.mrb[85].mxu1  ;;  %v7464_v54 = vmul.f32 %v15319_v33, %v15319_v33 }
 0x9dd   :  { %v15326_v6 = vpop.f32.mrb[86].mxu1  ;;  %v7465_v62 = vmul.f32 %v15324_v35, %v15324_v35 }
 0x9de   :  { %v7420_v39 = vadd.f32 %v15326_v6, %v15319_v33  ;;  %v7466_v22 = vmul.f32 %v15326_v6, %v15326_v6  ;;  %v15334_v43 = vpop.f32.mrb[87].mxu1 }
 0x9df   :  { %v7441_v59 = vadd.f32 %v15334_v43, %v15324_v35  ;;  %v7467_v0 = vmul.f32 %v15334_v43, %v15334_v43 }
 0x9e0   :  { %v7496_v19 = vadd.f32 %v7466_v22, %v7464_v54 }
 0x9e1   :  { %v7517_v9 = vadd.f32 %v7467_v0, %v7465_v62 }
 0x9e3   :  { %v15351_v37 = vpop.f32.mrb[88].mxu1 }
 0x9e4   :  { %v7421_v1 = vadd.f32 %v7420_v39, %v15351_v37  ;;  %v7468_v18 = vmul.f32 %v15351_v37, %v15351_v37  ;;  %v15359_v58 = vpop.f32.mrb[89].mxu1 }
 0x9e5   :  { %v7442_v56 = vadd.f32 %v7441_v59, %v15359_v58  ;;  %v7469_v30 = vmul.f32 %v15359_v58, %v15359_v58  ;;  %v15364_v46 = vpop.f32.mrb[90].mxu1 }
 0x9e6   :  { %v7497_v52 = vadd.f32 %v7496_v19, %v7468_v18  ;;  %v7422_v45 = vadd.f32 %v7421_v1, %v15364_v46  ;;  %v7470_v34 = vmul.f32 %v15364_v46, %v15364_v46  ;;  %v15369_v44 = vpop.f32.mrb[91].mxu1 }
 0x9e7   :  { %v7518_v48 = vadd.f32 %v7517_v9, %v7469_v30  ;;  %v7443_v57 = vadd.f32 %v7442_v56, %v15369_v44  ;;  %v7471_v24 = vmul.f32 %v15369_v44, %v15369_v44 }
 0x9e8   :  { %v7498_v14 = vadd.f32 %v7497_v52, %v7470_v34 }
 0x9e9   :  { %v7519_v26 = vadd.f32 %v7518_v48, %v7471_v24 }
 0x9eb   :  { %v15383_v5 = vpop.f32.mrb[92].mxu1 }
 0x9ec   :  { %v7423_v32 = vadd.f32 %v7422_v45, %v15383_v5  ;;  %v7472_v4 = vmul.f32 %v15383_v5, %v15383_v5  ;;  %v15391_v11 = vpop.f32.mrb[93].mxu1 }
 0x9ed   :  { %v7444_v61 = vadd.f32 %v7443_v57, %v15391_v11  ;;  %v7473_v28 = vmul.f32 %v15391_v11, %v15391_v11  ;;  %v15396_v47 = vpop.f32.mrb[94].mxu1 }
 0x9ee   :  { %v7499_v36 = vadd.f32 %v7498_v14, %v7472_v4  ;;  %v7424_v21 = vadd.f32 %v7423_v32, %v15396_v47  ;;  %v7474_v16 = vmul.f32 %v15396_v47, %v15396_v47  ;;  %v15401_v2 = vpop.f32.mrb[95].mxu1 }
 0x9ef   :  { %v7520_v38 = vadd.f32 %v7519_v26, %v7473_v28  ;;  %v7445_v13 = vadd.f32 %v7444_v61, %v15401_v2  ;;  %v7475_v63 = vmul.f32 %v15401_v2, %v15401_v2 }
 0x9f0   :  { %v7500_v23 = vadd.f32 %v7499_v36, %v7474_v16 }
 0x9f1   :  { %v7521_v31 = vadd.f32 %v7520_v38, %v7475_v63 }
 0x9f3   :  { %v15409_v55 = vpop.f32.mrb[96].mxu1 }
 0x9f4   :  { %v7425_v40 = vadd.f32 %v7424_v21, %v15409_v55  ;;  %v7476_v8 = vmul.f32 %v15409_v55, %v15409_v55  ;;  %v15414_v41 = vpop.f32.mrb[97].mxu1 }
 0x9f5   :  { %v7446_v49 = vadd.f32 %v7445_v13, %v15414_v41  ;;  %v7477_v17 = vmul.f32 %v15414_v41, %v15414_v41  ;;  %v15419_v54 = vpop.f32.mrb[98].mxu1 }
 0x9f6   :  { %v7501_v39 = vadd.f32 %v7500_v23, %v7476_v8  ;;  %v7426_v22 = vadd.f32 %v7425_v40, %v15419_v54  ;;  %v7478_v51 = vmul.f32 %v15419_v54, %v15419_v54  ;;  %v15424_v62 = vpop.f32.mrb[99].mxu1 }
 0x9f7   :  { %v7522_v59 = vadd.f32 %v7521_v31, %v7477_v17  ;;  %v7447_v0 = vadd.f32 %v7446_v49, %v15424_v62  ;;  %v7479_v15 = vmul.f32 %v15424_v62, %v15424_v62 }
 0x9f8   :  { %v7502_v19 = vadd.f32 %v7501_v39, %v7478_v51 }
 0x9f9   :  { %v7523_v9 = vadd.f32 %v7522_v59, %v7479_v15 }
 0x9fb   :  { %v15429_v12 = vpop.f32.mrb[100].mxu1 }
 0x9fc   :  { %v7427_v29 = vadd.f32 %v7426_v22, %v15429_v12  ;;  %v7480_v1 = vmul.f32 %v15429_v12, %v15429_v12  ;;  %v15434_v18 = vpop.f32.mrb[101].mxu1 }
 0x9fd   :  { %v7448_v56 = vadd.f32 %v7447_v0, %v15434_v18  ;;  %v7481_v30 = vmul.f32 %v15434_v18, %v15434_v18  ;;  %v15439_v52 = vpop.f32.mrb[102].mxu1 }
 0x9fe   :  { %v7503_v45 = vadd.f32 %v7502_v19, %v7480_v1  ;;  %v7428_v34 = vadd.f32 %v7427_v29, %v15439_v52  ;;  %v7482_v60 = vmul.f32 %v15439_v52, %v15439_v52  ;;  %v15444_v48 = vpop.f32.mrb[103].mxu1 }
 0x9ff   :  { %v7524_v57 = vadd.f32 %v7523_v9, %v7481_v30  ;;  %v7449_v24 = vadd.f32 %v7448_v56, %v15444_v48  ;;  %v7483_v7 = vmul.f32 %v15444_v48, %v15444_v48 }
 0xa00   :  { %v7504_v14 = vadd.f32 %v7503_v45, %v7482_v60 }
 0xa01   :  { %v7525_v26 = vadd.f32 %v7524_v57, %v7483_v7 }
 0xa03   :  { %v15449_v3 = vpop.f32.mrb[104].mxu1 }
 0xa04   :  { %v7429_v53 = vadd.f32 %v7428_v34, %v15449_v3  ;;  %v7484_v32 = vmul.f32 %v15449_v3, %v15449_v3  ;;  %v15454_v4 = vpop.f32.mrb[105].mxu1 }
 0xa05   :  { %v7450_v61 = vadd.f32 %v7449_v24, %v15454_v4  ;;  %v7485_v28 = vmul.f32 %v15454_v4, %v15454_v4  ;;  %v15459_v36 = vpop.f32.mrb[106].mxu1 }
 0xa06   :  { %v7505_v21 = vadd.f32 %v7504_v14, %v7484_v32  ;;  %v7430_v16 = vadd.f32 %v7429_v53, %v15459_v36  ;;  %v7486_v20 = vmul.f32 %v15459_v36, %v15459_v36  ;;  %v15464_v38 = vpop.f32.mrb[107].mxu1 }
 0xa07   :  { %v7526_v13 = vadd.f32 %v7525_v26, %v7485_v28  ;;  %v7451_v63 = vadd.f32 %v7450_v61, %v15464_v38  ;;  %v7487_v23 = vmul.f32 %v15464_v38, %v15464_v38 }
 0xa08   :  { %v7506_v31 = vadd.f32 %v7505_v21, %v7486_v20 }
 0xa09   :  { %v7527_v40 = vadd.f32 %v7526_v13, %v7487_v23 }
 0xa0b   :  { %v15469_v8 = vpop.f32.mrb[108].mxu1 }
 0xa0c   :  { %v7431_v49 = vadd.f32 %v7430_v16, %v15469_v8  ;;  %v7488_v17 = vmul.f32 %v15469_v8, %v15469_v8  ;;  %v15474_v39 = vpop.f32.mrb[109].mxu1 }
 0xa0d   :  { %v7452_v22 = vadd.f32 %v7451_v63, %v15474_v39  ;;  %v7489_v51 = vmul.f32 %v15474_v39, %v15474_v39  ;;  %v15479_v59 = vpop.f32.mrb[110].mxu1 }
 0xa0e   :  { %v7507_v0 = vadd.f32 %v7506_v31, %v7488_v17  ;;  %v7432_v15 = vadd.f32 %v7431_v49, %v15479_v59  ;;  %v7490_v19 = vmul.f32 %v15479_v59, %v15479_v59  ;;  %v15484_v9 = vpop.f32.mrb[111].mxu1 }
 0xa0f   :  { %v7528_v29 = vadd.f32 %v7527_v40, %v7489_v51  ;;  %v7453_v1 = vadd.f32 %v7452_v22, %v15484_v9  ;;  %v7491_v56 = vmul.f32 %v15484_v9, %v15484_v9 }
 0xa10   :  { %v7508_v30 = vadd.f32 %v7507_v0, %v7490_v19 }
 0xa11   :  { %v7529_v45 = vadd.f32 %v7528_v29, %v7491_v56 }
 0xa13   :  { %v15489_v34 = vpop.f32.mrb[112].mxu1 }
 0xa14   :  { %v7433_v60 = vadd.f32 %v7432_v15, %v15489_v34  ;;  %v7492_v57 = vmul.f32 %v15489_v34, %v15489_v34  ;;  %v15494_v24 = vpop.f32.mrb[113].mxu1 }
 0xa15   :  { %v7454_v7 = vadd.f32 %v7453_v1, %v15494_v24  ;;  %v7493_v14 = vmul.f32 %v15494_v24, %v15494_v24  ;;  %v15499_v26 = vpop.f32.mrb[114].mxu1 }
 0xa16   :  { %v7509_v53 = vadd.f32 %v7508_v30, %v7492_v57  ;;  %v7434_v32 = vadd.f32 %v7433_v60, %v15499_v26  ;;  %v7494_v61 = vmul.f32 %v15499_v26, %v15499_v26  ;;  %v7416_v28 = vpop.f32.mrb[115].mxu1 }
 0xa17   :  { %v7530_v21 = vadd.f32 %v7529_v45, %v7493_v14  ;;  %v7455_v16 = vadd.f32 %v7454_v7, %v7416_v28  ;;  %v7495_v20 = vmul.f32 %v7416_v28, %v7416_v28 }
 0xa18   :  { %v7435_v13 = vrot.slane %v7434_v32, 4  ;;  %v7510_v63 = vadd.f32 %v7509_v53, %v7494_v61 }
 0xa19   :  { %v7456_v23 = vrot.slane %v7455_v16, 4  ;;  %v7531_v31 = vadd.f32 %v7530_v21, %v7495_v20 }
 0xa1a   :  { %v7436_v40 = vadd.f32 %v7435_v13, %v7434_v32  ;;  %v7511_v49 = vrot.slane %v7510_v63, 4 }
 0xa1b   :  { %v7457_v17 = vadd.f32 %v7456_v23, %v7455_v16  ;;  %v7532_v22 = vrot.slane %v7531_v31, 4 }
 0xa1c   :  { %v7437_v51 = vrot.slane %v7436_v40, 2  ;;  %v7512_v0 = vadd.f32 %v7511_v49, %v7510_v63 }
 0xa1d   :  { %v7458_v15 = vrot.slane %v7457_v17, 2  ;;  %v7533_v19 = vadd.f32 %v7532_v22, %v7531_v31 }
 0xa1e   :  { %v7438_v29 = vadd.f32 %v7437_v51, %v7436_v40  ;;  %v7513_v1 = vrot.slane %v7512_v0, 2 }
 0xa1f   :  { %v7459_v56 = vadd.f32 %v7458_v15, %v7457_v17  ;;  %v7534_v30 = vrot.slane %v7533_v19, 2 }
 0xa20   :  { %v7439_v60 = vrot.slane %v7438_v29, 1  ;;  %v7514_v45 = vadd.f32 %v7513_v1, %v7512_v0 }
 0xa21   :  { %v7460_v57 = vrot.slane %v7459_v56, 1  ;;  %v7535_v7 = vadd.f32 %v7534_v30, %v7533_v19 }
 0xa22   :  { %v7440_v14 = vadd.f32 %v7439_v60, %v7438_v29  ;;  %v7515_v53 = vrot.slane %v7514_v45, 1 }
 0xa23   :  { %v7461_v61 = vadd.f32 %v7460_v57, %v7459_v56  ;;  %v7536_v21 = vrot.slane %v7535_v7, 1  ;;  %v7419_v56 = vld [vmem:[%s16083_s15] sm:$0xf] }
 0xa24   :  { %v7462_v32 = vmul.f32 0.0078125, %v7440_v14  ;;  %v7516_v20 = vadd.f32 %v7515_v53, %v7514_v45 }
 0xa25   :  { %v7463_v16 = vmul.f32 0.0078125, %v7461_v61  ;;  %v7537_v13 = vadd.f32 %v7536_v21, %v7535_v7 }
 0xa26   :  { %v7538_v23 = vmul.f32 0.0078125, %v7516_v20  ;;  %v7540_v63 = vmul.f32 %v7462_v32, %v7462_v32 }
 0xa27   :  { %v7539_v49 = vmul.f32 0.0078125, %v7537_v13  ;;  %v7541_v31 = vmul.f32 %v7463_v16, %v7463_v16 }
 0xa28   :  { %v7542_v40 = vsub.f32 %v7538_v23, %v7540_v63 }
 0xa29   :  { %v7543_v22 = vsub.f32 %v7539_v49, %v7541_v31 }
 0xa2a   :  { %v7544_v17 = vmax.f32 %v7542_v40, 0.0 }
 0xa2b   :  { %v7545_v51 = vmax.f32 %v7543_v22, 0.0 }
 0xa2c   :  { %v7546_v15 = vadd.f32 1e-05, %v7544_v17 }
 0xa2d   :  { %v7547_v0 = vadd.f32 1e-05, %v7545_v51 }
 0xa2e   :  { %10090 = vrsqrt.f32 %v7546_v15 }
 0xa2f   :  { %10092 = vrsqrt.f32 %v7547_v0 }
 0xa38   :  { %v10091_v19 = vpop.eup %10090 }
 0xa39   :  { %v10093_v29 = vpop.eup %10092 }
 0xa3a   :  { %v7552_v1 = vcombine.low %v10091_v19, %v10093_v29 }
 0xa3c   :  { %v7559_v30 = vrot.slane %v7552_v1, %v16788_v27 }
 0xa3e   :  { %v7561_v60 = vmul.f32 %v7559_v30, %v7419_v56 }
 0xa40   :  { %v7566_v45 = vrot.slane %v7561_v60, %v16789_v42  ;;  %v7570_v57 = vrot.slane %v7561_v60, %v16790_v10 }
 0xa42   :  { %v7573_v7 = vmul.f32 %v7566_v45, %v7462_v32  ;;  %v7574_v14 = vmul.f32 %v7570_v57, %v7463_v16  ;;  %v7591_v53 = vrot.slane %v7566_v45, %v16789_v42  ;;  %v7595_v61 = vrot.slane %v7570_v57, %v16789_v42 }
 0xa44   :  { %v7577_v21 = vcombine.low %v7573_v7, %v7574_v14  ;;  %v7627_v20 = vmul.f32 %v7595_v61, %v7416_v28  ;;  %v7597_v13 = vmul.f32 %v7595_v61, %v15324_v35  ;;  %v7599_v23 = vmul.f32 %v7595_v61, %v15334_v43 }
 0xa45   :  { %v7596_v63 = vmul.f32 %v7591_v53, %v15319_v33  ;;  %v7598_v49 = vmul.f32 %v7591_v53, %v15326_v6  ;;  %v7601_v31 = vmul.f32 %v7595_v61, %v15359_v58  ;;  %v7603_v10 = vmul.f32 %v7595_v61, %v15369_v44 }
 0xa46   :  { %v7584_v32 = vrot.slane %v7577_v21, %v16788_v27  ;;  %v7600_v16 = vmul.f32 %v7591_v53, %v15351_v37  ;;  %v7602_v40 = vmul.f32 %v7591_v53, %v15364_v46  ;;  %v7605_v28 = vmul.f32 %v7595_v61, %v15391_v11 }
 0xa47   :  { %v7607_v35 = vmul.f32 %v7595_v61, %v15401_v2  ;;  %v7604_v43 = vmul.f32 %v7591_v53, %v15383_v5  ;;  %v7606_v33 = vmul.f32 %v7591_v53, %v15396_v47  ;;  %v7609_v6 = vmul.f32 %v7595_v61, %v15414_v41 }
 0xa48   :  { %v7585_v22 = vrot.slane %v7584_v32, 7  ;;  %v7611_v58 = vmul.f32 %v7595_v61, %v15424_v62  ;;  %v7608_v44 = vmul.f32 %v7591_v53, %v15409_v55  ;;  %v7610_v27 = vmul.f32 %v7591_v53, %v15419_v54 }
 0xa49   :  { %v7613_v37 = vmul.f32 %v7595_v61, %v15434_v18  ;;  %v7615_v46 = vmul.f32 %v7595_v61, %v15444_v48  ;;  %v15532_v11 = vmul.f32 %v7591_v53, %v15429_v12  ;;  %v15535_v5 = vmul.f32 %v7591_v53, %v15439_v52 }
 0xa4a   :  { %v7587_v47 = vsub.f32 %v7419_v56, %v7585_v22  ;;  %v15538_v2 = vmul.f32 %v7595_v61, %v15454_v4  ;;  %v15541_v41 = vmul.f32 %v7595_v61, %v15464_v38  ;;  %v15544_v55 = vmul.f32 %v7591_v53, %v15449_v3 }
 0xa4b   :  { %v15547_v54 = vmul.f32 %v7591_v53, %v15459_v36  ;;  %v15550_v62 = vmul.f32 %v7595_v61, %v15474_v39  ;;  %v15553_v12 = vmul.f32 %v7595_v61, %v15484_v9  ;;  %v15556_v18 = vmul.f32 %v7591_v53, %v15469_v8 }
 0xa4c   :  { %v7632_v52 = vrot.slane %v7587_v47, %v16793_v25  ;;  %v7636_v48 = vrot.slane %v7587_v47, %v16794_v50  ;;  %v15561_v4 = vmul.f32 %v7591_v53, %v15479_v59  ;;  %v15564_v3 = vmul.f32 %v7595_v61, %v15494_v24 }
 0xa4d   :  { %v15567_v36 = vmul.f32 %v7591_v53, %v15489_v34  ;;  %v15570_v38 = vmul.f32 %v7591_v53, %v15499_v26 }
 0xa4e   :  { %v15573_v39 = vrot.slane %v7632_v52, %v16793_v25  ;;  %v15576_v8 = vrot.slane %v7636_v48, %v16793_v25 }
 0xa50   :  { %v15579_v50 = vadd.f32 %v15576_v8, %v7627_v20  ;;  %v7648_v59 = vadd.f32 %v15576_v8, %v7597_v13  ;;  %v7650_v9 = vadd.f32 %v15576_v8, %v7599_v23  ;;  %v7647_v24 = vadd.f32 %v15573_v39, %v7596_v63 }
 0xa51   :  { %v7649_v34 = vadd.f32 %v15573_v39, %v7598_v49  ;;  %v7652_v26 = vadd.f32 %v15576_v8, %v7601_v31  ;;  %v7654_v17 = vadd.f32 %v15576_v8, %v7603_v10  ;;  %v7651_v51 = vadd.f32 %v15573_v39, %v7600_v16 }
 0xa52   :  { %v7710_v15 = vmax.f32 %v15579_v50, 0.0  ;;  %v7680_v0 = vmax.f32 %v7648_v59, 0.0  ;;  %v7682_v19 = vmax.f32 %v7650_v9, 0.0  ;;  %v7679_v29 = vmax.f32 %v7647_v24, 0.0  ;;  %v10051_v50 = vld [vmem:[%s16084_s18 + $0x28] sm:$0xff]  }
 0xa53   :  { %v7681_v1 = vmax.f32 %v7649_v34, 0.0  ;;  %v7684_v56 = vmax.f32 %v7652_v26, 0.0  ;;  %v7686_v30 = vmax.f32 %v7654_v17, 0.0  ;;  %v7653_v60 = vadd.f32 %v15573_v39, %v7602_v40 }
 0xa54   :  { %v7712_v45 = vpack.c.bf16 %v7682_v19, %v7680_v0  ;;  %v7683_v57 = vmax.f32 %v7651_v51, 0.0  ;;  %v7656_v7 = vadd.f32 %v15576_v8, %v7605_v28  ;;  %v7658_v14 = vadd.f32 %v15576_v8, %v7607_v35 }
 0xa55   :  { %v7711_v53 = vpack.c.bf16 %v7681_v1, %v7679_v29  ;;  %v7714_v61 = vpack.c.bf16 %v7686_v30, %v7684_v56  ;;  %v7685_v21 = vmax.f32 %v7653_v60, 0.0  ;;  %v7655_v20 = vadd.f32 %v15573_v39, %v7604_v43 }
 0xa56   :  { %7887 = vmatprep.mubr.bf16.mxu0 %v7712_v45  ;;  %v7688_v13 = vmax.f32 %v7656_v7, 0.0  ;;  %v7690_v23 = vmax.f32 %v7658_v14, 0.0  ;;  %v7657_v63 = vadd.f32 %v15573_v39, %v7606_v33  ;;  %v7660_v49 = vadd.f32 %v15576_v8, %v7609_v6 }
 0xa57   :  { %7888 = vmatmul.mubr.bf16.vlgmr.msra.gmra.mrb[100].mxu0 %v7711_v53  ;;  %v7713_v31 = vpack.c.bf16 %v7685_v21, %v7683_v57  ;;  %v7687_v10 = vmax.f32 %v7655_v20, 0.0  ;;  %v7662_v32 = vadd.f32 %v15576_v8, %v7611_v58  ;;  %v7659_v16 = vadd.f32 %v15573_v39, %v7608_v44 }
 0xa58   :  { %7895 = vmatprep.mubr.bf16.mxu0 %v7714_v61  ;;  %v7716_v40 = vpack.c.bf16 %v7690_v23, %v7688_v13  ;;  %v7689_v28 = vmax.f32 %v7657_v63, 0.0  ;;  %v7692_v35 = vmax.f32 %v7660_v49, 0.0  ;;  %v7661_v43 = vadd.f32 %v15573_v39, %v7610_v27  ;;  %v10053_v23 = vld [vmem:[%s16084_s18 + $0x38] sm:$0xff]  }
 0xa59   :  { %v7694_v22 = vmax.f32 %v7662_v32, 0.0  ;;  %v7691_v47 = vmax.f32 %v7659_v16, 0.0  ;;  %v7664_v52 = vadd.f32 %v15576_v8, %v7613_v37  ;;  %v7666_v33 = vadd.f32 %v15576_v8, %v7615_v46 }
 0xa5a   :  { %v7715_v6 = vpack.c.bf16 %v7689_v28, %v7687_v10  ;;  %v7693_v48 = vmax.f32 %v7661_v43, 0.0  ;;  %v7663_v59 = vadd.f32 %v15573_v39, %v15532_v11  ;;  %v7665_v58 = vadd.f32 %v15573_v39, %v15535_v5 }
 0xa5b   :  { %v7718_v44 = vpack.c.bf16 %v7694_v22, %v7692_v35  ;;  %v7696_v9 = vmax.f32 %v7664_v52, 0.0  ;;  %v7698_v24 = vmax.f32 %v7666_v33, 0.0  ;;  %v7668_v27 = vadd.f32 %v15576_v8, %v15538_v2 }
 0xa5c   :  { %v7717_v34 = vpack.c.bf16 %v7693_v48, %v7691_v47  ;;  %v7695_v26 = vmax.f32 %v7663_v59, 0.0  ;;  %v7697_v17 = vmax.f32 %v7665_v58, 0.0  ;;  %v7670_v37 = vadd.f32 %v15576_v8, %v15541_v41 }
 0xa5d   :  { %v7720_v46 = vpack.c.bf16 %v7698_v24, %v7696_v9  ;;  %v7700_v51 = vmax.f32 %v7668_v27, 0.0  ;;  %v7667_v11 = vadd.f32 %v15573_v39, %v15544_v55  ;;  %v7669_v5 = vadd.f32 %v15573_v39, %v15547_v54 }
 0xa5e   :  { %v7719_v0 = vpack.c.bf16 %v7697_v17, %v7695_v26  ;;  %v7702_v19 = vmax.f32 %v7670_v37, 0.0  ;;  %v7672_v29 = vadd.f32 %v15576_v8, %v15550_v62  ;;  %v7674_v2 = vadd.f32 %v15576_v8, %v15553_v12 }
 0xa5f   :  { %7896 = vmatmul.mubr.bf16.gmra.mrb[104].mxu0 %v7713_v31  ;;  %v7699_v1 = vmax.f32 %v7667_v11, 0.0  ;;  %v7701_v56 = vmax.f32 %v7669_v5, 0.0  ;;  %v7671_v41 = vadd.f32 %v15573_v39, %v15556_v18  ;;  %v7673_v55 = vadd.f32 %v15573_v39, %v15561_v4 }
 0xa60   :  { %7903 = vmatprep.mubr.bf16.mxu0 %v7716_v40  ;;  %v7722_v30 = vpack.c.bf16 %v7702_v19, %v7700_v51  ;;  %v7704_v54 = vmax.f32 %v7672_v29, 0.0  ;;  %v7706_v60 = vmax.f32 %v7674_v2, 0.0  ;;  %v7676_v45 = vadd.f32 %v15576_v8, %v15564_v3  ;;  %v10046_v3 = vld [vmem:[%s16084_s18] sm:$0xff]  }
 0xa61   :  { %v7721_v62 = vpack.c.bf16 %v7701_v56, %v7699_v1  ;;  %v7703_v57 = vmax.f32 %v7671_v41, 0.0  ;;  %v7705_v7 = vmax.f32 %v7673_v55, 0.0  ;;  %v7675_v12 = vadd.f32 %v15573_v39, %v15567_v36  ;;  %9391 = vmatprep.subr.bf16.mxu0 %v10046_v3  ;;  %v10047_v36 = vld [vmem:[%s16084_s18 + $0x8] sm:$0xff]   ;;  %v10050_v8 = vld [vmem:[%s16084_s18 + $0x20] sm:$0xff]  }
 0xa62   :  { %v7724_v14 = vpack.c.bf16 %v7706_v60, %v7704_v54  ;;  %v7708_v53 = vmax.f32 %v7676_v45, 0.0  ;;  %v7677_v18 = vadd.f32 %v15573_v39, %v15570_v38  ;;  %9392 = vmatpush3.bf16.msra.mxu0 %v10046_v3  ;;  %v10048_v38 = vld [vmem:[%s16084_s18 + $0x10] sm:$0xff]   ;;  %v10049_v39 = vld [vmem:[%s16084_s18 + $0x18] sm:$0xff]  }
 0xa63   :  { %v7723_v61 = vpack.c.bf16 %v7705_v7, %v7703_v57  ;;  %v7707_v4 = vmax.f32 %v7675_v12, 0.0  ;;  %9393 = vmatprep.subr.bf16.mxu0 %v10047_v36 }
 0xa64   :  { %v7726_v21 = vpack.c.bf16 %v7710_v15, %v7708_v53  ;;  %v7709_v20 = vmax.f32 %v7677_v18, 0.0  ;;  %v10052_v15 = vld [vmem:[%s16084_s18 + $0x30] sm:$0xff]  }
 0xa66   :  { %v7725_v13 = vpack.c.bf16 %v7709_v20, %v7707_v4  ;;  %9394 = vmatpush3.bf16.msra.mxu0 %v10047_v36 }
 0xa67   :  { %7904 = vmatmul.mubr.bf16.gmra.mrb[108].mxu0 %v7715_v6  ;;  %9395 = vmatprep.subr.bf16.mxu0 %v10048_v38 }
 0xa68   :  { %7911 = vmatprep.mubr.bf16.mxu0 %v7718_v44 }
 0xa6a   :  { %9396 = vmatpush3.bf16.msra.mxu0 %v10048_v38 }
 0xa6b   :  { %9397 = vmatprep.subr.bf16.mxu0 %v10049_v39 }
 0xa6e   :  { %9398 = vmatpush3.bf16.msra.mxu0 %v10049_v39 }
 0xa6f   :  { %7912 = vmatmul.mubr.bf16.gmra.mrb[112].mxu0 %v7717_v34  ;;  %9399 = vmatprep.subr.bf16.mxu0 %v10050_v8 }
 0xa70   :  { %7919 = vmatprep.mubr.bf16.mxu0 %v7720_v46 }
 0xa72   :  { %9400 = vmatpush3.bf16.msra.mxu0 %v10050_v8 }
 0xa73   :  { %9401 = vmatprep.subr.bf16.mxu0 %v10051_v50 }
 0xa76   :  { %9402 = vmatpush3.bf16.msra.mxu0 %v10051_v50 }
 0xa77   :  { %7920 = vmatmul.mubr.bf16.gmra.mrb[116].mxu0 %v7719_v0  ;;  %9403 = vmatprep.subr.bf16.mxu0 %v10052_v15 }
 0xa78   :  { %7927 = vmatprep.mubr.bf16.mxu0 %v7722_v30 }
 0xa7a   :  { %9404 = vmatpush3.bf16.msra.mxu0 %v10052_v15 }
 0xa7b   :  { %9405 = vmatprep.subr.bf16.mxu0 %v10053_v23 }
 0xa7e   :  { %9406 = vmatpush3.bf16.msra.mxu0 %v10053_v23 }
 0xa7f   :  { %7928 = vmatmul.mubr.bf16.gmra.mrb[120].mxu0 %v7721_v62 }
 0xa80   :  { %7935 = vmatprep.mubr.bf16.mxu0 %v7724_v14 }
 0xa87   :  { %7936 = vmatmul.mubr.bf16.gmra.mrb[124].mxu0 %v7723_v61 }
 0xa88   :  { %7943 = vmatprep.mubr.bf16.mxu0 %v7726_v21 }
 0xa8f   :  { %7944 = vmatmul.mubr.bf16.gmra.mrb[128].mxu0 %v7725_v13 }
 0xb2a   :  { %v9243_v63 = vpop.f32.mrb[100].mxu0 }
 0xb2b   :  { %v9244_v49 = vpop.f32.mrb[101].mxu0 }
 0xb2c   :  { %v15652_v31 = vadd.f32 %v9244_v49, %v9243_v63  ;;  %v9246_v10 = vpop.f32.mrb[102].mxu0 }
 0xb2d   :  { %v9247_v32 = vpop.f32.mrb[103].mxu0 }
 0xb2e   :  { %v15654_v16 = vadd.f32 %v9247_v32, %v9246_v10  ;;  %v7975_v48 = vmul.f32 %v15652_v31, %v15652_v31 }
 0xb30   :  { %v7976_v52 = vmul.f32 %v15654_v16, %v15654_v16  ;;  %v7953_v59 = vadd.f32 %v15654_v16, %v15652_v31 }
 0xb32   :  { %v9249_v40 = vpop.f32.mrb[104].mxu0  ;;  %v7991_v27 = vadd.f32 %v7976_v52, %v7975_v48 }
 0xb33   :  { %v9250_v28 = vpop.f32.mrb[105].mxu0 }
 0xb34   :  { %v15656_v35 = vadd.f32 %v9250_v28, %v9249_v40  ;;  %v9252_v43 = vpop.f32.mrb[106].mxu0 }
 0xb35   :  { %v9253_v22 = vpop.f32.mrb[107].mxu0 }
 0xb36   :  { %v15658_v47 = vadd.f32 %v9253_v22, %v9252_v43  ;;  %v7977_v58 = vmul.f32 %v15656_v35, %v15656_v35  ;;  %v7954_v34 = vadd.f32 %v15656_v35, %v7953_v59 }
 0xb38   :  { %v7992_v17 = vadd.f32 %v7991_v27, %v7977_v58  ;;  %v7978_v37 = vmul.f32 %v15658_v47, %v15658_v47  ;;  %v7955_v46 = vadd.f32 %v15658_v47, %v7954_v34 }
 0xb3a   :  { %v9255_v33 = vpop.f32.mrb[108].mxu0  ;;  %v7993_v0 = vadd.f32 %v7992_v17, %v7978_v37 }
 0xb3b   :  { %v9256_v6 = vpop.f32.mrb[109].mxu0 }
 0xb3c   :  { %v15668_v44 = vadd.f32 %v9256_v6, %v9255_v33  ;;  %v9258_v9 = vpop.f32.mrb[110].mxu0 }
 0xb3d   :  { %v9259_v24 = vpop.f32.mrb[111].mxu0 }
 0xb3e   :  { %v15671_v26 = vadd.f32 %v9259_v24, %v9258_v9  ;;  %v7979_v51 = vmul.f32 %v15668_v44, %v15668_v44  ;;  %v7956_v19 = vadd.f32 %v15668_v44, %v7955_v46 }
 0xb40   :  { %v7994_v56 = vadd.f32 %v7993_v0, %v7979_v51  ;;  %v7980_v41 = vmul.f32 %v15671_v26, %v15671_v26  ;;  %v7957_v30 = vadd.f32 %v15671_v26, %v7956_v19 }
 0xb42   :  { %v9261_v11 = vpop.f32.mrb[112].mxu0  ;;  %v7995_v60 = vadd.f32 %v7994_v56, %v7980_v41 }
 0xb43   :  { %v9262_v5 = vpop.f32.mrb[113].mxu0 }
 0xb44   :  { %v15679_v29 = vadd.f32 %v9262_v5, %v9261_v11  ;;  %v9264_v2 = vpop.f32.mrb[114].mxu0 }
 0xb45   :  { %v9265_v1 = vpop.f32.mrb[115].mxu0 }
 0xb46   :  { %v15683_v55 = vadd.f32 %v9265_v1, %v9264_v2  ;;  %v7981_v54 = vmul.f32 %v15679_v29, %v15679_v29  ;;  %v7958_v45 = vadd.f32 %v15679_v29, %v7957_v30 }
 0xb48   :  { %v7996_v7 = vadd.f32 %v7995_v60, %v7981_v54  ;;  %v7982_v12 = vmul.f32 %v15683_v55, %v15683_v55  ;;  %v7959_v61 = vadd.f32 %v15683_v55, %v7958_v45 }
 0xb4a   :  { %v9267_v62 = vpop.f32.mrb[116].mxu0  ;;  %v7997_v20 = vadd.f32 %v7996_v7, %v7982_v12 }
 0xb4b   :  { %v9268_v57 = vpop.f32.mrb[117].mxu0 }
 0xb4c   :  { %v15691_v14 = vadd.f32 %v9268_v57, %v9267_v62  ;;  %v9270_v53 = vpop.f32.mrb[118].mxu0 }
 0xb4d   :  { %v9271_v18 = vpop.f32.mrb[119].mxu0 }
 0xb4e   :  { %v7983_v4 = vmul.f32 %v15691_v14, %v15691_v14  ;;  %v15696_v21 = vadd.f32 %v9271_v18, %v9270_v53  ;;  %v7960_v13 = vadd.f32 %v15691_v14, %v7959_v61 }
 0xb50   :  { %v7998_v3 = vadd.f32 %v7997_v20, %v7983_v4  ;;  %v7984_v36 = vmul.f32 %v15696_v21, %v15696_v21  ;;  %v7961_v8 = vadd.f32 %v15696_v21, %v7960_v13 }
 0xb52   :  { %v9273_v38 = vpop.f32.mrb[120].mxu0  ;;  %v7999_v63 = vadd.f32 %v7998_v3, %v7984_v36 }
 0xb53   :  { %v9274_v39 = vpop.f32.mrb[121].mxu0 }
 0xb54   :  { %v15702_v50 = vadd.f32 %v9274_v39, %v9273_v38  ;;  %v9276_v15 = vpop.f32.mrb[122].mxu0 }
 0xb55   :  { %v9277_v23 = vpop.f32.mrb[123].mxu0 }
 0xb56   :  { %v7962_v49 = vadd.f32 %v15702_v50, %v7961_v8  ;;  %v7985_v10 = vmul.f32 %v15702_v50, %v15702_v50  ;;  %v15707_v32 = vadd.f32 %v9277_v23, %v9276_v15  ;;  %v7952_v23 = vld [vmem:[%s16085_s17] sm:$0x3] }
 0xb58   :  { %v8000_v40 = vadd.f32 %v7999_v63, %v7985_v10  ;;  %v7963_v28 = vadd.f32 %v15707_v32, %v7962_v49  ;;  %v7986_v43 = vmul.f32 %v15707_v32, %v15707_v32 }
 0xb5a   :  { %v8001_v22 = vadd.f32 %v8000_v40, %v7986_v43  ;;  %v9279_v52 = vpop.f32.mrb[124].mxu0 }
 0xb5b   :  { %v9280_v33 = vpop.f32.mrb[125].mxu0 }
 0xb5c   :  { %v9281_v6 = vadd.f32 %v9280_v33, %v9279_v52  ;;  %v9282_v48 = vpop.f32.mrb[126].mxu0 }
 0xb5d   :  { %v9283_v59 = vpop.f32.mrb[127].mxu0 }
 0xb5e   :  { %v7964_v58 = vadd.f32 %v9281_v6, %v7963_v28  ;;  %v7987_v9 = vmul.f32 %v9281_v6, %v9281_v6  ;;  %v9284_v24 = vadd.f32 %v9283_v59, %v9282_v48 }
 0xb60   :  { %v8002_v27 = vadd.f32 %v8001_v22, %v7987_v9  ;;  %v7965_v34 = vadd.f32 %v9284_v24, %v7964_v58  ;;  %v7988_v17 = vmul.f32 %v9284_v24, %v9284_v24 }
 0xb62   :  { %v8003_v37 = vadd.f32 %v8002_v27, %v7988_v17  ;;  %v9285_v46 = vpop.f32.mrb[128].mxu0 }
 0xb63   :  { %v9286_v51 = vpop.f32.mrb[129].mxu0 }
 0xb64   :  { %v9287_v11 = vadd.f32 %v9286_v51, %v9285_v46  ;;  %v9288_v5 = vpop.f32.mrb[130].mxu0 }
 0xb65   :  { %v9289_v0 = vpop.f32.mrb[131].mxu0 }
 0xb66   :  { %v7966_v19 = vadd.f32 %v9287_v11, %v7965_v34  ;;  %v7989_v2 = vmul.f32 %v9287_v11, %v9287_v11  ;;  %v9290_v1 = vadd.f32 %v9289_v0, %v9288_v5 }
 0xb68   :  { %v8004_v56 = vadd.f32 %v8003_v37, %v7989_v2  ;;  %v7967_v41 = vadd.f32 %v9290_v1, %v7966_v19  ;;  %v7990_v30 = vmul.f32 %v9290_v1, %v9290_v1 }
 0xb6a   :  { %v7968_v54 = vrot.slane %v7967_v41, 4  ;;  %v8005_v60 = vadd.f32 %v8004_v56, %v7990_v30 }
 0xb6c   :  { %v7969_v45 = vadd.f32 %v7968_v54, %v7967_v41  ;;  %v8006_v62 = vrot.slane %v8005_v60, 4 }
 0xb6e   :  { %v7970_v57 = vrot.slane %v7969_v45, 2  ;;  %v8007_v7 = vadd.f32 %v8006_v62, %v8005_v60 }
 0xb70   :  { %v7971_v12 = vadd.f32 %v7970_v57, %v7969_v45  ;;  %v8008_v53 = vrot.slane %v8007_v7, 2 }
 0xb72   :  { %v7972_v18 = vrot.slane %v7971_v12, 1  ;;  %v8009_v61 = vadd.f32 %v8008_v53, %v8007_v7 }
 0xb74   :  { %v7973_v4 = vadd.f32 %v7972_v18, %v7971_v12  ;;  %v8010_v20 = vrot.slane %v8009_v61, 1 }
 0xb76   :  { %v7974_v13 = vmul.f32 0.0078125, %v7973_v4  ;;  %v8011_v3 = vadd.f32 %v8010_v20, %v8009_v61 }
 0xb78   :  { %v8012_v36 = vmul.f32 0.0078125, %v8011_v3  ;;  %v8013_v38 = vmul.f32 %v7974_v13, %v7974_v13 }
 0xb7a   :  { %v8014_v39 = vsub.f32 %v8012_v36, %v8013_v38 }
 0xb7c   :  { %v8015_v8 = vmax.f32 %v8014_v39, 0.0 }
 0xb7e   :  { %v8016_v15 = vadd.f32 1e-05, %v8015_v8 }
 0xb80   :  { %10094 = vrsqrt.f32 %v8016_v15 }
 0xb8a   :  { %v10095_v63 = vpop.eup %10094 }
 0xb8b   :  { %v8018_v49 = vmul.f32 %v10095_v63, %v7952_v23 }
 0xb8d   :  { %v8019_v10 = vmul.f32 %v8018_v49, %v7974_v13  ;;  %v8027_v40 = vrot.slane %v8018_v49, %v16789_v42  ;;  %v10054_v49 = vld [vmem:[%s16086_s20] sm:$0xff]  }
 0xb8e   :  { %9423 = vmatprep.subr.bf16.mxu0 %v10054_v49 }
 0xb8f   :  { %v8021_v28 = vrot.slane %v8019_v10, 7  ;;  %v8043_v43 = vmul.f32 %v9290_v1, %v8027_v40  ;;  %v8028_v22 = vmul.f32 %v15652_v31, %v8027_v40  ;;  %v8029_v33 = vmul.f32 %v15654_v16, %v8027_v40  ;;  %v10055_v10 = vld [vmem:[%s16086_s20 + $0x8] sm:$0xff]  }
 0xb90   :  { %v8030_v48 = vmul.f32 %v15656_v35, %v8027_v40  ;;  %v8031_v59 = vmul.f32 %v15658_v47, %v8027_v40  ;;  %v8032_v58 = vmul.f32 %v15668_v44, %v8027_v40  ;;  %v8038_v9 = vmul.f32 %v15702_v50, %v8027_v40 }
 0xb91   :  { %v8023_v52 = vsub.f32 %v7952_v23, %v8021_v28  ;;  %v8039_v27 = vmul.f32 %v15707_v32, %v8027_v40  ;;  %v8040_v34 = vmul.f32 %v9281_v6, %v8027_v40  ;;  %v8033_v37 = vmul.f32 %v15671_v26, %v8027_v40  ;;  %v10057_v28 = vld [vmem:[%s16086_s20 + $0x18] sm:$0xff]  }
 0xb92   :  { %v8041_v46 = vmul.f32 %v9284_v24, %v8027_v40  ;;  %v8042_v31 = vmul.f32 %v9287_v11, %v8027_v40  ;;  %v8034_v51 = vmul.f32 %v15679_v29, %v8027_v40  ;;  %v8035_v16 = vmul.f32 %v15683_v55, %v8027_v40 }
 0xb93   :  { %v8047_v17 = vrot.slane %v8023_v52, %v16793_v25  ;;  %v8036_v35 = vmul.f32 %v15691_v14, %v8027_v40  ;;  %v8037_v47 = vmul.f32 %v15696_v21, %v8027_v40  ;;  %v10056_v40 = vld [vmem:[%s16086_s20 + $0x10] sm:$0xff]  }
 0xb95   :  { %v8048_v44 = vadd.f32 %v8047_v17, %v8028_v22  ;;  %v8049_v5 = vadd.f32 %v8047_v17, %v8029_v33  ;;  %v8050_v50 = vadd.f32 %v8047_v17, %v8030_v48  ;;  %v8051_v0 = vadd.f32 %v8047_v17, %v8031_v59 }
 0xb96   :  { %v8052_v32 = vadd.f32 %v8047_v17, %v8032_v58  ;;  %v8053_v6 = vadd.f32 %v8047_v17, %v8033_v37  ;;  %v8054_v19 = vadd.f32 %v8047_v17, %v8034_v51  ;;  %v8055_v2 = vadd.f32 %v8047_v17, %v8035_v16 }
 0xb97   :  { %v8064_v1 = vmax.f32 %v8048_v44, 0.0  ;;  %v8065_v26 = vmax.f32 %v8049_v5, 0.0  ;;  %v8066_v24 = vmax.f32 %v8050_v50, 0.0  ;;  %v8067_v11 = vmax.f32 %v8051_v0, 0.0 }
 0xb98   :  { %v8068_v56 = vmax.f32 %v8052_v32, 0.0  ;;  %v8069_v29 = vmax.f32 %v8053_v6, 0.0  ;;  %v8070_v41 = vmax.f32 %v8054_v19, 0.0  ;;  %v8071_v55 = vmax.f32 %v8055_v2, 0.0 }
 0xb99   :  { %v8080_v30 = vpack.c.bf16 %v8065_v26, %v8064_v1  ;;  %v8081_v14 = vpack.c.bf16 %v8067_v11, %v8066_v24  ;;  %v8056_v54 = vadd.f32 %v8047_v17, %v8036_v35  ;;  %v8057_v21 = vadd.f32 %v8047_v17, %v8037_v47 }
 0xb9a   :  { %v8082_v60 = vpack.c.bf16 %v8069_v29, %v8068_v56  ;;  %v8083_v45 = vpack.c.bf16 %v8071_v55, %v8070_v41  ;;  %v8058_v62 = vadd.f32 %v8047_v17, %v8038_v9  ;;  %v8059_v57 = vadd.f32 %v8047_v17, %v8039_v27 }
 0xb9b   :  { %9407 = vmatprep.mubr.bf16.mxu0 %v8080_v30  ;;  %v8072_v7 = vmax.f32 %v8056_v54, 0.0  ;;  %v8073_v12 = vmax.f32 %v8057_v21, 0.0  ;;  %v8060_v53 = vadd.f32 %v8047_v17, %v8040_v34  ;;  %v8061_v18 = vadd.f32 %v8047_v17, %v8041_v46 }
 0xb9c   :  { %9408 = vmatmul.mubr.bf16.vlgmr.msra.gmra.mrb[132].mxu0 %v8081_v14  ;;  %v8074_v61 = vmax.f32 %v8058_v62, 0.0  ;;  %v8075_v4 = vmax.f32 %v8059_v57, 0.0  ;;  %v8062_v20 = vadd.f32 %v8047_v17, %v8042_v31  ;;  %v8063_v13 = vadd.f32 %v8047_v17, %v8043_v43 }
 0xb9d   :  { %9411 = vmatprep.mubr.bf16.mxu0 %v8082_v60  ;;  %v8084_v3 = vpack.c.bf16 %v8073_v12, %v8072_v7  ;;  %v8076_v36 = vmax.f32 %v8060_v53, 0.0  ;;  %v8077_v38 = vmax.f32 %v8061_v18, 0.0  ;;  %9424 = vmatpush3.bf16.msra.mxu0 %v10054_v49 }
 0xb9e   :  { %v8085_v39 = vpack.c.bf16 %v8075_v4, %v8074_v61  ;;  %v8078_v8 = vmax.f32 %v8062_v20, 0.0  ;;  %v8079_v15 = vmax.f32 %v8063_v13, 0.0  ;;  %9425 = vmatprep.subr.bf16.mxu0 %v10055_v10 }
 0xb9f   :  { %v8086_v23 = vpack.c.bf16 %v8077_v38, %v8076_v36 }
 0xba0   :  { %v8087_v63 = vpack.c.bf16 %v8079_v15, %v8078_v8 }
 0xba1   :  { %9426 = vmatpush3.bf16.msra.mxu0 %v10055_v10 }
 0xba2   :  { %9427 = vmatprep.subr.bf16.mxu0 %v10056_v40 }
 0xba4   :  { %9412 = vmatmul.mubr.bf16.gmra.mrb[136].mxu0 %v8083_v45 }
 0xba5   :  { %9415 = vmatprep.mubr.bf16.mxu0 %v8084_v3  ;;  %9428 = vmatpush3.bf16.msra.mxu0 %v10056_v40 }
 0xba6   :  { %9429 = vmatprep.subr.bf16.mxu0 %v10057_v28 }
 0xba9   :  { %9430 = vmatpush3.bf16.msra.mxu0 %v10057_v28 }
 0xbac   :  { %9416 = vmatmul.mubr.bf16.gmra.mrb[140].mxu0 %v8085_v39 }
 0xbad   :  { %9419 = vmatprep.mubr.bf16.mxu0 %v8086_v23 }
 0xbb4   :  { %9420 = vmatmul.mubr.bf16.gmra.mrb[144].mxu0 %v8087_v63 }
 0xc6f   :  { %v15741_v43 = vpop.f32.mrb[132].mxu0 }
 0xc70   :  { %v15743_v22 = vpop.f32.mrb[133].mxu0  ;;  %v8290_v59 = vmul.f32 %v15741_v43, %v15741_v43  ;;  %v8253_v17 = vsel %vm390_vm0, %v15741_v43, 0.0 }
 0xc71   :  { %v8288_v52 = vmul.f32 %v15743_v22, %v15743_v22  ;;  %v15747_v33 = vpop.f32.mrb[134].mxu0  ;;  %v8250_v58 = vsel %vm390_vm0, %v15743_v22, 0.0 }
 0xc72   :  { %v15749_v48 = vpop.f32.mrb[135].mxu0  ;;  %v8291_v46 = vmul.f32 %v15747_v33, %v15747_v33  ;;  %v8307_v35 = vsel %vm390_vm0, %v8290_v59, 0.0  ;;  %v8255_v47 = vsel %vm390_vm0, %v15747_v33, 0.0 }
 0xc73   :  { %v8251_v9 = vsel %vm390_vm0, %v15749_v48, 0.0  ;;  %v8289_v27 = vmul.f32 %v15749_v48, %v15749_v48  ;;  %v8304_v37 = vsel %vm390_vm0, %v8288_v52, 0.0 }
 0xc74   :  { %v8252_v34 = vadd.f32 %v8251_v9, %v8250_v58  ;;  %v8309_v32 = vsel %vm390_vm0, %v8291_v46, 0.0 }
 0xc75   :  { %v8305_v31 = vsel %vm390_vm0, %v8289_v27, 0.0 }
 0xc76   :  { %v8254_v51 = vadd.f32 %v8253_v17, %v8252_v34  ;;  %v8306_v16 = vadd.f32 %v8305_v31, %v8304_v37 }
 0xc77   :  { %v15768_v44 = vpop.f32.mrb[136].mxu0 }
 0xc78   :  { %v8308_v5 = vadd.f32 %v8307_v35, %v8306_v16  ;;  %v15770_v50 = vpop.f32.mrb[137].mxu0  ;;  %v8256_v0 = vadd.f32 %v8255_v47, %v8254_v51  ;;  %v8294_v11 = vmul.f32 %v15768_v44, %v15768_v44  ;;  %v8261_v14 = vsel %vm390_vm0, %v15768_v44, 0.0 }
 0xc79   :  { %v8257_v6 = vsel %vm390_vm0, %v15770_v50, 0.0  ;;  %v8292_v19 = vmul.f32 %v15770_v50, %v15770_v50  ;;  %v15777_v2 = vpop.f32.mrb[138].mxu0 }
 0xc7a   :  { %v8258_v1 = vadd.f32 %v8257_v6, %v8256_v0  ;;  %v8310_v26 = vadd.f32 %v8309_v32, %v8308_v5  ;;  %v15779_v24 = vpop.f32.mrb[139].mxu0  ;;  %v8295_v54 = vmul.f32 %v15777_v2, %v15777_v2  ;;  %v8315_v62 = vsel %vm390_vm0, %v8294_v11, 0.0 }
 0xc7b   :  { %v8311_v56 = vsel %vm390_vm0, %v8292_v19, 0.0  ;;  %v8259_v29 = vsel %vm390_vm0, %v15779_v24, 0.0  ;;  %v8293_v41 = vmul.f32 %v15779_v24, %v15779_v24  ;;  %v8263_v57 = vsel %vm390_vm0, %v15777_v2, 0.0 }
 0xc7c   :  { %v8312_v55 = vadd.f32 %v8311_v56, %v8310_v26  ;;  %v8260_v30 = vadd.f32 %v8259_v29, %v8258_v1  ;;  %v8317_v61 = vsel %vm390_vm0, %v8295_v54, 0.0 }
 0xc7d   :  { %v8313_v21 = vsel %vm390_vm0, %v8293_v41, 0.0 }
 0xc7e   :  { %v8262_v60 = vadd.f32 %v8261_v14, %v8260_v30  ;;  %v8314_v45 = vadd.f32 %v8313_v21, %v8312_v55 }
 0xc7f   :  { %v15796_v7 = vpop.f32.mrb[140].mxu0 }
 0xc80   :  { %v8316_v12 = vadd.f32 %v8315_v62, %v8314_v45  ;;  %v15798_v53 = vpop.f32.mrb[141].mxu0  ;;  %v8264_v18 = vadd.f32 %v8263_v57, %v8262_v60  ;;  %v8298_v39 = vmul.f32 %v15796_v7, %v15796_v7  ;;  %v8269_v10 = vsel %vm390_vm0, %v15796_v7, 0.0 }
 0xc81   :  { %v8265_v4 = vsel %vm390_vm0, %v15798_v53, 0.0  ;;  %v8296_v20 = vmul.f32 %v15798_v53, %v15798_v53  ;;  %v15805_v13 = vpop.f32.mrb[142].mxu0 }
 0xc82   :  { %v8266_v3 = vadd.f32 %v8265_v4, %v8264_v18  ;;  %v8318_v36 = vadd.f32 %v8317_v61, %v8316_v12  ;;  %v15807_v38 = vpop.f32.mrb[143].mxu0  ;;  %v8299_v40 = vmul.f32 %v15805_v13, %v15805_v13  ;;  %v8323_v58 = vsel %vm390_vm0, %v8298_v39, 0.0 }
 0xc83   :  { %v8319_v8 = vsel %vm390_vm0, %v8296_v20, 0.0  ;;  %v8267_v15 = vsel %vm390_vm0, %v15807_v38, 0.0  ;;  %v8297_v23 = vmul.f32 %v15807_v38, %v15807_v38  ;;  %v8271_v9 = vsel %vm390_vm0, %v15805_v13, 0.0 }
 0xc84   :  { %v8320_v63 = vadd.f32 %v8319_v8, %v8318_v36  ;;  %v8268_v49 = vadd.f32 %v8267_v15, %v8266_v3  ;;  %v8325_v46 = vsel %vm390_vm0, %v8299_v40, 0.0 }
 0xc85   :  { %v8321_v28 = vsel %vm390_vm0, %v8297_v23, 0.0 }
 0xc86   :  { %v8270_v52 = vadd.f32 %v8269_v10, %v8268_v49  ;;  %v8322_v59 = vadd.f32 %v8321_v28, %v8320_v63 }
 0xc87   :  { %v15824_v27 = vpop.f32.mrb[144].mxu0 }
 0xc88   :  { %v8324_v34 = vadd.f32 %v8323_v58, %v8322_v59  ;;  %v15826_v17 = vpop.f32.mrb[145].mxu0  ;;  %v8272_v37 = vadd.f32 %v8271_v9, %v8270_v52  ;;  %v8302_v0 = vmul.f32 %v15824_v27, %v15824_v27  ;;  %v8277_v11 = vsel %vm390_vm0, %v15824_v27, 0.0  ;;  %v8249_v52 = vld [vmem:[%s16087_s19] sm:$0x3] }
 0xc89   :  { %v8273_v31 = vsel %vm390_vm0, %v15826_v17, 0.0  ;;  %v8300_v51 = vmul.f32 %v15826_v17, %v15826_v17  ;;  %v15833_v16 = vpop.f32.mrb[146].mxu0 }
 0xc8a   :  { %v8274_v35 = vadd.f32 %v8273_v31, %v8272_v37  ;;  %v8326_v47 = vadd.f32 %v8325_v46, %v8324_v34  ;;  %v8237_v5 = vpop.f32.mrb[147].mxu0  ;;  %v8303_v56 = vmul.f32 %v15833_v16, %v15833_v16  ;;  %v8331_v30 = vsel %vm390_vm0, %v8302_v0, 0.0 }
 0xc8b   :  { %v8327_v32 = vsel %vm390_vm0, %v8300_v51, 0.0  ;;  %v8275_v6 = vsel %vm390_vm0, %v8237_v5, 0.0  ;;  %v8301_v19 = vmul.f32 %v8237_v5, %v8237_v5  ;;  %v8279_v14 = vsel %vm390_vm0, %v15833_v16, 0.0 }
 0xc8c   :  { %v8328_v1 = vadd.f32 %v8327_v32, %v8326_v47  ;;  %v8276_v26 = vadd.f32 %v8275_v6, %v8274_v35  ;;  %v8333_v60 = vsel %vm390_vm0, %v8303_v56, 0.0 }
 0xc8d   :  { %v8329_v29 = vsel %vm390_vm0, %v8301_v19, 0.0 }
 0xc8e   :  { %v8278_v41 = vadd.f32 %v8277_v11, %v8276_v26  ;;  %v8330_v55 = vadd.f32 %v8329_v29, %v8328_v1 }
 0xc90   :  { %v8280_v54 = vadd.f32 %v8279_v14, %v8278_v41  ;;  %v8332_v21 = vadd.f32 %v8331_v30, %v8330_v55 }
 0xc92   :  { %v8281_v45 = vrot.slane %v8280_v54, 4  ;;  %v8334_v62 = vadd.f32 %v8333_v60, %v8332_v21 }
 0xc94   :  { %v8282_v57 = vadd.f32 %v8281_v45, %v8280_v54  ;;  %v8335_v12 = vrot.slane %v8334_v62, 4 }
 0xc96   :  { %v8283_v18 = vrot.slane %v8282_v57, 2  ;;  %v8336_v61 = vadd.f32 %v8335_v12, %v8334_v62 }
 0xc98   :  { %v8284_v4 = vadd.f32 %v8283_v18, %v8282_v57  ;;  %v8337_v20 = vrot.slane %v8336_v61, 2 }
 0xc9a   :  { %v8285_v3 = vrot.slane %v8284_v4, 1  ;;  %v8338_v36 = vadd.f32 %v8337_v20, %v8336_v61 }
 0xc9c   :  { %v8286_v39 = vadd.f32 %v8285_v3, %v8284_v4  ;;  %v8339_v8 = vrot.slane %v8338_v36, 1 }
 0xc9e   :  { %v8287_v15 = vmul.f32 0.0078125, %v8286_v39  ;;  %v8340_v23 = vadd.f32 %v8339_v8, %v8338_v36 }
 0xca0   :  { %v8341_v63 = vmul.f32 0.0078125, %v8340_v23  ;;  %v8342_v49 = vmul.f32 %v8287_v15, %v8287_v15 }
 0xca2   :  { %v8343_v10 = vsub.f32 %v8341_v63, %v8342_v49 }
 0xca4   :  { %v8344_v40 = vmax.f32 %v8343_v10, 0.0 }
 0xca6   :  { %v8345_v28 = vadd.f32 1e-05, %v8344_v40 }
 0xca8   :  { %10096 = vrsqrt.f32 %v8345_v28 }
 0xcb2   :  { %v10097_v59 = vpop.eup %10096 }
 0xcb3   :  { %v8347_v58 = vmul.f32 %v10097_v59, %v8249_v52 }
 0xcb5   :  { %v8348_v9 = vmul.f32 %v8347_v58, %v8287_v15  ;;  %v8356_v34 = vrot.slane %v8347_v58, %v16789_v42 }
 0xcb7   :  { %v8350_v37 = vrot.slane %v8348_v9, 7  ;;  %v8370_v46 = vmul.f32 %v8356_v34, %v8237_v5  ;;  %v8357_v31 = vmul.f32 %v8356_v34, %v15743_v22  ;;  %v8358_v51 = vmul.f32 %v8356_v34, %v15749_v48 }
 0xcb8   :  { %v8359_v35 = vmul.f32 %v15741_v43, %v8356_v34  ;;  %v8360_v47 = vmul.f32 %v15747_v33, %v8356_v34  ;;  %v8361_v0 = vmul.f32 %v8356_v34, %v15770_v50  ;;  %v8362_v32 = vmul.f32 %v8356_v34, %v15779_v24 }
 0xcb9   :  { %v8352_v6 = vsub.f32 %v8249_v52, %v8350_v37  ;;  %v8363_v19 = vmul.f32 %v15768_v44, %v8356_v34  ;;  %v8364_v1 = vmul.f32 %v15777_v2, %v8356_v34  ;;  %v8365_v26 = vmul.f32 %v8356_v34, %v15798_v53 }
 0xcba   :  { %v8366_v5 = vmul.f32 %v8356_v34, %v15807_v38  ;;  %v8367_v22 = vmul.f32 %v15796_v7, %v8356_v34  ;;  %v8368_v48 = vmul.f32 %v15805_v13, %v8356_v34  ;;  %v8369_v43 = vmul.f32 %v8356_v34, %v15826_v17 }
 0xcbb   :  { %v8376_v33 = vrot.slane %v8352_v6, %v16793_v25  ;;  %v8371_v50 = vmul.f32 %v15824_v27, %v8356_v34  ;;  %v8372_v24 = vmul.f32 %v15833_v16, %v8356_v34 }
 0xcbd   :  { %v8390_v11 = vadd.f32 %v8376_v33, %v8370_v46  ;;  %v8377_v44 = vadd.f32 %v8376_v33, %v8357_v31  ;;  %v8378_v56 = vadd.f32 %v8376_v33, %v8358_v51  ;;  %v8379_v2 = vadd.f32 %v8376_v33, %v8359_v35 }
 0xcbe   :  { %v8380_v29 = vadd.f32 %v8376_v33, %v8360_v47  ;;  %v8381_v53 = vadd.f32 %v8376_v33, %v8361_v0  ;;  %v8382_v41 = vadd.f32 %v8376_v33, %v8362_v32  ;;  %v8383_v38 = vadd.f32 %v8376_v33, %v8363_v19 }
 0xcbf   :  { %v8406_v55 = vmax.f32 %v8390_v11, 0.0  ;;  %v8393_v7 = vmax.f32 %v8377_v44, 0.0  ;;  %v8394_v30 = vmax.f32 %v8378_v56, 0.0  ;;  %v8395_v13 = vmax.f32 %v8379_v2, 0.0 }
 0xcc0   :  { %v8396_v14 = vmax.f32 %v8380_v29, 0.0  ;;  %v8397_v17 = vmax.f32 %v8381_v53, 0.0  ;;  %v8398_v54 = vmax.f32 %v8382_v41, 0.0  ;;  %v8384_v21 = vadd.f32 %v8376_v33, %v8364_v1 }
 0xcc1   :  { %v8409_v60 = vpack.c.bf16 %v8394_v30, %v8393_v7  ;;  %v8399_v27 = vmax.f32 %v8383_v38, 0.0  ;;  %v8385_v45 = vadd.f32 %v8376_v33, %v8365_v26  ;;  %v8386_v16 = vadd.f32 %v8376_v33, %v8366_v5 }
 0xcc2   :  { %v8410_v62 = vpack.c.bf16 %v8396_v14, %v8395_v13  ;;  %v8411_v57 = vpack.c.bf16 %v8398_v54, %v8397_v17  ;;  %v8400_v12 = vmax.f32 %v8384_v21, 0.0  ;;  %v8387_v18 = vadd.f32 %v8376_v33, %v8367_v22 }
 0xcc3   :  { %9431 = vmatprep.mubr.msk.bf16.mxu0 %vm390_vm0, %v8409_v60  ;;  %v8401_v61 = vmax.f32 %v8385_v45, 0.0  ;;  %v8402_v4 = vmax.f32 %v8386_v16, 0.0  ;;  %v8388_v20 = vadd.f32 %v8376_v33, %v8368_v48  ;;  %v8389_v3 = vadd.f32 %v8376_v33, %v8369_v43 }
 0xcc4   :  { %9432 = vmatmul.mubr.msk.bf16.vlgmr.msra.gmra.mrb[148].mxu0 %vm390_vm0, %v8410_v62  ;;  %v8412_v36 = vpack.c.bf16 %v8400_v12, %v8399_v27  ;;  %v8403_v39 = vmax.f32 %v8387_v18, 0.0  ;;  %v8391_v8 = vadd.f32 %v8376_v33, %v8371_v50  ;;  %v8392_v15 = vadd.f32 %v8376_v33, %v8372_v24 }
 0xcc5   :  { %9435 = vmatprep.mubr.msk.bf16.mxu0 %vm390_vm0, %v8411_v57  ;;  %v8413_v23 = vpack.c.bf16 %v8402_v4, %v8401_v61  ;;  %v8404_v63 = vmax.f32 %v8388_v20, 0.0  ;;  %v8405_v49 = vmax.f32 %v8389_v3, 0.0 }
 0xcc6   :  { %v8407_v10 = vmax.f32 %v8391_v8, 0.0  ;;  %v8408_v40 = vmax.f32 %v8392_v15, 0.0 }
 0xcc7   :  { %v8414_v28 = vpack.c.bf16 %v8404_v63, %v8403_v39  ;;  %v8415_v52 = vpack.c.bf16 %v8406_v55, %v8405_v49 }
 0xcc8   :  { %v8416_v59 = vpack.c.bf16 %v8408_v40, %v8407_v10 }
 0xccc   :  { %9436 = vmatmul.mubr.msk.bf16.gmra.mrb[152].mxu0 %vm390_vm0, %v8412_v36 }
 0xccd   :  { %9439 = vmatprep.mubr.msk.bf16.mxu0 %vm390_vm0, %v8413_v23 }
 0xcd4   :  { %9440 = vmatmul.mubr.msk.bf16.gmra.mrb[156].mxu0 %vm390_vm0, %v8414_v28 }
 0xcd5   :  { %9443 = vmatprep.mubr.msk.bf16.mxu0 %vm390_vm0, %v8415_v52 }
 0xcdc   :  { %9444 = vmatmul.mubr.msk.bf16.gmra.mrb[160].mxu0 %vm390_vm0, %v8416_v59 }
 0xd97   :  { %v15876_v58 = vpop.f32.mrb[148].mxu0 }
 0xd98   :  { %v15878_v9 = vpop.f32.mrb[149].mxu0  ;;  %v8612_v31 = vmul.f32 %v15876_v58, %v15876_v58  ;;  %v8575_v32 = vsel %vm8571_vm2, %v15876_v58, 0.0 }
 0xd99   :  { %v8610_v34 = vmul.f32 %v15878_v9, %v15878_v9  ;;  %v15882_v37 = vpop.f32.mrb[150].mxu0  ;;  %v8572_v51 = vsel %vm8571_vm2, %v15878_v9, 0.0 }
 0xd9a   :  { %v15884_v46 = vpop.f32.mrb[151].mxu0  ;;  %v8613_v19 = vmul.f32 %v15882_v37, %v15882_v37  ;;  %v8629_v22 = vsel %vm8571_vm2, %v8612_v31, 0.0  ;;  %v8577_v48 = vsel %vm8571_vm2, %v15882_v37, 0.0 }
 0xd9b   :  { %v8573_v35 = vsel %vm8571_vm2, %v15884_v46, 0.0  ;;  %v8611_v47 = vmul.f32 %v15884_v46, %v15884_v46  ;;  %v8626_v6 = vsel %vm8571_vm2, %v8610_v34, 0.0 }
 0xd9c   :  { %v8574_v0 = vadd.f32 %v8573_v35, %v8572_v51  ;;  %v8631_v11 = vsel %vm8571_vm2, %v8613_v19, 0.0 }
 0xd9d   :  { %v8627_v1 = vsel %vm8571_vm2, %v8611_v47, 0.0 }
 0xd9e   :  { %v8576_v26 = vadd.f32 %v8575_v32, %v8574_v0  ;;  %v8628_v5 = vadd.f32 %v8627_v1, %v8626_v6 }
 0xd9f   :  { %v15903_v43 = vpop.f32.mrb[152].mxu0 }
 0xda0   :  { %v8630_v33 = vadd.f32 %v8629_v22, %v8628_v5  ;;  %v15905_v50 = vpop.f32.mrb[153].mxu0  ;;  %v8578_v24 = vadd.f32 %v8577_v48, %v8576_v26  ;;  %v8616_v38 = vmul.f32 %v15903_v43, %v15903_v43  ;;  %v8583_v17 = vsel %vm8571_vm2, %v15903_v43, 0.0 }
 0xda1   :  { %v8579_v44 = vsel %vm8571_vm2, %v15905_v50, 0.0  ;;  %v8614_v56 = vmul.f32 %v15905_v50, %v15905_v50  ;;  %v15912_v2 = vpop.f32.mrb[154].mxu0 }
 0xda2   :  { %v8580_v29 = vadd.f32 %v8579_v44, %v8578_v24  ;;  %v8632_v53 = vadd.f32 %v8631_v11, %v8630_v33  ;;  %v15914_v41 = vpop.f32.mrb[155].mxu0  ;;  %v8617_v54 = vmul.f32 %v15912_v2, %v15912_v2  ;;  %v8637_v45 = vsel %vm8571_vm2, %v8616_v38, 0.0 }
 0xda3   :  { %v8633_v55 = vsel %vm8571_vm2, %v8614_v56, 0.0  ;;  %v8581_v7 = vsel %vm8571_vm2, %v15914_v41, 0.0  ;;  %v8615_v30 = vmul.f32 %v15914_v41, %v15914_v41  ;;  %v8585_v16 = vsel %vm8571_vm2, %v15912_v2, 0.0 }
 0xda4   :  { %v8634_v13 = vadd.f32 %v8633_v55, %v8632_v53  ;;  %v8582_v14 = vadd.f32 %v8581_v7, %v8580_v29  ;;  %v8639_v61 = vsel %vm8571_vm2, %v8617_v54, 0.0 }
 0xda5   :  { %v8635_v21 = vsel %vm8571_vm2, %v8615_v30, 0.0 }
 0xda6   :  { %v8584_v60 = vadd.f32 %v8583_v17, %v8582_v14  ;;  %v8636_v27 = vadd.f32 %v8635_v21, %v8634_v13 }
 0xda7   :  { %v15931_v62 = vpop.f32.mrb[156].mxu0 }
 0xda8   :  { %v8638_v57 = vadd.f32 %v8637_v45, %v8636_v27  ;;  %v15933_v12 = vpop.f32.mrb[157].mxu0  ;;  %v8586_v18 = vadd.f32 %v8585_v16, %v8584_v60  ;;  %v8620_v15 = vmul.f32 %v15931_v62, %v15931_v62  ;;  %v8591_v28 = vsel %vm8571_vm2, %v15931_v62, 0.0 }
 0xda9   :  { %v8587_v4 = vsel %vm8571_vm2, %v15933_v12, 0.0  ;;  %v8618_v20 = vmul.f32 %v15933_v12, %v15933_v12  ;;  %v15940_v3 = vpop.f32.mrb[158].mxu0 }
 0xdaa   :  { %v8588_v36 = vadd.f32 %v8587_v4, %v8586_v18  ;;  %v8640_v39 = vadd.f32 %v8639_v61, %v8638_v57  ;;  %v15942_v8 = vpop.f32.mrb[159].mxu0  ;;  %v8621_v52 = vmul.f32 %v15940_v3, %v15940_v3  ;;  %v8645_v51 = vsel %vm8571_vm2, %v8620_v15, 0.0 }
 0xdab   :  { %v8641_v23 = vsel %vm8571_vm2, %v8618_v20, 0.0  ;;  %v8589_v63 = vsel %vm8571_vm2, %v15942_v8, 0.0  ;;  %v8619_v49 = vmul.f32 %v15942_v8, %v15942_v8  ;;  %v8593_v35 = vsel %vm8571_vm2, %v15940_v3, 0.0 }
 0xdac   :  { %v8642_v10 = vadd.f32 %v8641_v23, %v8640_v39  ;;  %v8590_v40 = vadd.f32 %v8589_v63, %v8588_v36  ;;  %v8647_v19 = vsel %vm8571_vm2, %v8621_v52, 0.0 }
 0xdad   :  { %v8643_v59 = vsel %vm8571_vm2, %v8619_v49, 0.0 }
 0xdae   :  { %v8592_v34 = vadd.f32 %v8591_v28, %v8590_v40  ;;  %v8644_v31 = vadd.f32 %v8643_v59, %v8642_v10 }
 0xdaf   :  { %v15959_v47 = vpop.f32.mrb[160].mxu0 }
 0xdb0   :  { %v8646_v0 = vadd.f32 %v8645_v51, %v8644_v31  ;;  %v15961_v32 = vpop.f32.mrb[161].mxu0  ;;  %v8594_v6 = vadd.f32 %v8593_v35, %v8592_v34  ;;  %v8624_v24 = vmul.f32 %v15959_v47, %v15959_v47  ;;  %v8599_v38 = vsel %vm8571_vm2, %v15959_v47, 0.0  ;;  %v8570_v34 = vld [vmem:[%s16088_s21] sm:$0x3] }
 0xdb1   :  { %v8595_v1 = vsel %vm8571_vm2, %v15961_v32, 0.0  ;;  %v8622_v26 = vmul.f32 %v15961_v32, %v15961_v32  ;;  %v15968_v5 = vpop.f32.mrb[162].mxu0 }
 0xdb2   :  { %v8596_v22 = vadd.f32 %v8595_v1, %v8594_v6  ;;  %v8648_v48 = vadd.f32 %v8647_v19, %v8646_v0  ;;  %v8558_v33 = vpop.f32.mrb[163].mxu0  ;;  %v8625_v55 = vmul.f32 %v15968_v5, %v15968_v5  ;;  %v8653_v14 = vsel %vm8571_vm2, %v8624_v24, 0.0 }
 0xdb3   :  { %v8649_v11 = vsel %vm8571_vm2, %v8622_v26, 0.0  ;;  %v8597_v44 = vsel %vm8571_vm2, %v8558_v33, 0.0  ;;  %v8623_v56 = vmul.f32 %v8558_v33, %v8558_v33  ;;  %v8601_v17 = vsel %vm8571_vm2, %v15968_v5, 0.0 }
 0xdb4   :  { %v8650_v29 = vadd.f32 %v8649_v11, %v8648_v48  ;;  %v8598_v53 = vadd.f32 %v8597_v44, %v8596_v22  ;;  %v8655_v60 = vsel %vm8571_vm2, %v8625_v55, 0.0 }
 0xdb5   :  { %v8651_v7 = vsel %vm8571_vm2, %v8623_v56, 0.0 }
 0xdb6   :  { %v8600_v30 = vadd.f32 %v8599_v38, %v8598_v53  ;;  %v8652_v13 = vadd.f32 %v8651_v7, %v8650_v29 }
 0xdb8   :  { %v8602_v54 = vadd.f32 %v8601_v17, %v8600_v30  ;;  %v8654_v21 = vadd.f32 %v8653_v14, %v8652_v13 }
 0xdba   :  { %v8603_v27 = vrot.slane %v8602_v54, 4  ;;  %v8656_v45 = vadd.f32 %v8655_v60, %v8654_v21 }
 0xdbc   :  { %v8604_v16 = vadd.f32 %v8603_v27, %v8602_v54  ;;  %v8657_v57 = vrot.slane %v8656_v45, 4 }
 0xdbe   :  { %v8605_v18 = vrot.slane %v8604_v16, 2  ;;  %v8658_v61 = vadd.f32 %v8657_v57, %v8656_v45 }
 0xdc0   :  { %v8606_v4 = vadd.f32 %v8605_v18, %v8604_v16  ;;  %v8659_v20 = vrot.slane %v8658_v61, 2 }
 0xdc2   :  { %v8607_v36 = vrot.slane %v8606_v4, 1  ;;  %v8660_v39 = vadd.f32 %v8659_v20, %v8658_v61 }
 0xdc4   :  { %v8608_v15 = vadd.f32 %v8607_v36, %v8606_v4  ;;  %v8661_v23 = vrot.slane %v8660_v39, 1 }
 0xdc6   :  { %v8609_v63 = vmul.f32 0.0078125, %v8608_v15  ;;  %v8662_v49 = vadd.f32 %v8661_v23, %v8660_v39 }
 0xdc8   :  { %v8663_v10 = vmul.f32 0.0078125, %v8662_v49  ;;  %v8664_v40 = vmul.f32 %v8609_v63, %v8609_v63 }
 0xdca   :  { %v8665_v28 = vsub.f32 %v8663_v10, %v8664_v40 }
 0xdcc   :  { %v8666_v52 = vmax.f32 %v8665_v28, 0.0 }
 0xdce   :  { %v8667_v59 = vadd.f32 1e-05, %v8666_v52 }
 0xdd0   :  { %10098 = vrsqrt.f32 %v8667_v59 }
 0xdda   :  { %v10099_v31 = vpop.eup %10098 }
 0xddb   :  { %v8669_v51 = vmul.f32 %v10099_v31, %v8570_v34 }
 0xddd   :  { %v8670_v35 = vmul.f32 %v8669_v51, %v8609_v63  ;;  %v8678_v0 = vrot.slane %v8669_v51, %v16789_v42 }
 0xddf   :  { %v8672_v6 = vrot.slane %v8670_v35, 7  ;;  %v8679_v19 = vmul.f32 %v8678_v0, %v15878_v9  ;;  %v8680_v1 = vmul.f32 %v8678_v0, %v15884_v46  ;;  %v8681_v26 = vmul.f32 %v15876_v58, %v8678_v0 }
 0xde0   :  { %v8682_v22 = vmul.f32 %v15882_v37, %v8678_v0  ;;  %v8683_v48 = vmul.f32 %v8678_v0, %v15905_v50  ;;  %v8684_v24 = vmul.f32 %v8678_v0, %v15914_v41  ;;  %v8685_v11 = vmul.f32 %v15903_v43, %v8678_v0 }
 0xde1   :  { %v8674_v44 = vsub.f32 %v8570_v34, %v8672_v6  ;;  %v8686_v56 = vmul.f32 %v15912_v2, %v8678_v0  ;;  %v8687_v42 = vmul.f32 %v8678_v0, %v15933_v12  ;;  %v8688_v29 = vmul.f32 %v8678_v0, %v15942_v8 }
 0xde2   :  { %v8689_v9 = vmul.f32 %v15931_v62, %v8678_v0  ;;  %v8690_v46 = vmul.f32 %v15940_v3, %v8678_v0  ;;  %v8691_v58 = vmul.f32 %v8678_v0, %v15961_v32  ;;  %v8692_v37 = vmul.f32 %v8678_v0, %v8558_v33 }
 0xde3   :  { %v8693_v50 = vmul.f32 %v15959_v47, %v8678_v0  ;;  %v8694_v41 = vmul.f32 %v15968_v5, %v8678_v0  ;;  %v8698_v43 = vrot.slane %v8674_v44, %v16793_v25 }
 0xde5   :  { %v8699_v53 = vadd.f32 %v8698_v43, %v8679_v19  ;;  %v8700_v38 = vadd.f32 %v8698_v43, %v8680_v1  ;;  %v8701_v2 = vadd.f32 %v8698_v43, %v8681_v26  ;;  %v8702_v55 = vadd.f32 %v8698_v43, %v8682_v22 }
 0xde6   :  { %v8703_v12 = vadd.f32 %v8698_v43, %v8683_v48  ;;  %v8704_v7 = vadd.f32 %v8698_v43, %v8684_v24  ;;  %v8705_v8 = vadd.f32 %v8698_v43, %v8685_v11  ;;  %v8706_v30 = vadd.f32 %v8698_v43, %v8686_v56 }
 0xde7   :  { %v8707_v62 = vadd.f32 %v8698_v43, %v8687_v42  ;;  %v8708_v13 = vadd.f32 %v8698_v43, %v8688_v29  ;;  %v8709_v3 = vadd.f32 %v8698_v43, %v8689_v9  ;;  %v8710_v14 = vadd.f32 %v8698_v43, %v8690_v46  ;;  %8715 = vst.msk [vmem:[%s16089_s22] sm:$0xff] %vm8571_vm2, %v8699_v53 }
 0xde8   :  { %8716 = vst.msk [vmem:[%s16089_s22 + $0x8] sm:$0xff] %vm8571_vm2, %v8700_v38  ;;  %8717 = vst.msk [vmem:[%s16089_s22 + $0x10] sm:$0xff] %vm8571_vm2, %v8701_v2  ;;  %v8711_v25 = vadd.f32 %v8698_v43, %v8691_v58  ;;  %v8712_v47 = vadd.f32 %v8698_v43, %v8692_v37  ;;  %v8713_v32 = vadd.f32 %v8698_v43, %v8693_v50 }
 0xde9   :  { %8718 = vst.msk [vmem:[%s16089_s22 + $0x18] sm:$0xff] %vm8571_vm2, %v8702_v55  ;;  %v8714_v5 = vadd.f32 %v8698_v43, %v8694_v41  ;;  %8719 = vst.msk [vmem:[%s16089_s22 + $0x20] sm:$0xff] %vm8571_vm2, %v8703_v12 }
 0xdea   :  { %8720 = vst.msk [vmem:[%s16089_s22 + $0x28] sm:$0xff] %vm8571_vm2, %v8704_v7  ;;  %8721 = vst.msk [vmem:[%s16089_s22 + $0x30] sm:$0xff] %vm8571_vm2, %v8705_v8 }
 0xdeb   :  { %8722 = vst.msk [vmem:[%s16089_s22 + $0x38] sm:$0xff] %vm8571_vm2, %v8706_v30  ;;  %8723 = vst.msk [vmem:[%s16089_s22 + $0x40] sm:$0xff] %vm8571_vm2, %v8707_v62 }
 0xdec   :  { %8724 = vst.msk [vmem:[%s16089_s22 + $0x48] sm:$0xff] %vm8571_vm2, %v8708_v13  ;;  %8725 = vst.msk [vmem:[%s16089_s22 + $0x50] sm:$0xff] %vm8571_vm2, %v8709_v3 }
 0xded   :  { %8726 = vst.msk [vmem:[%s16089_s22 + $0x58] sm:$0xff] %vm8571_vm2, %v8710_v14  ;;  %8727 = vst.msk [vmem:[%s16089_s22 + $0x60] sm:$0xff] %vm8571_vm2, %v8711_v25 }
 0xdee   :  { %8728 = vst.msk [vmem:[%s16089_s22 + $0x68] sm:$0xff] %vm8571_vm2, %v8712_v47  ;;  %8729 = vst.msk [vmem:[%s16089_s22 + $0x70] sm:$0xff] %vm8571_vm2, %v8713_v32 }
 0xdef   :  { %8730 = vst.msk [vmem:[%s16089_s22 + $0x78] sm:$0xff] %vm8571_vm2, %v8714_v5 }

</bundles_post_ra>
